<compile_context>
chip_gen: v7x
topology: tpu7x:2x2x1
jax: 0.10.0
libtpu: 0.0.40
codegen_flags: <defaults>
</compile_context>

<pallas_src>
import functools
import math

import jax
import jax.numpy as jnp
from jax.experimental import pallas as pl
from jax.experimental.pallas import tpu as pltpu

LEAKY_SLOPE = 0.01           # nn.LeakyReLU default
BN_EPS = 1e-5                # nn.BatchNorm2d default
NUM_ACTIONS = 6
VMEM_LIMIT_BYTES = 32 * 1024 * 1024   # explicit; far above actual use, fits all gens


def _vmem_specs(n):
    return [pl.BlockSpec(memory_space=pltpu.MemorySpace.VMEM) for _ in range(n)]


def _cparams():
    return pltpu.CompilerParams(vmem_limit_bytes=VMEM_LIMIT_BYTES)


# --------------------------------------------------------------------------
# Pallas kernels
# --------------------------------------------------------------------------
def _conv_bn_leaky_kernel(p_ref, w_ref, g_ref, b_ref, o_ref):
    """o = LeakyReLU(BatchNorm_train(patches @ w)).

    patches: [M, K] (f32 or bf16), w: [K, N] bf16, g/b: [1, N] f32,
    o: [M, N] bf16.  Whole tiles are VMEM resident.  BN uses per-channel batch
    statistics over the M = B*OH*OW rows with biased variance (torch forward()
    in training mode).  The conv bias is omitted: it is exactly cancelled by
    the BN mean subtraction.
    """
    y = jnp.dot(p_ref[...].astype(jnp.bfloat16), w_ref[...],
                preferred_element_type=jnp.float32)            # [M, N] f32 acc
    mean = jnp.mean(y, axis=0, keepdims=True)
    yc = y - mean
    var = jnp.mean(yc * yc, axis=0, keepdims=True)             # biased variance
    out = yc * (g_ref[...] * jax.lax.rsqrt(var + BN_EPS)) + b_ref[...]
    o_ref[...] = jnp.where(out > 0, out, LEAKY_SLOPE * out).astype(o_ref.dtype)


def conv_bn_leaky(patches, w_km, gamma, beta):
    M = patches.shape[0]
    N = w_km.shape[1]
    return pl.pallas_call(
        _conv_bn_leaky_kernel,
        out_shape=jax.ShapeDtypeStruct((M, N), jnp.bfloat16),
        in_specs=_vmem_specs(4),
        out_specs=pl.BlockSpec(memory_space=pltpu.MemorySpace.VMEM),
        compiler_params=_cparams(),
    )(patches, w_km, gamma, beta)


def _head_kernel(x_ref, w1_ref, b1_ref, wva_ref, bva_ref, w2_ref, b2_ref, o_ref):
    """Fused dense head + dueling combine.

       h  = LeakyReLU(x @ w1 + b1)                  [B, 256]
       va = ReLU(h @ wva + bva)                     [B, 128]  (value|advantage hidden)
       s  = va @ w2 + b2                            [B, 1+A]  (block-diagonal w2)
       q  = s[:, :1] + (s[:, 1:] - mean(s[:, 1:]))  [B, A]
    The mean is a scalar over ALL advantage elements, matching the reference
    `advantage.mean()` (no dim argument).
    """
    x = x_ref[...]                                             # bf16 [B, 3136]
    h = jnp.dot(x, w1_ref[...], preferred_element_type=jnp.float32) + b1_ref[...]
    h = jnp.where(h > 0, h, LEAKY_SLOPE * h)
    va = jnp.dot(h.astype(jnp.bfloat16), wva_ref[...],
                 preferred_element_type=jnp.float32) + bva_ref[...]
    va = jnp.maximum(va, 0.0)
    s = jnp.dot(va.astype(jnp.bfloat16), w2_ref[...],
                preferred_element_type=jnp.float32) + b2_ref[...]
    v = s[:, :1]
    a = s[:, 1:]
    o_ref[...] = v + (a - jnp.mean(a))


def dqnet_head(x, p):
    B = x.shape[0]
    A = p["va2_b"].shape[1] - 1
    return pl.pallas_call(
        _head_kernel,
        out_shape=jax.ShapeDtypeStruct((B, A), jnp.float32),
        in_specs=_vmem_specs(7),
        out_specs=pl.BlockSpec(memory_space=pltpu.MemorySpace.VMEM),
        compiler_params=_cparams(),
    )(x, p["fc1_w"], p["fc1_b"], p["va1_w"], p["va1_b"], p["va2_w"], p["va2_b"])


# --------------------------------------------------------------------------
# Glue: im2col patch extraction (plain-XLA strided slices; no extra transpose)
# --------------------------------------------------------------------------
def im2col_nhwc(x, k, s):
    """x:[B,H,W,C] -> patches [B*OH*OW, k*k*C] with (kh, kw, c) feature order
    (matches the packed conv weights, so no activation-side relayout)."""
    B, H, W, C = x.shape
    OH = (H - k) // s + 1
    OW = (W - k) // s + 1
    cols = []
    for i in range(k):
        for j in range(k):
            cols.append(x[:, i:i + s * OH:s, j:j + s * OW:s, :])   # [B,OH,OW,C]
    p = jnp.stack(cols, axis=3)                                    # [B,OH,OW,k*k,C]
    return p.reshape(B * OH * OW, k * k * C), OH, OW


# --------------------------------------------------------------------------
# Parameters: torch-layout init, then one-time packing into kernel layout
# --------------------------------------------------------------------------
def _uniform(key, shape, bound):
    return jax.random.uniform(key, shape, jnp.float32, -bound, bound)


def init_params(key, num_actions):
    """PyTorch-layout parameters (Conv2d [O,Cin,k,k], Linear [out,in]) with
    fan_in-uniform bounds like the nn.Conv2d / nn.Linear defaults."""
    keys = jax.random.split(key, 13)
    p = {}

    def conv_w(kw, o, c, ksz):
        bound = 1.0 / math.sqrt(c * ksz * ksz)
        return _uniform(kw, (o, c, ksz, ksz), bound)

    def lin(kw, kb, o, i):
        bound = 1.0 / math.sqrt(i)
        return _uniform(kw, (o, i), bound), _uniform(kb, (o,), bound)

    # Conv biases are intentionally not created: train-mode BatchNorm right
    # after each conv cancels them exactly (dead work otherwise).
    p["c1_w"] = conv_w(keys[0], 32, 4, 8)
    p["c2_w"] = conv_w(keys[1], 64, 32, 4)
    p["c3_w"] = conv_w(keys[2], 64, 64, 3)
    for name, ch in (("bn1", 32), ("bn2", 64), ("bn3", 64)):
        p[name + "_g"] = jnp.ones((ch,), jnp.float32)    # torch BN default init
        p[name + "_b"] = jnp.zeros((ch,), jnp.float32)
    p["fc1_w"], p["fc1_b"] = lin(keys[3], keys[4], 256, 64 * 7 * 7)
    p["v1_w"], p["v1_b"] = lin(keys[5], keys[6], 64, 256)
    p["v2_w"], p["v2_b"] = lin(keys[7], keys[8], 1, 64)
    p["a1_w"], p["a1_b"] = lin(keys[9], keys[10], 64, 256)
    p["a2_w"], p["a2_b"] = lin(keys[11], keys[12], num_actions, 64)
    return p


def pack_params(p, num_actions):
    """One-time re-layout of torch-layout params into kernel operands:
    permuted / transposed / concatenated GEMM weights in bf16, biases and BN
    affine params in f32 row vectors."""
    q = {}

    def pack_conv(w):   # [O,Cin,k,k] -> [k*k*Cin, O], (kh, kw, c) row order
        O = w.shape[0]
        return jnp.transpose(w, (2, 3, 1, 0)).reshape(-1, O).astype(jnp.bfloat16)

    q["c1_w"] = pack_conv(p["c1_w"])
    q["c2_w"] = pack_conv(p["c2_w"])
    q["c3_w"] = pack_conv(p["c3_w"])
    for n in ("bn1", "bn2", "bn3"):
        q[n + "_g"] = p[n + "_g"].reshape(1, -1)
        q[n + "_b"] = p[n + "_b"].reshape(1, -1)

    # fc1: permute the 3136 input columns from torch's NCHW flatten order
    # (c, h, w) to our NHWC flatten order (h, w, c); transpose to [in, out].
    w1 = (p["fc1_w"].reshape(256, 64, 7, 7)
          .transpose(0, 2, 3, 1).reshape(256, 64 * 7 * 7))
    q["fc1_w"] = jnp.transpose(w1).astype(jnp.bfloat16)          # [3136, 256]
    q["fc1_b"] = p["fc1_b"].reshape(1, -1)

    # value/advantage first layers fused into a single lane-dense N=128 GEMM.
    q["va1_w"] = jnp.transpose(
        jnp.concatenate([p["v1_w"], p["a1_w"]], axis=0)).astype(jnp.bfloat16)  # [256,128]
    q["va1_b"] = jnp.concatenate([p["v1_b"], p["a1_b"]]).reshape(1, -1)

    # value/advantage second layers as one block-diagonal [128, 1+A] GEMM:
    # rows 0..63 (value hidden) feed only column 0, rows 64..127 feed 1..A.
    w2 = jnp.zeros((128, 1 + num_actions), jnp.float32)
    w2 = w2.at[:64, 0:1].set(jnp.transpose(p["v2_w"]))
    w2 = w2.at[64:, 1:].set(jnp.transpose(p["a2_w"]))
    q["va2_w"] = w2.astype(jnp.bfloat16)
    q["va2_b"] = jnp.concatenate([p["v2_b"], p["a2_b"]]).reshape(1, -1)
    return q


# --------------------------------------------------------------------------
# Forward pass (== DQNet.forward, training-mode BN semantics)
# --------------------------------------------------------------------------
@jax.jit
def dqnet_forward(params, state_nchw):
    p = params
    B = state_nchw.shape[0]
    x = jnp.transpose(state_nchw, (0, 2, 3, 1))                 # NCHW -> NHWC

    def conv_block(x_nhwc, w_km, g, b, k, s):
        patches, OH, OW = im2col_nhwc(x_nhwc, k, s)
        y = conv_bn_leaky(patches, w_km, g, b)                  # [B*OH*OW, O] bf16
        return y.reshape(B, OH, OW, w_km.shape[1])

    x = conv_block(x, p["c1_w"], p["bn1_g"], p["bn1_b"], k=8, s=4)  # [B,20,20,32]
    x = conv_block(x, p["c2_w"], p["bn2_g"], p["bn2_b"], k=4, s=2)  # [B, 9, 9,64]
    x = conv_block(x, p["c3_w"], p["bn3_g"], p["bn3_b"], k=3, s=1)  # [B, 7, 7,64]

    # NHWC flatten; fc1 columns were permuted at pack time, so no transpose.
    x = x.reshape(B, 7 * 7 * 64)                                 # [B, 3136] bf16

    return dqnet_head(x, p)                                      # [B, num_actions]


if __name__ == "__main__":
    key = jax.random.PRNGKey(0)
    k_param, k_x = jax.random.split(key)

    raw = init_params(k_param, NUM_ACTIONS)
    params = pack_params(raw, NUM_ACTIONS)

    # Atari-DQN geometry: the 64*7*7 Linear requires 84x84 spatial input.
    state = jax.random.normal(k_x, (2, 4, 84, 84), dtype=jnp.float32)  # NCHW

    q = dqnet_forward(params, state)
    q = jax.block_until_ready(q)

    assert q.shape == (2, NUM_ACTIONS), q.shape
    assert bool(jnp.all(jnp.isfinite(q)))
    print("KERNEL_OK")
</pallas_src>

<mosaic_0001>
module attributes {stable_mosaic.version = 11 : i64} {
  func.func @_conv_bn_leaky_kernel(%arg0: memref<800x256xf32, #tpu.memory_space<vmem>>, %arg1: memref<256x32xbf16, #tpu.memory_space<vmem>>, %arg2: memref<1x32xf32, #tpu.memory_space<vmem>>, %arg3: memref<1x32xf32, #tpu.memory_space<vmem>>, %arg4: memref<800x32xbf16, #tpu.memory_space<vmem>>) attributes {dimension_semantics = [], scalar_prefetch = 0 : i64, scratch_operands = 0 : i64, tpu.core_type = #tpu.core_type<tc>} {
    %c0 = arith.constant 0 : index
    %c0_0 = arith.constant 0 : index
    %0 = vector.load %arg0[%c0, %c0_0] : memref<800x256xf32, #tpu.memory_space<vmem>>, vector<800x256xf32>
    %1 = arith.truncf %0 : vector<800x256xf32> to vector<800x256xbf16>
    %c0_1 = arith.constant 0 : index
    %c0_2 = arith.constant 0 : index
    %2 = vector.load %arg1[%c0_1, %c0_2] : memref<256x32xbf16, #tpu.memory_space<vmem>>, vector<256x32xbf16>
    %cst = arith.constant dense<0.000000e+00> : vector<800x32xf32>
    %3 = tpu.matmul %1, %2, %cst {dimension_numbers = #tpu.dot_dimension_numbers<[1], [0], [0], [1], [0, 0, 1, 1], [], []>} : vector<800x256xbf16>, vector<256x32xbf16>, vector<800x32xf32> -> vector<800x32xf32>
    %cst_3 = arith.constant dense<0.000000e+00> : vector<32xf32>
    %4 = vector.multi_reduction <add>, %3, %cst_3 [0] : vector<800x32xf32> to vector<32xf32>
    %5 = vector.shape_cast %4 : vector<32xf32> to vector<1x32xf32>
    %cst_4 = arith.constant 8.000000e+02 : f32
    %6 = vector.broadcast %cst_4 : f32 to vector<1x32xf32>
    %7 = arith.divf %5, %6 : vector<1x32xf32>
    %8 = vector.broadcast %7 : vector<1x32xf32> to vector<800x32xf32>
    %9 = arith.subf %3, %8 : vector<800x32xf32>
    %10 = arith.mulf %9, %9 : vector<800x32xf32>
    %cst_5 = arith.constant dense<0.000000e+00> : vector<32xf32>
    %11 = vector.multi_reduction <add>, %10, %cst_5 [0] : vector<800x32xf32> to vector<32xf32>
    %12 = vector.shape_cast %11 : vector<32xf32> to vector<1x32xf32>
    %cst_6 = arith.constant 8.000000e+02 : f32
    %13 = vector.broadcast %cst_6 : f32 to vector<1x32xf32>
    %14 = arith.divf %12, %13 : vector<1x32xf32>
    %c0_7 = arith.constant 0 : index
    %c0_8 = arith.constant 0 : index
    %15 = vector.load %arg2[%c0_7, %c0_8] : memref<1x32xf32, #tpu.memory_space<vmem>>, vector<1x32xf32>
    %cst_9 = arith.constant 9.99999974E-6 : f32
    %16 = vector.broadcast %cst_9 : f32 to vector<1x32xf32>
    %17 = arith.addf %14, %16 : vector<1x32xf32>
    %18 = math.rsqrt %17 : vector<1x32xf32>
    %19 = arith.mulf %15, %18 : vector<1x32xf32>
    %20 = vector.broadcast %19 : vector<1x32xf32> to vector<800x32xf32>
    %21 = arith.mulf %9, %20 : vector<800x32xf32>
    %c0_10 = arith.constant 0 : index
    %c0_11 = arith.constant 0 : index
    %22 = vector.load %arg3[%c0_10, %c0_11] : memref<1x32xf32, #tpu.memory_space<vmem>>, vector<1x32xf32>
    %23 = vector.broadcast %22 : vector<1x32xf32> to vector<800x32xf32>
    %24 = arith.addf %21, %23 : vector<800x32xf32>
    %cst_12 = arith.constant 0.000000e+00 : f32
    %25 = vector.broadcast %cst_12 : f32 to vector<800x32xf32>
    %26 = arith.cmpf ogt, %24, %25 : vector<800x32xf32>
    %cst_13 = arith.constant 0.00999999977 : f32
    %27 = vector.broadcast %cst_13 : f32 to vector<800x32xf32>
    %28 = arith.mulf %27, %24 : vector<800x32xf32>
    %29 = arith.select %26, %24, %28 : vector<800x32xi1>, vector<800x32xf32>
    %30 = arith.truncf %29 : vector<800x32xf32> to vector<800x32xbf16>
    %c0_14 = arith.constant 0 : index
    %c0_15 = arith.constant 0 : index
    %31 = vector.load %arg4[%c0_14, %c0_15] : memref<800x32xbf16, #tpu.memory_space<vmem>>, vector<800x32xbf16>
    tpu.vector_store %arg4[%c0_14, %c0_15], %30 {strides = array<i32>} : memref<800x32xbf16, #tpu.memory_space<vmem>>, vector<800x32xbf16>,
    return
  }
}

module attributes {stable_mosaic.version = 11 : i64} {
  func.func @_conv_bn_leaky_kernel(%arg0: memref<162x512xbf16, #tpu.memory_space<vmem>>, %arg1: memref<512x64xbf16, #tpu.memory_space<vmem>>, %arg2: memref<1x64xf32, #tpu.memory_space<vmem>>, %arg3: memref<1x64xf32, #tpu.memory_space<vmem>>, %arg4: memref<162x64xbf16, #tpu.memory_space<vmem>>) attributes {dimension_semantics = [], scalar_prefetch = 0 : i64, scratch_operands = 0 : i64, tpu.core_type = #tpu.core_type<tc>} {
    %c0 = arith.constant 0 : index
    %c0_0 = arith.constant 0 : index
    %0 = vector.load %arg0[%c0, %c0_0] : memref<162x512xbf16, #tpu.memory_space<vmem>>, vector<162x512xbf16>
    %c0_1 = arith.constant 0 : index
    %c0_2 = arith.constant 0 : index
    %1 = vector.load %arg1[%c0_1, %c0_2] : memref<512x64xbf16, #tpu.memory_space<vmem>>, vector<512x64xbf16>
    %cst = arith.constant dense<0.000000e+00> : vector<162x64xf32>
    %2 = tpu.matmul %0, %1, %cst {dimension_numbers = #tpu.dot_dimension_numbers<[1], [0], [0], [1], [0, 0, 1, 1], [], []>} : vector<162x512xbf16>, vector<512x64xbf16>, vector<162x64xf32> -> vector<162x64xf32>
    %cst_3 = arith.constant dense<0.000000e+00> : vector<64xf32>
    %3 = vector.multi_reduction <add>, %2, %cst_3 [0] : vector<162x64xf32> to vector<64xf32>
    %4 = vector.shape_cast %3 : vector<64xf32> to vector<1x64xf32>
    %cst_4 = arith.constant 1.620000e+02 : f32
    %5 = vector.broadcast %cst_4 : f32 to vector<1x64xf32>
    %6 = arith.divf %4, %5 : vector<1x64xf32>
    %7 = vector.broadcast %6 : vector<1x64xf32> to vector<162x64xf32>
    %8 = arith.subf %2, %7 : vector<162x64xf32>
    %9 = arith.mulf %8, %8 : vector<162x64xf32>
    %cst_5 = arith.constant dense<0.000000e+00> : vector<64xf32>
    %10 = vector.multi_reduction <add>, %9, %cst_5 [0] : vector<162x64xf32> to vector<64xf32>
    %11 = vector.shape_cast %10 : vector<64xf32> to vector<1x64xf32>
    %cst_6 = arith.constant 1.620000e+02 : f32
    %12 = vector.broadcast %cst_6 : f32 to vector<1x64xf32>
    %13 = arith.divf %11, %12 : vector<1x64xf32>
    %c0_7 = arith.constant 0 : index
    %c0_8 = arith.constant 0 : index
    %14 = vector.load %arg2[%c0_7, %c0_8] : memref<1x64xf32, #tpu.memory_space<vmem>>, vector<1x64xf32>
    %cst_9 = arith.constant 9.99999974E-6 : f32
    %15 = vector.broadcast %cst_9 : f32 to vector<1x64xf32>
    %16 = arith.addf %13, %15 : vector<1x64xf32>
    %17 = math.rsqrt %16 : vector<1x64xf32>
    %18 = arith.mulf %14, %17 : vector<1x64xf32>
    %19 = vector.broadcast %18 : vector<1x64xf32> to vector<162x64xf32>
    %20 = arith.mulf %8, %19 : vector<162x64xf32>
    %c0_10 = arith.constant 0 : index
    %c0_11 = arith.constant 0 : index
    %21 = vector.load %arg3[%c0_10, %c0_11] : memref<1x64xf32, #tpu.memory_space<vmem>>, vector<1x64xf32>
    %22 = vector.broadcast %21 : vector<1x64xf32> to vector<162x64xf32>
    %23 = arith.addf %20, %22 : vector<162x64xf32>
    %cst_12 = arith.constant 0.000000e+00 : f32
    %24 = vector.broadcast %cst_12 : f32 to vector<162x64xf32>
    %25 = arith.cmpf ogt, %23, %24 : vector<162x64xf32>
    %cst_13 = arith.constant 0.00999999977 : f32
    %26 = vector.broadcast %cst_13 : f32 to vector<162x64xf32>
    %27 = arith.mulf %26, %23 : vector<162x64xf32>
    %28 = arith.select %25, %23, %27 : vector<162x64xi1>, vector<162x64xf32>
    %29 = arith.truncf %28 : vector<162x64xf32> to vector<162x64xbf16>
    %c0_14 = arith.constant 0 : index
    %c0_15 = arith.constant 0 : index
    %30 = vector.load %arg4[%c0_14, %c0_15] : memref<162x64xbf16, #tpu.memory_space<vmem>>, vector<162x64xbf16>
    tpu.vector_store %arg4[%c0_14, %c0_15], %29 {strides = array<i32>} : memref<162x64xbf16, #tpu.memory_space<vmem>>, vector<162x64xbf16>,
    return
  }
}

module attributes {stable_mosaic.version = 11 : i64} {
  func.func @_conv_bn_leaky_kernel(%arg0: memref<98x576xbf16, #tpu.memory_space<vmem>>, %arg1: memref<576x64xbf16, #tpu.memory_space<vmem>>, %arg2: memref<1x64xf32, #tpu.memory_space<vmem>>, %arg3: memref<1x64xf32, #tpu.memory_space<vmem>>, %arg4: memref<98x64xbf16, #tpu.memory_space<vmem>>) attributes {dimension_semantics = [], scalar_prefetch = 0 : i64, scratch_operands = 0 : i64, tpu.core_type = #tpu.core_type<tc>} {
    %c0 = arith.constant 0 : index
    %c0_0 = arith.constant 0 : index
    %0 = vector.load %arg0[%c0, %c0_0] : memref<98x576xbf16, #tpu.memory_space<vmem>>, vector<98x576xbf16>
    %c0_1 = arith.constant 0 : index
    %c0_2 = arith.constant 0 : index
    %1 = vector.load %arg1[%c0_1, %c0_2] : memref<576x64xbf16, #tpu.memory_space<vmem>>, vector<576x64xbf16>
    %cst = arith.constant dense<0.000000e+00> : vector<98x64xf32>
    %2 = tpu.matmul %0, %1, %cst {dimension_numbers = #tpu.dot_dimension_numbers<[1], [0], [0], [1], [0, 0, 1, 1], [], []>} : vector<98x576xbf16>, vector<576x64xbf16>, vector<98x64xf32> -> vector<98x64xf32>
    %cst_3 = arith.constant dense<0.000000e+00> : vector<64xf32>
    %3 = vector.multi_reduction <add>, %2, %cst_3 [0] : vector<98x64xf32> to vector<64xf32>
    %4 = vector.shape_cast %3 : vector<64xf32> to vector<1x64xf32>
    %cst_4 = arith.constant 9.800000e+01 : f32
    %5 = vector.broadcast %cst_4 : f32 to vector<1x64xf32>
    %6 = arith.divf %4, %5 : vector<1x64xf32>
    %7 = vector.broadcast %6 : vector<1x64xf32> to vector<98x64xf32>
    %8 = arith.subf %2, %7 : vector<98x64xf32>
    %9 = arith.mulf %8, %8 : vector<98x64xf32>
    %cst_5 = arith.constant dense<0.000000e+00> : vector<64xf32>
    %10 = vector.multi_reduction <add>, %9, %cst_5 [0] : vector<98x64xf32> to vector<64xf32>
    %11 = vector.shape_cast %10 : vector<64xf32> to vector<1x64xf32>
    %cst_6 = arith.constant 9.800000e+01 : f32
    %12 = vector.broadcast %cst_6 : f32 to vector<1x64xf32>
    %13 = arith.divf %11, %12 : vector<1x64xf32>
    %c0_7 = arith.constant 0 : index
    %c0_8 = arith.constant 0 : index
    %14 = vector.load %arg2[%c0_7, %c0_8] : memref<1x64xf32, #tpu.memory_space<vmem>>, vector<1x64xf32>
    %cst_9 = arith.constant 9.99999974E-6 : f32
    %15 = vector.broadcast %cst_9 : f32 to vector<1x64xf32>
    %16 = arith.addf %13, %15 : vector<1x64xf32>
    %17 = math.rsqrt %16 : vector<1x64xf32>
    %18 = arith.mulf %14, %17 : vector<1x64xf32>
    %19 = vector.broadcast %18 : vector<1x64xf32> to vector<98x64xf32>
    %20 = arith.mulf %8, %19 : vector<98x64xf32>
    %c0_10 = arith.constant 0 : index
    %c0_11 = arith.constant 0 : index
    %21 = vector.load %arg3[%c0_10, %c0_11] : memref<1x64xf32, #tpu.memory_space<vmem>>, vector<1x64xf32>
    %22 = vector.broadcast %21 : vector<1x64xf32> to vector<98x64xf32>
    %23 = arith.addf %20, %22 : vector<98x64xf32>
    %cst_12 = arith.constant 0.000000e+00 : f32
    %24 = vector.broadcast %cst_12 : f32 to vector<98x64xf32>
    %25 = arith.cmpf ogt, %23, %24 : vector<98x64xf32>
    %cst_13 = arith.constant 0.00999999977 : f32
    %26 = vector.broadcast %cst_13 : f32 to vector<98x64xf32>
    %27 = arith.mulf %26, %23 : vector<98x64xf32>
    %28 = arith.select %25, %23, %27 : vector<98x64xi1>, vector<98x64xf32>
    %29 = arith.truncf %28 : vector<98x64xf32> to vector<98x64xbf16>
    %c0_14 = arith.constant 0 : index
    %c0_15 = arith.constant 0 : index
    %30 = vector.load %arg4[%c0_14, %c0_15] : memref<98x64xbf16, #tpu.memory_space<vmem>>, vector<98x64xbf16>
    tpu.vector_store %arg4[%c0_14, %c0_15], %29 {strides = array<i32>} : memref<98x64xbf16, #tpu.memory_space<vmem>>, vector<98x64xbf16>,
    return
  }
}

module attributes {stable_mosaic.version = 11 : i64} {
  func.func @_head_kernel(%arg0: memref<2x3136xbf16, #tpu.memory_space<vmem>>, %arg1: memref<3136x256xbf16, #tpu.memory_space<vmem>>, %arg2: memref<1x256xf32, #tpu.memory_space<vmem>>, %arg3: memref<256x128xbf16, #tpu.memory_space<vmem>>, %arg4: memref<1x128xf32, #tpu.memory_space<vmem>>, %arg5: memref<128x7xbf16, #tpu.memory_space<vmem>>, %arg6: memref<1x7xf32, #tpu.memory_space<vmem>>, %arg7: memref<2x6xf32, #tpu.memory_space<vmem>>) attributes {dimension_semantics = [], scalar_prefetch = 0 : i64, scratch_operands = 0 : i64, tpu.core_type = #tpu.core_type<tc>} {
    %c0 = arith.constant 0 : index
    %c0_0 = arith.constant 0 : index
    %0 = vector.load %arg0[%c0, %c0_0] : memref<2x3136xbf16, #tpu.memory_space<vmem>>, vector<2x3136xbf16>
    %c0_1 = arith.constant 0 : index
    %c0_2 = arith.constant 0 : index
    %1 = vector.load %arg1[%c0_1, %c0_2] : memref<3136x256xbf16, #tpu.memory_space<vmem>>, vector<3136x256xbf16>
    %cst = arith.constant dense<0.000000e+00> : vector<2x256xf32>
    %2 = tpu.matmul %0, %1, %cst {dimension_numbers = #tpu.dot_dimension_numbers<[1], [0], [0], [1], [0, 0, 1, 1], [], []>} : vector<2x3136xbf16>, vector<3136x256xbf16>, vector<2x256xf32> -> vector<2x256xf32>
    %c0_3 = arith.constant 0 : index
    %c0_4 = arith.constant 0 : index
    %3 = vector.load %arg2[%c0_3, %c0_4] : memref<1x256xf32, #tpu.memory_space<vmem>>, vector<1x256xf32>
    %4 = vector.broadcast %3 : vector<1x256xf32> to vector<2x256xf32>
    %5 = arith.addf %2, %4 : vector<2x256xf32>
    %cst_5 = arith.constant 0.000000e+00 : f32
    %6 = vector.broadcast %cst_5 : f32 to vector<2x256xf32>
    %7 = arith.cmpf ogt, %5, %6 : vector<2x256xf32>
    %cst_6 = arith.constant 0.00999999977 : f32
    %8 = vector.broadcast %cst_6 : f32 to vector<2x256xf32>
    %9 = arith.mulf %8, %5 : vector<2x256xf32>
    %10 = arith.select %7, %5, %9 : vector<2x256xi1>, vector<2x256xf32>
    %11 = arith.truncf %10 : vector<2x256xf32> to vector<2x256xbf16>
    %c0_7 = arith.constant 0 : index
    %c0_8 = arith.constant 0 : index
    %12 = vector.load %arg3[%c0_7, %c0_8] : memref<256x128xbf16, #tpu.memory_space<vmem>>, vector<256x128xbf16>
    %cst_9 = arith.constant dense<0.000000e+00> : vector<2x128xf32>
    %13 = tpu.matmul %11, %12, %cst_9 {dimension_numbers = #tpu.dot_dimension_numbers<[1], [0], [0], [1], [0, 0, 1, 1], [], []>} : vector<2x256xbf16>, vector<256x128xbf16>, vector<2x128xf32> -> vector<2x128xf32>
    %c0_10 = arith.constant 0 : index
    %c0_11 = arith.constant 0 : index
    %14 = vector.load %arg4[%c0_10, %c0_11] : memref<1x128xf32, #tpu.memory_space<vmem>>, vector<1x128xf32>
    %15 = vector.broadcast %14 : vector<1x128xf32> to vector<2x128xf32>
    %16 = arith.addf %13, %15 : vector<2x128xf32>
    %cst_12 = arith.constant 0.000000e+00 : f32
    %17 = vector.broadcast %cst_12 : f32 to vector<2x128xf32>
    %18 = arith.maximumf %16, %17 : vector<2x128xf32>
    %19 = arith.truncf %18 : vector<2x128xf32> to vector<2x128xbf16>
    %c0_13 = arith.constant 0 : index
    %c0_14 = arith.constant 0 : index
    %20 = vector.load %arg5[%c0_13, %c0_14] : memref<128x7xbf16, #tpu.memory_space<vmem>>, vector<128x7xbf16>
    %cst_15 = arith.constant dense<0.000000e+00> : vector<2x7xf32>
    %21 = tpu.matmul %19, %20, %cst_15 {dimension_numbers = #tpu.dot_dimension_numbers<[1], [0], [0], [1], [0, 0, 1, 1], [], []>} : vector<2x128xbf16>, vector<128x7xbf16>, vector<2x7xf32> -> vector<2x7xf32>
    %c0_16 = arith.constant 0 : index
    %c0_17 = arith.constant 0 : index
    %22 = vector.load %arg6[%c0_16, %c0_17] : memref<1x7xf32, #tpu.memory_space<vmem>>, vector<1x7xf32>
    %23 = vector.broadcast %22 : vector<1x7xf32> to vector<2x7xf32>
    %24 = arith.addf %21, %23 : vector<2x7xf32>
    %25 = vector.extract_strided_slice %24 {offsets = [0, 0], sizes = [2, 1], strides = [1, 1]} : vector<2x7xf32> to vector<2x1xf32>
    %26 = vector.extract_strided_slice %24 {offsets = [0, 1], sizes = [2, 6], strides = [1, 1]} : vector<2x7xf32> to vector<2x6xf32>
    %27 = vector.shape_cast %26 : vector<2x6xf32> to vector<1x2x6xf32>
    %cst_18 = arith.constant dense<0.000000e+00> : vector<1xf32>
    %28 = vector.multi_reduction <add>, %27, %cst_18 [1, 2] : vector<1x2x6xf32> to vector<1xf32>
    %29 = vector.shape_cast %28 : vector<1xf32> to vector<1x1x1xf32>
    %30 = vector.extract %29[0, 0, 0] : f32 from vector<1x1x1xf32>
    %cst_19 = arith.constant 1.200000e+01 : f32
    %31 = arith.divf %30, %cst_19 : f32
    %32 = vector.broadcast %31 : f32 to vector<2x6xf32>
    %33 = arith.subf %26, %32 : vector<2x6xf32>
    %34 = vector.broadcast %25 : vector<2x1xf32> to vector<2x6xf32>
    %35 = arith.addf %34, %33 : vector<2x6xf32>
    %c0_20 = arith.constant 0 : index
    %c0_21 = arith.constant 0 : index
    %36 = vector.load %arg7[%c0_20, %c0_21] : memref<2x6xf32, #tpu.memory_space<vmem>>, vector<2x6xf32>
    tpu.vector_store %arg7[%c0_20, %c0_21], %35 {strides = array<i32>} : memref<2x6xf32, #tpu.memory_space<vmem>>, vector<2x6xf32>,
    return
  }
}

</mosaic_0001>

<bundles_post_ra>
// kernel: dqnet_forward.4
= control target key start
LH: loop header
LB: loop body
LE: loop exit
PB: predicated region body
PF: predicated region fallthrough
CT: control target
= control target key end

     0   :  { %v2783_v0 = vmov 0   ;;  %vm879_vm0 = vcmask 261120   ;;  %s7256_s1 = inlined_call_operand.vmem [shape: bf16[256,32], index: 1, kind: input, shape index: {}]   ;;  %s7257_s0 = inlined_call_operand.vmem [shape: f32[800,256], index: 0, kind: input, shape index: {}]   ;;  %s7258_s2 = inlined_call_operand.vmem [shape: f32[1,32], index: 2, kind: input, shape index: {}]   ;;  %s7259_s3 = inlined_call_operand.vmem [shape: f32[1,32], index: 3, kind: input, shape index: {}]   ;;  %s7260_s4 = inlined_call_operand.vmem [shape: bf16[800,32], index: 4, kind: output, shape index: {}]  }
   0x1   :  { %446 = vmatprep.subr.bf16.mxu0 %v2783_v0  ;;  %v2765_v1 = vld [vmem:[%s7256_s1] sm:$0xff]   ;;  %2732 = vmatprep.subr.bf16.mxu1 %v2783_v0  ;;  %v2766_v2 = vld [vmem:[%s7256_s1 + $0x8] sm:$0xff]   ;;  %v2767_v3 = vld [vmem:[%s7256_s1 + $0x10] sm:$0xff]  }
   0x2   :  { %447 = vmatpush1.bf16.msra.mxu0 %v2765_v1  ;;  %2748 = vmatpush1.bf16.msra.mxu1 %v2765_v1  ;;  %v2768_v4 = vld [vmem:[%s7256_s1 + $0x18] sm:$0xff]   ;;  %v2769_v5 = vld [vmem:[%s7256_s1 + $0x20] sm:$0xff]   ;;  %v19_v6 = vld [vmem:[%s7257_s0 + $0x8] sm:$0xff] }
   0x3   :  { %448 = vmatprep.subr.bf16.mxu0 %v2783_v0  ;;  %2733 = vmatprep.subr.bf16.mxu1 %v2783_v0  ;;  %v21_v7 = vld [vmem:[%s7257_s0 + $0x18] sm:$0xff]  ;;  %v2770_v9 = vld [vmem:[%s7256_s1 + $0x28] sm:$0xff]   ;;  %v2771_v10 = vld [vmem:[%s7256_s1 + $0x30] sm:$0xff]  }
   0x4   :  { %v219_v8 = vpack.c.bf16 %v21_v7, %v19_v6  ;;  %v2772_v11 = vld [vmem:[%s7256_s1 + $0x38] sm:$0xff]   ;;  %v2773_v12 = vld [vmem:[%s7256_s1 + $0x40] sm:$0xff]   ;;  %v119_v13 = vld [vmem:[%s7257_s0 + $0x328] sm:$0xff] }
   0x5   :  { %v121_v14 = vld [vmem:[%s7257_s0 + $0x338] sm:$0xff]  ;;  %v2774_v15 = vld [vmem:[%s7256_s1 + $0x48] sm:$0xff]   ;;  %v2775_v17 = vld [vmem:[%s7256_s1 + $0x50] sm:$0xff]  }
   0x6   :  { %449 = vmatpush1.bf16.msra.mxu0 %v2766_v2  ;;  %2749 = vmatpush1.bf16.msra.mxu1 %v2766_v2  ;;  %v269_v16 = vpack.c.bf16 %v121_v14, %v119_v13  ;;  %v2776_v18 = vld [vmem:[%s7256_s1 + $0x58] sm:$0xff]   ;;  %v2777_v19 = vld [vmem:[%s7256_s1 + $0x60] sm:$0xff]   ;;  %v2778_v20 = vld [vmem:[%s7256_s1 + $0x68] sm:$0xff]  }
   0x7   :  { %450 = vmatprep.subr.bf16.mxu0 %v2783_v0  ;;  %2734 = vmatprep.subr.bf16.mxu1 %v2783_v0  ;;  %v2779_v21 = vld [vmem:[%s7256_s1 + $0x70] sm:$0xff]   ;;  %v2780_v22 = vld [vmem:[%s7256_s1 + $0x78] sm:$0xff]   ;;  %v18_v23 = vld [vmem:[%s7257_s0] sm:$0xff] }
   0x8   :  { %478 = vmatprep.mubr.bf16.mxu0 %v219_v8  ;;  %678 = vmatprep.mubr.bf16.mxu1 %v269_v16  ;;  %v20_v24 = vld [vmem:[%s7257_s0 + $0x10] sm:$0xff]  ;;  %v23_v25 = vld [vmem:[%s7257_s0 + $0x28] sm:$0xff]  ;;  %v118_v26 = vld [vmem:[%s7257_s0 + $0x320] sm:$0xff] }
   0x9   :  { %v120_v27 = vld [vmem:[%s7257_s0 + $0x330] sm:$0xff]  ;;  %v25_v28 = vld [vmem:[%s7257_s0 + $0x38] sm:$0xff]  ;;  %v123_v29 = vld [vmem:[%s7257_s0 + $0x348] sm:$0xff]  ;;  %v218_v31 = vpack.c.bf16 %v20_v24, %v18_v23 }
   0xa   :  { %451 = vmatpush1.bf16.msra.mxu0 %v2767_v3  ;;  %2750 = vmatpush1.bf16.msra.mxu1 %v2767_v3  ;;  %v125_v30 = vld [vmem:[%s7257_s0 + $0x358] sm:$0xff]  ;;  %v268_v32 = vpack.c.bf16 %v120_v27, %v118_v26  ;;  %v221_v33 = vpack.c.bf16 %v25_v28, %v23_v25  ;;  %v22_v35 = vld [vmem:[%s7257_s0 + $0x20] sm:$0xff]  ;;  %v24_v36 = vld [vmem:[%s7257_s0 + $0x30] sm:$0xff] }
   0xb   :  { %452 = vmatprep.subr.bf16.mxu0 %v2783_v0  ;;  %2735 = vmatprep.subr.bf16.mxu1 %v2783_v0  ;;  %v271_v34 = vpack.c.bf16 %v125_v30, %v123_v29  ;;  %v27_v37 = vld [vmem:[%s7257_s0 + $0x48] sm:$0xff]  ;;  %v122_v38 = vld [vmem:[%s7257_s0 + $0x340] sm:$0xff]  ;;  %v124_v39 = vld [vmem:[%s7257_s0 + $0x350] sm:$0xff]  ;;  %v220_v43 = vpack.c.bf16 %v24_v36, %v22_v35 }
   0xc   :  { %v29_v40 = vld [vmem:[%s7257_s0 + $0x58] sm:$0xff]  ;;  %v127_v41 = vld [vmem:[%s7257_s0 + $0x368] sm:$0xff]  ;;  %v270_v44 = vpack.c.bf16 %v124_v39, %v122_v38  ;;  %v26_v47 = vld [vmem:[%s7257_s0 + $0x40] sm:$0xff] }
   0xd   :  { %v129_v42 = vld [vmem:[%s7257_s0 + $0x378] sm:$0xff]  ;;  %v223_v45 = vpack.c.bf16 %v29_v40, %v27_v37  ;;  %v28_v48 = vld [vmem:[%s7257_s0 + $0x50] sm:$0xff]  ;;  %v31_v49 = vld [vmem:[%s7257_s0 + $0x68] sm:$0xff] }
   0xe   :  { %453 = vmatpush1.bf16.msra.mxu0 %v2768_v4  ;;  %2751 = vmatpush1.bf16.msra.mxu1 %v2768_v4  ;;  %v273_v46 = vpack.c.bf16 %v129_v42, %v127_v41  ;;  %v126_v50 = vld [vmem:[%s7257_s0 + $0x360] sm:$0xff]  ;;  %v128_v51 = vld [vmem:[%s7257_s0 + $0x370] sm:$0xff]  ;;  %v33_v52 = vld [vmem:[%s7257_s0 + $0x78] sm:$0xff]  ;;  %v222_v55 = vpack.c.bf16 %v28_v48, %v26_v47 }
   0xf   :  { %454 = vmatprep.subr.bf16.mxu0 %v2783_v0  ;;  %2736 = vmatprep.subr.bf16.mxu1 %v2783_v0  ;;  %v131_v53 = vld [vmem:[%s7257_s0 + $0x388] sm:$0xff]  ;;  %v133_v54 = vld [vmem:[%s7257_s0 + $0x398] sm:$0xff]  ;;  %v272_v56 = vpack.c.bf16 %v128_v51, %v126_v50  ;;  %v225_v57 = vpack.c.bf16 %v33_v52, %v31_v49  ;;  %v30_v59 = vld [vmem:[%s7257_s0 + $0x60] sm:$0xff] }
  0x10   :  { %v275_v58 = vpack.c.bf16 %v133_v54, %v131_v53  ;;  %v32_v60 = vld [vmem:[%s7257_s0 + $0x70] sm:$0xff]  ;;  %v35_v61 = vld [vmem:[%s7257_s0 + $0x88] sm:$0xff]  ;;  %v130_v62 = vld [vmem:[%s7257_s0 + $0x380] sm:$0xff] }
  0x11   :  { %v132_v63 = vld [vmem:[%s7257_s0 + $0x390] sm:$0xff]  ;;  %v135_v1 = vld [vmem:[%s7257_s0 + $0x3a8] sm:$0xff]  ;;  %v137_v2 = vld [vmem:[%s7257_s0 + $0x3b8] sm:$0xff]  ;;  %v224_v3 = vpack.c.bf16 %v32_v60, %v30_v59 }
  0x12   :  { %455 = vmatpush1.bf16.msra.mxu0 %v2769_v5  ;;  %2752 = vmatpush1.bf16.msra.mxu1 %v2769_v5  ;;  %v274_v4 = vpack.c.bf16 %v132_v63, %v130_v62  ;;  %v277_v6 = vpack.c.bf16 %v137_v2, %v135_v1  ;;  %v34_v7 = vld [vmem:[%s7257_s0 + $0x80] sm:$0xff]  ;;  %v36_v8 = vld [vmem:[%s7257_s0 + $0x90] sm:$0xff]  ;;  %v139_v13 = vld [vmem:[%s7257_s0 + $0x3c8] sm:$0xff] }
  0x13   :  { %456 = vmatprep.subr.bf16.mxu0 %v2783_v0  ;;  %2737 = vmatprep.subr.bf16.mxu1 %v2783_v0  ;;  %v141_v14 = vld [vmem:[%s7257_s0 + $0x3d8] sm:$0xff]  ;;  %v140_v23 = vld [vmem:[%s7257_s0 + $0x3d0] sm:$0xff]  ;;  %v143_v25 = vld [vmem:[%s7257_s0 + $0x3e8] sm:$0xff] }
  0x14   :  { %v45_v24 = vld [vmem:[%s7257_s0 + $0xd8] sm:$0xff]  ;;  %v144_v35 = vld [vmem:[%s7257_s0 + $0x3f0] sm:$0xff]  ;;  %v147_v37 = vld [vmem:[%s7257_s0 + $0x408] sm:$0xff] }
  0x15   :  { %v145_v26 = vld [vmem:[%s7257_s0 + $0x3f8] sm:$0xff]  ;;  %v148_v47 = vld [vmem:[%s7257_s0 + $0x410] sm:$0xff]  ;;  %v151_v49 = vld [vmem:[%s7257_s0 + $0x428] sm:$0xff] }
  0x16   :  { %457 = vmatpush1.bf16.msra.mxu0 %v2770_v9  ;;  %2753 = vmatpush1.bf16.msra.mxu1 %v2770_v9  ;;  %v39_v9 = vld [vmem:[%s7257_s0 + $0xa8] sm:$0xff]  ;;  %v281_v30 = vpack.c.bf16 %v145_v26, %v143_v25  ;;  %v49_v36 = vld [vmem:[%s7257_s0 + $0xf8] sm:$0xff]  ;;  %v152_v59 = vld [vmem:[%s7257_s0 + $0x430] sm:$0xff] }
  0x17   :  { %458 = vmatprep.subr.bf16.mxu0 %v2783_v0  ;;  %2738 = vmatprep.subr.bf16.mxu1 %v2783_v0  ;;  %v149_v38 = vld [vmem:[%s7257_s0 + $0x418] sm:$0xff] }
  0x18   :  { %v283_v42 = vpack.c.bf16 %v149_v38, %v147_v37  ;;  %v53_v48 = vld [vmem:[%s7257_s0 + $0x118] sm:$0xff] }
  0x19   :  { %v153_v50 = vld [vmem:[%s7257_s0 + $0x438] sm:$0xff] }
  0x1a   :  { %459 = vmatpush1.bf16.msra.mxu0 %v2771_v10  ;;  %2754 = vmatpush1.bf16.msra.mxu1 %v2771_v10  ;;  %v134_v10 = vld [vmem:[%s7257_s0 + $0x3a0] sm:$0xff]  ;;  %v285_v54 = vpack.c.bf16 %v153_v50, %v151_v49  ;;  %v57_v60 = vld [vmem:[%s7257_s0 + $0x138] sm:$0xff] }
  0x1b   :  { %460 = vmatprep.subr.bf16.mxu0 %v2783_v0  ;;  %2739 = vmatprep.subr.bf16.mxu1 %v2783_v0  ;;  %v157_v62 = vld [vmem:[%s7257_s0 + $0x458] sm:$0xff] }
  0x1e   :  { %461 = vmatpush1.bf16.msra.mxu0 %v2772_v11  ;;  %2755 = vmatpush1.bf16.msra.mxu1 %v2772_v11  ;;  %v136_v11 = vld [vmem:[%s7257_s0 + $0x3b0] sm:$0xff] }
  0x1f   :  { %462 = vmatprep.subr.bf16.mxu0 %v2783_v0  ;;  %2740 = vmatprep.subr.bf16.mxu1 %v2783_v0  ;;  %v276_v16 = vpack.c.bf16 %v136_v11, %v134_v10  ;;  %v161_v10 = vld [vmem:[%s7257_s0 + $0x478] sm:$0xff] }
  0x22   :  { %463 = vmatpush1.bf16.msra.mxu0 %v2773_v12  ;;  %2756 = vmatpush1.bf16.msra.mxu1 %v2773_v12  ;;  %v41_v12 = vld [vmem:[%s7257_s0 + $0xb8] sm:$0xff] }
  0x23   :  { %464 = vmatprep.subr.bf16.mxu0 %v2783_v0  ;;  %2741 = vmatprep.subr.bf16.mxu1 %v2783_v0 }
  0x26   :  { %465 = vmatpush1.bf16.msra.mxu0 %v2774_v15  ;;  %2757 = vmatpush1.bf16.msra.mxu1 %v2774_v15  ;;  %v226_v15 = vpack.c.bf16 %v36_v8, %v34_v7  ;;  %v156_v7 = vld [vmem:[%s7257_s0 + $0x450] sm:$0xff]  ;;  %v61_v8 = vld [vmem:[%s7257_s0 + $0x158] sm:$0xff] }
  0x27   :  { %466 = vmatprep.subr.bf16.mxu0 %v2783_v0  ;;  %2742 = vmatprep.subr.bf16.mxu1 %v2783_v0 }
  0x2a   :  { %467 = vmatpush1.bf16.msra.mxu0 %v2775_v17  ;;  %2758 = vmatpush1.bf16.msra.mxu1 %v2775_v17  ;;  %v229_v17 = vpack.c.bf16 %v41_v12, %v39_v9  ;;  %v159_v9 = vld [vmem:[%s7257_s0 + $0x468] sm:$0xff] }
  0x2b   :  { %468 = vmatprep.subr.bf16.mxu0 %v2783_v0  ;;  %2743 = vmatprep.subr.bf16.mxu1 %v2783_v0 }
  0x2e   :  { %469 = vmatpush1.bf16.msra.mxu0 %v2776_v18  ;;  %2759 = vmatpush1.bf16.msra.mxu1 %v2776_v18  ;;  %v279_v18 = vpack.c.bf16 %v141_v14, %v139_v13  ;;  %v289_v14 = vpack.c.bf16 %v161_v10, %v159_v9 }
  0x2f   :  { %470 = vmatprep.subr.bf16.mxu0 %v2783_v0  ;;  %2744 = vmatprep.subr.bf16.mxu1 %v2783_v0 }
  0x32   :  { %471 = vmatpush1.bf16.msra.mxu0 %v2777_v19  ;;  %2760 = vmatpush1.bf16.msra.mxu1 %v2777_v19  ;;  %v38_v19 = vld [vmem:[%s7257_s0 + $0xa0] sm:$0xff] }
  0x33   :  { %472 = vmatprep.subr.bf16.mxu0 %v2783_v0  ;;  %2745 = vmatprep.subr.bf16.mxu1 %v2783_v0 }
  0x36   :  { %473 = vmatpush1.bf16.msra.mxu0 %v2778_v20  ;;  %2761 = vmatpush1.bf16.msra.mxu1 %v2778_v20  ;;  %v40_v20 = vld [vmem:[%s7257_s0 + $0xb0] sm:$0xff] }
  0x37   :  { %474 = vmatprep.subr.bf16.mxu0 %v2783_v0  ;;  %2746 = vmatprep.subr.bf16.mxu1 %v2783_v0  ;;  %v228_v27 = vpack.c.bf16 %v40_v20, %v38_v19  ;;  %v160_v19 = vld [vmem:[%s7257_s0 + $0x470] sm:$0xff]  ;;  %v65_v20 = vld [vmem:[%s7257_s0 + $0x178] sm:$0xff] }
  0x3a   :  { %475 = vmatpush1.bf16.msra.mxu0 %v2779_v21  ;;  %2762 = vmatpush1.bf16.msra.mxu1 %v2779_v21  ;;  %v43_v21 = vld [vmem:[%s7257_s0 + $0xc8] sm:$0xff] }
  0x3b   :  { %476 = vmatprep.subr.bf16.mxu0 %v2783_v0  ;;  %2747 = vmatprep.subr.bf16.mxu1 %v2783_v0  ;;  %v37_v0 = vld [vmem:[%s7257_s0 + $0x98] sm:$0xff]  ;;  %v231_v29 = vpack.c.bf16 %v45_v24, %v43_v21  ;;  %v163_v21 = vld [vmem:[%s7257_s0 + $0x488] sm:$0xff] }
  0x3c   :  { %v227_v5 = vpack.c.bf16 %v37_v0, %v35_v61  ;;  %v155_v61 = vld [vmem:[%s7257_s0 + $0x448] sm:$0xff] }
  0x3d   :  { %v287_v2 = vpack.c.bf16 %v157_v62, %v155_v61 }
  0x3e   :  { %477 = vmatpush1.bf16.msra.mxu0 %v2780_v22  ;;  %2763 = vmatpush1.bf16.msra.mxu1 %v2780_v22  ;;  %v138_v22 = vld [vmem:[%s7257_s0 + $0x3c0] sm:$0xff] }
  0x3f   :  { %v278_v28 = vpack.c.bf16 %v140_v23, %v138_v22  ;;  %v165_v22 = vld [vmem:[%s7257_s0 + $0x498] sm:$0xff] }
  0x40   :  { %v291_v26 = vpack.c.bf16 %v165_v22, %v163_v21 }
  0x41   :  { %479 = vmatmul.mubr.bf16.vlgmr.msra.gmra.mrb[0].mxu0 %v218_v31  ;;  %679 = vmatmul.mubr.bf16.vlgmr.msra.gmra.mrb[0].mxu1 %v268_v32  ;;  %v42_v31 = vld [vmem:[%s7257_s0 + $0xc0] sm:$0xff]  ;;  %v44_v32 = vld [vmem:[%s7257_s0 + $0xd0] sm:$0xff] }
  0x42   :  { %486 = vmatprep.mubr.bf16.mxu0 %v221_v33  ;;  %686 = vmatprep.mubr.bf16.mxu1 %v271_v34  ;;  %v47_v33 = vld [vmem:[%s7257_s0 + $0xe8] sm:$0xff]  ;;  %v142_v34 = vld [vmem:[%s7257_s0 + $0x3e0] sm:$0xff]  ;;  %v230_v39 = vpack.c.bf16 %v44_v32, %v42_v31  ;;  %v164_v31 = vld [vmem:[%s7257_s0 + $0x490] sm:$0xff] }
  0x43   :  { %v280_v40 = vpack.c.bf16 %v144_v35, %v142_v34  ;;  %v233_v41 = vpack.c.bf16 %v49_v36, %v47_v33  ;;  %v69_v32 = vld [vmem:[%s7257_s0 + $0x198] sm:$0xff]  ;;  %v167_v33 = vld [vmem:[%s7257_s0 + $0x4a8] sm:$0xff] }
  0x44   :  { %v169_v34 = vld [vmem:[%s7257_s0 + $0x4b8] sm:$0xff] }
  0x45   :  { %v293_v38 = vpack.c.bf16 %v169_v34, %v167_v33 }
  0x49   :  { %487 = vmatmul.mubr.bf16.gmra.mrb[4].mxu0 %v220_v43  ;;  %687 = vmatmul.mubr.bf16.gmra.mrb[4].mxu1 %v270_v44  ;;  %v46_v43 = vld [vmem:[%s7257_s0 + $0xe0] sm:$0xff]  ;;  %v48_v44 = vld [vmem:[%s7257_s0 + $0xf0] sm:$0xff] }
  0x4a   :  { %494 = vmatprep.mubr.bf16.mxu0 %v223_v45  ;;  %694 = vmatprep.mubr.bf16.mxu1 %v273_v46  ;;  %v51_v45 = vld [vmem:[%s7257_s0 + $0x108] sm:$0xff]  ;;  %v146_v46 = vld [vmem:[%s7257_s0 + $0x400] sm:$0xff]  ;;  %v232_v51 = vpack.c.bf16 %v48_v44, %v46_v43  ;;  %v168_v43 = vld [vmem:[%s7257_s0 + $0x4b0] sm:$0xff] }
  0x4b   :  { %v282_v52 = vpack.c.bf16 %v148_v47, %v146_v46  ;;  %v235_v53 = vpack.c.bf16 %v53_v48, %v51_v45  ;;  %v73_v44 = vld [vmem:[%s7257_s0 + $0x1b8] sm:$0xff]  ;;  %v171_v45 = vld [vmem:[%s7257_s0 + $0x4c8] sm:$0xff] }
  0x4c   :  { %v173_v46 = vld [vmem:[%s7257_s0 + $0x4d8] sm:$0xff] }
  0x4d   :  { %v295_v50 = vpack.c.bf16 %v173_v46, %v171_v45 }
  0x51   :  { %495 = vmatmul.mubr.bf16.gmra.mrb[8].mxu0 %v222_v55  ;;  %695 = vmatmul.mubr.bf16.gmra.mrb[8].mxu1 %v272_v56  ;;  %v50_v55 = vld [vmem:[%s7257_s0 + $0x100] sm:$0xff]  ;;  %v52_v56 = vld [vmem:[%s7257_s0 + $0x110] sm:$0xff] }
  0x52   :  { %502 = vmatprep.mubr.bf16.mxu0 %v225_v57  ;;  %702 = vmatprep.mubr.bf16.mxu1 %v275_v58  ;;  %v55_v57 = vld [vmem:[%s7257_s0 + $0x128] sm:$0xff]  ;;  %v150_v58 = vld [vmem:[%s7257_s0 + $0x420] sm:$0xff]  ;;  %v234_v63 = vpack.c.bf16 %v52_v56, %v50_v55  ;;  %v172_v55 = vld [vmem:[%s7257_s0 + $0x4d0] sm:$0xff] }
  0x53   :  { %v284_v0 = vpack.c.bf16 %v152_v59, %v150_v58  ;;  %v237_v1 = vpack.c.bf16 %v57_v60, %v55_v57  ;;  %v77_v56 = vld [vmem:[%s7257_s0 + $0x1d8] sm:$0xff]  ;;  %v175_v57 = vld [vmem:[%s7257_s0 + $0x4e8] sm:$0xff] }
  0x54   :  { %v177_v58 = vld [vmem:[%s7257_s0 + $0x4f8] sm:$0xff] }
  0x55   :  { %v297_v62 = vpack.c.bf16 %v177_v58, %v175_v57 }
  0x59   :  { %503 = vmatmul.mubr.bf16.gmra.mrb[12].mxu0 %v224_v3  ;;  %703 = vmatmul.mubr.bf16.gmra.mrb[12].mxu1 %v274_v4  ;;  %v54_v3 = vld [vmem:[%s7257_s0 + $0x120] sm:$0xff]  ;;  %v56_v4 = vld [vmem:[%s7257_s0 + $0x130] sm:$0xff] }
  0x5a   :  { %510 = vmatprep.mubr.bf16.mxu0 %v227_v5  ;;  %710 = vmatprep.mubr.bf16.mxu1 %v277_v6  ;;  %v59_v5 = vld [vmem:[%s7257_s0 + $0x148] sm:$0xff]  ;;  %v154_v6 = vld [vmem:[%s7257_s0 + $0x440] sm:$0xff]  ;;  %v236_v11 = vpack.c.bf16 %v56_v4, %v54_v3  ;;  %v176_v3 = vld [vmem:[%s7257_s0 + $0x4f0] sm:$0xff] }
  0x5b   :  { %v286_v12 = vpack.c.bf16 %v156_v7, %v154_v6  ;;  %v239_v13 = vpack.c.bf16 %v61_v8, %v59_v5  ;;  %v81_v4 = vld [vmem:[%s7257_s0 + $0x1f8] sm:$0xff]  ;;  %v179_v5 = vld [vmem:[%s7257_s0 + $0x508] sm:$0xff] }
  0x5c   :  { %v181_v6 = vld [vmem:[%s7257_s0 + $0x518] sm:$0xff] }
  0x5d   :  { %v299_v10 = vpack.c.bf16 %v181_v6, %v179_v5 }
  0x61   :  { %511 = vmatmul.mubr.bf16.gmra.mrb[16].mxu0 %v226_v15  ;;  %711 = vmatmul.mubr.bf16.gmra.mrb[16].mxu1 %v276_v16  ;;  %v58_v15 = vld [vmem:[%s7257_s0 + $0x140] sm:$0xff]  ;;  %v60_v16 = vld [vmem:[%s7257_s0 + $0x150] sm:$0xff] }
  0x62   :  { %518 = vmatprep.mubr.bf16.mxu0 %v229_v17  ;;  %718 = vmatprep.mubr.bf16.mxu1 %v279_v18  ;;  %v63_v17 = vld [vmem:[%s7257_s0 + $0x168] sm:$0xff]  ;;  %v158_v18 = vld [vmem:[%s7257_s0 + $0x460] sm:$0xff]  ;;  %v238_v23 = vpack.c.bf16 %v60_v16, %v58_v15  ;;  %v180_v15 = vld [vmem:[%s7257_s0 + $0x510] sm:$0xff] }
  0x63   :  { %v288_v24 = vpack.c.bf16 %v160_v19, %v158_v18  ;;  %v241_v25 = vpack.c.bf16 %v65_v20, %v63_v17  ;;  %v85_v16 = vld [vmem:[%s7257_s0 + $0x218] sm:$0xff]  ;;  %v183_v17 = vld [vmem:[%s7257_s0 + $0x528] sm:$0xff] }
  0x64   :  { %v185_v18 = vld [vmem:[%s7257_s0 + $0x538] sm:$0xff] }
  0x65   :  { %v301_v22 = vpack.c.bf16 %v185_v18, %v183_v17 }
  0x69   :  { %519 = vmatmul.mubr.bf16.gmra.mrb[20].mxu0 %v228_v27  ;;  %719 = vmatmul.mubr.bf16.gmra.mrb[20].mxu1 %v278_v28  ;;  %v62_v27 = vld [vmem:[%s7257_s0 + $0x160] sm:$0xff]  ;;  %v64_v28 = vld [vmem:[%s7257_s0 + $0x170] sm:$0xff] }
  0x6a   :  { %526 = vmatprep.mubr.bf16.mxu0 %v231_v29  ;;  %726 = vmatprep.mubr.bf16.mxu1 %v281_v30  ;;  %v67_v29 = vld [vmem:[%s7257_s0 + $0x188] sm:$0xff]  ;;  %v162_v30 = vld [vmem:[%s7257_s0 + $0x480] sm:$0xff]  ;;  %v240_v35 = vpack.c.bf16 %v64_v28, %v62_v27  ;;  %v184_v27 = vld [vmem:[%s7257_s0 + $0x530] sm:$0xff] }
  0x6b   :  { %v290_v36 = vpack.c.bf16 %v164_v31, %v162_v30  ;;  %v243_v37 = vpack.c.bf16 %v69_v32, %v67_v29  ;;  %v89_v28 = vld [vmem:[%s7257_s0 + $0x238] sm:$0xff]  ;;  %v187_v29 = vld [vmem:[%s7257_s0 + $0x548] sm:$0xff] }
  0x6c   :  { %v189_v30 = vld [vmem:[%s7257_s0 + $0x558] sm:$0xff] }
  0x6d   :  { %v303_v34 = vpack.c.bf16 %v189_v30, %v187_v29 }
  0x71   :  { %527 = vmatmul.mubr.bf16.gmra.mrb[24].mxu0 %v230_v39  ;;  %727 = vmatmul.mubr.bf16.gmra.mrb[24].mxu1 %v280_v40  ;;  %v66_v39 = vld [vmem:[%s7257_s0 + $0x180] sm:$0xff]  ;;  %v68_v40 = vld [vmem:[%s7257_s0 + $0x190] sm:$0xff] }
  0x72   :  { %534 = vmatprep.mubr.bf16.mxu0 %v233_v41  ;;  %734 = vmatprep.mubr.bf16.mxu1 %v283_v42  ;;  %v71_v41 = vld [vmem:[%s7257_s0 + $0x1a8] sm:$0xff]  ;;  %v166_v42 = vld [vmem:[%s7257_s0 + $0x4a0] sm:$0xff]  ;;  %v242_v47 = vpack.c.bf16 %v68_v40, %v66_v39  ;;  %v188_v39 = vld [vmem:[%s7257_s0 + $0x550] sm:$0xff] }
  0x73   :  { %v292_v48 = vpack.c.bf16 %v168_v43, %v166_v42  ;;  %v245_v49 = vpack.c.bf16 %v73_v44, %v71_v41  ;;  %v93_v40 = vld [vmem:[%s7257_s0 + $0x258] sm:$0xff]  ;;  %v191_v41 = vld [vmem:[%s7257_s0 + $0x568] sm:$0xff] }
  0x74   :  { %v193_v42 = vld [vmem:[%s7257_s0 + $0x578] sm:$0xff] }
  0x75   :  { %v305_v46 = vpack.c.bf16 %v193_v42, %v191_v41 }
  0x79   :  { %535 = vmatmul.mubr.bf16.gmra.mrb[28].mxu0 %v232_v51  ;;  %735 = vmatmul.mubr.bf16.gmra.mrb[28].mxu1 %v282_v52  ;;  %v70_v51 = vld [vmem:[%s7257_s0 + $0x1a0] sm:$0xff]  ;;  %v72_v52 = vld [vmem:[%s7257_s0 + $0x1b0] sm:$0xff] }
  0x7a   :  { %542 = vmatprep.mubr.bf16.mxu0 %v235_v53  ;;  %742 = vmatprep.mubr.bf16.mxu1 %v285_v54  ;;  %v75_v53 = vld [vmem:[%s7257_s0 + $0x1c8] sm:$0xff]  ;;  %v170_v54 = vld [vmem:[%s7257_s0 + $0x4c0] sm:$0xff]  ;;  %v244_v59 = vpack.c.bf16 %v72_v52, %v70_v51  ;;  %v192_v51 = vld [vmem:[%s7257_s0 + $0x570] sm:$0xff] }
  0x7b   :  { %v294_v60 = vpack.c.bf16 %v172_v55, %v170_v54  ;;  %v247_v61 = vpack.c.bf16 %v77_v56, %v75_v53  ;;  %v97_v52 = vld [vmem:[%s7257_s0 + $0x278] sm:$0xff]  ;;  %v195_v53 = vld [vmem:[%s7257_s0 + $0x588] sm:$0xff] }
  0x7c   :  { %v197_v54 = vld [vmem:[%s7257_s0 + $0x598] sm:$0xff] }
  0x7d   :  { %v307_v58 = vpack.c.bf16 %v197_v54, %v195_v53 }
  0x81   :  { %543 = vmatmul.mubr.bf16.gmra.mrb[32].mxu0 %v234_v63  ;;  %743 = vmatmul.mubr.bf16.gmra.mrb[32].mxu1 %v284_v0  ;;  %v74_v63 = vld [vmem:[%s7257_s0 + $0x1c0] sm:$0xff]  ;;  %v76_v0 = vld [vmem:[%s7257_s0 + $0x1d0] sm:$0xff] }
  0x82   :  { %550 = vmatprep.mubr.bf16.mxu0 %v237_v1  ;;  %750 = vmatprep.mubr.bf16.mxu1 %v287_v2  ;;  %v79_v1 = vld [vmem:[%s7257_s0 + $0x1e8] sm:$0xff]  ;;  %v174_v2 = vld [vmem:[%s7257_s0 + $0x4e0] sm:$0xff]  ;;  %v246_v7 = vpack.c.bf16 %v76_v0, %v74_v63  ;;  %v196_v63 = vld [vmem:[%s7257_s0 + $0x590] sm:$0xff] }
  0x83   :  { %v296_v8 = vpack.c.bf16 %v176_v3, %v174_v2  ;;  %v249_v9 = vpack.c.bf16 %v81_v4, %v79_v1  ;;  %v101_v0 = vld [vmem:[%s7257_s0 + $0x298] sm:$0xff]  ;;  %v199_v1 = vld [vmem:[%s7257_s0 + $0x5a8] sm:$0xff] }
  0x84   :  { %v201_v2 = vld [vmem:[%s7257_s0 + $0x5b8] sm:$0xff] }
  0x85   :  { %v309_v6 = vpack.c.bf16 %v201_v2, %v199_v1 }
  0x89   :  { %551 = vmatmul.mubr.bf16.gmra.mrb[36].mxu0 %v236_v11  ;;  %751 = vmatmul.mubr.bf16.gmra.mrb[36].mxu1 %v286_v12  ;;  %v78_v11 = vld [vmem:[%s7257_s0 + $0x1e0] sm:$0xff]  ;;  %v80_v12 = vld [vmem:[%s7257_s0 + $0x1f0] sm:$0xff] }
  0x8a   :  { %558 = vmatprep.mubr.bf16.mxu0 %v239_v13  ;;  %758 = vmatprep.mubr.bf16.mxu1 %v289_v14  ;;  %v83_v13 = vld [vmem:[%s7257_s0 + $0x208] sm:$0xff]  ;;  %v178_v14 = vld [vmem:[%s7257_s0 + $0x500] sm:$0xff]  ;;  %v248_v19 = vpack.c.bf16 %v80_v12, %v78_v11  ;;  %v200_v11 = vld [vmem:[%s7257_s0 + $0x5b0] sm:$0xff] }
  0x8b   :  { %v298_v20 = vpack.c.bf16 %v180_v15, %v178_v14  ;;  %v251_v21 = vpack.c.bf16 %v85_v16, %v83_v13  ;;  %v105_v12 = vld [vmem:[%s7257_s0 + $0x2b8] sm:$0xff]  ;;  %v203_v13 = vld [vmem:[%s7257_s0 + $0x5c8] sm:$0xff] }
  0x8c   :  { %v205_v14 = vld [vmem:[%s7257_s0 + $0x5d8] sm:$0xff] }
  0x8d   :  { %v311_v18 = vpack.c.bf16 %v205_v14, %v203_v13 }
  0x91   :  { %559 = vmatmul.mubr.bf16.gmra.mrb[40].mxu0 %v238_v23  ;;  %759 = vmatmul.mubr.bf16.gmra.mrb[40].mxu1 %v288_v24  ;;  %v82_v23 = vld [vmem:[%s7257_s0 + $0x200] sm:$0xff]  ;;  %v84_v24 = vld [vmem:[%s7257_s0 + $0x210] sm:$0xff] }
  0x92   :  { %566 = vmatprep.mubr.bf16.mxu0 %v241_v25  ;;  %766 = vmatprep.mubr.bf16.mxu1 %v291_v26  ;;  %v87_v25 = vld [vmem:[%s7257_s0 + $0x228] sm:$0xff]  ;;  %v182_v26 = vld [vmem:[%s7257_s0 + $0x520] sm:$0xff]  ;;  %v250_v31 = vpack.c.bf16 %v84_v24, %v82_v23  ;;  %v204_v23 = vld [vmem:[%s7257_s0 + $0x5d0] sm:$0xff] }
  0x93   :  { %v300_v32 = vpack.c.bf16 %v184_v27, %v182_v26  ;;  %v253_v33 = vpack.c.bf16 %v89_v28, %v87_v25  ;;  %v109_v24 = vld [vmem:[%s7257_s0 + $0x2d8] sm:$0xff]  ;;  %v207_v25 = vld [vmem:[%s7257_s0 + $0x5e8] sm:$0xff] }
  0x94   :  { %v209_v26 = vld [vmem:[%s7257_s0 + $0x5f8] sm:$0xff] }
  0x95   :  { %v313_v30 = vpack.c.bf16 %v209_v26, %v207_v25 }
  0x99   :  { %567 = vmatmul.mubr.bf16.gmra.mrb[44].mxu0 %v240_v35  ;;  %767 = vmatmul.mubr.bf16.gmra.mrb[44].mxu1 %v290_v36  ;;  %v86_v35 = vld [vmem:[%s7257_s0 + $0x220] sm:$0xff]  ;;  %v88_v36 = vld [vmem:[%s7257_s0 + $0x230] sm:$0xff] }
  0x9a   :  { %574 = vmatprep.mubr.bf16.mxu0 %v243_v37  ;;  %774 = vmatprep.mubr.bf16.mxu1 %v293_v38  ;;  %v91_v37 = vld [vmem:[%s7257_s0 + $0x248] sm:$0xff]  ;;  %v186_v38 = vld [vmem:[%s7257_s0 + $0x540] sm:$0xff]  ;;  %v252_v43 = vpack.c.bf16 %v88_v36, %v86_v35  ;;  %v208_v35 = vld [vmem:[%s7257_s0 + $0x5f0] sm:$0xff] }
  0x9b   :  { %v302_v44 = vpack.c.bf16 %v188_v39, %v186_v38  ;;  %v255_v45 = vpack.c.bf16 %v93_v40, %v91_v37  ;;  %v113_v36 = vld [vmem:[%s7257_s0 + $0x2f8] sm:$0xff]  ;;  %v211_v37 = vld [vmem:[%s7257_s0 + $0x608] sm:$0xff] }
  0x9c   :  { %v213_v38 = vld [vmem:[%s7257_s0 + $0x618] sm:$0xff] }
  0x9d   :  { %v315_v42 = vpack.c.bf16 %v213_v38, %v211_v37 }
  0xa1   :  { %575 = vmatmul.mubr.bf16.gmra.mrb[48].mxu0 %v242_v47  ;;  %775 = vmatmul.mubr.bf16.gmra.mrb[48].mxu1 %v292_v48  ;;  %v90_v47 = vld [vmem:[%s7257_s0 + $0x240] sm:$0xff]  ;;  %v92_v48 = vld [vmem:[%s7257_s0 + $0x250] sm:$0xff] }
  0xa2   :  { %582 = vmatprep.mubr.bf16.mxu0 %v245_v49  ;;  %782 = vmatprep.mubr.bf16.mxu1 %v295_v50  ;;  %v95_v49 = vld [vmem:[%s7257_s0 + $0x268] sm:$0xff]  ;;  %v190_v50 = vld [vmem:[%s7257_s0 + $0x560] sm:$0xff]  ;;  %v254_v55 = vpack.c.bf16 %v92_v48, %v90_v47  ;;  %v212_v47 = vld [vmem:[%s7257_s0 + $0x610] sm:$0xff] }
  0xa3   :  { %v304_v56 = vpack.c.bf16 %v192_v51, %v190_v50  ;;  %v257_v57 = vpack.c.bf16 %v97_v52, %v95_v49  ;;  %v117_v48 = vld [vmem:[%s7257_s0 + $0x318] sm:$0xff]  ;;  %v215_v49 = vld [vmem:[%s7257_s0 + $0x628] sm:$0xff] }
  0xa4   :  { %v217_v50 = vld [vmem:[%s7257_s0 + $0x638] sm:$0xff] }
  0xa5   :  { %v317_v54 = vpack.c.bf16 %v217_v50, %v215_v49 }
  0xa9   :  { %583 = vmatmul.mubr.bf16.gmra.mrb[52].mxu0 %v244_v59  ;;  %783 = vmatmul.mubr.bf16.gmra.mrb[52].mxu1 %v294_v60  ;;  %v94_v59 = vld [vmem:[%s7257_s0 + $0x260] sm:$0xff]  ;;  %v96_v60 = vld [vmem:[%s7257_s0 + $0x270] sm:$0xff] }
  0xaa   :  { %590 = vmatprep.mubr.bf16.mxu0 %v247_v61  ;;  %790 = vmatprep.mubr.bf16.mxu1 %v297_v62  ;;  %v99_v61 = vld [vmem:[%s7257_s0 + $0x288] sm:$0xff]  ;;  %v194_v62 = vld [vmem:[%s7257_s0 + $0x580] sm:$0xff]  ;;  %v256_v3 = vpack.c.bf16 %v96_v60, %v94_v59 }
  0xab   :  { %v306_v4 = vpack.c.bf16 %v196_v63, %v194_v62  ;;  %v259_v5 = vpack.c.bf16 %v101_v0, %v99_v61 }
  0xb1   :  { %591 = vmatmul.mubr.bf16.gmra.mrb[56].mxu0 %v246_v7  ;;  %791 = vmatmul.mubr.bf16.gmra.mrb[56].mxu1 %v296_v8  ;;  %v98_v7 = vld [vmem:[%s7257_s0 + $0x280] sm:$0xff]  ;;  %v100_v8 = vld [vmem:[%s7257_s0 + $0x290] sm:$0xff] }
  0xb2   :  { %598 = vmatprep.mubr.bf16.mxu0 %v249_v9  ;;  %798 = vmatprep.mubr.bf16.mxu1 %v299_v10  ;;  %v103_v9 = vld [vmem:[%s7257_s0 + $0x2a8] sm:$0xff]  ;;  %v198_v10 = vld [vmem:[%s7257_s0 + $0x5a0] sm:$0xff]  ;;  %v258_v15 = vpack.c.bf16 %v100_v8, %v98_v7 }
  0xb3   :  { %v308_v16 = vpack.c.bf16 %v200_v11, %v198_v10  ;;  %v261_v17 = vpack.c.bf16 %v105_v12, %v103_v9 }
  0xb9   :  { %599 = vmatmul.mubr.bf16.gmra.mrb[60].mxu0 %v248_v19  ;;  %799 = vmatmul.mubr.bf16.gmra.mrb[60].mxu1 %v298_v20  ;;  %v102_v19 = vld [vmem:[%s7257_s0 + $0x2a0] sm:$0xff]  ;;  %v104_v20 = vld [vmem:[%s7257_s0 + $0x2b0] sm:$0xff] }
  0xba   :  { %606 = vmatprep.mubr.bf16.mxu0 %v251_v21  ;;  %806 = vmatprep.mubr.bf16.mxu1 %v301_v22  ;;  %v107_v21 = vld [vmem:[%s7257_s0 + $0x2c8] sm:$0xff]  ;;  %v202_v22 = vld [vmem:[%s7257_s0 + $0x5c0] sm:$0xff]  ;;  %v260_v27 = vpack.c.bf16 %v104_v20, %v102_v19 }
  0xbb   :  { %v310_v28 = vpack.c.bf16 %v204_v23, %v202_v22  ;;  %v263_v29 = vpack.c.bf16 %v109_v24, %v107_v21 }
  0xc1   :  { %607 = vmatmul.mubr.bf16.gmra.mrb[64].mxu0 %v250_v31  ;;  %807 = vmatmul.mubr.bf16.gmra.mrb[64].mxu1 %v300_v32  ;;  %v106_v31 = vld [vmem:[%s7257_s0 + $0x2c0] sm:$0xff]  ;;  %v108_v32 = vld [vmem:[%s7257_s0 + $0x2d0] sm:$0xff] }
  0xc2   :  { %614 = vmatprep.mubr.bf16.mxu0 %v253_v33  ;;  %814 = vmatprep.mubr.bf16.mxu1 %v303_v34  ;;  %v111_v33 = vld [vmem:[%s7257_s0 + $0x2e8] sm:$0xff]  ;;  %v206_v34 = vld [vmem:[%s7257_s0 + $0x5e0] sm:$0xff]  ;;  %v262_v39 = vpack.c.bf16 %v108_v32, %v106_v31 }
  0xc3   :  { %v312_v40 = vpack.c.bf16 %v208_v35, %v206_v34  ;;  %v265_v41 = vpack.c.bf16 %v113_v36, %v111_v33 }
  0xc9   :  { %615 = vmatmul.mubr.bf16.gmra.mrb[68].mxu0 %v252_v43  ;;  %815 = vmatmul.mubr.bf16.gmra.mrb[68].mxu1 %v302_v44  ;;  %v110_v43 = vld [vmem:[%s7257_s0 + $0x2e0] sm:$0xff]  ;;  %v112_v44 = vld [vmem:[%s7257_s0 + $0x2f0] sm:$0xff] }
  0xca   :  { %622 = vmatprep.mubr.bf16.mxu0 %v255_v45  ;;  %822 = vmatprep.mubr.bf16.mxu1 %v305_v46  ;;  %v115_v45 = vld [vmem:[%s7257_s0 + $0x308] sm:$0xff]  ;;  %v210_v46 = vld [vmem:[%s7257_s0 + $0x600] sm:$0xff]  ;;  %v264_v51 = vpack.c.bf16 %v112_v44, %v110_v43 }
  0xcb   :  { %v314_v52 = vpack.c.bf16 %v212_v47, %v210_v46  ;;  %v267_v53 = vpack.c.bf16 %v117_v48, %v115_v45 }
  0xd1   :  { %623 = vmatmul.mubr.bf16.gmra.mrb[72].mxu0 %v254_v55  ;;  %823 = vmatmul.mubr.bf16.gmra.mrb[72].mxu1 %v304_v56  ;;  %v114_v55 = vld [vmem:[%s7257_s0 + $0x300] sm:$0xff]  ;;  %v116_v56 = vld [vmem:[%s7257_s0 + $0x310] sm:$0xff] }
  0xd2   :  { %630 = vmatprep.mubr.bf16.mxu0 %v257_v57  ;;  %830 = vmatprep.mubr.bf16.mxu1 %v307_v58  ;;  %v214_v57 = vld [vmem:[%s7257_s0 + $0x620] sm:$0xff]  ;;  %v216_v58 = vld [vmem:[%s7257_s0 + $0x630] sm:$0xff]  ;;  %v266_v59 = vpack.c.bf16 %v116_v56, %v114_v55 }
  0xd3   :  { %v316_v60 = vpack.c.bf16 %v216_v58, %v214_v57 }
  0xd9   :  { %631 = vmatmul.mubr.bf16.gmra.mrb[76].mxu0 %v256_v3  ;;  %831 = vmatmul.mubr.bf16.gmra.mrb[76].mxu1 %v306_v4 }
  0xda   :  { %638 = vmatprep.mubr.bf16.mxu0 %v259_v5  ;;  %838 = vmatprep.mubr.bf16.mxu1 %v309_v6 }
  0xe1   :  { %639 = vmatmul.mubr.bf16.gmra.mrb[80].mxu0 %v258_v15  ;;  %839 = vmatmul.mubr.bf16.gmra.mrb[80].mxu1 %v308_v16 }
  0xe2   :  { %646 = vmatprep.mubr.bf16.mxu0 %v261_v17  ;;  %846 = vmatprep.mubr.bf16.mxu1 %v311_v18 }
  0xe9   :  { %647 = vmatmul.mubr.bf16.gmra.mrb[84].mxu0 %v260_v27  ;;  %847 = vmatmul.mubr.bf16.gmra.mrb[84].mxu1 %v310_v28 }
  0xea   :  { %654 = vmatprep.mubr.bf16.mxu0 %v263_v29  ;;  %854 = vmatprep.mubr.bf16.mxu1 %v313_v30 }
  0xf1   :  { %655 = vmatmul.mubr.bf16.gmra.mrb[88].mxu0 %v262_v39  ;;  %855 = vmatmul.mubr.bf16.gmra.mrb[88].mxu1 %v312_v40 }
  0xf2   :  { %662 = vmatprep.mubr.bf16.mxu0 %v265_v41  ;;  %862 = vmatprep.mubr.bf16.mxu1 %v315_v42 }
  0xf9   :  { %663 = vmatmul.mubr.bf16.gmra.mrb[92].mxu0 %v264_v51  ;;  %863 = vmatmul.mubr.bf16.gmra.mrb[92].mxu1 %v314_v52 }
  0xfa   :  { %670 = vmatprep.mubr.bf16.mxu0 %v267_v53  ;;  %870 = vmatprep.mubr.bf16.mxu1 %v317_v54 }
 0x101   :  { %671 = vmatmul.mubr.bf16.gmra.mrb[96].mxu0 %v266_v59  ;;  %871 = vmatmul.mubr.bf16.gmra.mrb[96].mxu1 %v316_v60 }
 0x114   :  { %v3489_v61 = vpop.f32.mrb[0].mxu0  ;;  %v3491_v62 = vpop.f32.mrb[0].mxu1 }
 0x115   :  { %7530 = vst [vmem:[#allocation2_spill] sm:$0xff] %v3489_v61  ;;  %v482_v63 = vpop.f32.mrb[1].mxu0  ;;  %v682_v0 = vpop.f32.mrb[1].mxu1  ;;  %v880_v3 = vsel %vm879_vm0, %v3489_v61, 0.0 }
 0x116   :  { %v3493_v1 = vpop.f32.mrb[2].mxu0  ;;  %v3495_v2 = vpop.f32.mrb[2].mxu1 }
 0x117   :  { %7531 = vst [vmem:[#allocation3_spill] sm:$0xff] %v3493_v1  ;;  %v881_v4 = vsel %vm879_vm0, %v3493_v1, 0.0  ;;  %v485_v5 = vpop.f32.mrb[3].mxu0  ;;  %v685_v6 = vpop.f32.mrb[3].mxu1 }
 0x118   :  { %v882_v7 = vadd.f32 %v881_v4, %v880_v3 }
 0x11c   :  { %v3501_v8 = vpop.f32.mrb[4].mxu0  ;;  %v3503_v9 = vpop.f32.mrb[4].mxu1 }
 0x11d   :  { %7532 = vst [vmem:[#allocation4_spill] sm:$0xff] %v3501_v8  ;;  %v883_v10 = vsel %vm879_vm0, %v3501_v8, 0.0  ;;  %v490_v11 = vpop.f32.mrb[5].mxu0  ;;  %v690_v12 = vpop.f32.mrb[5].mxu1 }
 0x11e   :  { %v884_v13 = vadd.f32 %v883_v10, %v882_v7  ;;  %v3507_v14 = vpop.f32.mrb[6].mxu0  ;;  %v3509_v15 = vpop.f32.mrb[6].mxu1 }
 0x11f   :  { %7533 = vst [vmem:[#allocation5_spill] sm:$0xff] %v3507_v14  ;;  %v885_v16 = vsel %vm879_vm0, %v3507_v14, 0.0  ;;  %v493_v17 = vpop.f32.mrb[7].mxu0  ;;  %v693_v18 = vpop.f32.mrb[7].mxu1 }
 0x120   :  { %v886_v19 = vadd.f32 %v885_v16, %v884_v13 }
 0x124   :  { %v3513_v20 = vpop.f32.mrb[8].mxu0  ;;  %v3515_v21 = vpop.f32.mrb[8].mxu1 }
 0x125   :  { %7534 = vst [vmem:[#allocation6_spill] sm:$0xff] %v3513_v20  ;;  %v887_v22 = vsel %vm879_vm0, %v3513_v20, 0.0  ;;  %v498_v23 = vpop.f32.mrb[9].mxu0  ;;  %v698_v24 = vpop.f32.mrb[9].mxu1 }
 0x126   :  { %v888_v25 = vadd.f32 %v887_v22, %v886_v19  ;;  %v3519_v26 = vpop.f32.mrb[10].mxu0  ;;  %v3521_v27 = vpop.f32.mrb[10].mxu1 }
 0x127   :  { %7535 = vst [vmem:[#allocation7_spill] sm:$0xff] %v3519_v26  ;;  %v889_v28 = vsel %vm879_vm0, %v3519_v26, 0.0  ;;  %v501_v29 = vpop.f32.mrb[11].mxu0  ;;  %v701_v30 = vpop.f32.mrb[11].mxu1 }
 0x128   :  { %v890_v31 = vadd.f32 %v889_v28, %v888_v25 }
 0x12c   :  { %v3525_v32 = vpop.f32.mrb[12].mxu0  ;;  %v3527_v33 = vpop.f32.mrb[12].mxu1 }
 0x12d   :  { %7536 = vst [vmem:[#allocation8_spill] sm:$0xff] %v3525_v32  ;;  %v891_v34 = vsel %vm879_vm0, %v3525_v32, 0.0  ;;  %v506_v35 = vpop.f32.mrb[13].mxu0  ;;  %v706_v36 = vpop.f32.mrb[13].mxu1 }
 0x12e   :  { %v892_v37 = vadd.f32 %v891_v34, %v890_v31  ;;  %v3531_v38 = vpop.f32.mrb[14].mxu0  ;;  %v3533_v39 = vpop.f32.mrb[14].mxu1 }
 0x12f   :  { %7537 = vst [vmem:[#allocation9_spill] sm:$0xff] %v3531_v38  ;;  %v893_v40 = vsel %vm879_vm0, %v3531_v38, 0.0  ;;  %v509_v41 = vpop.f32.mrb[15].mxu0  ;;  %v709_v42 = vpop.f32.mrb[15].mxu1 }
 0x130   :  { %v894_v43 = vadd.f32 %v893_v40, %v892_v37 }
 0x134   :  { %v3537_v44 = vpop.f32.mrb[16].mxu0  ;;  %v3539_v45 = vpop.f32.mrb[16].mxu1 }
 0x135   :  { %7538 = vst [vmem:[#allocation10_spill] sm:$0xff] %v3537_v44  ;;  %v895_v46 = vsel %vm879_vm0, %v3537_v44, 0.0  ;;  %v514_v47 = vpop.f32.mrb[17].mxu0  ;;  %v714_v48 = vpop.f32.mrb[17].mxu1 }
 0x136   :  { %v896_v49 = vadd.f32 %v895_v46, %v894_v43  ;;  %v3543_v50 = vpop.f32.mrb[18].mxu0  ;;  %v3545_v51 = vpop.f32.mrb[18].mxu1 }
 0x137   :  { %7539 = vst [vmem:[#allocation11_spill] sm:$0xff] %v3543_v50  ;;  %v897_v52 = vsel %vm879_vm0, %v3543_v50, 0.0  ;;  %v517_v53 = vpop.f32.mrb[19].mxu0  ;;  %v717_v54 = vpop.f32.mrb[19].mxu1 }
 0x138   :  { %v898_v55 = vadd.f32 %v897_v52, %v896_v49 }
 0x13c   :  { %v3549_v56 = vpop.f32.mrb[20].mxu0  ;;  %v3551_v57 = vpop.f32.mrb[20].mxu1 }
 0x13d   :  { %7540 = vst [vmem:[#allocation12_spill] sm:$0xff] %v3549_v56  ;;  %v899_v58 = vsel %vm879_vm0, %v3549_v56, 0.0  ;;  %v522_v59 = vpop.f32.mrb[21].mxu0  ;;  %v722_v60 = vpop.f32.mrb[21].mxu1 }
 0x13e   :  { %v900_v63 = vadd.f32 %v899_v58, %v898_v55  ;;  %v3555_v0 = vpop.f32.mrb[22].mxu0  ;;  %v3557_v3 = vpop.f32.mrb[22].mxu1 }
 0x13f   :  { %7541 = vst [vmem:[#allocation13_spill] sm:$0xff] %v3555_v0  ;;  %v901_v4 = vsel %vm879_vm0, %v3555_v0, 0.0  ;;  %v525_v5 = vpop.f32.mrb[23].mxu0  ;;  %v725_v6 = vpop.f32.mrb[23].mxu1 }
 0x140   :  { %v902_v7 = vadd.f32 %v901_v4, %v900_v63 }
 0x144   :  { %v3561_v10 = vpop.f32.mrb[24].mxu0  ;;  %v3563_v11 = vpop.f32.mrb[24].mxu1 }
 0x145   :  { %7542 = vst [vmem:[#allocation14_spill] sm:$0xff] %v3561_v10  ;;  %v903_v12 = vsel %vm879_vm0, %v3561_v10, 0.0  ;;  %v530_v13 = vpop.f32.mrb[25].mxu0  ;;  %v730_v16 = vpop.f32.mrb[25].mxu1 }
 0x146   :  { %v904_v17 = vadd.f32 %v903_v12, %v902_v7  ;;  %v3567_v18 = vpop.f32.mrb[26].mxu0  ;;  %v3569_v19 = vpop.f32.mrb[26].mxu1 }
 0x147   :  { %7543 = vst [vmem:[#allocation15_spill] sm:$0xff] %v3567_v18  ;;  %v905_v22 = vsel %vm879_vm0, %v3567_v18, 0.0  ;;  %v533_v23 = vpop.f32.mrb[27].mxu0  ;;  %v733_v24 = vpop.f32.mrb[27].mxu1 }
 0x148   :  { %v906_v25 = vadd.f32 %v905_v22, %v904_v17 }
 0x14c   :  { %v3573_v28 = vpop.f32.mrb[28].mxu0  ;;  %v3575_v29 = vpop.f32.mrb[28].mxu1 }
 0x14d   :  { %7544 = vst [vmem:[#allocation16_spill] sm:$0xff] %v3573_v28  ;;  %v907_v30 = vsel %vm879_vm0, %v3573_v28, 0.0  ;;  %v538_v31 = vpop.f32.mrb[29].mxu0  ;;  %v738_v34 = vpop.f32.mrb[29].mxu1 }
 0x14e   :  { %v908_v35 = vadd.f32 %v907_v30, %v906_v25  ;;  %v3579_v36 = vpop.f32.mrb[30].mxu0  ;;  %v3581_v37 = vpop.f32.mrb[30].mxu1 }
 0x14f   :  { %7545 = vst [vmem:[#allocation17_spill] sm:$0xff] %v3579_v36  ;;  %v909_v40 = vsel %vm879_vm0, %v3579_v36, 0.0  ;;  %v541_v41 = vpop.f32.mrb[31].mxu0  ;;  %v741_v42 = vpop.f32.mrb[31].mxu1 }
 0x150   :  { %v910_v43 = vadd.f32 %v909_v40, %v908_v35 }
 0x154   :  { %v3585_v46 = vpop.f32.mrb[32].mxu0  ;;  %v3587_v47 = vpop.f32.mrb[32].mxu1 }
 0x155   :  { %7546 = vst [vmem:[#allocation18_spill] sm:$0xff] %v3585_v46  ;;  %v911_v48 = vsel %vm879_vm0, %v3585_v46, 0.0  ;;  %v546_v49 = vpop.f32.mrb[33].mxu0  ;;  %v746_v52 = vpop.f32.mrb[33].mxu1 }
 0x156   :  { %v912_v53 = vadd.f32 %v911_v48, %v910_v43  ;;  %v3591_v54 = vpop.f32.mrb[34].mxu0  ;;  %v3593_v55 = vpop.f32.mrb[34].mxu1 }
 0x157   :  { %7547 = vst [vmem:[#allocation19_spill] sm:$0xff] %v3591_v54  ;;  %v913_v58 = vsel %vm879_vm0, %v3591_v54, 0.0  ;;  %v549_v59 = vpop.f32.mrb[35].mxu0  ;;  %v749_v60 = vpop.f32.mrb[35].mxu1 }
 0x158   :  { %v914_v63 = vadd.f32 %v913_v58, %v912_v53 }
 0x15c   :  { %v3597_v4 = vpop.f32.mrb[36].mxu0  ;;  %v3599_v5 = vpop.f32.mrb[36].mxu1 }
 0x15d   :  { %7548 = vst [vmem:[#allocation20_spill] sm:$0xff] %v3597_v4  ;;  %v915_v6 = vsel %vm879_vm0, %v3597_v4, 0.0  ;;  %v554_v7 = vpop.f32.mrb[37].mxu0  ;;  %v754_v12 = vpop.f32.mrb[37].mxu1 }
 0x15e   :  { %v916_v13 = vadd.f32 %v915_v6, %v914_v63  ;;  %v3603_v16 = vpop.f32.mrb[38].mxu0  ;;  %v3605_v17 = vpop.f32.mrb[38].mxu1 }
 0x15f   :  { %7549 = vst [vmem:[#allocation21_spill] sm:$0xff] %v3603_v16  ;;  %v917_v22 = vsel %vm879_vm0, %v3603_v16, 0.0  ;;  %v557_v23 = vpop.f32.mrb[39].mxu0  ;;  %v757_v24 = vpop.f32.mrb[39].mxu1 }
 0x160   :  { %v918_v25 = vadd.f32 %v917_v22, %v916_v13 }
 0x164   :  { %v3609_v30 = vpop.f32.mrb[40].mxu0  ;;  %v3611_v31 = vpop.f32.mrb[40].mxu1 }
 0x165   :  { %7550 = vst [vmem:[#allocation22_spill] sm:$0xff] %v3609_v30  ;;  %v919_v34 = vsel %vm879_vm0, %v3609_v30, 0.0  ;;  %v562_v35 = vpop.f32.mrb[41].mxu0  ;;  %v762_v40 = vpop.f32.mrb[41].mxu1 }
 0x166   :  { %v920_v41 = vadd.f32 %v919_v34, %v918_v25  ;;  %v3615_v42 = vpop.f32.mrb[42].mxu0  ;;  %v3617_v43 = vpop.f32.mrb[42].mxu1 }
 0x167   :  { %7551 = vst [vmem:[#allocation23_spill] sm:$0xff] %v3615_v42  ;;  %v921_v48 = vsel %vm879_vm0, %v3615_v42, 0.0  ;;  %v565_v49 = vpop.f32.mrb[43].mxu0  ;;  %v765_v52 = vpop.f32.mrb[43].mxu1 }
 0x168   :  { %v922_v53 = vadd.f32 %v921_v48, %v920_v41 }
 0x16c   :  { %v3621_v58 = vpop.f32.mrb[44].mxu0  ;;  %v3623_v59 = vpop.f32.mrb[44].mxu1 }
 0x16d   :  { %7552 = vst [vmem:[#allocation24_spill] sm:$0xff] %v3621_v58  ;;  %v923_v60 = vsel %vm879_vm0, %v3621_v58, 0.0  ;;  %v570_v63 = vpop.f32.mrb[45].mxu0  ;;  %v770_v6 = vpop.f32.mrb[45].mxu1 }
 0x16e   :  { %v924_v7 = vadd.f32 %v923_v60, %v922_v53  ;;  %v3627_v12 = vpop.f32.mrb[46].mxu0  ;;  %v3629_v13 = vpop.f32.mrb[46].mxu1 }
 0x16f   :  { %7553 = vst [vmem:[#allocation25_spill] sm:$0xff] %v3627_v12  ;;  %v925_v22 = vsel %vm879_vm0, %v3627_v12, 0.0  ;;  %v573_v23 = vpop.f32.mrb[47].mxu0  ;;  %v773_v24 = vpop.f32.mrb[47].mxu1 }
 0x170   :  { %v926_v25 = vadd.f32 %v925_v22, %v924_v7 }
 0x174   :  { %v3633_v34 = vpop.f32.mrb[48].mxu0  ;;  %v3635_v35 = vpop.f32.mrb[48].mxu1 }
 0x175   :  { %7554 = vst [vmem:[#allocation26_spill] sm:$0xff] %v3633_v34  ;;  %v927_v40 = vsel %vm879_vm0, %v3633_v34, 0.0  ;;  %v578_v41 = vpop.f32.mrb[49].mxu0  ;;  %v778_v48 = vpop.f32.mrb[49].mxu1 }
 0x176   :  { %v928_v49 = vadd.f32 %v927_v40, %v926_v25  ;;  %v3639_v52 = vpop.f32.mrb[50].mxu0  ;;  %v3641_v53 = vpop.f32.mrb[50].mxu1 }
 0x177   :  { %7555 = vst [vmem:[#allocation27_spill] sm:$0xff] %v3639_v52  ;;  %v929_v60 = vsel %vm879_vm0, %v3639_v52, 0.0  ;;  %v581_v63 = vpop.f32.mrb[51].mxu0  ;;  %v781_v6 = vpop.f32.mrb[51].mxu1 }
 0x178   :  { %v930_v7 = vadd.f32 %v929_v60, %v928_v49 }
 0x17c   :  { %v3645_v22 = vpop.f32.mrb[52].mxu0  ;;  %v3647_v23 = vpop.f32.mrb[52].mxu1 }
 0x17d   :  { %7556 = vst [vmem:[#allocation28_spill] sm:$0xff] %v3645_v22  ;;  %v931_v24 = vsel %vm879_vm0, %v3645_v22, 0.0  ;;  %v586_v41 = vpop.f32.mrb[53].mxu0  ;;  %v786_v48 = vpop.f32.mrb[53].mxu1 }
 0x17e   :  { %v932_v25 = vadd.f32 %v931_v24, %v930_v7  ;;  %v3651_v40 = vpop.f32.mrb[54].mxu0  ;;  %v3653_v34 = vpop.f32.mrb[54].mxu1 }
 0x17f   :  { %7557 = vst [vmem:[#allocation29_spill] sm:$0xff] %v3651_v40  ;;  %v933_v52 = vsel %vm879_vm0, %v3651_v40, 0.0  ;;  %v589_v63 = vpop.f32.mrb[55].mxu0  ;;  %v789_v6 = vpop.f32.mrb[55].mxu1 }
 0x180   :  { %v934_v49 = vadd.f32 %v933_v52, %v932_v25 }
 0x184   :  { %v3657_v60 = vpop.f32.mrb[56].mxu0  ;;  %v3659_v12 = vpop.f32.mrb[56].mxu1 }
 0x185   :  { %7558 = vst [vmem:[#allocation30_spill] sm:$0xff] %v3657_v60  ;;  %v935_v22 = vsel %vm879_vm0, %v3657_v60, 0.0  ;;  %v594_v41 = vpop.f32.mrb[57].mxu0  ;;  %v794_v48 = vpop.f32.mrb[57].mxu1 }
 0x186   :  { %v936_v7 = vadd.f32 %v935_v22, %v934_v49  ;;  %v3663_v24 = vpop.f32.mrb[58].mxu0  ;;  %v3665_v58 = vpop.f32.mrb[58].mxu1 }
 0x187   :  { %7559 = vst [vmem:[#allocation31_spill] sm:$0xff] %v3663_v24  ;;  %v937_v40 = vsel %vm879_vm0, %v3663_v24, 0.0  ;;  %v597_v63 = vpop.f32.mrb[59].mxu0  ;;  %v797_v6 = vpop.f32.mrb[59].mxu1 }
 0x188   :  { %v938_v52 = vadd.f32 %v937_v40, %v936_v7 }
 0x18c   :  { %v3669_v25 = vpop.f32.mrb[60].mxu0  ;;  %v3671_v42 = vpop.f32.mrb[60].mxu1 }
 0x18d   :  { %7560 = vst [vmem:[#allocation32_spill] sm:$0xff] %v3669_v25  ;;  %v939_v60 = vsel %vm879_vm0, %v3669_v25, 0.0  ;;  %v602_v41 = vpop.f32.mrb[61].mxu0  ;;  %v802_v48 = vpop.f32.mrb[61].mxu1 }
 0x18e   :  { %v940_v22 = vadd.f32 %v939_v60, %v938_v52  ;;  %v3675_v49 = vpop.f32.mrb[62].mxu0  ;;  %v3677_v30 = vpop.f32.mrb[62].mxu1 }
 0x18f   :  { %7561 = vst [vmem:[#allocation33_spill] sm:$0xff] %v3675_v49  ;;  %v941_v24 = vsel %vm879_vm0, %v3675_v49, 0.0  ;;  %v605_v63 = vpop.f32.mrb[63].mxu0  ;;  %v805_v6 = vpop.f32.mrb[63].mxu1 }
 0x190   :  { %v942_v40 = vadd.f32 %v941_v24, %v940_v22 }
 0x194   :  { %v3681_v7 = vpop.f32.mrb[64].mxu0  ;;  %v3683_v16 = vpop.f32.mrb[64].mxu1 }
 0x195   :  { %7562 = vst [vmem:[#allocation34_spill] sm:$0xff] %v3681_v7  ;;  %v943_v25 = vsel %vm879_vm0, %v3681_v7, 0.0  ;;  %v610_v41 = vpop.f32.mrb[65].mxu0  ;;  %v810_v48 = vpop.f32.mrb[65].mxu1 }
 0x196   :  { %v944_v60 = vadd.f32 %v943_v25, %v942_v40  ;;  %v3687_v52 = vpop.f32.mrb[66].mxu0  ;;  %v3689_v4 = vpop.f32.mrb[66].mxu1 }
 0x197   :  { %7563 = vst [vmem:[#allocation35_spill] sm:$0xff] %v3687_v52  ;;  %v945_v49 = vsel %vm879_vm0, %v3687_v52, 0.0  ;;  %v613_v63 = vpop.f32.mrb[67].mxu0  ;;  %v813_v6 = vpop.f32.mrb[67].mxu1 }
 0x198   :  { %v946_v24 = vadd.f32 %v945_v49, %v944_v60 }
 0x19c   :  { %v3693_v22 = vpop.f32.mrb[68].mxu0  ;;  %v3695_v54 = vpop.f32.mrb[68].mxu1 }
 0x19d   :  { %7564 = vst [vmem:[#allocation36_spill] sm:$0xff] %v3693_v22  ;;  %v947_v7 = vsel %vm879_vm0, %v3693_v22, 0.0  ;;  %v618_v41 = vpop.f32.mrb[69].mxu0  ;;  %v818_v48 = vpop.f32.mrb[69].mxu1 }
 0x19e   :  { %v948_v25 = vadd.f32 %v947_v7, %v946_v24  ;;  %v3699_v40 = vpop.f32.mrb[70].mxu0  ;;  %v3701_v46 = vpop.f32.mrb[70].mxu1 }
 0x19f   :  { %7565 = vst [vmem:[#allocation37_spill] sm:$0xff] %v3699_v40  ;;  %v949_v52 = vsel %vm879_vm0, %v3699_v40, 0.0  ;;  %v621_v63 = vpop.f32.mrb[71].mxu0  ;;  %v821_v6 = vpop.f32.mrb[71].mxu1 }
 0x1a0   :  { %v950_v49 = vadd.f32 %v949_v52, %v948_v25 }
 0x1a4   :  { %v3705_v60 = vpop.f32.mrb[72].mxu0  ;;  %v3707_v36 = vpop.f32.mrb[72].mxu1 }
 0x1a5   :  { %7566 = vst [vmem:[#allocation38_spill] sm:$0xff] %v3705_v60  ;;  %v951_v22 = vsel %vm879_vm0, %v3705_v60, 0.0  ;;  %v626_v41 = vpop.f32.mrb[73].mxu0  ;;  %v826_v48 = vpop.f32.mrb[73].mxu1 }
 0x1a6   :  { %v952_v7 = vadd.f32 %v951_v22, %v950_v49  ;;  %v3711_v24 = vpop.f32.mrb[74].mxu0  ;;  %v3713_v28 = vpop.f32.mrb[74].mxu1 }
 0x1a7   :  { %7567 = vst [vmem:[#allocation39_spill] sm:$0xff] %v3711_v24  ;;  %v953_v40 = vsel %vm879_vm0, %v3711_v24, 0.0  ;;  %v629_v63 = vpop.f32.mrb[75].mxu0  ;;  %v829_v6 = vpop.f32.mrb[75].mxu1 }
 0x1a8   :  { %v954_v52 = vadd.f32 %v953_v40, %v952_v7 }
 0x1ac   :  { %v3717_v25 = vpop.f32.mrb[76].mxu0  ;;  %v3719_v18 = vpop.f32.mrb[76].mxu1 }
 0x1ad   :  { %7568 = vst [vmem:[#allocation40_spill] sm:$0xff] %v3717_v25  ;;  %v955_v60 = vsel %vm879_vm0, %v3717_v25, 0.0  ;;  %v634_v41 = vpop.f32.mrb[77].mxu0  ;;  %v834_v48 = vpop.f32.mrb[77].mxu1 }
 0x1ae   :  { %v956_v22 = vadd.f32 %v955_v60, %v954_v52  ;;  %v3723_v49 = vpop.f32.mrb[78].mxu0  ;;  %v3725_v10 = vpop.f32.mrb[78].mxu1 }
 0x1af   :  { %7569 = vst [vmem:[#allocation41_spill] sm:$0xff] %v3723_v49  ;;  %v957_v24 = vsel %vm879_vm0, %v3723_v49, 0.0  ;;  %v637_v63 = vpop.f32.mrb[79].mxu0  ;;  %v837_v6 = vpop.f32.mrb[79].mxu1 }
 0x1b0   :  { %v958_v40 = vadd.f32 %v957_v24, %v956_v22 }
 0x1b4   :  { %v3729_v7 = vpop.f32.mrb[80].mxu0  ;;  %v3731_v0 = vpop.f32.mrb[80].mxu1 }
 0x1b5   :  { %7570 = vst [vmem:[#allocation42_spill] sm:$0xff] %v3729_v7  ;;  %v959_v25 = vsel %vm879_vm0, %v3729_v7, 0.0  ;;  %v642_v41 = vpop.f32.mrb[81].mxu0  ;;  %v842_v48 = vpop.f32.mrb[81].mxu1 }
 0x1b6   :  { %v960_v60 = vadd.f32 %v959_v25, %v958_v40  ;;  %v3735_v52 = vpop.f32.mrb[82].mxu0  ;;  %v3737_v56 = vpop.f32.mrb[82].mxu1 }
 0x1b7   :  { %7571 = vst [vmem:[#allocation43_spill] sm:$0xff] %v3735_v52  ;;  %v961_v49 = vsel %vm879_vm0, %v3735_v52, 0.0  ;;  %v645_v63 = vpop.f32.mrb[83].mxu0  ;;  %v845_v6 = vpop.f32.mrb[83].mxu1 }
 0x1b8   :  { %v962_v24 = vadd.f32 %v961_v49, %v960_v60 }
 0x1bc   :  { %v3741_v22 = vpop.f32.mrb[84].mxu0  ;;  %v3743_v50 = vpop.f32.mrb[84].mxu1 }
 0x1bd   :  { %7572 = vst [vmem:[#allocation44_spill] sm:$0xff] %v3741_v22  ;;  %v963_v7 = vsel %vm879_vm0, %v3741_v22, 0.0  ;;  %v650_v41 = vpop.f32.mrb[85].mxu0  ;;  %v850_v48 = vpop.f32.mrb[85].mxu1 }
 0x1be   :  { %v964_v25 = vadd.f32 %v963_v7, %v962_v24  ;;  %v3747_v40 = vpop.f32.mrb[86].mxu0  ;;  %v3749_v44 = vpop.f32.mrb[86].mxu1 }
 0x1bf   :  { %7573 = vst [vmem:[#allocation45_spill] sm:$0xff] %v3747_v40  ;;  %v965_v52 = vsel %vm879_vm0, %v3747_v40, 0.0  ;;  %v653_v63 = vpop.f32.mrb[87].mxu0  ;;  %v853_v6 = vpop.f32.mrb[87].mxu1 }
 0x1c0   :  { %v966_v49 = vadd.f32 %v965_v52, %v964_v25 }
 0x1c4   :  { %v3753_v60 = vpop.f32.mrb[88].mxu0  ;;  %v3755_v38 = vpop.f32.mrb[88].mxu1 }
 0x1c5   :  { %7574 = vst [vmem:[#allocation46_spill] sm:$0xff] %v3753_v60  ;;  %7575 = vst [vmem:[#allocation47_spill] sm:$0xff] %v3755_v38  ;;  %v967_v22 = vsel %vm879_vm0, %v3753_v60, 0.0  ;;  %v658_v41 = vpop.f32.mrb[89].mxu0  ;;  %v858_v48 = vpop.f32.mrb[89].mxu1 }
 0x1c6   :  { %v968_v7 = vadd.f32 %v967_v22, %v966_v49  ;;  %v3759_v24 = vpop.f32.mrb[90].mxu0  ;;  %v3761_v32 = vpop.f32.mrb[90].mxu1 }
 0x1c7   :  { %7576 = vst [vmem:[#allocation48_spill] sm:$0xff] %v3759_v24  ;;  %7577 = vst [vmem:[#allocation49_spill] sm:$0xff] %v3761_v32  ;;  %v969_v40 = vsel %vm879_vm0, %v3759_v24, 0.0  ;;  %v661_v63 = vpop.f32.mrb[91].mxu0  ;;  %v861_v6 = vpop.f32.mrb[91].mxu1 }
 0x1c8   :  { %v970_v52 = vadd.f32 %v969_v40, %v968_v7 }
 0x1cc   :  { %v3765_v25 = vpop.f32.mrb[92].mxu0  ;;  %v3767_v26 = vpop.f32.mrb[92].mxu1 }
 0x1cd   :  { %7578 = vst [vmem:[#allocation50_spill] sm:$0xff] %v3765_v25  ;;  %7579 = vst [vmem:[#allocation51_spill] sm:$0xff] %v3767_v26  ;;  %v971_v60 = vsel %vm879_vm0, %v3765_v25, 0.0  ;;  %v666_v41 = vpop.f32.mrb[93].mxu0  ;;  %v866_v48 = vpop.f32.mrb[93].mxu1 }
 0x1ce   :  { %v972_v22 = vadd.f32 %v971_v60, %v970_v52  ;;  %v3771_v49 = vpop.f32.mrb[94].mxu0  ;;  %v3773_v20 = vpop.f32.mrb[94].mxu1 }
 0x1cf   :  { %7580 = vst [vmem:[#allocation52_spill] sm:$0xff] %v3771_v49  ;;  %v973_v24 = vsel %vm879_vm0, %v3771_v49, 0.0  ;;  %v669_v63 = vpop.f32.mrb[95].mxu0  ;;  %v869_v6 = vpop.f32.mrb[95].mxu1 }
 0x1d0   :  { %v974_v40 = vadd.f32 %v973_v24, %v972_v22  ;;  %v979_v22 = vsel %vm879_vm0, %v3491_v62, 0.0 }
 0x1d4   :  { %v3777_v7 = vpop.f32.mrb[96].mxu0  ;;  %v3779_v14 = vpop.f32.mrb[96].mxu1 }
 0x1d5   :  { %7581 = vst [vmem:[#allocation53_spill] sm:$0xff] %v3777_v7  ;;  %7582 = vst [vmem:[#allocation54_spill] sm:$0xff] %v3779_v14  ;;  %v975_v25 = vsel %vm879_vm0, %v3777_v7, 0.0  ;;  %v674_v41 = vpop.f32.mrb[97].mxu0  ;;  %v874_v48 = vpop.f32.mrb[97].mxu1  ;;  %v981_v7 = vsel %vm879_vm0, %v3495_v2, 0.0 }
 0x1d6   :  { %v976_v60 = vadd.f32 %v975_v25, %v974_v40  ;;  %v3783_v52 = vpop.f32.mrb[98].mxu0  ;;  %v3785_v8 = vpop.f32.mrb[98].mxu1  ;;  %v983_v25 = vsel %vm879_vm0, %v3503_v9, 0.0  ;;  %v985_v48 = vsel %vm879_vm0, %v3509_v15, 0.0 }
 0x1d7   :  { %v977_v49 = vsel %vm879_vm0, %v3783_v52, 0.0  ;;  %v677_v63 = vpop.f32.mrb[99].mxu0  ;;  %v877_v6 = vpop.f32.mrb[99].mxu1 }
 0x1d8   :  { %v978_v24 = vadd.f32 %v977_v49, %v976_v60  ;;  %v987_v63 = vsel %vm879_vm0, %v3515_v21, 0.0  ;;  %v989_v60 = vsel %vm879_vm0, %v3521_v27, 0.0 }
 0x1da   :  { %v980_v1 = vadd.f32 %v979_v22, %v978_v24  ;;  %v991_v24 = vsel %vm879_vm0, %v3527_v33, 0.0 }
 0x1dc   :  { %v982_v41 = vadd.f32 %v981_v7, %v980_v1  ;;  %v993_v7 = vsel %vm879_vm0, %v3533_v39, 0.0 }
 0x1de   :  { %v984_v40 = vadd.f32 %v983_v25, %v982_v41  ;;  %v995_v41 = vsel %vm879_vm0, %v3539_v45, 0.0 }
 0x1e0   :  { %v986_v61 = vadd.f32 %v985_v48, %v984_v40  ;;  %v997_v40 = vsel %vm879_vm0, %v3545_v51, 0.0  ;;  %v999_v48 = vsel %vm879_vm0, %v3551_v57, 0.0 }
 0x1e2   :  { %v988_v49 = vadd.f32 %v987_v63, %v986_v61 }
 0x1e4   :  { %v990_v6 = vadd.f32 %v989_v60, %v988_v49  ;;  %v1001_v49 = vsel %vm879_vm0, %v3557_v3, 0.0 }
 0x1e6   :  { %v992_v1 = vadd.f32 %v991_v24, %v990_v6  ;;  %v1003_v6 = vsel %vm879_vm0, %v3563_v11, 0.0 }
 0x1e8   :  { %v994_v22 = vadd.f32 %v993_v7, %v992_v1  ;;  %v1005_v1 = vsel %vm879_vm0, %v3569_v19, 0.0 }
 0x1ea   :  { %v996_v25 = vadd.f32 %v995_v41, %v994_v22  ;;  %v1007_v22 = vsel %vm879_vm0, %v3575_v29, 0.0 }
 0x1ec   :  { %v998_v61 = vadd.f32 %v997_v40, %v996_v25  ;;  %v1009_v25 = vsel %vm879_vm0, %v3581_v37, 0.0 }
 0x1ee   :  { %v1000_v63 = vadd.f32 %v999_v48, %v998_v61  ;;  %v1011_v61 = vsel %vm879_vm0, %v3587_v47, 0.0 }
 0x1f0   :  { %v1002_v60 = vadd.f32 %v1001_v49, %v1000_v63  ;;  %v1013_v63 = vsel %vm879_vm0, %v3593_v55, 0.0 }
 0x1f2   :  { %v1004_v24 = vadd.f32 %v1003_v6, %v1002_v60  ;;  %v1015_v60 = vsel %vm879_vm0, %v3599_v5, 0.0 }
 0x1f4   :  { %v1006_v7 = vadd.f32 %v1005_v1, %v1004_v24  ;;  %v1017_v24 = vsel %vm879_vm0, %v3605_v17, 0.0 }
 0x1f6   :  { %v1008_v41 = vadd.f32 %v1007_v22, %v1006_v7  ;;  %v1019_v7 = vsel %vm879_vm0, %v3611_v31, 0.0 }
 0x1f8   :  { %v1010_v40 = vadd.f32 %v1009_v25, %v1008_v41  ;;  %v1021_v41 = vsel %vm879_vm0, %v3617_v43, 0.0 }
 0x1fa   :  { %v1012_v48 = vadd.f32 %v1011_v61, %v1010_v40  ;;  %v1023_v40 = vsel %vm879_vm0, %v3623_v59, 0.0 }
 0x1fc   :  { %v1014_v49 = vadd.f32 %v1013_v63, %v1012_v48  ;;  %v1025_v48 = vsel %vm879_vm0, %v3629_v13, 0.0 }
 0x1fe   :  { %v1016_v6 = vadd.f32 %v1015_v60, %v1014_v49  ;;  %v1027_v49 = vsel %vm879_vm0, %v3635_v35, 0.0 }
 0x200   :  { %v1018_v1 = vadd.f32 %v1017_v24, %v1016_v6  ;;  %v1029_v6 = vsel %vm879_vm0, %v3641_v53, 0.0 }
 0x202   :  { %v1020_v22 = vadd.f32 %v1019_v7, %v1018_v1  ;;  %v1031_v1 = vsel %vm879_vm0, %v3647_v23, 0.0 }
 0x204   :  { %v1022_v25 = vadd.f32 %v1021_v41, %v1020_v22  ;;  %v1033_v22 = vsel %vm879_vm0, %v3653_v34, 0.0 }
 0x206   :  { %v1024_v61 = vadd.f32 %v1023_v40, %v1022_v25  ;;  %v1035_v25 = vsel %vm879_vm0, %v3659_v12, 0.0 }
 0x208   :  { %v1026_v63 = vadd.f32 %v1025_v48, %v1024_v61  ;;  %v1037_v61 = vsel %vm879_vm0, %v3665_v58, 0.0 }
 0x20a   :  { %v1028_v60 = vadd.f32 %v1027_v49, %v1026_v63  ;;  %v1039_v63 = vsel %vm879_vm0, %v3671_v42, 0.0 }
 0x20c   :  { %v1030_v24 = vadd.f32 %v1029_v6, %v1028_v60  ;;  %v1041_v60 = vsel %vm879_vm0, %v3677_v30, 0.0 }
 0x20e   :  { %v1032_v7 = vadd.f32 %v1031_v1, %v1030_v24  ;;  %v1043_v24 = vsel %vm879_vm0, %v3683_v16, 0.0 }
 0x210   :  { %v1034_v41 = vadd.f32 %v1033_v22, %v1032_v7  ;;  %v1045_v7 = vsel %vm879_vm0, %v3689_v4, 0.0 }
 0x212   :  { %v1036_v40 = vadd.f32 %v1035_v25, %v1034_v41  ;;  %v1047_v41 = vsel %vm879_vm0, %v3695_v54, 0.0 }
 0x214   :  { %v1038_v48 = vadd.f32 %v1037_v61, %v1036_v40  ;;  %v1049_v40 = vsel %vm879_vm0, %v3701_v46, 0.0 }
 0x216   :  { %v1040_v49 = vadd.f32 %v1039_v63, %v1038_v48  ;;  %v1051_v48 = vsel %vm879_vm0, %v3707_v36, 0.0 }
 0x218   :  { %v1042_v6 = vadd.f32 %v1041_v60, %v1040_v49  ;;  %v1053_v49 = vsel %vm879_vm0, %v3713_v28, 0.0 }
 0x21a   :  { %v1044_v1 = vadd.f32 %v1043_v24, %v1042_v6  ;;  %v1055_v6 = vsel %vm879_vm0, %v3719_v18, 0.0 }
 0x21c   :  { %v1046_v22 = vadd.f32 %v1045_v7, %v1044_v1  ;;  %v1057_v1 = vsel %vm879_vm0, %v3725_v10, 0.0 }
 0x21e   :  { %v1048_v25 = vadd.f32 %v1047_v41, %v1046_v22  ;;  %v1059_v22 = vsel %vm879_vm0, %v3731_v0, 0.0 }
 0x220   :  { %v1050_v61 = vadd.f32 %v1049_v40, %v1048_v25  ;;  %v1061_v25 = vsel %vm879_vm0, %v3737_v56, 0.0 }
 0x222   :  { %v1052_v63 = vadd.f32 %v1051_v48, %v1050_v61  ;;  %v1063_v61 = vsel %vm879_vm0, %v3743_v50, 0.0 }
 0x224   :  { %v1054_v60 = vadd.f32 %v1053_v49, %v1052_v63  ;;  %v1065_v63 = vsel %vm879_vm0, %v3749_v44, 0.0 }
 0x226   :  { %v1056_v24 = vadd.f32 %v1055_v6, %v1054_v60  ;;  %v1067_v60 = vsel %vm879_vm0, %v3755_v38, 0.0 }
 0x228   :  { %v1058_v7 = vadd.f32 %v1057_v1, %v1056_v24  ;;  %v1069_v24 = vsel %vm879_vm0, %v3761_v32, 0.0 }
 0x22a   :  { %v1060_v41 = vadd.f32 %v1059_v22, %v1058_v7  ;;  %v1071_v7 = vsel %vm879_vm0, %v3767_v26, 0.0 }
 0x22c   :  { %v1062_v40 = vadd.f32 %v1061_v25, %v1060_v41  ;;  %v1073_v41 = vsel %vm879_vm0, %v3773_v20, 0.0  ;;  %v1075_v25 = vsel %vm879_vm0, %v3779_v14, 0.0  ;;  %v7585_v14 = vld [vmem:[#allocation3_spill] sm:$0xff] }
 0x22e   :  { %v1064_v48 = vadd.f32 %v1063_v61, %v1062_v40 }
 0x230   :  { %v1066_v49 = vadd.f32 %v1065_v63, %v1064_v48  ;;  %v1077_v48 = vsel %vm879_vm0, %v3785_v8, 0.0 }
 0x232   :  { %v1068_v6 = vadd.f32 %v1067_v60, %v1066_v49 }
 0x234   :  { %v1070_v1 = vadd.f32 %v1069_v24, %v1068_v6 }
 0x236   :  { %v1072_v22 = vadd.f32 %v1071_v7, %v1070_v1  ;;  %v7583_v1 = vld [vmem:[#allocation2_spill] sm:$0xff] }
 0x238   :  { %v1074_v40 = vadd.f32 %v1073_v41, %v1072_v22  ;;  %v7587_v41 = vld [vmem:[#allocation4_spill] sm:$0xff] }
 0x23a   :  { %v1076_v61 = vadd.f32 %v1075_v25, %v1074_v40  ;;  %v7589_v40 = vld [vmem:[#allocation5_spill] sm:$0xff] }
 0x23c   :  { %v1078_v63 = vadd.f32 %v1077_v48, %v1076_v61  ;;  %v7593_v48 = vld [vmem:[#allocation7_spill] sm:$0xff] }
 0x23e   :  { %v1079_v49 = vrot.slane %v1078_v63, 4 }
 0x240   :  { %v1080_v60 = vadd.f32 %v1079_v49, %v1078_v63  ;;  %v7595_v49 = vld [vmem:[#allocation8_spill] sm:$0xff] }
 0x242   :  { %v1081_v32 = vrot.slane %v1080_v60, 2 }
 0x244   :  { %v1082_v6 = vadd.f32 %v1081_v32, %v1080_v60  ;;  %v7591_v32 = vld [vmem:[#allocation6_spill] sm:$0xff]  ;;  %v7597_v60 = vld [vmem:[#allocation9_spill] sm:$0xff] }
 0x246   :  { %v1083_v24 = vrot.slane %v1082_v6, 1 }
 0x248   :  { %v1084_v38 = vadd.f32 %v1083_v24, %v1082_v6  ;;  %v7599_v24 = vld [vmem:[#allocation10_spill] sm:$0xff] }
 0x24a   :  { %v3889_v26 = vmul.f32 0.00125, %v1084_v38 }
 0x24c   :  { %v3893_v7 = vsub.f32 %v7583_v1, %v3889_v26  ;;  %v3897_v22 = vsub.f32 %v7585_v14, %v3889_v26  ;;  %v3901_v25 = vsub.f32 %v7587_v41, %v3889_v26  ;;  %v3905_v61 = vsub.f32 %v7589_v40, %v3889_v26  ;;  %v7601_v41 = vld [vmem:[#allocation11_spill] sm:$0xff] }
 0x24d   :  { %v3909_v38 = vsub.f32 %v7591_v32, %v3889_v26  ;;  %v3913_v63 = vsub.f32 %v7593_v48, %v3889_v26  ;;  %v3917_v14 = vsub.f32 %v7595_v49, %v3889_v26  ;;  %v3921_v6 = vsub.f32 %v7597_v60, %v3889_v26  ;;  %v7603_v32 = vld [vmem:[#allocation12_spill] sm:$0xff] }
 0x24e   :  { %7584 = vst [vmem:[#allocation2_spill] sm:$0xff] %v3893_v7  ;;  %7586 = vst [vmem:[#allocation3_spill] sm:$0xff] %v3897_v22  ;;  %v3925_v1 = vsub.f32 %v7599_v24, %v3889_v26  ;;  %v3929_v40 = vsub.f32 %v7601_v41, %v3889_v26  ;;  %v3933_v48 = vsub.f32 %v7603_v32, %v3889_v26 }
 0x24f   :  { %7588 = vst [vmem:[#allocation4_spill] sm:$0xff] %v3901_v25  ;;  %7590 = vst [vmem:[#allocation5_spill] sm:$0xff] %v3905_v61 }
 0x250   :  { %7592 = vst [vmem:[#allocation6_spill] sm:$0xff] %v3909_v38  ;;  %7594 = vst [vmem:[#allocation7_spill] sm:$0xff] %v3913_v63  ;;  %v7605_v63 = vld [vmem:[#allocation13_spill] sm:$0xff] }
 0x251   :  { %7596 = vst [vmem:[#allocation8_spill] sm:$0xff] %v3917_v14  ;;  %7598 = vst [vmem:[#allocation9_spill] sm:$0xff] %v3921_v6  ;;  %v3937_v49 = vsub.f32 %v7605_v63, %v3889_v26  ;;  %v7607_v14 = vld [vmem:[#allocation14_spill] sm:$0xff]  ;;  %v7609_v6 = vld [vmem:[#allocation15_spill] sm:$0xff] }
 0x252   :  { %7600 = vst [vmem:[#allocation10_spill] sm:$0xff] %v3925_v1  ;;  %7602 = vst [vmem:[#allocation11_spill] sm:$0xff] %v3929_v40  ;;  %v3941_v60 = vsub.f32 %v7607_v14, %v3889_v26  ;;  %v3945_v24 = vsub.f32 %v7609_v6, %v3889_v26  ;;  %v7611_v1 = vld [vmem:[#allocation16_spill] sm:$0xff]  ;;  %v7613_v40 = vld [vmem:[#allocation17_spill] sm:$0xff] }
 0x253   :  { %7604 = vst [vmem:[#allocation12_spill] sm:$0xff] %v3933_v48  ;;  %7606 = vst [vmem:[#allocation13_spill] sm:$0xff] %v3937_v49  ;;  %v3949_v41 = vsub.f32 %v7611_v1, %v3889_v26  ;;  %v3953_v32 = vsub.f32 %v7613_v40, %v3889_v26  ;;  %v7615_v48 = vld [vmem:[#allocation18_spill] sm:$0xff]  ;;  %v7617_v49 = vld [vmem:[#allocation19_spill] sm:$0xff] }
 0x254   :  { %7608 = vst [vmem:[#allocation14_spill] sm:$0xff] %v3941_v60  ;;  %7610 = vst [vmem:[#allocation15_spill] sm:$0xff] %v3945_v24  ;;  %v3957_v63 = vsub.f32 %v7615_v48, %v3889_v26  ;;  %v3961_v14 = vsub.f32 %v7617_v49, %v3889_v26  ;;  %v7619_v60 = vld [vmem:[#allocation20_spill] sm:$0xff]  ;;  %v7621_v24 = vld [vmem:[#allocation21_spill] sm:$0xff] }
 0x255   :  { %7612 = vst [vmem:[#allocation16_spill] sm:$0xff] %v3949_v41  ;;  %7614 = vst [vmem:[#allocation17_spill] sm:$0xff] %v3953_v32  ;;  %v3965_v6 = vsub.f32 %v7619_v60, %v3889_v26  ;;  %v3969_v1 = vsub.f32 %v7621_v24, %v3889_v26  ;;  %v7623_v41 = vld [vmem:[#allocation22_spill] sm:$0xff]  ;;  %v7625_v32 = vld [vmem:[#allocation23_spill] sm:$0xff] }
 0x256   :  { %7616 = vst [vmem:[#allocation18_spill] sm:$0xff] %v3957_v63  ;;  %7618 = vst [vmem:[#allocation19_spill] sm:$0xff] %v3961_v14  ;;  %v3973_v40 = vsub.f32 %v7623_v41, %v3889_v26  ;;  %v3977_v48 = vsub.f32 %v7625_v32, %v3889_v26  ;;  %v7627_v63 = vld [vmem:[#allocation24_spill] sm:$0xff]  ;;  %v7629_v14 = vld [vmem:[#allocation25_spill] sm:$0xff] }
 0x257   :  { %7620 = vst [vmem:[#allocation20_spill] sm:$0xff] %v3965_v6  ;;  %7622 = vst [vmem:[#allocation21_spill] sm:$0xff] %v3969_v1  ;;  %v3981_v49 = vsub.f32 %v7627_v63, %v3889_v26  ;;  %v3985_v60 = vsub.f32 %v7629_v14, %v3889_v26  ;;  %v7631_v6 = vld [vmem:[#allocation26_spill] sm:$0xff]  ;;  %v7633_v1 = vld [vmem:[#allocation27_spill] sm:$0xff] }
 0x258   :  { %7624 = vst [vmem:[#allocation22_spill] sm:$0xff] %v3973_v40  ;;  %7626 = vst [vmem:[#allocation23_spill] sm:$0xff] %v3977_v48  ;;  %v3989_v24 = vsub.f32 %v7631_v6, %v3889_v26  ;;  %v3993_v41 = vsub.f32 %v7633_v1, %v3889_v26  ;;  %v7635_v40 = vld [vmem:[#allocation28_spill] sm:$0xff]  ;;  %v7637_v48 = vld [vmem:[#allocation29_spill] sm:$0xff] }
 0x259   :  { %7628 = vst [vmem:[#allocation24_spill] sm:$0xff] %v3981_v49  ;;  %7630 = vst [vmem:[#allocation25_spill] sm:$0xff] %v3985_v60  ;;  %v3997_v32 = vsub.f32 %v7635_v40, %v3889_v26  ;;  %v4001_v63 = vsub.f32 %v7637_v48, %v3889_v26  ;;  %v7639_v49 = vld [vmem:[#allocation30_spill] sm:$0xff]  ;;  %v7641_v60 = vld [vmem:[#allocation31_spill] sm:$0xff] }
 0x25a   :  { %7632 = vst [vmem:[#allocation26_spill] sm:$0xff] %v3989_v24  ;;  %7634 = vst [vmem:[#allocation27_spill] sm:$0xff] %v3993_v41  ;;  %v4005_v14 = vsub.f32 %v7639_v49, %v3889_v26  ;;  %v4009_v6 = vsub.f32 %v7641_v60, %v3889_v26  ;;  %v7643_v24 = vld [vmem:[#allocation32_spill] sm:$0xff]  ;;  %v7645_v41 = vld [vmem:[#allocation33_spill] sm:$0xff] }
 0x25b   :  { %7636 = vst [vmem:[#allocation28_spill] sm:$0xff] %v3997_v32  ;;  %7638 = vst [vmem:[#allocation29_spill] sm:$0xff] %v4001_v63  ;;  %v4013_v1 = vsub.f32 %v7643_v24, %v3889_v26  ;;  %v4017_v40 = vsub.f32 %v7645_v41, %v3889_v26  ;;  %v7647_v32 = vld [vmem:[#allocation34_spill] sm:$0xff]  ;;  %v7649_v63 = vld [vmem:[#allocation35_spill] sm:$0xff] }
 0x25c   :  { %7640 = vst [vmem:[#allocation30_spill] sm:$0xff] %v4005_v14  ;;  %7642 = vst [vmem:[#allocation31_spill] sm:$0xff] %v4009_v6  ;;  %v4021_v48 = vsub.f32 %v7647_v32, %v3889_v26  ;;  %v4025_v49 = vsub.f32 %v7649_v63, %v3889_v26  ;;  %v7651_v14 = vld [vmem:[#allocation36_spill] sm:$0xff]  ;;  %v7653_v6 = vld [vmem:[#allocation37_spill] sm:$0xff] }
 0x25d   :  { %7644 = vst [vmem:[#allocation32_spill] sm:$0xff] %v4013_v1  ;;  %7646 = vst [vmem:[#allocation33_spill] sm:$0xff] %v4017_v40  ;;  %v4029_v60 = vsub.f32 %v7651_v14, %v3889_v26  ;;  %v4033_v24 = vsub.f32 %v7653_v6, %v3889_v26  ;;  %v7655_v1 = vld [vmem:[#allocation38_spill] sm:$0xff]  ;;  %v7657_v40 = vld [vmem:[#allocation39_spill] sm:$0xff] }
 0x25e   :  { %7648 = vst [vmem:[#allocation34_spill] sm:$0xff] %v4021_v48  ;;  %7650 = vst [vmem:[#allocation35_spill] sm:$0xff] %v4025_v49  ;;  %v4037_v41 = vsub.f32 %v7655_v1, %v3889_v26  ;;  %v4041_v32 = vsub.f32 %v7657_v40, %v3889_v26  ;;  %v7659_v48 = vld [vmem:[#allocation40_spill] sm:$0xff]  ;;  %v7661_v49 = vld [vmem:[#allocation41_spill] sm:$0xff] }
 0x25f   :  { %7652 = vst [vmem:[#allocation36_spill] sm:$0xff] %v4029_v60  ;;  %7654 = vst [vmem:[#allocation37_spill] sm:$0xff] %v4033_v24  ;;  %v4045_v63 = vsub.f32 %v7659_v48, %v3889_v26  ;;  %v4049_v14 = vsub.f32 %v7661_v49, %v3889_v26  ;;  %v7663_v60 = vld [vmem:[#allocation42_spill] sm:$0xff]  ;;  %v7665_v24 = vld [vmem:[#allocation43_spill] sm:$0xff] }
 0x260   :  { %7656 = vst [vmem:[#allocation38_spill] sm:$0xff] %v4037_v41  ;;  %7658 = vst [vmem:[#allocation39_spill] sm:$0xff] %v4041_v32  ;;  %v4053_v6 = vsub.f32 %v7663_v60, %v3889_v26  ;;  %v4057_v1 = vsub.f32 %v7665_v24, %v3889_v26  ;;  %v7667_v41 = vld [vmem:[#allocation44_spill] sm:$0xff]  ;;  %v7669_v32 = vld [vmem:[#allocation45_spill] sm:$0xff] }
 0x261   :  { %7660 = vst [vmem:[#allocation40_spill] sm:$0xff] %v4045_v63  ;;  %7662 = vst [vmem:[#allocation41_spill] sm:$0xff] %v4049_v14  ;;  %v4061_v40 = vsub.f32 %v7667_v41, %v3889_v26  ;;  %v4065_v48 = vsub.f32 %v7669_v32, %v3889_v26  ;;  %v7670_v63 = vld [vmem:[#allocation46_spill] sm:$0xff]  ;;  %v7671_v14 = vld [vmem:[#allocation48_spill] sm:$0xff] }
 0x262   :  { %7664 = vst [vmem:[#allocation42_spill] sm:$0xff] %v4053_v6  ;;  %7666 = vst [vmem:[#allocation43_spill] sm:$0xff] %v4057_v1  ;;  %v4069_v49 = vsub.f32 %v7670_v63, %v3889_v26  ;;  %v4073_v60 = vsub.f32 %v7671_v14, %v3889_v26  ;;  %v7672_v6 = vld [vmem:[#allocation50_spill] sm:$0xff]  ;;  %v7673_v1 = vld [vmem:[#allocation52_spill] sm:$0xff]  ;;  %v4089_v63 = vsub.f32 %v3783_v52, %v3889_v26 }
 0x263   :  { %7668 = vst [vmem:[#allocation44_spill] sm:$0xff] %v4061_v40  ;;  %v4077_v24 = vsub.f32 %v7672_v6, %v3889_v26  ;;  %v4081_v41 = vsub.f32 %v7673_v1, %v3889_v26  ;;  %v7674_v40 = vld [vmem:[#allocation53_spill] sm:$0xff]  ;;  %v4093_v14 = vsub.f32 %v3491_v62, %v3889_v26  ;;  %v4097_v6 = vsub.f32 %v3495_v2, %v3889_v26 }
 0x264   :  { %v4085_v32 = vsub.f32 %v7674_v40, %v3889_v26  ;;  %v4101_v1 = vsub.f32 %v3503_v9, %v3889_v26  ;;  %v4105_v40 = vsub.f32 %v3509_v15, %v3889_v26  ;;  %v4109_v52 = vsub.f32 %v3515_v21, %v3889_v26 }
 0x265   :  { %v4113_v62 = vsub.f32 %v3521_v27, %v3889_v26  ;;  %v4117_v2 = vsub.f32 %v3527_v33, %v3889_v26  ;;  %v4121_v9 = vsub.f32 %v3533_v39, %v3889_v26  ;;  %v4125_v15 = vsub.f32 %v3539_v45, %v3889_v26 }
 0x266   :  { %v4129_v21 = vsub.f32 %v3545_v51, %v3889_v26  ;;  %v4133_v27 = vsub.f32 %v3551_v57, %v3889_v26  ;;  %v4137_v33 = vsub.f32 %v3557_v3, %v3889_v26  ;;  %v4141_v39 = vsub.f32 %v3563_v11, %v3889_v26 }
 0x267   :  { %v4145_v45 = vsub.f32 %v3569_v19, %v3889_v26  ;;  %v4149_v51 = vsub.f32 %v3575_v29, %v3889_v26  ;;  %v4153_v57 = vsub.f32 %v3581_v37, %v3889_v26  ;;  %v4157_v3 = vsub.f32 %v3587_v47, %v3889_v26 }
 0x268   :  { %v4161_v11 = vsub.f32 %v3593_v55, %v3889_v26  ;;  %v4165_v19 = vsub.f32 %v3599_v5, %v3889_v26  ;;  %v4169_v29 = vsub.f32 %v3605_v17, %v3889_v26  ;;  %v4173_v37 = vsub.f32 %v3611_v31, %v3889_v26 }
 0x269   :  { %v4177_v47 = vsub.f32 %v3617_v43, %v3889_v26  ;;  %v4181_v55 = vsub.f32 %v3623_v59, %v3889_v26  ;;  %v4185_v5 = vsub.f32 %v3629_v13, %v3889_v26  ;;  %v4189_v17 = vsub.f32 %v3635_v35, %v3889_v26 }
 0x26a   :  { %7675 = vst [vmem:[#allocation45_spill] sm:$0xff] %v4165_v19  ;;  %7676 = vst [vmem:[#allocation46_spill] sm:$0xff] %v4169_v29  ;;  %v4193_v31 = vsub.f32 %v3641_v53, %v3889_v26  ;;  %v4197_v43 = vsub.f32 %v3647_v23, %v3889_v26  ;;  %v4201_v59 = vsub.f32 %v3653_v34, %v3889_v26 }
 0x26b   :  { %7677 = vst [vmem:[#allocation48_spill] sm:$0xff] %v4173_v37  ;;  %7678 = vst [vmem:[#allocation50_spill] sm:$0xff] %v4177_v47  ;;  %v4205_v13 = vsub.f32 %v3659_v12, %v3889_v26  ;;  %v4209_v35 = vsub.f32 %v3665_v58, %v3889_v26  ;;  %v4213_v53 = vsub.f32 %v3671_v42, %v3889_v26 }
 0x26c   :  { %7679 = vst [vmem:[#allocation52_spill] sm:$0xff] %v4181_v55  ;;  %7680 = vst [vmem:[#allocation53_spill] sm:$0xff] %v4185_v5  ;;  %v4217_v23 = vsub.f32 %v3677_v30, %v3889_v26  ;;  %v4221_v34 = vsub.f32 %v3683_v16, %v3889_v26  ;;  %v4225_v12 = vsub.f32 %v3689_v4, %v3889_v26 }
 0x26d   :  { %7681 = vst [vmem:[#allocation55_spill] sm:$0xff] %v4189_v17  ;;  %7682 = vst [vmem:[#allocation56_spill] sm:$0xff] %v4193_v31  ;;  %v4229_v58 = vsub.f32 %v3695_v54, %v3889_v26  ;;  %v4233_v42 = vsub.f32 %v3701_v46, %v3889_v26  ;;  %v4237_v30 = vsub.f32 %v3707_v36, %v3889_v26 }
 0x26e   :  { %7683 = vst [vmem:[#allocation57_spill] sm:$0xff] %v4197_v43  ;;  %7684 = vst [vmem:[#allocation58_spill] sm:$0xff] %v4201_v59  ;;  %v4241_v16 = vsub.f32 %v3713_v28, %v3889_v26  ;;  %v4245_v4 = vsub.f32 %v3719_v18, %v3889_v26  ;;  %v4249_v54 = vsub.f32 %v3725_v10, %v3889_v26 }
 0x26f   :  { %7685 = vst [vmem:[#allocation59_spill] sm:$0xff] %v4205_v13  ;;  %7686 = vst [vmem:[#allocation60_spill] sm:$0xff] %v4209_v35  ;;  %v4253_v46 = vsub.f32 %v3731_v0, %v3889_v26  ;;  %v4257_v36 = vsub.f32 %v3737_v56, %v3889_v26  ;;  %v4261_v28 = vsub.f32 %v3743_v50, %v3889_v26 }
 0x270   :  { %7687 = vst [vmem:[#allocation61_spill] sm:$0xff] %v4213_v53  ;;  %7688 = vst [vmem:[#allocation62_spill] sm:$0xff] %v4217_v23  ;;  %v4265_v18 = vsub.f32 %v3749_v44, %v3889_v26  ;;  %v4281_v50 = vsub.f32 %v3773_v20, %v3889_v26  ;;  %v1190_v20 = vmul.f32 %v3905_v61, %v3905_v61 }
 0x271   :  { %7689 = vst [vmem:[#allocation63_spill] sm:$0xff] %v4221_v34  ;;  %7690 = vst [vmem:[#allocation64_spill] sm:$0xff] %v4225_v12 }
 0x272   :  { %7691 = vst [vmem:[#allocation65_spill] sm:$0xff] %v4229_v58  ;;  %7692 = vst [vmem:[#allocation66_spill] sm:$0xff] %v4245_v4  ;;  %v7697_v4 = vld [vmem:[#allocation47_spill] sm:$0xff] }
 0x273   :  { %7693 = vst [vmem:[#allocation67_spill] sm:$0xff] %v4249_v54  ;;  %7694 = vst [vmem:[#allocation68_spill] sm:$0xff] %v4253_v46  ;;  %v4269_v10 = vsub.f32 %v7697_v4, %v3889_v26  ;;  %v7699_v54 = vld [vmem:[#allocation49_spill] sm:$0xff]  ;;  %v7701_v46 = vld [vmem:[#allocation51_spill] sm:$0xff]  ;;  %v4289_v4 = vsub.f32 %v3785_v8, %v3889_v26  ;;  %v1191_v8 = vmul.f32 %v3909_v38, %v3909_v38 }
 0x274   :  { %7695 = vst [vmem:[#allocation69_spill] sm:$0xff] %v4261_v28  ;;  %7696 = vst [vmem:[#allocation70_spill] sm:$0xff] %v4265_v18  ;;  %v4273_v0 = vsub.f32 %v7699_v54, %v3889_v26  ;;  %v4277_v56 = vsub.f32 %v7701_v46, %v3889_v26  ;;  %v7704_v28 = vld [vmem:[#allocation54_spill] sm:$0xff]  ;;  %v1187_v54 = vmul.f32 %v3893_v7, %v3893_v7 }
 0x275   :  { %7698 = vst [vmem:[#allocation47_spill] sm:$0xff] %v4269_v10  ;;  %7703 = vst [vmem:[#allocation71_spill] sm:$0xff] %v4281_v50  ;;  %v4285_v44 = vsub.f32 %v7704_v28, %v3889_v26  ;;  %v1189_v46 = vmul.f32 %v3901_v25, %v3901_v25  ;;  %v7708_v10 = vld [vmem:[#allocation8_spill] sm:$0xff] }
 0x276   :  { %7700 = vst [vmem:[#allocation49_spill] sm:$0xff] %v4273_v0  ;;  %7702 = vst [vmem:[#allocation51_spill] sm:$0xff] %v4277_v56  ;;  %v1188_v0 = vmul.f32 %v3897_v22, %v3897_v22  ;;  %v1287_v50 = vsel %vm879_vm0, %v1187_v54, 0.0  ;;  %v1292_v56 = vsel %vm879_vm0, %v1190_v20, 0.0  ;;  %v1193_v61 = vmul.f32 %v7708_v10, %v7708_v10  ;;  %v7711_v20 = vld [vmem:[#allocation11_spill] sm:$0xff] }
 0x277   :  { %7705 = vst [vmem:[#allocation54_spill] sm:$0xff] %v4285_v44  ;;  %7706 = vst [vmem:[#allocation72_spill] sm:$0xff] %v4289_v4  ;;  %v1290_v26 = vsel %vm879_vm0, %v1189_v46, 0.0  ;;  %v7707_v4 = vld [vmem:[#allocation7_spill] sm:$0xff]  ;;  %v1294_v54 = vsel %vm879_vm0, %v1191_v8, 0.0  ;;  %v7710_v46 = vld [vmem:[#allocation10_spill] sm:$0xff] }
 0x278   :  { %v1288_v28 = vsel %vm879_vm0, %v1188_v0, 0.0  ;;  %v1192_v22 = vmul.f32 %v7707_v4, %v7707_v4  ;;  %v7709_v0 = vld [vmem:[#allocation9_spill] sm:$0xff]  ;;  %v7712_v8 = vld [vmem:[#allocation12_spill] sm:$0xff] }
 0x279   :  { %v1289_v44 = vadd.f32 %v1288_v28, %v1287_v50  ;;  %v1194_v50 = vmul.f32 %v7709_v0, %v7709_v0 }
 0x27a   :  { %v1296_v28 = vsel %vm879_vm0, %v1192_v22, 0.0  ;;  %v7713_v22 = vld [vmem:[#allocation13_spill] sm:$0xff] }
 0x27b   :  { %v1291_v7 = vadd.f32 %v1290_v26, %v1289_v44  ;;  %v1195_v44 = vmul.f32 %v7710_v46, %v7710_v46  ;;  %v1298_v26 = vsel %vm879_vm0, %v1193_v61, 0.0  ;;  %v7714_v61 = vld [vmem:[#allocation14_spill] sm:$0xff] }
 0x27d   :  { %v1293_v25 = vadd.f32 %v1292_v56, %v1291_v7  ;;  %v1196_v7 = vmul.f32 %v7711_v20, %v7711_v20  ;;  %v1300_v56 = vsel %vm879_vm0, %v1194_v50, 0.0  ;;  %v7715_v50 = vld [vmem:[#allocation15_spill] sm:$0xff] }
 0x27f   :  { %v1295_v18 = vadd.f32 %v1294_v54, %v1293_v25  ;;  %v1197_v25 = vmul.f32 %v7712_v8, %v7712_v8  ;;  %v1302_v54 = vsel %vm879_vm0, %v1195_v44, 0.0  ;;  %v7716_v44 = vld [vmem:[#allocation16_spill] sm:$0xff] }
 0x281   :  { %v1297_v38 = vadd.f32 %v1296_v28, %v1295_v18  ;;  %v1198_v18 = vmul.f32 %v7713_v22, %v7713_v22  ;;  %v1304_v28 = vsel %vm879_vm0, %v1196_v7, 0.0  ;;  %v7717_v7 = vld [vmem:[#allocation17_spill] sm:$0xff] }
 0x283   :  { %v1299_v4 = vadd.f32 %v1298_v26, %v1297_v38  ;;  %v1199_v38 = vmul.f32 %v7714_v61, %v7714_v61  ;;  %v1306_v26 = vsel %vm879_vm0, %v1197_v25, 0.0  ;;  %v7718_v25 = vld [vmem:[#allocation18_spill] sm:$0xff] }
 0x285   :  { %v1301_v10 = vadd.f32 %v1300_v56, %v1299_v4  ;;  %v1200_v4 = vmul.f32 %v7715_v50, %v7715_v50  ;;  %v1308_v56 = vsel %vm879_vm0, %v1198_v18, 0.0  ;;  %v7719_v18 = vld [vmem:[#allocation19_spill] sm:$0xff] }
 0x287   :  { %v1303_v0 = vadd.f32 %v1302_v54, %v1301_v10  ;;  %v1201_v10 = vmul.f32 %v7716_v44, %v7716_v44  ;;  %v1310_v54 = vsel %vm879_vm0, %v1199_v38, 0.0  ;;  %v7720_v38 = vld [vmem:[#allocation20_spill] sm:$0xff] }
 0x289   :  { %v1305_v46 = vadd.f32 %v1304_v28, %v1303_v0  ;;  %v1202_v0 = vmul.f32 %v7717_v7, %v7717_v7  ;;  %v1312_v28 = vsel %vm879_vm0, %v1200_v4, 0.0  ;;  %v7721_v4 = vld [vmem:[#allocation21_spill] sm:$0xff] }
 0x28b   :  { %v1307_v20 = vadd.f32 %v1306_v26, %v1305_v46  ;;  %v1203_v46 = vmul.f32 %v7718_v25, %v7718_v25  ;;  %v1314_v26 = vsel %vm879_vm0, %v1201_v10, 0.0  ;;  %v7722_v10 = vld [vmem:[#allocation22_spill] sm:$0xff] }
 0x28d   :  { %v1309_v8 = vadd.f32 %v1308_v56, %v1307_v20  ;;  %v1204_v20 = vmul.f32 %v7719_v18, %v7719_v18  ;;  %v1316_v56 = vsel %vm879_vm0, %v1202_v0, 0.0  ;;  %v7723_v0 = vld [vmem:[#allocation23_spill] sm:$0xff] }
 0x28f   :  { %v1311_v22 = vadd.f32 %v1310_v54, %v1309_v8  ;;  %v1205_v8 = vmul.f32 %v7720_v38, %v7720_v38  ;;  %v1318_v54 = vsel %vm879_vm0, %v1203_v46, 0.0  ;;  %v7724_v46 = vld [vmem:[#allocation24_spill] sm:$0xff] }
 0x291   :  { %v1313_v61 = vadd.f32 %v1312_v28, %v1311_v22  ;;  %v1206_v22 = vmul.f32 %v7721_v4, %v7721_v4  ;;  %v1320_v28 = vsel %vm879_vm0, %v1204_v20, 0.0  ;;  %v7725_v20 = vld [vmem:[#allocation25_spill] sm:$0xff] }
 0x293   :  { %v1315_v50 = vadd.f32 %v1314_v26, %v1313_v61  ;;  %v1207_v61 = vmul.f32 %v7722_v10, %v7722_v10  ;;  %v1322_v26 = vsel %vm879_vm0, %v1205_v8, 0.0  ;;  %v7726_v8 = vld [vmem:[#allocation26_spill] sm:$0xff] }
 0x295   :  { %v1317_v44 = vadd.f32 %v1316_v56, %v1315_v50  ;;  %v1208_v50 = vmul.f32 %v7723_v0, %v7723_v0  ;;  %v1324_v56 = vsel %vm879_vm0, %v1206_v22, 0.0  ;;  %v7727_v22 = vld [vmem:[#allocation27_spill] sm:$0xff] }
 0x297   :  { %v1319_v7 = vadd.f32 %v1318_v54, %v1317_v44  ;;  %v1209_v44 = vmul.f32 %v7724_v46, %v7724_v46  ;;  %v1326_v54 = vsel %vm879_vm0, %v1207_v61, 0.0  ;;  %v7728_v61 = vld [vmem:[#allocation28_spill] sm:$0xff] }
 0x299   :  { %v1321_v25 = vadd.f32 %v1320_v28, %v1319_v7  ;;  %v1210_v7 = vmul.f32 %v7725_v20, %v7725_v20  ;;  %v1328_v28 = vsel %vm879_vm0, %v1208_v50, 0.0  ;;  %v7729_v50 = vld [vmem:[#allocation29_spill] sm:$0xff] }
 0x29b   :  { %v1323_v18 = vadd.f32 %v1322_v26, %v1321_v25  ;;  %v1211_v25 = vmul.f32 %v7726_v8, %v7726_v8  ;;  %v1330_v26 = vsel %vm879_vm0, %v1209_v44, 0.0  ;;  %v7730_v44 = vld [vmem:[#allocation30_spill] sm:$0xff] }
 0x29d   :  { %v1325_v38 = vadd.f32 %v1324_v56, %v1323_v18  ;;  %v1212_v18 = vmul.f32 %v7727_v22, %v7727_v22  ;;  %v1332_v56 = vsel %vm879_vm0, %v1210_v7, 0.0  ;;  %v7731_v7 = vld [vmem:[#allocation31_spill] sm:$0xff] }
 0x29f   :  { %v1327_v4 = vadd.f32 %v1326_v54, %v1325_v38  ;;  %v1213_v38 = vmul.f32 %v7728_v61, %v7728_v61  ;;  %v1334_v54 = vsel %vm879_vm0, %v1211_v25, 0.0  ;;  %v7732_v25 = vld [vmem:[#allocation32_spill] sm:$0xff] }
 0x2a1   :  { %v1329_v10 = vadd.f32 %v1328_v28, %v1327_v4  ;;  %v1214_v4 = vmul.f32 %v7729_v50, %v7729_v50  ;;  %v1336_v28 = vsel %vm879_vm0, %v1212_v18, 0.0  ;;  %v7733_v18 = vld [vmem:[#allocation33_spill] sm:$0xff] }
 0x2a3   :  { %v1331_v0 = vadd.f32 %v1330_v26, %v1329_v10  ;;  %v1215_v10 = vmul.f32 %v7730_v44, %v7730_v44  ;;  %v1338_v26 = vsel %vm879_vm0, %v1213_v38, 0.0  ;;  %v7734_v38 = vld [vmem:[#allocation34_spill] sm:$0xff] }
 0x2a5   :  { %v1333_v46 = vadd.f32 %v1332_v56, %v1331_v0  ;;  %v1216_v0 = vmul.f32 %v7731_v7, %v7731_v7  ;;  %v1340_v56 = vsel %vm879_vm0, %v1214_v4, 0.0  ;;  %v7735_v4 = vld [vmem:[#allocation35_spill] sm:$0xff] }
 0x2a7   :  { %v1335_v20 = vadd.f32 %v1334_v54, %v1333_v46  ;;  %v1217_v46 = vmul.f32 %v7732_v25, %v7732_v25  ;;  %v1342_v54 = vsel %vm879_vm0, %v1215_v10, 0.0  ;;  %v7736_v10 = vld [vmem:[#allocation36_spill] sm:$0xff] }
 0x2a9   :  { %v1337_v8 = vadd.f32 %v1336_v28, %v1335_v20  ;;  %v1218_v20 = vmul.f32 %v7733_v18, %v7733_v18  ;;  %v1344_v28 = vsel %vm879_vm0, %v1216_v0, 0.0  ;;  %v7737_v0 = vld [vmem:[#allocation37_spill] sm:$0xff] }
 0x2ab   :  { %v1339_v22 = vadd.f32 %v1338_v26, %v1337_v8  ;;  %v1219_v8 = vmul.f32 %v7734_v38, %v7734_v38  ;;  %v1346_v26 = vsel %vm879_vm0, %v1217_v46, 0.0  ;;  %v7738_v46 = vld [vmem:[#allocation38_spill] sm:$0xff] }
 0x2ad   :  { %v1341_v61 = vadd.f32 %v1340_v56, %v1339_v22  ;;  %v1220_v22 = vmul.f32 %v7735_v4, %v7735_v4  ;;  %v1348_v56 = vsel %vm879_vm0, %v1218_v20, 0.0  ;;  %v7739_v20 = vld [vmem:[#allocation39_spill] sm:$0xff] }
 0x2af   :  { %v1343_v50 = vadd.f32 %v1342_v54, %v1341_v61  ;;  %v1221_v61 = vmul.f32 %v7736_v10, %v7736_v10  ;;  %v1350_v54 = vsel %vm879_vm0, %v1219_v8, 0.0  ;;  %v7740_v8 = vld [vmem:[#allocation40_spill] sm:$0xff] }
 0x2b1   :  { %v1345_v44 = vadd.f32 %v1344_v28, %v1343_v50  ;;  %v1222_v50 = vmul.f32 %v7737_v0, %v7737_v0  ;;  %v1352_v28 = vsel %vm879_vm0, %v1220_v22, 0.0  ;;  %v7741_v22 = vld [vmem:[#allocation41_spill] sm:$0xff] }
 0x2b3   :  { %v1347_v7 = vadd.f32 %v1346_v26, %v1345_v44  ;;  %v1223_v44 = vmul.f32 %v7738_v46, %v7738_v46  ;;  %v1354_v26 = vsel %vm879_vm0, %v1221_v61, 0.0  ;;  %v7742_v61 = vld [vmem:[#allocation42_spill] sm:$0xff] }
 0x2b5   :  { %v1349_v25 = vadd.f32 %v1348_v56, %v1347_v7  ;;  %v1224_v7 = vmul.f32 %v7739_v20, %v7739_v20  ;;  %v1356_v56 = vsel %vm879_vm0, %v1222_v50, 0.0  ;;  %v7743_v50 = vld [vmem:[#allocation43_spill] sm:$0xff] }
 0x2b7   :  { %v1351_v18 = vadd.f32 %v1350_v54, %v1349_v25  ;;  %v1225_v25 = vmul.f32 %v7740_v8, %v7740_v8  ;;  %v1358_v54 = vsel %vm879_vm0, %v1223_v44, 0.0  ;;  %v7744_v44 = vld [vmem:[#allocation44_spill] sm:$0xff] }
 0x2b9   :  { %v1353_v38 = vadd.f32 %v1352_v28, %v1351_v18  ;;  %v1226_v18 = vmul.f32 %v7741_v22, %v7741_v22  ;;  %v1360_v28 = vsel %vm879_vm0, %v1224_v7, 0.0 }
 0x2bb   :  { %v1355_v4 = vadd.f32 %v1354_v26, %v1353_v38  ;;  %v1227_v38 = vmul.f32 %v7742_v61, %v7742_v61  ;;  %v1362_v26 = vsel %vm879_vm0, %v1225_v25, 0.0 }
 0x2bd   :  { %v1357_v10 = vadd.f32 %v1356_v56, %v1355_v4  ;;  %v1228_v4 = vmul.f32 %v7743_v50, %v7743_v50  ;;  %v1364_v56 = vsel %vm879_vm0, %v1226_v18, 0.0 }
 0x2bf   :  { %v1359_v0 = vadd.f32 %v1358_v54, %v1357_v10  ;;  %v1229_v10 = vmul.f32 %v7744_v44, %v7744_v44  ;;  %v1366_v54 = vsel %vm879_vm0, %v1227_v38, 0.0  ;;  %v1368_v7 = vsel %vm879_vm0, %v1228_v4, 0.0 }
 0x2c1   :  { %v1361_v46 = vadd.f32 %v1360_v28, %v1359_v0  ;;  %v1230_v0 = vmul.f32 %v4065_v48, %v4065_v48  ;;  %v1370_v25 = vsel %vm879_vm0, %v1229_v10, 0.0  ;;  %v1235_v10 = vmul.f32 %v4085_v32, %v4085_v32 }
 0x2c3   :  { %v1363_v20 = vadd.f32 %v1362_v26, %v1361_v46  ;;  %v1231_v46 = vmul.f32 %v4069_v49, %v4069_v49  ;;  %v1372_v18 = vsel %vm879_vm0, %v1230_v0, 0.0  ;;  %v1236_v0 = vmul.f32 %v4089_v63, %v4089_v63 }
 0x2c5   :  { %v1365_v8 = vadd.f32 %v1364_v56, %v1363_v20  ;;  %v1232_v20 = vmul.f32 %v4073_v60, %v4073_v60  ;;  %v1374_v38 = vsel %vm879_vm0, %v1231_v46, 0.0  ;;  %v1237_v46 = vmul.f32 %v4093_v14, %v4093_v14 }
 0x2c7   :  { %v1367_v22 = vadd.f32 %v1366_v54, %v1365_v8  ;;  %v1233_v8 = vmul.f32 %v4077_v24, %v4077_v24  ;;  %v1376_v4 = vsel %vm879_vm0, %v1232_v20, 0.0  ;;  %v1238_v20 = vmul.f32 %v4097_v6, %v4097_v6 }
 0x2c9   :  { %v1369_v28 = vadd.f32 %v1368_v7, %v1367_v22  ;;  %v1234_v22 = vmul.f32 %v4081_v41, %v4081_v41 }
 0x2cb   :  { %v1371_v26 = vadd.f32 %v1370_v25, %v1369_v28  ;;  %v1378_v28 = vsel %vm879_vm0, %v1233_v8, 0.0  ;;  %v1239_v8 = vmul.f32 %v4101_v1, %v4101_v1 }
 0x2cd   :  { %v1373_v56 = vadd.f32 %v1372_v18, %v1371_v26  ;;  %v1380_v26 = vsel %vm879_vm0, %v1234_v22, 0.0  ;;  %v1240_v22 = vmul.f32 %v4105_v40, %v4105_v40 }
 0x2cf   :  { %v1375_v54 = vadd.f32 %v1374_v38, %v1373_v56  ;;  %v1382_v56 = vsel %vm879_vm0, %v1235_v10, 0.0  ;;  %v1241_v10 = vmul.f32 %v4109_v52, %v4109_v52 }
 0x2d1   :  { %v1377_v7 = vadd.f32 %v1376_v4, %v1375_v54  ;;  %v1384_v54 = vsel %vm879_vm0, %v1236_v0, 0.0  ;;  %v1242_v0 = vmul.f32 %v4113_v62, %v4113_v62 }
 0x2d3   :  { %v1379_v25 = vadd.f32 %v1378_v28, %v1377_v7  ;;  %v1386_v7 = vsel %vm879_vm0, %v1237_v46, 0.0  ;;  %v1243_v46 = vmul.f32 %v4117_v2, %v4117_v2 }
 0x2d5   :  { %v1381_v18 = vadd.f32 %v1380_v26, %v1379_v25  ;;  %v1388_v25 = vsel %vm879_vm0, %v1238_v20, 0.0  ;;  %v1244_v20 = vmul.f32 %v4121_v9, %v4121_v9 }
 0x2d7   :  { %v1383_v38 = vadd.f32 %v1382_v56, %v1381_v18  ;;  %v1390_v18 = vsel %vm879_vm0, %v1239_v8, 0.0  ;;  %v1245_v8 = vmul.f32 %v4125_v15, %v4125_v15 }
 0x2d9   :  { %v1385_v4 = vadd.f32 %v1384_v54, %v1383_v38  ;;  %v1392_v38 = vsel %vm879_vm0, %v1240_v22, 0.0  ;;  %v1246_v22 = vmul.f32 %v4129_v21, %v4129_v21 }
 0x2db   :  { %v1387_v28 = vadd.f32 %v1386_v7, %v1385_v4  ;;  %v1394_v4 = vsel %vm879_vm0, %v1241_v10, 0.0  ;;  %v1247_v10 = vmul.f32 %v4133_v27, %v4133_v27 }
 0x2dd   :  { %v1389_v26 = vadd.f32 %v1388_v25, %v1387_v28  ;;  %v1396_v28 = vsel %vm879_vm0, %v1242_v0, 0.0  ;;  %v1248_v0 = vmul.f32 %v4137_v33, %v4137_v33 }
 0x2df   :  { %v1391_v56 = vadd.f32 %v1390_v18, %v1389_v26  ;;  %v1398_v26 = vsel %vm879_vm0, %v1243_v46, 0.0  ;;  %v1249_v46 = vmul.f32 %v4141_v39, %v4141_v39 }
 0x2e1   :  { %v1393_v54 = vadd.f32 %v1392_v38, %v1391_v56  ;;  %v1400_v56 = vsel %vm879_vm0, %v1244_v20, 0.0  ;;  %v1250_v20 = vmul.f32 %v4145_v45, %v4145_v45 }
 0x2e3   :  { %v1395_v7 = vadd.f32 %v1394_v4, %v1393_v54  ;;  %v1402_v54 = vsel %vm879_vm0, %v1245_v8, 0.0  ;;  %v1251_v8 = vmul.f32 %v4149_v51, %v4149_v51 }
 0x2e5   :  { %v1397_v25 = vadd.f32 %v1396_v28, %v1395_v7  ;;  %v1404_v7 = vsel %vm879_vm0, %v1246_v22, 0.0  ;;  %v1252_v22 = vmul.f32 %v4153_v57, %v4153_v57 }
 0x2e7   :  { %v1399_v18 = vadd.f32 %v1398_v26, %v1397_v25  ;;  %v1406_v25 = vsel %vm879_vm0, %v1247_v10, 0.0  ;;  %v1253_v10 = vmul.f32 %v4157_v3, %v4157_v3 }
 0x2e9   :  { %v1401_v38 = vadd.f32 %v1400_v56, %v1399_v18  ;;  %v1408_v18 = vsel %vm879_vm0, %v1248_v0, 0.0  ;;  %v1254_v0 = vmul.f32 %v4161_v11, %v4161_v11 }
 0x2eb   :  { %v1403_v4 = vadd.f32 %v1402_v54, %v1401_v38  ;;  %v1410_v38 = vsel %vm879_vm0, %v1249_v46, 0.0  ;;  %v1255_v46 = vmul.f32 %v4165_v19, %v4165_v19 }
 0x2ed   :  { %v1405_v28 = vadd.f32 %v1404_v7, %v1403_v4  ;;  %v1412_v4 = vsel %vm879_vm0, %v1250_v20, 0.0  ;;  %v1256_v20 = vmul.f32 %v4169_v29, %v4169_v29 }
 0x2ef   :  { %v1407_v26 = vadd.f32 %v1406_v25, %v1405_v28  ;;  %v1414_v28 = vsel %vm879_vm0, %v1251_v8, 0.0  ;;  %v1257_v8 = vmul.f32 %v4173_v37, %v4173_v37 }
 0x2f1   :  { %v1409_v56 = vadd.f32 %v1408_v18, %v1407_v26  ;;  %v1416_v26 = vsel %vm879_vm0, %v1252_v22, 0.0  ;;  %v1258_v22 = vmul.f32 %v4177_v47, %v4177_v47 }
 0x2f3   :  { %v1411_v54 = vadd.f32 %v1410_v38, %v1409_v56  ;;  %v1418_v56 = vsel %vm879_vm0, %v1253_v10, 0.0  ;;  %v1259_v10 = vmul.f32 %v4181_v55, %v4181_v55 }
 0x2f5   :  { %v1413_v7 = vadd.f32 %v1412_v4, %v1411_v54  ;;  %v1420_v54 = vsel %vm879_vm0, %v1254_v0, 0.0  ;;  %v1260_v0 = vmul.f32 %v4185_v5, %v4185_v5 }
 0x2f7   :  { %v1415_v25 = vadd.f32 %v1414_v28, %v1413_v7  ;;  %v1422_v7 = vsel %vm879_vm0, %v1255_v46, 0.0  ;;  %v1261_v46 = vmul.f32 %v4189_v17, %v4189_v17 }
 0x2f9   :  { %v1417_v18 = vadd.f32 %v1416_v26, %v1415_v25  ;;  %v1424_v25 = vsel %vm879_vm0, %v1256_v20, 0.0  ;;  %v1262_v20 = vmul.f32 %v4193_v31, %v4193_v31 }
 0x2fb   :  { %v1419_v38 = vadd.f32 %v1418_v56, %v1417_v18  ;;  %v1426_v18 = vsel %vm879_vm0, %v1257_v8, 0.0  ;;  %v1263_v8 = vmul.f32 %v4197_v43, %v4197_v43 }
 0x2fd   :  { %v1421_v4 = vadd.f32 %v1420_v54, %v1419_v38  ;;  %v1428_v38 = vsel %vm879_vm0, %v1258_v22, 0.0  ;;  %v1264_v22 = vmul.f32 %v4201_v59, %v4201_v59 }
 0x2ff   :  { %v1423_v28 = vadd.f32 %v1422_v7, %v1421_v4  ;;  %v1430_v4 = vsel %vm879_vm0, %v1259_v10, 0.0  ;;  %v1265_v10 = vmul.f32 %v4205_v13, %v4205_v13 }
 0x301   :  { %v1425_v26 = vadd.f32 %v1424_v25, %v1423_v28  ;;  %v1432_v28 = vsel %vm879_vm0, %v1260_v0, 0.0  ;;  %v1266_v0 = vmul.f32 %v4209_v35, %v4209_v35 }
 0x303   :  { %v1427_v56 = vadd.f32 %v1426_v18, %v1425_v26  ;;  %v1434_v26 = vsel %vm879_vm0, %v1261_v46, 0.0  ;;  %v1267_v46 = vmul.f32 %v4213_v53, %v4213_v53 }
 0x305   :  { %v1429_v54 = vadd.f32 %v1428_v38, %v1427_v56  ;;  %v1436_v56 = vsel %vm879_vm0, %v1262_v20, 0.0  ;;  %v1268_v20 = vmul.f32 %v4217_v23, %v4217_v23 }
 0x307   :  { %v1431_v7 = vadd.f32 %v1430_v4, %v1429_v54  ;;  %v1438_v54 = vsel %vm879_vm0, %v1263_v8, 0.0  ;;  %v1269_v8 = vmul.f32 %v4221_v34, %v4221_v34 }
 0x309   :  { %v1433_v25 = vadd.f32 %v1432_v28, %v1431_v7  ;;  %v1440_v7 = vsel %vm879_vm0, %v1264_v22, 0.0  ;;  %v1270_v22 = vmul.f32 %v4225_v12, %v4225_v12 }
 0x30b   :  { %v1435_v18 = vadd.f32 %v1434_v26, %v1433_v25  ;;  %v1442_v25 = vsel %vm879_vm0, %v1265_v10, 0.0  ;;  %v1271_v10 = vmul.f32 %v4229_v58, %v4229_v58 }
 0x30d   :  { %v1437_v38 = vadd.f32 %v1436_v56, %v1435_v18  ;;  %v1444_v18 = vsel %vm879_vm0, %v1266_v0, 0.0  ;;  %v1272_v0 = vmul.f32 %v4233_v42, %v4233_v42 }
 0x30f   :  { %v1439_v4 = vadd.f32 %v1438_v54, %v1437_v38  ;;  %v1446_v38 = vsel %vm879_vm0, %v1267_v46, 0.0  ;;  %v1273_v46 = vmul.f32 %v4237_v30, %v4237_v30 }
 0x311   :  { %v1441_v28 = vadd.f32 %v1440_v7, %v1439_v4  ;;  %v1448_v4 = vsel %vm879_vm0, %v1268_v20, 0.0  ;;  %v1274_v20 = vmul.f32 %v4241_v16, %v4241_v16 }
 0x313   :  { %v1443_v26 = vadd.f32 %v1442_v25, %v1441_v28  ;;  %v1450_v28 = vsel %vm879_vm0, %v1269_v8, 0.0  ;;  %v7745_v8 = vld [vmem:[#allocation66_spill] sm:$0xff] }
 0x315   :  { %v1445_v56 = vadd.f32 %v1444_v18, %v1443_v26  ;;  %v1452_v26 = vsel %vm879_vm0, %v1270_v22, 0.0  ;;  %v7746_v22 = vld [vmem:[#allocation67_spill] sm:$0xff] }
 0x317   :  { %v1447_v54 = vadd.f32 %v1446_v38, %v1445_v56  ;;  %v1454_v56 = vsel %vm879_vm0, %v1271_v10, 0.0  ;;  %v7747_v10 = vld [vmem:[#allocation68_spill] sm:$0xff] }
 0x319   :  { %v1449_v7 = vadd.f32 %v1448_v4, %v1447_v54  ;;  %v1456_v54 = vsel %vm879_vm0, %v1272_v0, 0.0  ;;  %v1278_v0 = vmul.f32 %v4257_v36, %v4257_v36 }
 0x31b   :  { %v1451_v25 = vadd.f32 %v1450_v28, %v1449_v7  ;;  %v1275_v7 = vmul.f32 %v7745_v8, %v7745_v8  ;;  %v1458_v28 = vsel %vm879_vm0, %v1273_v46, 0.0  ;;  %v7748_v46 = vld [vmem:[#allocation69_spill] sm:$0xff] }
 0x31d   :  { %v1453_v18 = vadd.f32 %v1452_v26, %v1451_v25  ;;  %v1276_v25 = vmul.f32 %v7746_v22, %v7746_v22  ;;  %v1460_v26 = vsel %vm879_vm0, %v1274_v20, 0.0  ;;  %v7749_v20 = vld [vmem:[#allocation70_spill] sm:$0xff] }
 0x31f   :  { %v1455_v38 = vadd.f32 %v1454_v56, %v1453_v18  ;;  %v1277_v18 = vmul.f32 %v7747_v10, %v7747_v10  ;;  %v1462_v56 = vsel %vm879_vm0, %v1275_v7, 0.0  ;;  %v7750_v7 = vld [vmem:[#allocation47_spill] sm:$0xff] }
 0x321   :  { %v1457_v4 = vadd.f32 %v1456_v54, %v1455_v38  ;;  %v1464_v38 = vsel %vm879_vm0, %v1276_v25, 0.0  ;;  %v7751_v25 = vld [vmem:[#allocation49_spill] sm:$0xff] }
 0x323   :  { %v1459_v58 = vadd.f32 %v1458_v28, %v1457_v4  ;;  %v1279_v4 = vmul.f32 %v7748_v46, %v7748_v46  ;;  %v1466_v28 = vsel %vm879_vm0, %v1277_v18, 0.0  ;;  %v7752_v18 = vld [vmem:[#allocation51_spill] sm:$0xff] }
 0x325   :  { %v1461_v12 = vadd.f32 %v1460_v26, %v1459_v58  ;;  %v1280_v58 = vmul.f32 %v7749_v20, %v7749_v20  ;;  %v1468_v26 = vsel %vm879_vm0, %v1278_v0, 0.0  ;;  %v7753_v0 = vld [vmem:[#allocation71_spill] sm:$0xff] }
 0x327   :  { %v1463_v34 = vadd.f32 %v1462_v56, %v1461_v12  ;;  %v1281_v12 = vmul.f32 %v7750_v7, %v7750_v7  ;;  %v1470_v56 = vsel %vm879_vm0, %v1279_v4, 0.0  ;;  %v7754_v4 = vld [vmem:[#allocation54_spill] sm:$0xff] }
 0x329   :  { %v1465_v54 = vadd.f32 %v1464_v38, %v1463_v34  ;;  %v1282_v34 = vmul.f32 %v7751_v25, %v7751_v25  ;;  %v1472_v38 = vsel %vm879_vm0, %v1280_v58, 0.0  ;;  %v7755_v58 = vld [vmem:[#allocation72_spill] sm:$0xff] }
 0x32b   :  { %v1467_v23 = vadd.f32 %v1466_v28, %v1465_v54  ;;  %v1283_v54 = vmul.f32 %v7752_v18, %v7752_v18  ;;  %v1474_v28 = vsel %vm879_vm0, %v1281_v12, 0.0 }
 0x32d   :  { %v1469_v53 = vadd.f32 %v1468_v26, %v1467_v23  ;;  %v1284_v23 = vmul.f32 %v7753_v0, %v7753_v0  ;;  %v1476_v26 = vsel %vm879_vm0, %v1282_v34, 0.0 }
 0x32f   :  { %v1471_v35 = vadd.f32 %v1470_v56, %v1469_v53  ;;  %v1285_v53 = vmul.f32 %v7754_v4, %v7754_v4  ;;  %v1478_v56 = vsel %vm879_vm0, %v1283_v54, 0.0 }
 0x331   :  { %v1473_v13 = vadd.f32 %v1472_v38, %v1471_v35  ;;  %v1286_v35 = vmul.f32 %v7755_v58, %v7755_v58  ;;  %v1480_v38 = vsel %vm879_vm0, %v1284_v23, 0.0 }
 0x333   :  { %v1475_v59 = vadd.f32 %v1474_v28, %v1473_v13  ;;  %v1482_v13 = vsel %vm879_vm0, %v1285_v53, 0.0  ;;  %v1484_v28 = vsel %vm879_vm0, %v1286_v35, 0.0  ;;  %v7772_v35 = vld [vmem:[#allocation3_spill] sm:$0xff] }
 0x335   :  { %v1477_v43 = vadd.f32 %v1476_v26, %v1475_v59 }
 0x337   :  { %v1479_v31 = vadd.f32 %v1478_v56, %v1477_v43  ;;  %v1498_v56 = vlaneseq }
 0x339   :  { %v1481_v17 = vadd.f32 %v1480_v38, %v1479_v31  ;;  %v1499_v29 = vshrl.u32 %v1498_v56, 7  ;;  %v1493_v31 = vld [vmem:[%s7258_s2] sm:$0x1]  ;;  %v7773_v38 = vld [vmem:[#allocation4_spill] sm:$0xff] }
 0x33a   :  { %v7779_v56 = vld [vmem:[#allocation10_spill] sm:$0xff] }
 0x33b   :  { %v1483_v12 = vadd.f32 %v1482_v13, %v1481_v17  ;;  %v1500_v23 = vsub.s32 0, %v1499_v29  ;;  %v7774_v13 = vld [vmem:[#allocation5_spill] sm:$0xff] }
 0x33d   :  { %v1485_v5 = vadd.f32 %v1484_v28, %v1483_v12  ;;  %v7775_v12 = vld [vmem:[#allocation6_spill] sm:$0xff]  ;;  %v7776_v28 = vld [vmem:[#allocation7_spill] sm:$0xff] }
 0x33f   :  { %v1486_v34 = vrot.slane %v1485_v5, 4 }
 0x341   :  { %v1487_v59 = vadd.f32 %v1486_v34, %v1485_v5 }
 0x343   :  { %v1488_v26 = vrot.slane %v1487_v59, 2 }
 0x345   :  { %v1489_v55 = vadd.f32 %v1488_v26, %v1487_v59  ;;  %v7777_v59 = vld [vmem:[#allocation8_spill] sm:$0xff] }
 0x347   :  { %v1490_v47 = vrot.slane %v1489_v55, 1 }
 0x349   :  { %v1491_v37 = vadd.f32 %v1490_v47, %v1489_v55 }
 0x34b   :  { %v1492_v54 = vmul.f32 0.00125, %v1491_v37 }
 0x34d   :  { %v1494_v43 = vadd.f32 1e-05, %v1492_v54  ;;  %v7778_v54 = vld [vmem:[#allocation9_spill] sm:$0xff] }
 0x34f   :  { %2781 = vrsqrt.f32 %v1494_v43 }
 0x359   :  { %v2782_v19 = vpop.eup %2781 }
 0x35a   :  { %v1496_v17 = vmul.f32 %v2782_v19, %v1493_v31 }
 0x35c   :  { %v4594_v53 = vrot.slane %v1496_v17, %v1500_v23  ;;  %v7780_v17 = vld [vmem:[#allocation11_spill] sm:$0xff] }
 0x35e   :  { %v4598_v5 = vmul.f32 %v4594_v53, %v4233_v42  ;;  %v4602_v37 = vmul.f32 %v4594_v53, %v4237_v30  ;;  %v4606_v47 = vmul.f32 %v4594_v53, %v4241_v16  ;;  %v4610_v55 = vmul.f32 %v4594_v53, %v7745_v8 }
 0x35f   :  { %v4614_v19 = vmul.f32 %v4594_v53, %v7746_v22  ;;  %v4618_v29 = vmul.f32 %v4594_v53, %v7747_v10  ;;  %v4622_v42 = vmul.f32 %v4594_v53, %v4257_v36  ;;  %v4626_v30 = vmul.f32 %v4594_v53, %v7748_v46 }
 0x360   :  { %7756 = vst [vmem:[#allocation42_spill] sm:$0xff] %v4598_v5  ;;  %7757 = vst [vmem:[#allocation43_spill] sm:$0xff] %v4602_v37  ;;  %v4630_v16 = vmul.f32 %v4594_v53, %v7749_v20  ;;  %v4634_v8 = vmul.f32 %v4594_v53, %v7750_v7  ;;  %v4638_v22 = vmul.f32 %v4594_v53, %v7751_v25  ;;  %v7771_v7 = vld [vmem:[#allocation2_spill] sm:$0xff]  ;;  %v7805_v5 = vld [vmem:[#allocation31_spill] sm:$0xff] }
 0x361   :  { %7758 = vst [vmem:[#allocation44_spill] sm:$0xff] %v4606_v47  ;;  %7759 = vst [vmem:[#allocation66_spill] sm:$0xff] %v4610_v55  ;;  %v4642_v36 = vmul.f32 %v4594_v53, %v7752_v18  ;;  %v4646_v10 = vmul.f32 %v4594_v53, %v7753_v0  ;;  %v4650_v46 = vmul.f32 %v4594_v53, %v7754_v4  ;;  %v7799_v55 = vld [vmem:[#allocation28_spill] sm:$0xff]  ;;  %v7801_v47 = vld [vmem:[#allocation29_spill] sm:$0xff] }
 0x362   :  { %7760 = vst [vmem:[#allocation67_spill] sm:$0xff] %v4614_v19  ;;  %7761 = vst [vmem:[#allocation68_spill] sm:$0xff] %v4618_v29  ;;  %v4654_v20 = vmul.f32 %v4594_v53, %v7755_v58  ;;  %v4658_v25 = vmul.f32 %v4594_v53, %v7771_v7  ;;  %v4662_v18 = vmul.f32 %v4594_v53, %v7772_v35  ;;  %v7781_v7 = vld [vmem:[#allocation12_spill] sm:$0xff]  ;;  %v7795_v29 = vld [vmem:[#allocation26_spill] sm:$0xff] }
 0x363   :  { %7762 = vst [vmem:[#allocation69_spill] sm:$0xff] %v4622_v42  ;;  %7763 = vst [vmem:[#allocation70_spill] sm:$0xff] %v4626_v30  ;;  %v4666_v0 = vmul.f32 %v4594_v53, %v7773_v38  ;;  %v4670_v4 = vmul.f32 %v4594_v53, %v7774_v13  ;;  %v4674_v58 = vmul.f32 %v4594_v53, %v7775_v12  ;;  %v7782_v38 = vld [vmem:[#allocation13_spill] sm:$0xff]  ;;  %v7783_v12 = vld [vmem:[#allocation14_spill] sm:$0xff] }
 0x364   :  { %7764 = vst [vmem:[#allocation47_spill] sm:$0xff] %v4630_v16  ;;  %7765 = vst [vmem:[#allocation49_spill] sm:$0xff] %v4634_v8  ;;  %v4678_v34 = vmul.f32 %v4594_v53, %v7776_v28  ;;  %v4682_v26 = vmul.f32 %v4594_v53, %v7777_v59  ;;  %v4686_v43 = vmul.f32 %v4594_v53, %v7778_v54  ;;  %v7784_v59 = vld [vmem:[#allocation15_spill] sm:$0xff]  ;;  %v7791_v8 = vld [vmem:[#allocation22_spill] sm:$0xff] }
 0x365   :  { %7766 = vst [vmem:[#allocation51_spill] sm:$0xff] %v4638_v22  ;;  %7767 = vst [vmem:[#allocation71_spill] sm:$0xff] %v4642_v36  ;;  %v4690_v31 = vmul.f32 %v4594_v53, %v7779_v56  ;;  %v4694_v23 = vmul.f32 %v4594_v53, %v7780_v17  ;;  %v4698_v35 = vmul.f32 %v4594_v53, %v7781_v7  ;;  %v7785_v56 = vld [vmem:[#allocation16_spill] sm:$0xff]  ;;  %v7790_v22 = vld [vmem:[#allocation21_spill] sm:$0xff] }
 0x366   :  { %7768 = vst [vmem:[#allocation54_spill] sm:$0xff] %v4646_v10  ;;  %7769 = vst [vmem:[#allocation72_spill] sm:$0xff] %v4650_v46  ;;  %v4702_v13 = vmul.f32 %v4594_v53, %v7782_v38  ;;  %v4706_v28 = vmul.f32 %v4594_v53, %v7783_v12  ;;  %v4710_v54 = vmul.f32 %v4594_v53, %v7784_v59  ;;  %v7787_v46 = vld [vmem:[#allocation18_spill] sm:$0xff]  ;;  %v7788_v10 = vld [vmem:[#allocation19_spill] sm:$0xff] }
 0x367   :  { %7770 = vst [vmem:[#allocation73_spill] sm:$0xff] %v4654_v20  ;;  %v4714_v17 = vmul.f32 %v4594_v53, %v7785_v56  ;;  %v7786_v20 = vld [vmem:[#allocation17_spill] sm:$0xff]  ;;  %v4722_v38 = vmul.f32 %v4594_v53, %v7787_v46  ;;  %v4726_v12 = vmul.f32 %v4594_v53, %v7788_v10  ;;  %v7789_v36 = vld [vmem:[#allocation20_spill] sm:$0xff]  ;;  %v4734_v56 = vmul.f32 %v4594_v53, %v7790_v22  ;;  %v7792_v16 = vld [vmem:[#allocation23_spill] sm:$0xff] }
 0x368   :  { %v4718_v7 = vmul.f32 %v4594_v53, %v7786_v20  ;;  %v4730_v59 = vmul.f32 %v4594_v53, %v7789_v36  ;;  %v4738_v20 = vmul.f32 %v4594_v53, %v7791_v8  ;;  %v4742_v46 = vmul.f32 %v4594_v53, %v7792_v16  ;;  %v7793_v30 = vld [vmem:[#allocation24_spill] sm:$0xff]  ;;  %v7794_v42 = vld [vmem:[#allocation25_spill] sm:$0xff]  ;;  %v7797_v19 = vld [vmem:[#allocation27_spill] sm:$0xff] }
 0x369   :  { %v4746_v10 = vmul.f32 %v4594_v53, %v7793_v30  ;;  %v4750_v36 = vmul.f32 %v4594_v53, %v7794_v42  ;;  %v4754_v22 = vmul.f32 %v4594_v53, %v7795_v29  ;;  %v4758_v8 = vmul.f32 %v4594_v53, %v7797_v19  ;;  %v7803_v37 = vld [vmem:[#allocation30_spill] sm:$0xff] }
 0x36a   :  { %v4762_v16 = vmul.f32 %v4594_v53, %v7799_v55  ;;  %v4766_v30 = vmul.f32 %v4594_v53, %v7801_v47  ;;  %v4770_v42 = vmul.f32 %v4594_v53, %v7803_v37  ;;  %v4774_v29 = vmul.f32 %v4594_v53, %v7805_v5 }
 0x36b   :  { %7796 = vst [vmem:[#allocation2_spill] sm:$0xff] %v4754_v22  ;;  %7798 = vst [vmem:[#allocation3_spill] sm:$0xff] %v4758_v8  ;;  %v7807_v22 = vld [vmem:[#allocation32_spill] sm:$0xff]  ;;  %v7809_v8 = vld [vmem:[#allocation33_spill] sm:$0xff] }
 0x36c   :  { %7800 = vst [vmem:[#allocation4_spill] sm:$0xff] %v4762_v16  ;;  %7802 = vst [vmem:[#allocation5_spill] sm:$0xff] %v4766_v30  ;;  %v4778_v19 = vmul.f32 %v4594_v53, %v7807_v22  ;;  %v4782_v55 = vmul.f32 %v4594_v53, %v7809_v8  ;;  %v7811_v16 = vld [vmem:[#allocation34_spill] sm:$0xff]  ;;  %v7813_v30 = vld [vmem:[#allocation35_spill] sm:$0xff] }
 0x36d   :  { %7804 = vst [vmem:[#allocation6_spill] sm:$0xff] %v4770_v42  ;;  %7806 = vst [vmem:[#allocation7_spill] sm:$0xff] %v4774_v29  ;;  %v4786_v47 = vmul.f32 %v4594_v53, %v7811_v16  ;;  %v4790_v37 = vmul.f32 %v4594_v53, %v7813_v30  ;;  %v7815_v42 = vld [vmem:[#allocation36_spill] sm:$0xff]  ;;  %v7816_v29 = vld [vmem:[#allocation37_spill] sm:$0xff] }
 0x36e   :  { %7808 = vst [vmem:[#allocation8_spill] sm:$0xff] %v4778_v19  ;;  %7810 = vst [vmem:[#allocation9_spill] sm:$0xff] %v4782_v55  ;;  %v4794_v5 = vmul.f32 %v4594_v53, %v7815_v42  ;;  %v4798_v22 = vmul.f32 %v4594_v53, %v7816_v29  ;;  %v7817_v19 = vld [vmem:[#allocation38_spill] sm:$0xff]  ;;  %v7818_v55 = vld [vmem:[#allocation39_spill] sm:$0xff]  ;;  %v4818_v29 = vmul.f32 %v4594_v53, %v7742_v61 }
 0x36f   :  { %7812 = vst [vmem:[#allocation10_spill] sm:$0xff] %v4786_v47  ;;  %7814 = vst [vmem:[#allocation11_spill] sm:$0xff] %v4790_v37  ;;  %v4802_v8 = vmul.f32 %v4594_v53, %v7817_v19  ;;  %v4806_v16 = vmul.f32 %v4594_v53, %v7818_v55  ;;  %v7819_v47 = vld [vmem:[#allocation40_spill] sm:$0xff]  ;;  %v7820_v37 = vld [vmem:[#allocation41_spill] sm:$0xff]  ;;  %v4822_v19 = vmul.f32 %v4594_v53, %v7743_v50 }
 0x370   :  { %v4810_v30 = vmul.f32 %v4594_v53, %v7819_v47  ;;  %v4814_v42 = vmul.f32 %v4594_v53, %v7820_v37  ;;  %v4826_v55 = vmul.f32 %v4594_v53, %v7744_v44  ;;  %v4830_v47 = vmul.f32 %v4594_v53, %v4065_v48 }
 0x371   :  { %v4834_v37 = vmul.f32 %v4594_v53, %v4069_v49  ;;  %v4838_v61 = vmul.f32 %v4594_v53, %v4073_v60  ;;  %v4842_v50 = vmul.f32 %v4594_v53, %v4077_v24  ;;  %v4846_v44 = vmul.f32 %v4594_v53, %v4081_v41 }
 0x372   :  { %v4850_v48 = vmul.f32 %v4594_v53, %v4085_v32  ;;  %v4854_v49 = vmul.f32 %v4594_v53, %v4089_v63  ;;  %v4858_v60 = vmul.f32 %v4594_v53, %v4093_v14  ;;  %v4862_v24 = vmul.f32 %v4594_v53, %v4097_v6 }
 0x373   :  { %v4866_v41 = vmul.f32 %v4594_v53, %v4101_v1  ;;  %v4870_v32 = vmul.f32 %v4594_v53, %v4105_v40  ;;  %v4874_v63 = vmul.f32 %v4594_v53, %v4109_v52  ;;  %v4878_v14 = vmul.f32 %v4594_v53, %v4113_v62 }
 0x374   :  { %v4882_v6 = vmul.f32 %v4594_v53, %v4117_v2  ;;  %v4886_v1 = vmul.f32 %v4594_v53, %v4121_v9  ;;  %v4890_v40 = vmul.f32 %v4594_v53, %v4125_v15  ;;  %v4894_v52 = vmul.f32 %v4594_v53, %v4129_v21 }
 0x375   :  { %v4898_v62 = vmul.f32 %v4594_v53, %v4133_v27  ;;  %v4902_v2 = vmul.f32 %v4594_v53, %v4137_v33  ;;  %v4906_v9 = vmul.f32 %v4594_v53, %v4141_v39  ;;  %v4910_v15 = vmul.f32 %v4594_v53, %v4145_v45 }
 0x376   :  { %v4914_v21 = vmul.f32 %v4594_v53, %v4149_v51  ;;  %v4918_v27 = vmul.f32 %v4594_v53, %v4153_v57  ;;  %v4922_v33 = vmul.f32 %v4594_v53, %v4157_v3  ;;  %v4926_v39 = vmul.f32 %v4594_v53, %v4161_v11 }
 0x377   :  { %7821 = vst [vmem:[#allocation12_spill] sm:$0xff] %v4902_v2  ;;  %7822 = vst [vmem:[#allocation13_spill] sm:$0xff] %v4906_v9  ;;  %v7828_v9 = vld [vmem:[#allocation45_spill] sm:$0xff]  ;;  %v7852_v2 = vld [vmem:[#allocation62_spill] sm:$0xff] }
 0x378   :  { %7823 = vst [vmem:[#allocation14_spill] sm:$0xff] %v4910_v15  ;;  %7824 = vst [vmem:[#allocation15_spill] sm:$0xff] %v4914_v21  ;;  %v4930_v45 = vmul.f32 %v4594_v53, %v7828_v9  ;;  %v7830_v15 = vld [vmem:[#allocation46_spill] sm:$0xff]  ;;  %v7832_v21 = vld [vmem:[#allocation48_spill] sm:$0xff] }
 0x379   :  { %7825 = vst [vmem:[#allocation16_spill] sm:$0xff] %v4918_v27  ;;  %7826 = vst [vmem:[#allocation17_spill] sm:$0xff] %v4922_v33  ;;  %v4934_v51 = vmul.f32 %v4594_v53, %v7830_v15  ;;  %v4938_v57 = vmul.f32 %v4594_v53, %v7832_v21  ;;  %v7834_v27 = vld [vmem:[#allocation50_spill] sm:$0xff]  ;;  %v7836_v33 = vld [vmem:[#allocation52_spill] sm:$0xff] }
 0x37a   :  { %7827 = vst [vmem:[#allocation18_spill] sm:$0xff] %v4926_v39  ;;  %7829 = vst [vmem:[#allocation19_spill] sm:$0xff] %v4930_v45  ;;  %v4942_v3 = vmul.f32 %v4594_v53, %v7834_v27  ;;  %v4946_v11 = vmul.f32 %v4594_v53, %v7836_v33  ;;  %v7838_v39 = vld [vmem:[#allocation53_spill] sm:$0xff]  ;;  %v7840_v45 = vld [vmem:[#allocation55_spill] sm:$0xff] }
 0x37b   :  { %7831 = vst [vmem:[#allocation20_spill] sm:$0xff] %v4934_v51  ;;  %7833 = vst [vmem:[#allocation21_spill] sm:$0xff] %v4938_v57  ;;  %v4950_v9 = vmul.f32 %v4594_v53, %v7838_v39  ;;  %v4954_v15 = vmul.f32 %v4594_v53, %v7840_v45  ;;  %v7842_v51 = vld [vmem:[#allocation56_spill] sm:$0xff]  ;;  %v4963_v27 = vld [vmem:[%s7259_s3] ss:$0 sm:$0xff] }
 0x37c   :  { %7835 = vst [vmem:[#allocation22_spill] sm:$0xff] %v4942_v3  ;;  %7837 = vst [vmem:[#allocation23_spill] sm:$0xff] %v4946_v11  ;;  %v4958_v21 = vmul.f32 %v4594_v53, %v7842_v51  ;;  %v7844_v3 = vld [vmem:[#allocation57_spill] sm:$0xff]  ;;  %v7846_v11 = vld [vmem:[#allocation58_spill] sm:$0xff] }
 0x37d   :  { %7839 = vst [vmem:[#allocation24_spill] sm:$0xff] %v4950_v9  ;;  %7841 = vst [vmem:[#allocation25_spill] sm:$0xff] %v4954_v15  ;;  %v4967_v33 = vmul.f32 %v4594_v53, %v7844_v3  ;;  %v4971_v39 = vmul.f32 %v4594_v53, %v7846_v11  ;;  %v7848_v9 = vld [vmem:[#allocation59_spill] sm:$0xff]  ;;  %v7850_v15 = vld [vmem:[#allocation60_spill] sm:$0xff]  ;;  %v4987_v3 = vmul.f32 %v4594_v53, %v7852_v2 }
 0x37e   :  { %7843 = vst [vmem:[#allocation26_spill] sm:$0xff] %v4958_v21  ;;  %v4975_v45 = vmul.f32 %v4594_v53, %v7848_v9  ;;  %v4979_v51 = vmul.f32 %v4594_v53, %v7850_v15  ;;  %v7851_v21 = vld [vmem:[#allocation61_spill] sm:$0xff]  ;;  %v5007_v2 = vadd.f32 %v4963_v27, %v4662_v18  ;;  %v5027_v18 = vadd.f32 %v4963_v27, %v4682_v26 }
 0x37f   :  { %7845 = vst [vmem:[#allocation27_spill] sm:$0xff] %v4967_v33  ;;  %7847 = vst [vmem:[#allocation28_spill] sm:$0xff] %v4971_v39  ;;  %v4983_v57 = vmul.f32 %v4594_v53, %v7851_v21  ;;  %v7853_v33 = vld [vmem:[#allocation63_spill] sm:$0xff]  ;;  %v7854_v39 = vld [vmem:[#allocation64_spill] sm:$0xff]  ;;  %v5003_v21 = vadd.f32 %v4963_v27, %v4658_v25  ;;  %v5023_v25 = vadd.f32 %v4963_v27, %v4678_v34 }
 0x380   :  { %7849 = vst [vmem:[#allocation29_spill] sm:$0xff] %v4975_v45  ;;  %v4991_v11 = vmul.f32 %v4594_v53, %v7853_v33  ;;  %v4995_v9 = vmul.f32 %v4594_v53, %v7854_v39  ;;  %v7855_v45 = vld [vmem:[#allocation65_spill] sm:$0xff]  ;;  %v5011_v33 = vadd.f32 %v4963_v27, %v4666_v0  ;;  %v5015_v39 = vadd.f32 %v4963_v27, %v4670_v4 }
 0x381   :  { %v4999_v15 = vmul.f32 %v4594_v53, %v7855_v45  ;;  %v5019_v53 = vadd.f32 %v4963_v27, %v4674_v58  ;;  %v5031_v0 = vadd.f32 %v4963_v27, %v4686_v43  ;;  %v5035_v4 = vadd.f32 %v4963_v27, %v4690_v31  ;;  %v7862_v45 = vld [vmem:[#allocation2_spill] sm:$0xff] }
 0x382   :  { %v5039_v58 = vadd.f32 %v4963_v27, %v4694_v23  ;;  %v5043_v34 = vadd.f32 %v4963_v27, %v4698_v35  ;;  %v5047_v26 = vadd.f32 %v4963_v27, %v4702_v13  ;;  %v5051_v43 = vadd.f32 %v4963_v27, %v4706_v28 }
 0x383   :  { %v5055_v31 = vadd.f32 %v4963_v27, %v4710_v54  ;;  %v5059_v23 = vadd.f32 %v4963_v27, %v4714_v17  ;;  %v5063_v35 = vadd.f32 %v4963_v27, %v4718_v7  ;;  %v5067_v13 = vadd.f32 %v4963_v27, %v4722_v38 }
 0x384   :  { %v5071_v28 = vadd.f32 %v4963_v27, %v4726_v12  ;;  %v5075_v54 = vadd.f32 %v4963_v27, %v4730_v59  ;;  %v5079_v17 = vadd.f32 %v4963_v27, %v4734_v56  ;;  %v5083_v7 = vadd.f32 %v4963_v27, %v4738_v20 }
 0x385   :  { %7856 = vst [vmem:[#allocation30_spill] sm:$0xff] %v5067_v13  ;;  %v5087_v38 = vadd.f32 %v4963_v27, %v4742_v46  ;;  %v5091_v12 = vadd.f32 %v4963_v27, %v4746_v10  ;;  %v5095_v59 = vadd.f32 %v4963_v27, %v4750_v36  ;;  %v5099_v56 = vadd.f32 %v4963_v27, %v7862_v45 }
 0x386   :  { %7857 = vst [vmem:[#allocation31_spill] sm:$0xff] %v5079_v17  ;;  %7858 = vst [vmem:[#allocation32_spill] sm:$0xff] %v5083_v7  ;;  %v7864_v17 = vld [vmem:[#allocation3_spill] sm:$0xff]  ;;  %v7866_v7 = vld [vmem:[#allocation4_spill] sm:$0xff]  ;;  %vm1710_vm1 = vcmp.gt.f32.partialorder %v5003_v21, 0.0  ;;  %vm1711_vm2 = vcmp.gt.f32.partialorder %v5007_v2, 0.0 }
 0x387   :  { %7859 = vst [vmem:[#allocation33_spill] sm:$0xff] %v5087_v38  ;;  %7860 = vst [vmem:[#allocation34_spill] sm:$0xff] %v5091_v12  ;;  %v5103_v20 = vadd.f32 %v4963_v27, %v7864_v17  ;;  %v5107_v46 = vadd.f32 %v4963_v27, %v7866_v7  ;;  %v7868_v38 = vld [vmem:[#allocation5_spill] sm:$0xff]  ;;  %v7870_v12 = vld [vmem:[#allocation6_spill] sm:$0xff]  ;;  %vm1712_vm3 = vcmp.gt.f32.partialorder %v5011_v33, 0.0  ;;  %vm1713_vm4 = vcmp.gt.f32.partialorder %v5015_v39, 0.0 }
 0x388   :  { %7861 = vst [vmem:[#allocation35_spill] sm:$0xff] %v5095_v59  ;;  %7863 = vst [vmem:[#allocation36_spill] sm:$0xff] %v5099_v56  ;;  %v5111_v10 = vadd.f32 %v4963_v27, %v7868_v38  ;;  %v5115_v36 = vadd.f32 %v4963_v27, %v7870_v12  ;;  %v7871_v59 = vld [vmem:[#allocation7_spill] sm:$0xff]  ;;  %v7872_v56 = vld [vmem:[#allocation8_spill] sm:$0xff]  ;;  %vm1714_vm5 = vcmp.gt.f32.partialorder %v5019_v53, 0.0  ;;  %vm1715_vm6 = vcmp.gt.f32.partialorder %v5023_v25, 0.0 }
 0x389   :  { %7865 = vst [vmem:[#allocation37_spill] sm:$0xff] %v5103_v20  ;;  %7867 = vst [vmem:[#allocation38_spill] sm:$0xff] %v5107_v46  ;;  %v5119_v45 = vadd.f32 %v4963_v27, %v7871_v59  ;;  %v5123_v17 = vadd.f32 %v4963_v27, %v7872_v56  ;;  %v7873_v20 = vld [vmem:[#allocation9_spill] sm:$0xff]  ;;  %v7874_v46 = vld [vmem:[#allocation10_spill] sm:$0xff]  ;;  %v5139_v59 = vadd.f32 %v4963_v27, %v4794_v5  ;;  %vm1716_vm7 = vcmp.gt.f32.partialorder %v5027_v18, 0.0 }
 0x38a   :  { %7869 = vst [vmem:[#allocation39_spill] sm:$0xff] %v5111_v10  ;;  %v5127_v7 = vadd.f32 %v4963_v27, %v7873_v20  ;;  %v5131_v38 = vadd.f32 %v4963_v27, %v7874_v46  ;;  %v7875_v10 = vld [vmem:[#allocation11_spill] sm:$0xff]  ;;  %v5143_v56 = vadd.f32 %v4963_v27, %v4798_v22  ;;  %v5147_v20 = vadd.f32 %v4963_v27, %v4802_v8 }
 0x38b   :  { %v5135_v12 = vadd.f32 %v4963_v27, %v7875_v10  ;;  %v5151_v46 = vadd.f32 %v4963_v27, %v4806_v16  ;;  %v5155_v10 = vadd.f32 %v4963_v27, %v4810_v30  ;;  %v5159_v5 = vadd.f32 %v4963_v27, %v4814_v42 }
 0x38c   :  { %v5163_v22 = vadd.f32 %v4963_v27, %v4818_v29  ;;  %v5167_v8 = vadd.f32 %v4963_v27, %v4822_v19  ;;  %v5171_v16 = vadd.f32 %v4963_v27, %v4826_v55  ;;  %v5175_v30 = vadd.f32 %v4963_v27, %v4830_v47 }
 0x38d   :  { %7876 = vst [vmem:[#allocation40_spill] sm:$0xff] %v5135_v12  ;;  %7877 = vst [vmem:[#allocation41_spill] sm:$0xff] %v5151_v46  ;;  %v5179_v42 = vadd.f32 %v4963_v27, %v4834_v37  ;;  %v5183_v29 = vadd.f32 %v4963_v27, %v4838_v61  ;;  %v5187_v19 = vadd.f32 %v4963_v27, %v4842_v50  ;;  %vm1717_vm8 = vcmp.gt.f32.partialorder %v5031_v0, 0.0 }
 0x38e   :  { %7878 = vst [vmem:[#allocation45_spill] sm:$0xff] %v5163_v22  ;;  %7879 = vst [vmem:[#allocation46_spill] sm:$0xff] %v5167_v8  ;;  %v5191_v55 = vadd.f32 %v4963_v27, %v4846_v44  ;;  %v5195_v47 = vadd.f32 %v4963_v27, %v4850_v48  ;;  %v5199_v37 = vadd.f32 %v4963_v27, %v4854_v49  ;;  %vm1718_vm9 = vcmp.gt.f32.partialorder %v5035_v4, 0.0 }
 0x38f   :  { %7880 = vst [vmem:[#allocation48_spill] sm:$0xff] %v5179_v42  ;;  %7881 = vst [vmem:[#allocation50_spill] sm:$0xff] %v5183_v29  ;;  %v5203_v61 = vadd.f32 %v4963_v27, %v4858_v60  ;;  %v5207_v50 = vadd.f32 %v4963_v27, %v4862_v24  ;;  %v5211_v44 = vadd.f32 %v4963_v27, %v4866_v41  ;;  %vm1719_vm10 = vcmp.gt.f32.partialorder %v5039_v58, 0.0 }
 0x390   :  { %7882 = vst [vmem:[#allocation52_spill] sm:$0xff] %v5199_v37  ;;  %v5215_v48 = vadd.f32 %v4963_v27, %v4870_v32  ;;  %v5219_v49 = vadd.f32 %v4963_v27, %v4874_v63  ;;  %v5223_v60 = vadd.f32 %v4963_v27, %v4878_v14  ;;  %v5227_v24 = vadd.f32 %v4963_v27, %v4882_v6 }
 0x391   :  { %7883 = vst [vmem:[#allocation53_spill] sm:$0xff] %v5211_v44  ;;  %v5231_v41 = vadd.f32 %v4963_v27, %v4886_v1  ;;  %v5235_v32 = vadd.f32 %v4963_v27, %v4890_v40  ;;  %v5239_v63 = vadd.f32 %v4963_v27, %v4894_v52  ;;  %v5243_v14 = vadd.f32 %v4963_v27, %v4898_v62 }
 0x392   :  { %7884 = vst [vmem:[#allocation55_spill] sm:$0xff] %v5215_v48  ;;  %7885 = vst [vmem:[#allocation56_spill] sm:$0xff] %v5219_v49  ;;  %vm1720_vm11 = vcmp.gt.f32.partialorder %v5043_v34, 0.0  ;;  %vm1721_vm12 = vcmp.gt.f32.partialorder %v5047_v26, 0.0  ;;  %vm1722_vm13 = vcmp.gt.f32.partialorder %v5051_v43, 0.0  ;;  %vm1723_vm14 = vcmp.gt.f32.partialorder %v5055_v31, 0.0 }
 0x393   :  { %7886 = vst [vmem:[#allocation57_spill] sm:$0xff] %v5223_v60  ;;  %7887 = vst [vmem:[#allocation58_spill] sm:$0xff] %v5227_v24  ;;  %v7892_v60 = vld [vmem:[#allocation12_spill] sm:$0xff]  ;;  %v7894_v24 = vld [vmem:[#allocation13_spill] sm:$0xff]  ;;  %vm1724_vm15 = vcmp.gt.f32.partialorder %v5059_v23, 0.0  ;;  %vm1725_vm0 = vcmp.gt.f32.partialorder %v5063_v35, 0.0 }
 0x394   :  { %7888 = vst [vmem:[#allocation59_spill] sm:$0xff] %v5231_v41  ;;  %7889 = vst [vmem:[#allocation60_spill] sm:$0xff] %v5235_v32  ;;  %v5247_v6 = vadd.f32 %v4963_v27, %v7892_v60  ;;  %v5251_v1 = vadd.f32 %v4963_v27, %v7894_v24  ;;  %v7896_v41 = vld [vmem:[#allocation14_spill] sm:$0xff]  ;;  %v7898_v32 = vld [vmem:[#allocation15_spill] sm:$0xff] }
 0x395   :  { %7890 = vst [vmem:[#allocation61_spill] sm:$0xff] %v5239_v63  ;;  %7891 = vst [vmem:[#allocation62_spill] sm:$0xff] %v5243_v14  ;;  %v5255_v40 = vadd.f32 %v4963_v27, %v7896_v41  ;;  %v5259_v52 = vadd.f32 %v4963_v27, %v7898_v32  ;;  %v7900_v63 = vld [vmem:[#allocation16_spill] sm:$0xff]  ;;  %v7902_v14 = vld [vmem:[#allocation17_spill] sm:$0xff] }
 0x396   :  { %7893 = vst [vmem:[#allocation63_spill] sm:$0xff] %v5247_v6  ;;  %7895 = vst [vmem:[#allocation64_spill] sm:$0xff] %v5251_v1  ;;  %v5263_v62 = vadd.f32 %v4963_v27, %v7900_v63  ;;  %v5267_v60 = vadd.f32 %v4963_v27, %v7902_v14  ;;  %v7904_v6 = vld [vmem:[#allocation18_spill] sm:$0xff]  ;;  %v7906_v1 = vld [vmem:[#allocation19_spill] sm:$0xff] }
 0x397   :  { %7897 = vst [vmem:[#allocation65_spill] sm:$0xff] %v5255_v40  ;;  %7899 = vst [vmem:[#allocation2_spill] sm:$0xff] %v5259_v52  ;;  %v5271_v24 = vadd.f32 %v4963_v27, %v7904_v6  ;;  %v5275_v41 = vadd.f32 %v4963_v27, %v7906_v1  ;;  %v7908_v40 = vld [vmem:[#allocation20_spill] sm:$0xff]  ;;  %v7910_v52 = vld [vmem:[#allocation21_spill] sm:$0xff] }
 0x398   :  { %7901 = vst [vmem:[#allocation3_spill] sm:$0xff] %v5263_v62  ;;  %7903 = vst [vmem:[#allocation4_spill] sm:$0xff] %v5267_v60  ;;  %v5279_v32 = vadd.f32 %v4963_v27, %v7908_v40  ;;  %v5283_v63 = vadd.f32 %v4963_v27, %v7910_v52  ;;  %v7912_v62 = vld [vmem:[#allocation22_spill] sm:$0xff]  ;;  %v7914_v60 = vld [vmem:[#allocation23_spill] sm:$0xff] }
 0x399   :  { %7905 = vst [vmem:[#allocation5_spill] sm:$0xff] %v5271_v24  ;;  %7907 = vst [vmem:[#allocation6_spill] sm:$0xff] %v5275_v41  ;;  %v5287_v14 = vadd.f32 %v4963_v27, %v7912_v62  ;;  %v5291_v6 = vadd.f32 %v4963_v27, %v7914_v60  ;;  %v7916_v24 = vld [vmem:[#allocation24_spill] sm:$0xff]  ;;  %v7918_v41 = vld [vmem:[#allocation25_spill] sm:$0xff] }
 0x39a   :  { %7909 = vst [vmem:[#allocation7_spill] sm:$0xff] %v5279_v32  ;;  %7911 = vst [vmem:[#allocation8_spill] sm:$0xff] %v5283_v63  ;;  %v5295_v1 = vadd.f32 %v4963_v27, %v7916_v24  ;;  %v5299_v40 = vadd.f32 %v4963_v27, %v7918_v41  ;;  %v7920_v32 = vld [vmem:[#allocation26_spill] sm:$0xff]  ;;  %v7922_v63 = vld [vmem:[#allocation27_spill] sm:$0xff]  ;;  %v5319_v41 = vadd.f32 %v4963_v27, %v4979_v51 }
 0x39b   :  { %7913 = vst [vmem:[#allocation9_spill] sm:$0xff] %v5287_v14  ;;  %7915 = vst [vmem:[#allocation10_spill] sm:$0xff] %v5291_v6  ;;  %v5303_v52 = vadd.f32 %v4963_v27, %v7920_v32  ;;  %v5307_v62 = vadd.f32 %v4963_v27, %v7922_v63  ;;  %v7924_v14 = vld [vmem:[#allocation28_spill] sm:$0xff]  ;;  %v7926_v6 = vld [vmem:[#allocation29_spill] sm:$0xff]  ;;  %v5323_v32 = vadd.f32 %v4963_v27, %v4983_v57 }
 0x39c   :  { %7917 = vst [vmem:[#allocation11_spill] sm:$0xff] %v5295_v1  ;;  %7919 = vst [vmem:[#allocation12_spill] sm:$0xff] %v5299_v40  ;;  %v5311_v60 = vadd.f32 %v4963_v27, %v7924_v14  ;;  %v5315_v24 = vadd.f32 %v4963_v27, %v7926_v6  ;;  %v5327_v63 = vadd.f32 %v4963_v27, %v4987_v3  ;;  %v7973_v40 = vld [vmem:[#allocation32_spill] sm:$0xff] }
 0x39d   :  { %7921 = vst [vmem:[#allocation13_spill] sm:$0xff] %v5303_v52  ;;  %7923 = vst [vmem:[#allocation14_spill] sm:$0xff] %v5307_v62  ;;  %v5331_v14 = vadd.f32 %v4963_v27, %v4991_v11  ;;  %v5335_v6 = vadd.f32 %v4963_v27, %v4995_v9  ;;  %v5339_v51 = vadd.f32 %v4963_v27, %v4999_v15  ;;  %v1822_v62 = vmul.f32 0.01, %v5051_v43 }
 0x39e   :  { %7925 = vst [vmem:[#allocation15_spill] sm:$0xff] %v5311_v60  ;;  %7927 = vst [vmem:[#allocation16_spill] sm:$0xff] %v5315_v24  ;;  %v1821_v24 = vmul.f32 0.01, %v5047_v26  ;;  %v5447_v52 = vmul.f32 0.01, %v5063_v35 }
 0x39f   :  { %7928 = vst [vmem:[#allocation17_spill] sm:$0xff] %v5319_v41  ;;  %7929 = vst [vmem:[#allocation18_spill] sm:$0xff] %v5323_v32  ;;  %v7934_v41 = vld [vmem:[#allocation42_spill] sm:$0xff]  ;;  %v7936_v32 = vld [vmem:[#allocation43_spill] sm:$0xff]  ;;  %v5468_v1 = vmul.f32 0.01, %v7973_v40 }
 0x3a0   :  { %7930 = vst [vmem:[#allocation19_spill] sm:$0xff] %v5327_v63  ;;  %7931 = vst [vmem:[#allocation20_spill] sm:$0xff] %v5331_v14  ;;  %v5343_v57 = vadd.f32 %v4963_v27, %v7934_v41  ;;  %v5347_v3 = vadd.f32 %v4963_v27, %v7936_v32  ;;  %v7938_v63 = vld [vmem:[#allocation44_spill] sm:$0xff]  ;;  %v7940_v14 = vld [vmem:[#allocation66_spill] sm:$0xff] }
 0x3a1   :  { %7932 = vst [vmem:[#allocation21_spill] sm:$0xff] %v5335_v6  ;;  %7933 = vst [vmem:[#allocation22_spill] sm:$0xff] %v5339_v51  ;;  %v5351_v11 = vadd.f32 %v4963_v27, %v7938_v63  ;;  %v5355_v9 = vadd.f32 %v4963_v27, %v7940_v14  ;;  %v7942_v6 = vld [vmem:[#allocation67_spill] sm:$0xff]  ;;  %v7944_v51 = vld [vmem:[#allocation68_spill] sm:$0xff] }
 0x3a2   :  { %7935 = vst [vmem:[#allocation23_spill] sm:$0xff] %v5343_v57  ;;  %7937 = vst [vmem:[#allocation24_spill] sm:$0xff] %v5347_v3  ;;  %v5359_v15 = vadd.f32 %v4963_v27, %v7942_v6  ;;  %v5363_v41 = vadd.f32 %v4963_v27, %v7944_v51  ;;  %v7946_v57 = vld [vmem:[#allocation69_spill] sm:$0xff]  ;;  %v7948_v3 = vld [vmem:[#allocation70_spill] sm:$0xff] }
 0x3a3   :  { %7939 = vst [vmem:[#allocation25_spill] sm:$0xff] %v5351_v11  ;;  %7941 = vst [vmem:[#allocation26_spill] sm:$0xff] %v5355_v9  ;;  %v5367_v32 = vadd.f32 %v4963_v27, %v7946_v57  ;;  %v5371_v63 = vadd.f32 %v4963_v27, %v7948_v3  ;;  %v7950_v11 = vld [vmem:[#allocation47_spill] sm:$0xff]  ;;  %v7952_v9 = vld [vmem:[#allocation49_spill] sm:$0xff] }
 0x3a4   :  { %7943 = vst [vmem:[#allocation27_spill] sm:$0xff] %v5359_v15  ;;  %7945 = vst [vmem:[#allocation28_spill] sm:$0xff] %v5363_v41  ;;  %v5375_v14 = vadd.f32 %v4963_v27, %v7950_v11  ;;  %v5379_v6 = vadd.f32 %v4963_v27, %v7952_v9  ;;  %v7954_v15 = vld [vmem:[#allocation51_spill] sm:$0xff]  ;;  %v7960_v11 = vld [vmem:[#allocation72_spill] sm:$0xff] }
 0x3a5   :  { %7947 = vst [vmem:[#allocation29_spill] sm:$0xff] %v5367_v32  ;;  %7949 = vst [vmem:[#allocation42_spill] sm:$0xff] %v5371_v63  ;;  %v5383_v51 = vadd.f32 %v4963_v27, %v7954_v15  ;;  %v7956_v41 = vld [vmem:[#allocation71_spill] sm:$0xff]  ;;  %v7958_v32 = vld [vmem:[#allocation54_spill] sm:$0xff]  ;;  %v5404_v9 = vadd.f32 %v4963_v27, %v7960_v11  ;;  %v1810_v15 = vmul.f32 0.01, %v5003_v21 }
 0x3a6   :  { %7951 = vst [vmem:[#allocation43_spill] sm:$0xff] %v5375_v14  ;;  %7953 = vst [vmem:[#allocation44_spill] sm:$0xff] %v5379_v6  ;;  %v5387_v57 = vadd.f32 %v4963_v27, %v7956_v41  ;;  %v5391_v3 = vadd.f32 %v4963_v27, %v7958_v32  ;;  %v1811_v41 = vmul.f32 0.01, %v5007_v2  ;;  %v1812_v32 = vmul.f32 0.01, %v5011_v33 }
 0x3a7   :  { %7955 = vst [vmem:[#allocation66_spill] sm:$0xff] %v5383_v51  ;;  %7961 = vst [vmem:[#allocation69_spill] sm:$0xff] %v5404_v9  ;;  %v1813_v51 = vmul.f32 0.01, %v5015_v39  ;;  %v1814_v6 = vmul.f32 0.01, %v5019_v53 }
 0x3a8   :  { %7957 = vst [vmem:[#allocation67_spill] sm:$0xff] %v5387_v57  ;;  %7959 = vst [vmem:[#allocation68_spill] sm:$0xff] %v5391_v3  ;;  %v7962_v3 = vld [vmem:[#allocation73_spill] sm:$0xff]  ;;  %v1815_v11 = vmul.f32 0.01, %v5023_v25  ;;  %v5434_v60 = vsel %vm1711_vm2, %v5007_v2, %v1811_v41  ;;  %vm1727_vm2 = vcmp.gt.f32.partialorder %v5071_v28, 0.0 }
 0x3a9   :  { %v5412_v57 = vadd.f32 %v4963_v27, %v7962_v3  ;;  %v1816_v9 = vmul.f32 0.01, %v5027_v18  ;;  %v1817_v14 = vmul.f32 0.01, %v5031_v0  ;;  %v1818_v63 = vmul.f32 0.01, %v5035_v4 }
 0x3aa   :  { %v5425_v27 = vsel %vm1710_vm1, %v5003_v21, %v1810_v15  ;;  %v1819_v3 = vmul.f32 0.01, %v5039_v58  ;;  %7965 = vst [vmem:[#allocation49_spill] sm:$0xff] %v5434_v60  ;;  %v1823_v21 = vmul.f32 0.01, %v5055_v31  ;;  %v5458_v60 = vsel %vm1713_vm4, %v5015_v39, %v1813_v51  ;;  %7974 = vst [vmem:[#allocation32_spill] sm:$0xff] %v5468_v1 }
 0x3ab   :  { %7963 = vst [vmem:[#allocation70_spill] sm:$0xff] %v5412_v57  ;;  %7964 = vst [vmem:[#allocation47_spill] sm:$0xff] %v5425_v27  ;;  %v1820_v57 = vmul.f32 0.01, %v5043_v34  ;;  %v1824_v15 = vmul.f32 0.01, %v5059_v23  ;;  %v5443_v27 = vsel %vm1712_vm3, %v5011_v33, %v1812_v32  ;;  %v5488_v1 = vsel %vm1715_vm6, %v5023_v25, %v1815_v11 }
 0x3ac   :  { %7966 = vst [vmem:[#allocation51_spill] sm:$0xff] %v5443_v27  ;;  %v5450_v2 = vmul.f32 0.01, %v5067_v13  ;;  %v5453_v41 = vmul.f32 0.01, %v5071_v28  ;;  %7969 = vst [vmem:[#allocation72_spill] sm:$0xff] %v5458_v60 }
 0x3ad   :  { %v5462_v33 = vmul.f32 0.01, %v5075_v54  ;;  %v7971_v32 = vld [vmem:[#allocation31_spill] sm:$0xff]  ;;  %vm1726_vm1 = vcmp.gt.f32.partialorder %v5067_v13, 0.0  ;;  %v7976_v39 = vld [vmem:[#allocation33_spill] sm:$0xff]  ;;  %v7978_v60 = vld [vmem:[#allocation34_spill] sm:$0xff] }
 0x3ae   :  { %7967 = vst [vmem:[#allocation71_spill] sm:$0xff] %v5450_v2  ;;  %7968 = vst [vmem:[#allocation54_spill] sm:$0xff] %v5453_v41  ;;  %v5465_v27 = vmul.f32 0.01, %v7971_v32  ;;  %v5473_v41 = vsel %vm1714_vm5, %v5019_v53, %v1814_v6  ;;  %v5477_v51 = vmul.f32 0.01, %v7976_v39 }
 0x3af   :  { %7970 = vst [vmem:[#allocation73_spill] sm:$0xff] %v5462_v33  ;;  %7975 = vst [vmem:[#allocation74_spill] sm:$0xff] %v5473_v41  ;;  %v5480_v2 = vmul.f32 0.01, %v7978_v60  ;;  %v7979_v33 = vld [vmem:[#allocation35_spill] sm:$0xff]  ;;  %v7982_v53 = vld [vmem:[#allocation36_spill] sm:$0xff] }
 0x3b0   :  { %7972 = vst [vmem:[#allocation31_spill] sm:$0xff] %v5465_v27  ;;  %7977 = vst [vmem:[#allocation33_spill] sm:$0xff] %v5477_v51  ;;  %v5483_v49 = vmul.f32 0.01, %v7979_v33  ;;  %v5492_v6 = vmul.f32 0.01, %v7982_v53 }
 0x3b1   :  { %7981 = vst [vmem:[#allocation35_spill] sm:$0xff] %v5488_v1  ;;  %v7984_v41 = vld [vmem:[#allocation37_spill] sm:$0xff]  ;;  %v7985_v51 = vld [vmem:[#allocation38_spill] sm:$0xff]  ;;  %vm1728_vm3 = vcmp.gt.f32.partialorder %v5075_v54, 0.0  ;;  %v7988_v25 = vld [vmem:[#allocation39_spill] sm:$0xff]  ;;  %vm1729_vm4 = vcmp.gt.f32.partialorder %v7971_v32, 0.0 }
 0x3b2   :  { %7980 = vst [vmem:[#allocation34_spill] sm:$0xff] %v5483_v49  ;;  %7983 = vst [vmem:[#allocation36_spill] sm:$0xff] %v5492_v6  ;;  %v5495_v27 = vmul.f32 0.01, %v7984_v41  ;;  %v5498_v13 = vmul.f32 0.01, %v7985_v51  ;;  %v5503_v49 = vsel %vm1716_vm7, %v5027_v18, %v1816_v9 }
 0x3b3   :  { %7987 = vst [vmem:[#allocation38_spill] sm:$0xff] %v5503_v49  ;;  %v5507_v11 = vmul.f32 0.01, %v7988_v25  ;;  %v5510_v1 = vmul.f32 0.01, %v5115_v36  ;;  %vm1730_vm5 = vcmp.gt.f32.partialorder %v7973_v40, 0.0 }
 0x3b4   :  { %7986 = vst [vmem:[#allocation37_spill] sm:$0xff] %v5498_v13  ;;  %v5513_v6 = vmul.f32 0.01, %v5119_v45  ;;  %v5518_v13 = vsel %vm1717_vm8, %v5031_v0, %v1817_v14  ;;  %v5522_v18 = vmul.f32 0.01, %v5123_v17  ;;  %vm1731_vm6 = vcmp.gt.f32.partialorder %v7976_v39, 0.0 }
 0x3b5   :  { %7990 = vst [vmem:[#allocation75_spill] sm:$0xff] %v5518_v13  ;;  %v5525_v9 = vmul.f32 0.01, %v5127_v7  ;;  %v5528_v49 = vmul.f32 0.01, %v5131_v38  ;;  %vm1732_vm7 = vcmp.gt.f32.partialorder %v7978_v60, 0.0 }
 0x3b6   :  { %7989 = vst [vmem:[#allocation39_spill] sm:$0xff] %v5513_v6  ;;  %v5533_v6 = vsel %vm1718_vm9, %v5035_v4, %v1818_v63  ;;  %v5537_v0 = vmul.f32 0.01, %v5135_v12  ;;  %v5540_v14 = vmul.f32 0.01, %v5139_v59  ;;  %vm1733_vm8 = vcmp.gt.f32.partialorder %v7979_v33, 0.0 }
 0x3b7   :  { %7991 = vst [vmem:[#allocation76_spill] sm:$0xff] %v5528_v49  ;;  %7992 = vst [vmem:[#allocation77_spill] sm:$0xff] %v5533_v6  ;;  %v5543_v13 = vmul.f32 0.01, %v5143_v56  ;;  %v5548_v49 = vsel %vm1719_vm10, %v5039_v58, %v1819_v3  ;;  %v5552_v4 = vmul.f32 0.01, %v5147_v20 }
 0x3b8   :  { %7993 = vst [vmem:[#allocation78_spill] sm:$0xff] %v5540_v14  ;;  %7995 = vst [vmem:[#allocation80_spill] sm:$0xff] %v5548_v49  ;;  %v5555_v63 = vmul.f32 0.01, %v5151_v46  ;;  %v5558_v6 = vmul.f32 0.01, %v5155_v10 }
 0x3b9   :  { %7994 = vst [vmem:[#allocation79_spill] sm:$0xff] %v5543_v13  ;;  %7996 = vst [vmem:[#allocation81_spill] sm:$0xff] %v5552_v4  ;;  %v5563_v13 = vsel %vm1720_vm11, %v5043_v34, %v1820_v57  ;;  %v5567_v58 = vmul.f32 0.01, %v5159_v5  ;;  %v5570_v3 = vmul.f32 0.01, %v5163_v22 }
 0x3ba   :  { %7997 = vst [vmem:[#allocation82_spill] sm:$0xff] %v5555_v63  ;;  %7998 = vst [vmem:[#allocation83_spill] sm:$0xff] %v5558_v6  ;;  %v5573_v49 = vmul.f32 0.01, %v5167_v8  ;;  %v5578_v6 = vsel %vm1721_vm12, %v5047_v26, %v1821_v24  ;;  %v5582_v34 = vmul.f32 0.01, %v5171_v16 }
 0x3bb   :  { %7999 = vst [vmem:[#allocation84_spill] sm:$0xff] %v5563_v13  ;;  %8000 = vst [vmem:[#allocation85_spill] sm:$0xff] %v5567_v58  ;;  %v5585_v57 = vmul.f32 0.01, %v5175_v30  ;;  %v5588_v13 = vmul.f32 0.01, %v5179_v42 }
 0x3bc   :  { %8001 = vst [vmem:[#allocation86_spill] sm:$0xff] %v5570_v3  ;;  %8002 = vst [vmem:[#allocation87_spill] sm:$0xff] %v5573_v49  ;;  %v5593_v49 = vsel %vm1722_vm13, %v5051_v43, %v1822_v62  ;;  %vm1734_vm9 = vcmp.gt.f32.partialorder %v7982_v53, 0.0  ;;  %v5597_v26 = vmul.f32 0.01, %v5183_v29  ;;  %vm1735_vm10 = vcmp.gt.f32.partialorder %v7984_v41, 0.0 }
 0x3bd   :  { %8003 = vst [vmem:[#allocation88_spill] sm:$0xff] %v5578_v6  ;;  %8004 = vst [vmem:[#allocation89_spill] sm:$0xff] %v5582_v34  ;;  %v5600_v24 = vmul.f32 0.01, %v5187_v19  ;;  %v5603_v6 = vmul.f32 0.01, %v5191_v55 }
 0x3be   :  { %8005 = vst [vmem:[#allocation90_spill] sm:$0xff] %v5585_v57  ;;  %8006 = vst [vmem:[#allocation91_spill] sm:$0xff] %v5588_v13  ;;  %v5608_v13 = vsel %vm1723_vm14, %v5055_v31, %v1823_v21  ;;  %v5612_v43 = vmul.f32 0.01, %v5195_v47  ;;  %v5615_v62 = vmul.f32 0.01, %v5199_v37 }
 0x3bf   :  { %8007 = vst [vmem:[#allocation92_spill] sm:$0xff] %v5593_v49  ;;  %8008 = vst [vmem:[#allocation93_spill] sm:$0xff] %v5597_v26  ;;  %v5618_v49 = vmul.f32 0.01, %v5203_v61  ;;  %vm1736_vm11 = vcmp.gt.f32.partialorder %v7985_v51, 0.0  ;;  %vm1737_vm12 = vcmp.gt.f32.partialorder %v7988_v25, 0.0 }
 0x3c0   :  { %8009 = vst [vmem:[#allocation94_spill] sm:$0xff] %v5600_v24  ;;  %8010 = vst [vmem:[#allocation95_spill] sm:$0xff] %v5603_v6  ;;  %v5623_v6 = vsel %vm1724_vm15, %v5059_v23, %v1824_v15  ;;  %v5627_v31 = vmul.f32 0.01, %v5207_v50  ;;  %v5630_v21 = vmul.f32 0.01, %v5211_v44 }
 0x3c1   :  { %8011 = vst [vmem:[#allocation96_spill] sm:$0xff] %v5608_v13  ;;  %8012 = vst [vmem:[#allocation97_spill] sm:$0xff] %v5612_v43  ;;  %v5633_v13 = vmul.f32 0.01, %v5215_v48  ;;  %v8020_v23 = vld [vmem:[#allocation56_spill] sm:$0xff]  ;;  %v8027_v24 = vld [vmem:[#allocation30_spill] sm:$0xff] }
 0x3c2   :  { %8013 = vst [vmem:[#allocation98_spill] sm:$0xff] %v5615_v62  ;;  %8014 = vst [vmem:[#allocation99_spill] sm:$0xff] %v5618_v49  ;;  %v5639_v49 = vsel %vm1725_vm0, %v5063_v35, %v5447_v52  ;;  %v5643_v15 = vmul.f32 0.01, %v8020_v23  ;;  %vm1738_vm13 = vcmp.gt.f32.partialorder %v5115_v36, 0.0  ;;  %v8029_v35 = vld [vmem:[#allocation59_spill] sm:$0xff] }
 0x3c3   :  { %8015 = vst [vmem:[#allocation100_spill] sm:$0xff] %v5623_v6  ;;  %8016 = vst [vmem:[#allocation101_spill] sm:$0xff] %v5627_v31  ;;  %v8022_v6 = vld [vmem:[#allocation57_spill] sm:$0xff]  ;;  %v8024_v31 = vld [vmem:[#allocation58_spill] sm:$0xff]  ;;  %v5659_v52 = vmul.f32 0.01, %v8029_v35 }
 0x3c4   :  { %8017 = vst [vmem:[#allocation102_spill] sm:$0xff] %v5630_v21  ;;  %8018 = vst [vmem:[#allocation103_spill] sm:$0xff] %v5633_v13  ;;  %v5646_v62 = vmul.f32 0.01, %v8022_v6  ;;  %v5649_v43 = vmul.f32 0.01, %v8024_v31 }
 0x3c5   :  { %8019 = vst [vmem:[#allocation104_spill] sm:$0xff] %v5639_v49  ;;  %8021 = vst [vmem:[#allocation56_spill] sm:$0xff] %v5643_v15  ;;  %v8026_v21 = vld [vmem:[#allocation71_spill] sm:$0xff]  ;;  %v8031_v49 = vld [vmem:[#allocation60_spill] sm:$0xff]  ;;  %vm1739_vm14 = vcmp.gt.f32.partialorder %v5119_v45, 0.0  ;;  %vm1740_vm15 = vcmp.gt.f32.partialorder %v5123_v17, 0.0 }
 0x3c6   :  { %8023 = vst [vmem:[#allocation57_spill] sm:$0xff] %v5646_v62  ;;  %8025 = vst [vmem:[#allocation58_spill] sm:$0xff] %v5649_v43  ;;  %v5655_v13 = vsel %vm1726_vm1, %v8027_v24, %v8026_v21  ;;  %v5662_v26 = vmul.f32 0.01, %v8031_v49  ;;  %v8033_v15 = vld [vmem:[#allocation61_spill] sm:$0xff]  ;;  %v8035_v62 = vld [vmem:[#allocation54_spill] sm:$0xff] }
 0x3c7   :  { %8028 = vst [vmem:[#allocation71_spill] sm:$0xff] %v5655_v13  ;;  %8030 = vst [vmem:[#allocation30_spill] sm:$0xff] %v5659_v52  ;;  %v5665_v57 = vmul.f32 0.01, %v8033_v15  ;;  %v5671_v43 = vsel %vm1727_vm2, %v5071_v28, %v8035_v62  ;;  %v8037_v24 = vld [vmem:[#allocation62_spill] sm:$0xff]  ;;  %v8039_v13 = vld [vmem:[#allocation63_spill] sm:$0xff] }
 0x3c8   :  { %8032 = vst [vmem:[#allocation60_spill] sm:$0xff] %v5662_v26  ;;  %8036 = vst [vmem:[#allocation54_spill] sm:$0xff] %v5671_v43  ;;  %v5675_v21 = vmul.f32 0.01, %v8037_v24  ;;  %v5678_v34 = vmul.f32 0.01, %v8039_v13 }
 0x3c9   :  { %8034 = vst [vmem:[#allocation61_spill] sm:$0xff] %v5665_v57  ;;  %v8041_v52 = vld [vmem:[#allocation64_spill] sm:$0xff]  ;;  %v8043_v26 = vld [vmem:[#allocation73_spill] sm:$0xff]  ;;  %v8047_v43 = vld [vmem:[#allocation2_spill] sm:$0xff]  ;;  %vm1741_vm0 = vcmp.gt.f32.partialorder %v5127_v7, 0.0 }
 0x3ca   :  { %8038 = vst [vmem:[#allocation62_spill] sm:$0xff] %v5675_v21  ;;  %8040 = vst [vmem:[#allocation105_spill] sm:$0xff] %v5678_v34  ;;  %v5681_v3 = vmul.f32 0.01, %v8041_v52  ;;  %v5687_v57 = vsel %vm1728_vm3, %v5075_v54, %v8043_v26  ;;  %v8045_v28 = vld [vmem:[#allocation65_spill] sm:$0xff]  ;;  %v8049_v21 = vld [vmem:[#allocation3_spill] sm:$0xff] }
 0x3cb   :  { %8044 = vst [vmem:[#allocation73_spill] sm:$0xff] %v5687_v57  ;;  %v5691_v62 = vmul.f32 0.01, %v8045_v28  ;;  %v5694_v58 = vmul.f32 0.01, %v8047_v43  ;;  %v8051_v34 = vld [vmem:[#allocation31_spill] sm:$0xff] }
 0x3cc   :  { %8042 = vst [vmem:[#allocation64_spill] sm:$0xff] %v5681_v3  ;;  %v5697_v63 = vmul.f32 0.01, %v8049_v21  ;;  %v5703_v3 = vsel %vm1729_vm4, %v7971_v32, %v8051_v34  ;;  %v8053_v54 = vld [vmem:[#allocation4_spill] sm:$0xff]  ;;  %v8055_v57 = vld [vmem:[#allocation5_spill] sm:$0xff]  ;;  %vm1744_vm3 = vcmp.gt.f32.partialorder %v5139_v59, 0.0 }
 0x3cd   :  { %8046 = vst [vmem:[#allocation65_spill] sm:$0xff] %v5691_v62  ;;  %8048 = vst [vmem:[#allocation106_spill] sm:$0xff] %v5694_v58  ;;  %v5709_v26 = vmul.f32 0.01, %v8053_v54  ;;  %v5712_v58 = vmul.f32 0.01, %v8055_v57 }
 0x3ce   :  { %8050 = vst [vmem:[#allocation107_spill] sm:$0xff] %v5697_v63  ;;  %8052 = vst [vmem:[#allocation31_spill] sm:$0xff] %v5703_v3  ;;  %v8057_v62 = vld [vmem:[#allocation6_spill] sm:$0xff]  ;;  %v8059_v4 = vld [vmem:[#allocation32_spill] sm:$0xff] }
 0x3cf   :  { %8054 = vst [vmem:[#allocation4_spill] sm:$0xff] %v5709_v26  ;;  %8056 = vst [vmem:[#allocation5_spill] sm:$0xff] %v5712_v58  ;;  %v5715_v63 = vmul.f32 0.01, %v8057_v62  ;;  %v5721_v32 = vsel %vm1730_vm5, %v7973_v40, %v8059_v4  ;;  %v8061_v34 = vld [vmem:[#allocation7_spill] sm:$0xff]  ;;  %v8063_v58 = vld [vmem:[#allocation8_spill] sm:$0xff] }
 0x3d0   :  { %8060 = vst [vmem:[#allocation32_spill] sm:$0xff] %v5721_v32  ;;  %v5728_v3 = vmul.f32 0.01, %v8061_v34  ;;  %v5731_v26 = vmul.f32 0.01, %v8063_v58  ;;  %v8067_v12 = vld [vmem:[#allocation33_spill] sm:$0xff] }
 0x3d1   :  { %8058 = vst [vmem:[#allocation6_spill] sm:$0xff] %v5715_v63  ;;  %v8065_v63 = vld [vmem:[#allocation9_spill] sm:$0xff]  ;;  %v5740_v40 = vsel %vm1731_vm6, %v7976_v39, %v8067_v12  ;;  %vm1748_vm5 = vcmp.gt.f32.partialorder %v5155_v10, 0.0  ;;  %v8069_v4 = vld [vmem:[#allocation10_spill] sm:$0xff]  ;;  %v5759_v12 = vsel %vm1732_vm7, %v7978_v60, %v5480_v2  ;;  %vm1752_vm6 = vcmp.gt.f32.partialorder %v5171_v16, 0.0  ;;  %v8084_v2 = vld [vmem:[#allocation16_spill] sm:$0xff] }
 0x3d2   :  { %8062 = vst [vmem:[#allocation108_spill] sm:$0xff] %v5728_v3  ;;  %8064 = vst [vmem:[#allocation8_spill] sm:$0xff] %v5731_v26  ;;  %v5734_v14 = vmul.f32 0.01, %v8065_v63  ;;  %v5747_v32 = vmul.f32 0.01, %v8069_v4 }
 0x3d3   :  { %8068 = vst [vmem:[#allocation33_spill] sm:$0xff] %v5740_v40  ;;  %v8071_v26 = vld [vmem:[#allocation11_spill] sm:$0xff]  ;;  %8075 = vst [vmem:[#allocation109_spill] sm:$0xff] %v5759_v12  ;;  %v8076_v39 = vld [vmem:[#allocation13_spill] sm:$0xff]  ;;  %vm1756_vm7 = vcmp.gt.f32.partialorder %v5187_v19, 0.0  ;;  %vm1788_vm4 = vcmp.gt.f32.partialorder %v8084_v2, 0.0 }
 0x3d4   :  { %8066 = vst [vmem:[#allocation9_spill] sm:$0xff] %v5734_v14  ;;  %8070 = vst [vmem:[#allocation10_spill] sm:$0xff] %v5747_v32  ;;  %v5750_v3 = vmul.f32 0.01, %v8071_v26  ;;  %v8073_v14 = vld [vmem:[#allocation12_spill] sm:$0xff]  ;;  %v8082_v22 = vld [vmem:[#allocation34_spill] sm:$0xff] }
 0x3d5   :  { %v5753_v46 = vmul.f32 0.01, %v8073_v14  ;;  %v5766_v40 = vmul.f32 0.01, %v8076_v39  ;;  %v5778_v60 = vsel %vm1733_vm8, %v7979_v33, %v8082_v22  ;;  %v5785_v12 = vmul.f32 0.01, %v8084_v2 }
 0x3d6   :  { %8072 = vst [vmem:[#allocation11_spill] sm:$0xff] %v5750_v3  ;;  %v8078_v3 = vld [vmem:[#allocation14_spill] sm:$0xff]  ;;  %8083 = vst [vmem:[#allocation34_spill] sm:$0xff] %v5778_v60  ;;  %v8090_v42 = vld [vmem:[#allocation36_spill] sm:$0xff]  ;;  %vm1760_vm8 = vcmp.gt.f32.partialorder %v5203_v61, 0.0 }
 0x3d7   :  { %8074 = vst [vmem:[#allocation12_spill] sm:$0xff] %v5753_v46  ;;  %8077 = vst [vmem:[#allocation13_spill] sm:$0xff] %v5766_v40  ;;  %v5769_v32 = vmul.f32 0.01, %v8078_v3  ;;  %v8080_v46 = vld [vmem:[#allocation15_spill] sm:$0xff]  ;;  %v5797_v22 = vsel %vm1734_vm9, %v7982_v53, %v8090_v42  ;;  %v5816_v42 = vsel %vm1735_vm10, %v7984_v41, %v5495_v27  ;;  %vm1764_vm9 = vcmp.gt.f32.partialorder %v8020_v23, 0.0 }
 0x3d8   :  { %v5772_v8 = vmul.f32 0.01, %v8080_v46  ;;  %8085 = vst [vmem:[#allocation16_spill] sm:$0xff] %v5785_v12  ;;  %8091 = vst [vmem:[#allocation36_spill] sm:$0xff] %v5797_v22  ;;  %v8092_v33 = vld [vmem:[#allocation19_spill] sm:$0xff]  ;;  %v8099_v53 = vld [vmem:[#allocation22_spill] sm:$0xff] }
 0x3d9   :  { %8079 = vst [vmem:[#allocation14_spill] sm:$0xff] %v5769_v32  ;;  %v8086_v32 = vld [vmem:[#allocation17_spill] sm:$0xff]  ;;  %v5804_v60 = vmul.f32 0.01, %v8092_v33  ;;  %8098 = vst [vmem:[#allocation110_spill] sm:$0xff] %v5816_v42  ;;  %vm1768_vm10 = vcmp.gt.f32.partialorder %v8031_v49, 0.0 }
 0x3da   :  { %8081 = vst [vmem:[#allocation15_spill] sm:$0xff] %v5772_v8  ;;  %v5788_v40 = vmul.f32 0.01, %v8086_v32  ;;  %v8088_v8 = vld [vmem:[#allocation18_spill] sm:$0xff]  ;;  %v5823_v22 = vmul.f32 0.01, %v8099_v53 }
 0x3db   :  { %v5791_v29 = vmul.f32 0.01, %v8088_v8  ;;  %8093 = vst [vmem:[#allocation19_spill] sm:$0xff] %v5804_v60  ;;  %v8105_v44 = vld [vmem:[#allocation37_spill] sm:$0xff]  ;;  %v8127_v43 = vld [vmem:[#allocation39_spill] sm:$0xff] }
 0x3dc   :  { %8087 = vst [vmem:[#allocation17_spill] sm:$0xff] %v5788_v40  ;;  %v8094_v40 = vld [vmem:[#allocation20_spill] sm:$0xff]  ;;  %8100 = vst [vmem:[#allocation22_spill] sm:$0xff] %v5823_v22  ;;  %v5835_v27 = vsel %vm1736_vm11, %v7985_v51, %v8105_v44  ;;  %v8107_v41 = vld [vmem:[#allocation25_spill] sm:$0xff]  ;;  %v5854_v44 = vsel %vm1737_vm12, %v7988_v25, %v5507_v11  ;;  %vm1772_vm11 = vcmp.gt.f32.partialorder %v8041_v52, 0.0  ;;  %v5873_v25 = vsel %vm1738_vm13, %v5115_v36, %v5510_v1 }
 0x3dd   :  { %8089 = vst [vmem:[#allocation18_spill] sm:$0xff] %v5791_v29  ;;  %v5807_v12 = vmul.f32 0.01, %v8094_v40  ;;  %v8096_v29 = vld [vmem:[#allocation21_spill] sm:$0xff]  ;;  %8106 = vst [vmem:[#allocation37_spill] sm:$0xff] %v5835_v27  ;;  %v8114_v51 = vld [vmem:[#allocation28_spill] sm:$0xff]  ;;  %v5892_v36 = vsel %vm1739_vm14, %v5119_v45, %v8127_v43  ;;  %v5911_v45 = vsel %vm1740_vm15, %v5123_v17, %v5522_v18 }
 0x3de   :  { %v5810_v37 = vmul.f32 0.01, %v8096_v29  ;;  %v5842_v42 = vmul.f32 0.01, %v8107_v41  ;;  %8113 = vst [vmem:[#allocation111_spill] sm:$0xff] %v5854_v44  ;;  %8120 = vst [vmem:[#allocation112_spill] sm:$0xff] %v5873_v25 }
 0x3df   :  { %8095 = vst [vmem:[#allocation20_spill] sm:$0xff] %v5807_v12  ;;  %v8101_v12 = vld [vmem:[#allocation23_spill] sm:$0xff]  ;;  %v5861_v27 = vmul.f32 0.01, %v8114_v51  ;;  %vm1776_vm12 = vcmp.gt.f32.partialorder %v8053_v54, 0.0  ;;  %8128 = vst [vmem:[#allocation39_spill] sm:$0xff] %v5892_v36 }
 0x3e0   :  { %8097 = vst [vmem:[#allocation21_spill] sm:$0xff] %v5810_v37  ;;  %v5826_v60 = vmul.f32 0.01, %v8101_v12  ;;  %v8103_v37 = vld [vmem:[#allocation24_spill] sm:$0xff]  ;;  %8108 = vst [vmem:[#allocation25_spill] sm:$0xff] %v5842_v42  ;;  %v8121_v11 = vld [vmem:[#allocation43_spill] sm:$0xff] }
 0x3e1   :  { %v5829_v48 = vmul.f32 0.01, %v8103_v37  ;;  %8115 = vst [vmem:[#allocation28_spill] sm:$0xff] %v5861_v27  ;;  %v5880_v44 = vmul.f32 0.01, %v8121_v11  ;;  %vm1780_vm13 = vcmp.gt.f32.partialorder %v8063_v58, 0.0 }
 0x3e2   :  { %8102 = vst [vmem:[#allocation23_spill] sm:$0xff] %v5826_v60  ;;  %v8109_v60 = vld [vmem:[#allocation26_spill] sm:$0xff]  ;;  %v8129_v1 = vld [vmem:[#allocation67_spill] sm:$0xff]  ;;  %vm8138_vm15 = vcmp.gt.f32.partialorder %v5131_v38, 0.0  ;;  %v8140_v18 = vld [vmem:[#allocation40_spill] sm:$0xff] }
 0x3e3   :  { %8104 = vst [vmem:[#allocation24_spill] sm:$0xff] %v5829_v48  ;;  %v5845_v22 = vmul.f32 0.01, %v8109_v60  ;;  %v8111_v48 = vld [vmem:[#allocation27_spill] sm:$0xff]  ;;  %8122 = vst [vmem:[#allocation43_spill] sm:$0xff] %v5880_v44  ;;  %v8135_v43 = vld [vmem:[#allocation70_spill] sm:$0xff] }
 0x3e4   :  { %v5848_v35 = vmul.f32 0.01, %v8111_v48  ;;  %v5899_v25 = vmul.f32 0.01, %v8129_v1  ;;  %v5918_v36 = vmul.f32 0.01, %v8135_v43 }
 0x3e5   :  { %8110 = vst [vmem:[#allocation26_spill] sm:$0xff] %v5845_v22  ;;  %v8116_v22 = vld [vmem:[#allocation29_spill] sm:$0xff]  ;;  %vm8141_vm1 = vcmp.gt.f32.partialorder %v8140_v18, 0.0  ;;  %vm1809_vm14 = vcmp.gt.f32.partialorder %v8135_v43, 0.0 }
 0x3e6   :  { %8112 = vst [vmem:[#allocation27_spill] sm:$0xff] %v5848_v35  ;;  %v5864_v42 = vmul.f32 0.01, %v8116_v22  ;;  %v8118_v35 = vld [vmem:[#allocation42_spill] sm:$0xff] }
 0x3e7   :  { %v5867_v13 = vmul.f32 0.01, %v8118_v35 }
 0x3e8   :  { %8117 = vst [vmem:[#allocation29_spill] sm:$0xff] %v5864_v42  ;;  %v8123_v42 = vld [vmem:[#allocation44_spill] sm:$0xff] }
 0x3e9   :  { %8119 = vst [vmem:[#allocation42_spill] sm:$0xff] %v5867_v13  ;;  %v5883_v27 = vmul.f32 0.01, %v8123_v42  ;;  %v8125_v13 = vld [vmem:[#allocation66_spill] sm:$0xff] }
 0x3ea   :  { %v5886_v21 = vmul.f32 0.01, %v8125_v13  ;;  %vm1805_vm2 = vcmp.gt.f32.partialorder %v8125_v13, 0.0 }
 0x3eb   :  { %8124 = vst [vmem:[#allocation44_spill] sm:$0xff] %v5883_v27  ;;  %v8130_v27 = vld [vmem:[#allocation68_spill] sm:$0xff] }
 0x3ec   :  { %8126 = vst [vmem:[#allocation66_spill] sm:$0xff] %v5886_v21  ;;  %v5902_v44 = vmul.f32 0.01, %v8130_v27  ;;  %v8132_v21 = vld [vmem:[#allocation69_spill] sm:$0xff] }
 0x3ed   :  { %v5905_v34 = vmul.f32 0.01, %v8132_v21  ;;  %8134 = vst [vmem:[#allocation69_spill] sm:$0xff] %v5911_v45  ;;  %v5936_v45 = vsel %vm8141_vm1, %v8140_v18, %v5537_v0  ;;  %vm8147_vm1 = vcmp.gt.f32.partialorder %v5147_v20, 0.0 }
 0x3ee   :  { %8131 = vst [vmem:[#allocation67_spill] sm:$0xff] %v5902_v44  ;;  %v8137_v44 = vld [vmem:[#allocation76_spill] sm:$0xff]  ;;  %8142 = vst [vmem:[#allocation40_spill] sm:$0xff] %v5936_v45  ;;  %v8149_v45 = vld [vmem:[#allocation82_spill] sm:$0xff] }
 0x3ef   :  { %8133 = vst [vmem:[#allocation68_spill] sm:$0xff] %v5905_v34  ;;  %v5924_v34 = vsel %vm1741_vm0, %v5127_v7, %v5525_v9  ;;  %v5930_v17 = vsel %vm8138_vm15, %v5131_v38, %v8137_v44  ;;  %v8143_v7 = vld [vmem:[#allocation78_spill] sm:$0xff]  ;;  %v8144_v9 = vld [vmem:[#allocation79_spill] sm:$0xff]  ;;  %vm8145_vm15 = vcmp.gt.f32.partialorder %v5143_v56, 0.0  ;;  %v8146_v44 = vld [vmem:[#allocation81_spill] sm:$0xff] }
 0x3f0   :  { %8136 = vst [vmem:[#allocation70_spill] sm:$0xff] %v5924_v34  ;;  %8139 = vst [vmem:[#allocation76_spill] sm:$0xff] %v5930_v17  ;;  %v5946_v38 = vsel %vm1744_vm3, %v5139_v59, %v8143_v7  ;;  %v5952_v0 = vsel %vm8145_vm15, %v5143_v56, %v8144_v9  ;;  %v5958_v18 = vsel %vm8147_vm1, %v5147_v20, %v8146_v44  ;;  %v8150_v17 = vld [vmem:[#allocation41_spill] sm:$0xff]  ;;  %vm1792_vm3 = vcmp.gt.f32.partialorder %v8094_v40, 0.0  ;;  %v8153_v59 = vld [vmem:[#allocation83_spill] sm:$0xff] }
 0x3f1   :  { %8148 = vst [vmem:[#allocation78_spill] sm:$0xff] %v5958_v18  ;;  %vm8151_vm0 = vcmp.gt.f32.partialorder %v8150_v17, 0.0  ;;  %v5974_v56 = vsel %vm1748_vm5, %v5155_v10, %v8153_v59  ;;  %v8154_v20 = vld [vmem:[#allocation85_spill] sm:$0xff]  ;;  %vm8155_vm1 = vcmp.gt.f32.partialorder %v5159_v5, 0.0  ;;  %v8160_v44 = vld [vmem:[#allocation87_spill] sm:$0xff]  ;;  %vm1796_vm5 = vcmp.gt.f32.partialorder %v8103_v37, 0.0 }
 0x3f2   :  { %v5964_v34 = vsel %vm8151_vm0, %v8150_v17, %v8149_v45  ;;  %v5980_v45 = vsel %vm8155_vm1, %v5159_v5, %v8154_v20  ;;  %v8156_v17 = vld [vmem:[#allocation86_spill] sm:$0xff]  ;;  %v8157_v7 = vld [vmem:[#allocation45_spill] sm:$0xff]  ;;  %v8167_v20 = vld [vmem:[#allocation91_spill] sm:$0xff] }
 0x3f3   :  { %8152 = vst [vmem:[#allocation79_spill] sm:$0xff] %v5964_v34  ;;  %vm8158_vm0 = vcmp.gt.f32.partialorder %v8157_v7, 0.0  ;;  %v8161_v34 = vld [vmem:[#allocation46_spill] sm:$0xff]  ;;  %v8164_v10 = vld [vmem:[#allocation89_spill] sm:$0xff] }
 0x3f4   :  { %v5986_v9 = vsel %vm8158_vm0, %v8157_v7, %v8156_v17  ;;  %vm8162_vm15 = vcmp.gt.f32.partialorder %v8161_v34, 0.0  ;;  %v6002_v5 = vsel %vm1752_vm6, %v5171_v16, %v8164_v10  ;;  %v8165_v59 = vld [vmem:[#allocation90_spill] sm:$0xff]  ;;  %vm8166_vm0 = vcmp.gt.f32.partialorder %v5175_v30, 0.0  ;;  %v8168_v17 = vld [vmem:[#allocation48_spill] sm:$0xff]  ;;  %v8175_v10 = vld [vmem:[#allocation95_spill] sm:$0xff] }
 0x3f5   :  { %8159 = vst [vmem:[#allocation81_spill] sm:$0xff] %v5986_v9  ;;  %v5992_v18 = vsel %vm8162_vm15, %v8161_v34, %v8160_v44  ;;  %v6008_v34 = vsel %vm8166_vm0, %v5175_v30, %v8165_v59  ;;  %vm8169_vm15 = vcmp.gt.f32.partialorder %v8168_v17, 0.0  ;;  %v8170_v44 = vld [vmem:[#allocation93_spill] sm:$0xff]  ;;  %vm1800_vm6 = vcmp.gt.f32.partialorder %v8114_v51, 0.0  ;;  %v8174_v16 = vld [vmem:[#allocation94_spill] sm:$0xff] }
 0x3f6   :  { %8163 = vst [vmem:[#allocation82_spill] sm:$0xff] %v5992_v18  ;;  %v6014_v7 = vsel %vm8169_vm15, %v8168_v17, %v8167_v20  ;;  %v8171_v18 = vld [vmem:[#allocation50_spill] sm:$0xff]  ;;  %v6030_v30 = vsel %vm1756_vm7, %v5187_v19, %v8174_v16  ;;  %vm8176_vm15 = vcmp.gt.f32.partialorder %v5191_v55, 0.0  ;;  %v8177_v59 = vld [vmem:[#allocation97_spill] sm:$0xff]  ;;  %vm1804_vm7 = vcmp.gt.f32.partialorder %v8123_v42, 0.0  ;;  %v8184_v19 = vld [vmem:[#allocation99_spill] sm:$0xff] }
 0x3f7   :  { %vm8172_vm1 = vcmp.gt.f32.partialorder %v8171_v18, 0.0  ;;  %v8180_v17 = vld [vmem:[#allocation98_spill] sm:$0xff] }
 0x3f8   :  { %v6020_v9 = vsel %vm8172_vm1, %v8171_v18, %v8170_v44  ;;  %v6036_v18 = vsel %vm8176_vm15, %v5191_v55, %v8175_v10  ;;  %vm8178_vm1 = vcmp.gt.f32.partialorder %v5195_v47, 0.0  ;;  %v8181_v44 = vld [vmem:[#allocation52_spill] sm:$0xff]  ;;  %v6058_v55 = vsel %vm1760_vm8, %v5203_v61, %v8184_v19  ;;  %v8187_v10 = vld [vmem:[#allocation102_spill] sm:$0xff]  ;;  %v8196_v19 = vld [vmem:[#allocation57_spill] sm:$0xff] }
 0x3f9   :  { %8173 = vst [vmem:[#allocation41_spill] sm:$0xff] %v6020_v9  ;;  %v6042_v20 = vsel %vm8178_vm1, %v5195_v47, %v8177_v59  ;;  %vm8182_vm0 = vcmp.gt.f32.partialorder %v8181_v44, 0.0  ;;  %v8185_v47 = vld [vmem:[#allocation101_spill] sm:$0xff]  ;;  %vm8186_vm1 = vcmp.gt.f32.partialorder %v5207_v50, 0.0  ;;  %vm1808_vm8 = vcmp.gt.f32.partialorder %v8132_v21, 0.0  ;;  %v8195_v61 = vld [vmem:[#allocation56_spill] sm:$0xff] }
 0x3fa   :  { %8179 = vst [vmem:[#allocation83_spill] sm:$0xff] %v6042_v20  ;;  %v6048_v9 = vsel %vm8182_vm0, %v8181_v44, %v8180_v17  ;;  %v6064_v16 = vsel %vm8186_vm1, %v5207_v50, %v8185_v47  ;;  %v8188_v59 = vld [vmem:[#allocation53_spill] sm:$0xff]  ;;  %v8191_v44 = vld [vmem:[#allocation103_spill] sm:$0xff]  ;;  %v6084_v50 = vsel %vm1764_vm9, %v8020_v23, %v8195_v61  ;;  %vm8197_vm1 = vcmp.gt.f32.partialorder %v8022_v6, 0.0  ;;  %v8204_v23 = vld [vmem:[#allocation60_spill] sm:$0xff] }
 0x3fb   :  { %8183 = vst [vmem:[#allocation85_spill] sm:$0xff] %v6048_v9  ;;  %vm8189_vm0 = vcmp.gt.f32.partialorder %v8188_v59, 0.0  ;;  %v8192_v9 = vld [vmem:[#allocation55_spill] sm:$0xff]  ;;  %v6090_v47 = vsel %vm8197_vm1, %v8022_v6, %v8196_v19  ;;  %v6108_v61 = vsel %vm1768_vm10, %v8031_v49, %v8204_v23  ;;  %v8205_v6 = vld [vmem:[#allocation61_spill] sm:$0xff]  ;;  %vm8206_vm9 = vcmp.gt.f32.partialorder %v8033_v15, 0.0  ;;  %v8214_v49 = vld [vmem:[#allocation64_spill] sm:$0xff] }
 0x3fc   :  { %v6070_v17 = vsel %vm8189_vm0, %v8188_v59, %v8187_v10  ;;  %vm8193_vm15 = vcmp.gt.f32.partialorder %v8192_v9, 0.0  ;;  %v8198_v10 = vld [vmem:[#allocation58_spill] sm:$0xff]  ;;  %v6114_v19 = vsel %vm8206_vm9, %v8033_v15, %v8205_v6  ;;  %vm8208_vm1 = vcmp.gt.f32.partialorder %v8037_v24, 0.0  ;;  %v8215_v15 = vld [vmem:[#allocation65_spill] sm:$0xff] }
 0x3fd   :  { %8190 = vst [vmem:[#allocation86_spill] sm:$0xff] %v6070_v17  ;;  %v6076_v20 = vsel %vm8193_vm15, %v8192_v9, %v8191_v44  ;;  %vm8199_vm15 = vcmp.gt.f32.partialorder %v8024_v31, 0.0  ;;  %v8200_v59 = vld [vmem:[#allocation30_spill] sm:$0xff]  ;;  %v8201_v44 = vld [vmem:[#allocation59_spill] sm:$0xff]  ;;  %v6132_v23 = vsel %vm1772_vm11, %v8041_v52, %v8214_v49  ;;  %vm8216_vm10 = vcmp.gt.f32.partialorder %v8045_v28, 0.0  ;;  %v8224_v52 = vld [vmem:[#allocation4_spill] sm:$0xff] }
 0x3fe   :  { %8194 = vst [vmem:[#allocation45_spill] sm:$0xff] %v6076_v20  ;;  %v6096_v9 = vsel %vm8199_vm15, %v8024_v31, %v8198_v10  ;;  %vm8202_vm0 = vcmp.gt.f32.partialorder %v8201_v44, 0.0  ;;  %v8207_v31 = vld [vmem:[#allocation62_spill] sm:$0xff]  ;;  %v6138_v6 = vsel %vm8216_vm10, %v8045_v28, %v8215_v15  ;;  %v6156_v49 = vsel %vm1776_vm12, %v8053_v54, %v8224_v52  ;;  %v8225_v28 = vld [vmem:[#allocation5_spill] sm:$0xff]  ;;  %v8232_v54 = vld [vmem:[#allocation8_spill] sm:$0xff] }
 0x3ff   :  { %v6102_v20 = vsel %vm8202_vm0, %v8201_v44, %v8200_v59  ;;  %v6120_v10 = vsel %vm8208_vm1, %v8037_v24, %v8207_v31  ;;  %v8210_v59 = vld [vmem:[#allocation105_spill] sm:$0xff]  ;;  %v8211_v44 = vld [vmem:[#allocation63_spill] sm:$0xff]  ;;  %v8217_v24 = vld [vmem:[#allocation106_spill] sm:$0xff]  ;;  %vm8226_vm11 = vcmp.gt.f32.partialorder %v8055_v57, 0.0  ;;  %vm8228_vm1 = vcmp.gt.f32.partialorder %v8057_v62, 0.0 }
 0x400   :  { %8203 = vst [vmem:[#allocation87_spill] sm:$0xff] %v6102_v20  ;;  %8209 = vst [vmem:[#allocation46_spill] sm:$0xff] %v6120_v10  ;;  %vm8212_vm15 = vcmp.gt.f32.partialorder %v8211_v44, 0.0  ;;  %v8218_v31 = vld [vmem:[#allocation2_spill] sm:$0xff]  ;;  %v6162_v15 = vsel %vm8226_vm11, %v8055_v57, %v8225_v28  ;;  %v6180_v52 = vsel %vm1780_vm13, %v8063_v58, %v8232_v54  ;;  %v8233_v57 = vld [vmem:[#allocation9_spill] sm:$0xff]  ;;  %vm8234_vm12 = vcmp.gt.f32.partialorder %v8065_v63, 0.0 }
 0x401   :  { %v6126_v20 = vsel %vm8212_vm15, %v8211_v44, %v8210_v59  ;;  %vm8219_vm0 = vcmp.gt.f32.partialorder %v8218_v31, 0.0  ;;  %v8220_v59 = vld [vmem:[#allocation107_spill] sm:$0xff]  ;;  %v6186_v28 = vsel %vm8234_vm12, %v8065_v63, %v8233_v57  ;;  %vm8236_vm10 = vcmp.gt.f32.partialorder %v8069_v4, 0.0  ;;  %v8239_v58 = vld [vmem:[#allocation12_spill] sm:$0xff]  ;;  %v8241_v63 = vld [vmem:[#allocation13_spill] sm:$0xff] }
 0x402   :  { %8213 = vst [vmem:[#allocation89_spill] sm:$0xff] %v6126_v20  ;;  %v6144_v10 = vsel %vm8219_vm0, %v8218_v31, %v8217_v24  ;;  %v8221_v44 = vld [vmem:[#allocation3_spill] sm:$0xff]  ;;  %v8227_v24 = vld [vmem:[#allocation6_spill] sm:$0xff]  ;;  %vm8238_vm0 = vcmp.gt.f32.partialorder %v8071_v26, 0.0  ;;  %vm8240_vm13 = vcmp.gt.f32.partialorder %v8073_v14, 0.0  ;;  %vm8244_vm11 = vcmp.gt.f32.partialorder %v8078_v3, 0.0 }
 0x403   :  { %vm8222_vm9 = vcmp.gt.f32.partialorder %v8221_v44, 0.0  ;;  %v6168_v31 = vsel %vm8228_vm1, %v8057_v62, %v8227_v24  ;;  %v8235_v62 = vld [vmem:[#allocation10_spill] sm:$0xff]  ;;  %v6204_v54 = vsel %vm8240_vm13, %v8073_v14, %v8239_v58  ;;  %vm8246_vm1 = vcmp.gt.f32.partialorder %v8080_v46, 0.0  ;;  %v8247_v14 = vld [vmem:[#allocation16_spill] sm:$0xff] }
 0x404   :  { %v6150_v20 = vsel %vm8222_vm9, %v8221_v44, %v8220_v59  ;;  %v8229_v59 = vld [vmem:[#allocation108_spill] sm:$0xff]  ;;  %v8230_v44 = vld [vmem:[#allocation7_spill] sm:$0xff]  ;;  %v6192_v24 = vsel %vm8236_vm10, %v8069_v4, %v8235_v62  ;;  %vm8242_vm9 = vcmp.gt.f32.partialorder %v8076_v39, 0.0  ;;  %v8243_v4 = vld [vmem:[#allocation14_spill] sm:$0xff]  ;;  %v6228_v58 = vsel %vm1788_vm4, %v8084_v2, %v8247_v14 }
 0x405   :  { %8223 = vst [vmem:[#allocation90_spill] sm:$0xff] %v6150_v20  ;;  %vm8231_vm15 = vcmp.gt.f32.partialorder %v8230_v44, 0.0  ;;  %v6210_v57 = vsel %vm8242_vm9, %v8076_v39, %v8241_v63  ;;  %v6216_v62 = vsel %vm8244_vm11, %v8078_v3, %v8243_v4  ;;  %v8248_v39 = vld [vmem:[#allocation17_spill] sm:$0xff]  ;;  %v8250_v3 = vld [vmem:[#allocation18_spill] sm:$0xff]  ;;  %vm8251_vm12 = vcmp.gt.f32.partialorder %v8088_v8, 0.0  ;;  %v8254_v2 = vld [vmem:[#allocation20_spill] sm:$0xff] }
 0x406   :  { %v6174_v20 = vsel %vm8231_vm15, %v8230_v44, %v8229_v59  ;;  %v8237_v59 = vld [vmem:[#allocation11_spill] sm:$0xff]  ;;  %vm8249_vm15 = vcmp.gt.f32.partialorder %v8086_v32, 0.0  ;;  %v6240_v4 = vsel %vm8251_vm12, %v8088_v8, %v8250_v3  ;;  %vm8253_vm10 = vcmp.gt.f32.partialorder %v8092_v33, 0.0  ;;  %v8257_v8 = vld [vmem:[#allocation22_spill] sm:$0xff] }
 0x407   :  { %v6198_v44 = vsel %vm8238_vm0, %v8071_v26, %v8237_v59  ;;  %v8245_v26 = vld [vmem:[#allocation15_spill] sm:$0xff]  ;;  %v6234_v63 = vsel %vm8249_vm15, %v8086_v32, %v8248_v39  ;;  %v6252_v14 = vsel %vm1792_vm3, %v8094_v40, %v8254_v2  ;;  %v8255_v32 = vld [vmem:[#allocation21_spill] sm:$0xff]  ;;  %vm8256_vm4 = vcmp.gt.f32.partialorder %v8096_v29, 0.0  ;;  %v8261_v40 = vld [vmem:[#allocation24_spill] sm:$0xff] }
 0x408   :  { %v6222_v59 = vsel %vm8246_vm1, %v8080_v46, %v8245_v26  ;;  %v8252_v46 = vld [vmem:[#allocation19_spill] sm:$0xff]  ;;  %v6258_v39 = vsel %vm8256_vm4, %v8096_v29, %v8255_v32  ;;  %vm8258_vm0 = vcmp.gt.f32.partialorder %v8099_v53, 0.0  ;;  %vm8260_vm13 = vcmp.gt.f32.partialorder %v8101_v12, 0.0  ;;  %v8262_v29 = vld [vmem:[#allocation25_spill] sm:$0xff]  ;;  %v8335_v17 = vld [vmem:[#allocation46_spill] sm:$0xff] }
 0x409   :  { %v6246_v26 = vsel %vm8253_vm10, %v8092_v33, %v8252_v46  ;;  %v6264_v3 = vsel %vm8258_vm0, %v8099_v53, %v8257_v8  ;;  %v8259_v33 = vld [vmem:[#allocation23_spill] sm:$0xff]  ;;  %v6276_v2 = vsel %vm1796_vm5, %v8103_v37, %v8261_v40  ;;  %vm8263_vm3 = vcmp.gt.f32.partialorder %v8107_v41, 0.0  ;;  %v8265_v53 = vld [vmem:[#allocation26_spill] sm:$0xff]  ;;  %v8271_v37 = vld [vmem:[#allocation28_spill] sm:$0xff] }
 0x40a   :  { %v6270_v46 = vsel %vm8260_vm13, %v8101_v12, %v8259_v33  ;;  %v6282_v32 = vsel %vm8263_vm3, %v8107_v41, %v8262_v29  ;;  %vm8266_vm9 = vcmp.gt.f32.partialorder %v8109_v60, 0.0  ;;  %v8268_v12 = vld [vmem:[#allocation27_spill] sm:$0xff]  ;;  %vm8269_vm11 = vcmp.gt.f32.partialorder %v8111_v48, 0.0  ;;  %v8273_v41 = vld [vmem:[#allocation29_spill] sm:$0xff] }
 0x40b   :  { %8264 = vst [vmem:[#allocation91_spill] sm:$0xff] %v6282_v32  ;;  %v6288_v8 = vsel %vm8266_vm9, %v8109_v60, %v8265_v53  ;;  %v6294_v33 = vsel %vm8269_vm11, %v8111_v48, %v8268_v12  ;;  %v6300_v40 = vsel %vm1800_vm6, %v8114_v51, %v8271_v37  ;;  %vm8274_vm5 = vcmp.gt.f32.partialorder %v8116_v22, 0.0  ;;  %v8276_v60 = vld [vmem:[#allocation42_spill] sm:$0xff]  ;;  %v8278_v48 = vld [vmem:[#allocation43_spill] sm:$0xff]  ;;  %v8281_v51 = vld [vmem:[#allocation44_spill] sm:$0xff] }
 0x40c   :  { %8267 = vst [vmem:[#allocation48_spill] sm:$0xff] %v6288_v8  ;;  %8270 = vst [vmem:[#allocation93_spill] sm:$0xff] %v6294_v33  ;;  %v6306_v29 = vsel %vm8274_vm5, %v8116_v22, %v8273_v41  ;;  %vm8277_vm1 = vcmp.gt.f32.partialorder %v8118_v35, 0.0  ;;  %vm8279_vm15 = vcmp.gt.f32.partialorder %v8121_v11, 0.0  ;;  %v6324_v37 = vsel %vm1804_vm7, %v8123_v42, %v8281_v51  ;;  %v8282_v22 = vld [vmem:[#allocation66_spill] sm:$0xff]  ;;  %v8289_v42 = vld [vmem:[#allocation68_spill] sm:$0xff] }
 0x40d   :  { %8272 = vst [vmem:[#allocation50_spill] sm:$0xff] %v6300_v40  ;;  %8275 = vst [vmem:[#allocation94_spill] sm:$0xff] %v6306_v29  ;;  %v6312_v53 = vsel %vm8277_vm1, %v8118_v35, %v8276_v60  ;;  %v6318_v12 = vsel %vm8279_vm15, %v8121_v11, %v8278_v48  ;;  %v6330_v41 = vsel %vm1805_vm2, %v8125_v13, %v8282_v22  ;;  %vm8284_vm6 = vcmp.gt.f32.partialorder %v8129_v1, 0.0  ;;  %v8286_v11 = vld [vmem:[#allocation67_spill] sm:$0xff]  ;;  %v8337_v51 = vld [vmem:[#allocation90_spill] sm:$0xff] }
 0x40e   :  { %8280 = vst [vmem:[#allocation95_spill] sm:$0xff] %v6318_v12  ;;  %8283 = vst [vmem:[#allocation97_spill] sm:$0xff] %v6330_v41  ;;  %v6336_v35 = vsel %vm8284_vm6, %v8129_v1, %v5899_v25  ;;  %vm8287_vm12 = vcmp.gt.f32.partialorder %v8130_v27, 0.0  ;;  %v6348_v48 = vsel %vm1808_vm8, %v8132_v21, %v8289_v42  ;;  %v6354_v13 = vsel %vm1809_vm14, %v8135_v43, %v5918_v36  ;;  %v8322_v36 = vld [vmem:[#allocation69_spill] sm:$0xff]  ;;  %v8326_v21 = vld [vmem:[#allocation78_spill] sm:$0xff] }
 0x40f   :  { %8285 = vst [vmem:[#allocation98_spill] sm:$0xff] %v6336_v35  ;;  %v6342_v60 = vsel %vm8287_vm12, %v8130_v27, %v8286_v11  ;;  %8290 = vst [vmem:[#allocation99_spill] sm:$0xff] %v6348_v48  ;;  %v8318_v27 = vld [vmem:[#allocation37_spill] sm:$0xff]  ;;  %v8331_v25 = vld [vmem:[#allocation83_spill] sm:$0xff]  ;;  %v2726_v35 = vpack.c.bf16 %v6324_v37, %v6324_v37  ;;  %v8338_v32 = vmov %v6330_v41  ;;  %vm2410_vm2 = vcmask 257024  }
 0x410   :  { %8288 = vst [vmem:[#allocation52_spill] sm:$0xff] %v6342_v60  ;;  %8291 = vst [vmem:[#allocation101_spill] sm:$0xff] %v6354_v13  ;;  %v8319_v60 = vld [vmem:[#allocation111_spill] sm:$0xff]  ;;  %v8323_v13 = vld [vmem:[#allocation70_spill] sm:$0xff] }
 0x411   :  { %v8336_v48 = vld [vmem:[#allocation89_spill] sm:$0xff]  ;;  %v8343_v11 = vld [vmem:[#allocation47_spill] sm:$0xff]  ;;  %2505 = vst.msk [vmem:[%s7260_s4 + $0x178] sm:$0xf] %vm2410_vm2, %v2726_v35 }
 0x412   :  { %v8344_v12 = vpack.c.bf16 %v8343_v11, %v8343_v11  ;;  %v8345_v42 = vld [vmem:[#allocation49_spill] sm:$0xff]  ;;  %v8347_v1 = vld [vmem:[#allocation51_spill] sm:$0xff]  ;;  %v8349_v11 = vld [vmem:[#allocation72_spill] sm:$0xff] }
 0x413   :  { %v8346_v41 = vpack.c.bf16 %v8345_v42, %v8345_v42  ;;  %v8348_v22 = vpack.c.bf16 %v8347_v1, %v8347_v1  ;;  %v8350_v43 = vpack.c.bf16 %v8349_v11, %v8349_v11 }
 0x414   :  { %2411 = vst.msk [vmem:[%s7260_s4] sm:$0xf] %vm2410_vm2, %v8344_v12  ;;  %v8351_v12 = vld [vmem:[#allocation74_spill] sm:$0xff] }
 0x415   :  { %2412 = vst.msk [vmem:[%s7260_s4 + $0x4] sm:$0xf] %vm2410_vm2, %v8346_v41  ;;  %2413 = vst.msk [vmem:[%s7260_s4 + $0x8] sm:$0xf] %vm2410_vm2, %v8348_v22  ;;  %v8352_v42 = vpack.c.bf16 %v8351_v12, %v8351_v12  ;;  %v8353_v41 = vld [vmem:[#allocation35_spill] sm:$0xff]  ;;  %v8355_v22 = vld [vmem:[#allocation38_spill] sm:$0xff] }
 0x416   :  { %v8339_v8 = vld [vmem:[#allocation98_spill] sm:$0xff]  ;;  %v8341_v40 = vld [vmem:[#allocation99_spill] sm:$0xff]  ;;  %2414 = vst.msk [vmem:[%s7260_s4 + $0xc] sm:$0xf] %vm2410_vm2, %v8350_v43  ;;  %v8354_v1 = vpack.c.bf16 %v8353_v41, %v8353_v41  ;;  %v8356_v11 = vpack.c.bf16 %v8355_v22, %v8355_v22 }
 0x417   :  { %v8340_v33 = vld [vmem:[#allocation52_spill] sm:$0xff]  ;;  %v8342_v29 = vld [vmem:[#allocation101_spill] sm:$0xff]  ;;  %2415 = vst.msk [vmem:[%s7260_s4 + $0x10] sm:$0xf] %vm2410_vm2, %v8352_v42  ;;  %v8357_v43 = vld [vmem:[#allocation75_spill] sm:$0xff] }
 0x418   :  { %2416 = vst.msk [vmem:[%s7260_s4 + $0x14] sm:$0xf] %vm2410_vm2, %v8354_v1  ;;  %2417 = vst.msk [vmem:[%s7260_s4 + $0x18] sm:$0xf] %vm2410_vm2, %v8356_v11  ;;  %v8358_v12 = vpack.c.bf16 %v8357_v43, %v8357_v43  ;;  %v8359_v42 = vld [vmem:[#allocation77_spill] sm:$0xff]  ;;  %v8361_v1 = vld [vmem:[#allocation80_spill] sm:$0xff]  ;;  %v8483_v37 = vpack.c.bf16 %v8340_v33, %v8340_v33 }
 0x419   :  { %v8360_v41 = vpack.c.bf16 %v8359_v42, %v8359_v42  ;;  %v8362_v22 = vpack.c.bf16 %v8361_v1, %v8361_v1  ;;  %v8363_v11 = vld [vmem:[#allocation84_spill] sm:$0xff] }
 0x41a   :  { %2418 = vst.msk [vmem:[%s7260_s4 + $0x1c] sm:$0xf] %vm2410_vm2, %v8358_v12  ;;  %v8364_v43 = vpack.c.bf16 %v8363_v11, %v8363_v11  ;;  %v8365_v12 = vld [vmem:[#allocation88_spill] sm:$0xff]  ;;  %2508 = vst.msk [vmem:[%s7260_s4 + $0x184] sm:$0xf] %vm2410_vm2, %v8483_v37 }
 0x41b   :  { %2419 = vst.msk [vmem:[%s7260_s4 + $0x20] sm:$0xf] %vm2410_vm2, %v8360_v41  ;;  %2420 = vst.msk [vmem:[%s7260_s4 + $0x24] sm:$0xf] %vm2410_vm2, %v8362_v22  ;;  %v8366_v42 = vpack.c.bf16 %v8365_v12, %v8365_v12  ;;  %v8367_v41 = vld [vmem:[#allocation92_spill] sm:$0xff] }
 0x41c   :  { %2421 = vst.msk [vmem:[%s7260_s4 + $0x28] sm:$0xf] %vm2410_vm2, %v8364_v43  ;;  %v8368_v1 = vpack.c.bf16 %v8367_v41, %v8367_v41  ;;  %v8369_v22 = vld [vmem:[#allocation96_spill] sm:$0xff] }
 0x41d   :  { %2422 = vst.msk [vmem:[%s7260_s4 + $0x2c] sm:$0xf] %vm2410_vm2, %v8366_v42  ;;  %v8370_v11 = vpack.c.bf16 %v8369_v22, %v8369_v22  ;;  %v8371_v43 = vld [vmem:[#allocation100_spill] sm:$0xff] }
 0x41e   :  { %2423 = vst.msk [vmem:[%s7260_s4 + $0x30] sm:$0xf] %vm2410_vm2, %v8368_v1  ;;  %v8372_v12 = vpack.c.bf16 %v8371_v43, %v8371_v43  ;;  %v8373_v42 = vld [vmem:[#allocation104_spill] sm:$0xff]  ;;  %v8375_v1 = vld [vmem:[#allocation71_spill] sm:$0xff] }
 0x41f   :  { %2424 = vst.msk [vmem:[%s7260_s4 + $0x34] sm:$0xf] %vm2410_vm2, %v8370_v11  ;;  %v8374_v41 = vpack.c.bf16 %v8373_v42, %v8373_v42  ;;  %v8376_v22 = vpack.c.bf16 %v8375_v1, %v8375_v1  ;;  %v8377_v11 = vld [vmem:[#allocation54_spill] sm:$0xff] }
 0x420   :  { %2425 = vst.msk [vmem:[%s7260_s4 + $0x38] sm:$0xf] %vm2410_vm2, %v8372_v12  ;;  %v8378_v43 = vpack.c.bf16 %v8377_v11, %v8377_v11  ;;  %v8379_v12 = vld [vmem:[#allocation73_spill] sm:$0xff] }
 0x421   :  { %2426 = vst.msk [vmem:[%s7260_s4 + $0x3c] sm:$0xf] %vm2410_vm2, %v8374_v41  ;;  %2427 = vst.msk [vmem:[%s7260_s4 + $0x40] sm:$0xf] %vm2410_vm2, %v8376_v22  ;;  %v8380_v42 = vpack.c.bf16 %v8379_v12, %v8379_v12  ;;  %v8381_v41 = vld [vmem:[#allocation31_spill] sm:$0xff]  ;;  %v8383_v22 = vld [vmem:[#allocation32_spill] sm:$0xff] }
 0x422   :  { %2428 = vst.msk [vmem:[%s7260_s4 + $0x44] sm:$0xf] %vm2410_vm2, %v8378_v43  ;;  %v8382_v1 = vpack.c.bf16 %v8381_v41, %v8381_v41  ;;  %v8384_v11 = vpack.c.bf16 %v8383_v22, %v8383_v22  ;;  %v8385_v43 = vld [vmem:[#allocation33_spill] sm:$0xff] }
 0x423   :  { %2429 = vst.msk [vmem:[%s7260_s4 + $0x48] sm:$0xf] %vm2410_vm2, %v8380_v42  ;;  %v8386_v12 = vpack.c.bf16 %v8385_v43, %v8385_v43  ;;  %v8387_v42 = vld [vmem:[#allocation109_spill] sm:$0xff] }
 0x424   :  { %2430 = vst.msk [vmem:[%s7260_s4 + $0x4c] sm:$0xf] %vm2410_vm2, %v8382_v1  ;;  %2431 = vst.msk [vmem:[%s7260_s4 + $0x50] sm:$0xf] %vm2410_vm2, %v8384_v11  ;;  %v8388_v41 = vpack.c.bf16 %v8387_v42, %v8387_v42  ;;  %v8389_v1 = vld [vmem:[#allocation34_spill] sm:$0xff]  ;;  %v8391_v11 = vld [vmem:[#allocation36_spill] sm:$0xff] }
 0x425   :  { %2432 = vst.msk [vmem:[%s7260_s4 + $0x54] sm:$0xf] %vm2410_vm2, %v8386_v12  ;;  %v8390_v22 = vpack.c.bf16 %v8389_v1, %v8389_v1  ;;  %v8392_v43 = vpack.c.bf16 %v8391_v11, %v8391_v11  ;;  %v8393_v12 = vld [vmem:[#allocation110_spill] sm:$0xff]  ;;  %v8396_v1 = vpack.c.bf16 %v8319_v60, %v8319_v60  ;;  %v8401_v60 = vpack.c.bf16 %v8322_v36, %v8322_v36  ;;  %v8405_v36 = vld [vmem:[#allocation40_spill] sm:$0xff] }
 0x426   :  { %2433 = vst.msk [vmem:[%s7260_s4 + $0x58] sm:$0xf] %vm2410_vm2, %v8388_v41  ;;  %v8394_v42 = vpack.c.bf16 %v8393_v12, %v8393_v12  ;;  %v8395_v41 = vpack.c.bf16 %v8318_v27, %v8318_v27  ;;  %v8399_v27 = vld [vmem:[#allocation39_spill] sm:$0xff]  ;;  %v8402_v12 = vpack.c.bf16 %v8323_v13, %v8323_v13  ;;  %v8407_v13 = vpack.c.bf16 %v5946_v38, %v5946_v38 }
 0x427   :  { %2434 = vst.msk [vmem:[%s7260_s4 + $0x5c] sm:$0xf] %vm2410_vm2, %v8390_v22  ;;  %2435 = vst.msk [vmem:[%s7260_s4 + $0x60] sm:$0xf] %vm2410_vm2, %v8392_v43  ;;  %v8397_v22 = vld [vmem:[#allocation112_spill] sm:$0xff]  ;;  %v8400_v43 = vpack.c.bf16 %v8399_v27, %v8399_v27  ;;  %v8410_v38 = vld [vmem:[#allocation79_spill] sm:$0xff] }
 0x428   :  { %2436 = vst.msk [vmem:[%s7260_s4 + $0x64] sm:$0xf] %vm2410_vm2, %v8394_v42  ;;  %2437 = vst.msk [vmem:[%s7260_s4 + $0x68] sm:$0xf] %vm2410_vm2, %v8395_v41  ;;  %v8398_v11 = vpack.c.bf16 %v8397_v22, %v8397_v22  ;;  %v8403_v42 = vld [vmem:[#allocation76_spill] sm:$0xff]  ;;  %v8408_v22 = vpack.c.bf16 %v5952_v0, %v5952_v0  ;;  %v8411_v27 = vpack.c.bf16 %v8410_v38, %v8410_v38 }
 0x429   :  { %2438 = vst.msk [vmem:[%s7260_s4 + $0x6c] sm:$0xf] %vm2410_vm2, %v8396_v1  ;;  %2440 = vst.msk [vmem:[%s7260_s4 + $0x74] sm:$0xf] %vm2410_vm2, %v8400_v43  ;;  %v8404_v41 = vpack.c.bf16 %v8403_v42, %v8403_v42  ;;  %v8406_v1 = vpack.c.bf16 %v8405_v36, %v8405_v36  ;;  %v8412_v0 = vpack.c.bf16 %v5974_v56, %v5974_v56  ;;  %v8414_v43 = vld [vmem:[#allocation81_spill] sm:$0xff]  ;;  %v8416_v56 = vld [vmem:[#allocation82_spill] sm:$0xff] }
 0x42a   :  { %2439 = vst.msk [vmem:[%s7260_s4 + $0x70] sm:$0xf] %vm2410_vm2, %v8398_v11  ;;  %2441 = vst.msk [vmem:[%s7260_s4 + $0x78] sm:$0xf] %vm2410_vm2, %v8401_v60  ;;  %v8409_v11 = vpack.c.bf16 %v8326_v21, %v8326_v21  ;;  %v8413_v21 = vpack.c.bf16 %v5980_v45, %v5980_v45  ;;  %v8415_v60 = vpack.c.bf16 %v8414_v43, %v8414_v43 }
 0x42b   :  { %2442 = vst.msk [vmem:[%s7260_s4 + $0x7c] sm:$0xf] %vm2410_vm2, %v8402_v12  ;;  %2443 = vst.msk [vmem:[%s7260_s4 + $0x80] sm:$0xf] %vm2410_vm2, %v8404_v41  ;;  %v8417_v12 = vpack.c.bf16 %v8416_v56, %v8416_v56  ;;  %v8418_v45 = vpack.c.bf16 %v6002_v5, %v6002_v5  ;;  %v8419_v42 = vpack.c.bf16 %v6008_v34, %v6008_v34  ;;  %v8421_v5 = vld [vmem:[#allocation41_spill] sm:$0xff] }
 0x42c   :  { %2444 = vst.msk [vmem:[%s7260_s4 + $0x84] sm:$0xf] %vm2410_vm2, %v8406_v1  ;;  %2445 = vst.msk [vmem:[%s7260_s4 + $0x88] sm:$0xf] %vm2410_vm2, %v8407_v13  ;;  %v8420_v41 = vpack.c.bf16 %v6014_v7, %v6014_v7  ;;  %v8422_v36 = vpack.c.bf16 %v8421_v5, %v8421_v5  ;;  %v8423_v34 = vpack.c.bf16 %v6030_v30, %v6030_v30  ;;  %v8426_v30 = vld [vmem:[#allocation85_spill] sm:$0xff] }
 0x42d   :  { %2446 = vst.msk [vmem:[%s7260_s4 + $0x8c] sm:$0xf] %vm2410_vm2, %v8408_v22  ;;  %2447 = vst.msk [vmem:[%s7260_s4 + $0x90] sm:$0xf] %vm2410_vm2, %v8409_v11  ;;  %v8424_v7 = vpack.c.bf16 %v6036_v18, %v6036_v18  ;;  %v8425_v1 = vpack.c.bf16 %v8331_v25, %v8331_v25  ;;  %v8427_v13 = vpack.c.bf16 %v8426_v30, %v8426_v30  ;;  %v8430_v22 = vld [vmem:[#allocation86_spill] sm:$0xff] }
 0x42e   :  { %2448 = vst.msk [vmem:[%s7260_s4 + $0x94] sm:$0xf] %vm2410_vm2, %v8411_v27  ;;  %2449 = vst.msk [vmem:[%s7260_s4 + $0x98] sm:$0xf] %vm2410_vm2, %v8412_v0  ;;  %v8428_v18 = vpack.c.bf16 %v6058_v55, %v6058_v55  ;;  %v8429_v25 = vpack.c.bf16 %v6064_v16, %v6064_v16  ;;  %v8431_v11 = vpack.c.bf16 %v8430_v22, %v8430_v22  ;;  %v8432_v55 = vld [vmem:[#allocation45_spill] sm:$0xff] }
 0x42f   :  { %2450 = vst.msk [vmem:[%s7260_s4 + $0x9c] sm:$0xf] %vm2410_vm2, %v8413_v21  ;;  %2451 = vst.msk [vmem:[%s7260_s4 + $0xa0] sm:$0xf] %vm2410_vm2, %v8415_v60  ;;  %v8433_v38 = vpack.c.bf16 %v8432_v55, %v8432_v55  ;;  %v8434_v16 = vpack.c.bf16 %v6084_v50, %v6084_v50  ;;  %v8435_v27 = vpack.c.bf16 %v6090_v47, %v6090_v47  ;;  %v8437_v50 = vld [vmem:[#allocation87_spill] sm:$0xff] }
 0x430   :  { %2452 = vst.msk [vmem:[%s7260_s4 + $0xa4] sm:$0xf] %vm2410_vm2, %v8417_v12  ;;  %2453 = vst.msk [vmem:[%s7260_s4 + $0xa8] sm:$0xf] %vm2410_vm2, %v8418_v45  ;;  %v8436_v0 = vpack.c.bf16 %v6096_v9, %v6096_v9  ;;  %v8438_v21 = vpack.c.bf16 %v8437_v50, %v8437_v50  ;;  %v8439_v47 = vpack.c.bf16 %v6108_v61, %v6108_v61  ;;  %v8474_v45 = vld [vmem:[#allocation50_spill] sm:$0xff] }
 0x431   :  { %2454 = vst.msk [vmem:[%s7260_s4 + $0xac] sm:$0xf] %vm2410_vm2, %v8419_v42  ;;  %2455 = vst.msk [vmem:[%s7260_s4 + $0xb0] sm:$0xf] %vm2410_vm2, %v8420_v41  ;;  %v8440_v9 = vpack.c.bf16 %v6114_v19, %v6114_v19  ;;  %v8441_v43 = vpack.c.bf16 %v8335_v17, %v8335_v17  ;;  %v8442_v61 = vpack.c.bf16 %v8336_v48, %v8336_v48  ;;  %v8476_v41 = vld [vmem:[#allocation94_spill] sm:$0xff] }
 0x432   :  { %2456 = vst.msk [vmem:[%s7260_s4 + $0xb4] sm:$0xf] %vm2410_vm2, %v8422_v36  ;;  %2457 = vst.msk [vmem:[%s7260_s4 + $0xb8] sm:$0xf] %vm2410_vm2, %v8423_v34  ;;  %v8443_v19 = vpack.c.bf16 %v6132_v23, %v6132_v23  ;;  %v8444_v17 = vpack.c.bf16 %v6138_v6, %v6138_v6  ;;  %v8445_v48 = vpack.c.bf16 %v6144_v10, %v6144_v10  ;;  %v8479_v34 = vld [vmem:[#allocation95_spill] sm:$0xff] }
 0x433   :  { %2458 = vst.msk [vmem:[%s7260_s4 + $0xbc] sm:$0xf] %vm2410_vm2, %v8424_v7  ;;  %2459 = vst.msk [vmem:[%s7260_s4 + $0xc0] sm:$0xf] %vm2410_vm2, %v8425_v1  ;;  %v8446_v23 = vpack.c.bf16 %v8337_v51, %v8337_v51  ;;  %v8447_v6 = vpack.c.bf16 %v6156_v49, %v6156_v49  ;;  %v8448_v10 = vpack.c.bf16 %v6162_v15, %v6162_v15 }
 0x434   :  { %2460 = vst.msk [vmem:[%s7260_s4 + $0xc4] sm:$0xf] %vm2410_vm2, %v8427_v13  ;;  %2461 = vst.msk [vmem:[%s7260_s4 + $0xc8] sm:$0xf] %vm2410_vm2, %v8428_v18  ;;  %v8449_v51 = vpack.c.bf16 %v6168_v31, %v6168_v31  ;;  %v8450_v49 = vpack.c.bf16 %v6174_v20, %v6174_v20  ;;  %v8451_v15 = vpack.c.bf16 %v6180_v52, %v6180_v52 }
 0x435   :  { %2462 = vst.msk [vmem:[%s7260_s4 + $0xcc] sm:$0xf] %vm2410_vm2, %v8429_v25  ;;  %2463 = vst.msk [vmem:[%s7260_s4 + $0xd0] sm:$0xf] %vm2410_vm2, %v8431_v11  ;;  %v8452_v31 = vpack.c.bf16 %v6186_v28, %v6186_v28  ;;  %v8453_v20 = vpack.c.bf16 %v6192_v24, %v6192_v24  ;;  %v8454_v52 = vpack.c.bf16 %v6198_v44, %v6198_v44 }
 0x436   :  { %2464 = vst.msk [vmem:[%s7260_s4 + $0xd4] sm:$0xf] %vm2410_vm2, %v8433_v38  ;;  %2465 = vst.msk [vmem:[%s7260_s4 + $0xd8] sm:$0xf] %vm2410_vm2, %v8434_v16  ;;  %v8455_v28 = vpack.c.bf16 %v6204_v54, %v6204_v54  ;;  %v8456_v24 = vpack.c.bf16 %v6210_v57, %v6210_v57  ;;  %v8457_v44 = vpack.c.bf16 %v6216_v62, %v6216_v62 }
 0x437   :  { %2466 = vst.msk [vmem:[%s7260_s4 + $0xdc] sm:$0xf] %vm2410_vm2, %v8435_v27  ;;  %2467 = vst.msk [vmem:[%s7260_s4 + $0xe0] sm:$0xf] %vm2410_vm2, %v8436_v0  ;;  %v8458_v54 = vpack.c.bf16 %v6222_v59, %v6222_v59  ;;  %v8459_v57 = vpack.c.bf16 %v6228_v58, %v6228_v58  ;;  %v8460_v62 = vpack.c.bf16 %v6234_v63, %v6234_v63 }
 0x438   :  { %2468 = vst.msk [vmem:[%s7260_s4 + $0xe4] sm:$0xf] %vm2410_vm2, %v8438_v21  ;;  %2469 = vst.msk [vmem:[%s7260_s4 + $0xe8] sm:$0xf] %vm2410_vm2, %v8439_v47  ;;  %v8461_v59 = vpack.c.bf16 %v6240_v4, %v6240_v4  ;;  %v8462_v58 = vpack.c.bf16 %v6246_v26, %v6246_v26  ;;  %v8463_v63 = vpack.c.bf16 %v6252_v14, %v6252_v14 }
 0x439   :  { %2470 = vst.msk [vmem:[%s7260_s4 + $0xec] sm:$0xf] %vm2410_vm2, %v8440_v9  ;;  %2471 = vst.msk [vmem:[%s7260_s4 + $0xf0] sm:$0xf] %vm2410_vm2, %v8441_v43  ;;  %v8464_v4 = vpack.c.bf16 %v6258_v39, %v6258_v39  ;;  %v8465_v26 = vpack.c.bf16 %v6264_v3, %v6264_v3  ;;  %v8466_v14 = vpack.c.bf16 %v6270_v46, %v6270_v46  ;;  %v8468_v3 = vld [vmem:[#allocation91_spill] sm:$0xff]  ;;  %v8470_v46 = vld [vmem:[#allocation48_spill] sm:$0xff] }
 0x43a   :  { %2472 = vst.msk [vmem:[%s7260_s4 + $0xf4] sm:$0xf] %vm2410_vm2, %v8442_v61  ;;  %2473 = vst.msk [vmem:[%s7260_s4 + $0xf8] sm:$0xf] %vm2410_vm2, %v8443_v19  ;;  %v8467_v39 = vpack.c.bf16 %v6276_v2, %v6276_v2  ;;  %v8469_v60 = vpack.c.bf16 %v8468_v3, %v8468_v3  ;;  %v8471_v56 = vpack.c.bf16 %v8470_v46, %v8470_v46  ;;  %v8472_v2 = vld [vmem:[#allocation93_spill] sm:$0xff] }
 0x43b   :  { %2474 = vst.msk [vmem:[%s7260_s4 + $0xfc] sm:$0xf] %vm2410_vm2, %v8444_v17  ;;  %2475 = vst.msk [vmem:[%s7260_s4 + $0x100] sm:$0xf] %vm2410_vm2, %v8445_v48  ;;  %v8473_v12 = vpack.c.bf16 %v8472_v2, %v8472_v2  ;;  %v8475_v42 = vpack.c.bf16 %v8474_v45, %v8474_v45  ;;  %v8477_v5 = vpack.c.bf16 %v8476_v41, %v8476_v41 }
 0x43c   :  { %2476 = vst.msk [vmem:[%s7260_s4 + $0x104] sm:$0xf] %vm2410_vm2, %v8446_v23  ;;  %2477 = vst.msk [vmem:[%s7260_s4 + $0x108] sm:$0xf] %vm2410_vm2, %v8447_v6  ;;  %v8478_v36 = vpack.c.bf16 %v6312_v53, %v6312_v53  ;;  %v8480_v7 = vpack.c.bf16 %v8479_v34, %v8479_v34  ;;  %v8481_v53 = vpack.c.bf16 %v8338_v32, %v8338_v32 }
 0x43d   :  { %2478 = vst.msk [vmem:[%s7260_s4 + $0x10c] sm:$0xf] %vm2410_vm2, %v8448_v10  ;;  %2479 = vst.msk [vmem:[%s7260_s4 + $0x110] sm:$0xf] %vm2410_vm2, %v8449_v51  ;;  %v8482_v1 = vpack.c.bf16 %v8339_v8, %v8339_v8  ;;  %v8484_v32 = vpack.c.bf16 %v8341_v40, %v8341_v40  ;;  %v8485_v8 = vpack.c.bf16 %v8342_v29, %v8342_v29 }
 0x43e   :  { %2480 = vst.msk [vmem:[%s7260_s4 + $0x114] sm:$0xf] %vm2410_vm2, %v8450_v49  ;;  %2481 = vst.msk [vmem:[%s7260_s4 + $0x118] sm:$0xf] %vm2410_vm2, %v8451_v15 }
 0x43f   :  { %2482 = vst.msk [vmem:[%s7260_s4 + $0x11c] sm:$0xf] %vm2410_vm2, %v8452_v31  ;;  %2483 = vst.msk [vmem:[%s7260_s4 + $0x120] sm:$0xf] %vm2410_vm2, %v8453_v20 }
 0x440   :  { %2484 = vst.msk [vmem:[%s7260_s4 + $0x124] sm:$0xf] %vm2410_vm2, %v8454_v52  ;;  %2485 = vst.msk [vmem:[%s7260_s4 + $0x128] sm:$0xf] %vm2410_vm2, %v8455_v28 }
 0x441   :  { %2486 = vst.msk [vmem:[%s7260_s4 + $0x12c] sm:$0xf] %vm2410_vm2, %v8456_v24  ;;  %2487 = vst.msk [vmem:[%s7260_s4 + $0x130] sm:$0xf] %vm2410_vm2, %v8457_v44 }
 0x442   :  { %2488 = vst.msk [vmem:[%s7260_s4 + $0x134] sm:$0xf] %vm2410_vm2, %v8458_v54  ;;  %2489 = vst.msk [vmem:[%s7260_s4 + $0x138] sm:$0xf] %vm2410_vm2, %v8459_v57 }
 0x443   :  { %2490 = vst.msk [vmem:[%s7260_s4 + $0x13c] sm:$0xf] %vm2410_vm2, %v8460_v62  ;;  %2491 = vst.msk [vmem:[%s7260_s4 + $0x140] sm:$0xf] %vm2410_vm2, %v8461_v59 }
 0x444   :  { %2492 = vst.msk [vmem:[%s7260_s4 + $0x144] sm:$0xf] %vm2410_vm2, %v8462_v58  ;;  %2493 = vst.msk [vmem:[%s7260_s4 + $0x148] sm:$0xf] %vm2410_vm2, %v8463_v63 }
 0x445   :  { %2494 = vst.msk [vmem:[%s7260_s4 + $0x14c] sm:$0xf] %vm2410_vm2, %v8464_v4  ;;  %2495 = vst.msk [vmem:[%s7260_s4 + $0x150] sm:$0xf] %vm2410_vm2, %v8465_v26 }
 0x446   :  { %2496 = vst.msk [vmem:[%s7260_s4 + $0x154] sm:$0xf] %vm2410_vm2, %v8466_v14  ;;  %2497 = vst.msk [vmem:[%s7260_s4 + $0x158] sm:$0xf] %vm2410_vm2, %v8467_v39 }
 0x447   :  { %2498 = vst.msk [vmem:[%s7260_s4 + $0x15c] sm:$0xf] %vm2410_vm2, %v8469_v60  ;;  %2499 = vst.msk [vmem:[%s7260_s4 + $0x160] sm:$0xf] %vm2410_vm2, %v8471_v56 }
 0x448   :  { %2500 = vst.msk [vmem:[%s7260_s4 + $0x164] sm:$0xf] %vm2410_vm2, %v8473_v12  ;;  %2501 = vst.msk [vmem:[%s7260_s4 + $0x168] sm:$0xf] %vm2410_vm2, %v8475_v42 }
 0x449   :  { %2502 = vst.msk [vmem:[%s7260_s4 + $0x16c] sm:$0xf] %vm2410_vm2, %v8477_v5  ;;  %2503 = vst.msk [vmem:[%s7260_s4 + $0x170] sm:$0xf] %vm2410_vm2, %v8478_v36 }
 0x44a   :  { %2504 = vst.msk [vmem:[%s7260_s4 + $0x174] sm:$0xf] %vm2410_vm2, %v8480_v7  ;;  %2506 = vst.msk [vmem:[%s7260_s4 + $0x17c] sm:$0xf] %vm2410_vm2, %v8481_v53 }
 0x44b   :  { %2507 = vst.msk [vmem:[%s7260_s4 + $0x180] sm:$0xf] %vm2410_vm2, %v8482_v1  ;;  %2509 = vst.msk [vmem:[%s7260_s4 + $0x188] sm:$0xf] %vm2410_vm2, %v8484_v32 }
 0x44c   :  { %2510 = vst.msk [vmem:[%s7260_s4 + $0x18c] sm:$0xf] %vm2410_vm2, %v8485_v8 }

// kernel: dqnet_forward.5
= control target key start
LH: loop header
LB: loop body
LE: loop exit
PB: predicated region body
PF: predicated region fallthrough
CT: control target
= control target key end

     0   :  { %vm770_vm0 = vcmask 523264   ;;  %vm810_vm1 = vcmask 517120   ;;  %vm1118_vm8 = vcmask 519168   ;;  %s2197_s1 = inlined_call_operand.vmem [shape: bf16[512,64], index: 1, kind: input, shape index: {}]   ;;  %s2198_s0 = inlined_call_operand.vmem [shape: bf16[162,512], index: 0, kind: input, shape index: {}]   ;;  %s2199_s2 = inlined_call_operand.vmem [shape: f32[1,64], index: 2, kind: input, shape index: {}]   ;;  %s2200_s3 = inlined_call_operand.vmem [shape: f32[1,64], index: 3, kind: input, shape index: {}]   ;;  %s2201_s4 = inlined_call_operand.vmem [shape: bf16[162,64], index: 4, kind: output, shape index: {}]  }
   0x1   :  { %v1428_v0 = vld [vmem:[%s2197_s1 + $0x40] sm:$0xff]   ;;  %v1432_v4 = vld [vmem:[%s2197_s1 + $0x48] sm:$0xff]   ;;  %v1436_v8 = vld [vmem:[%s2197_s1 + $0x50] sm:$0xff]  }
   0x2   :  { %v1429_v1 = vld [vmem:[%s2197_s1 + $0xc0] sm:$0xff]   ;;  %1264 = vmatprep.subr.bf16.mxu0 %v1428_v0  ;;  %v1433_v5 = vld [vmem:[%s2197_s1 + $0xc8] sm:$0xff]   ;;  %v1437_v9 = vld [vmem:[%s2197_s1 + $0xd0] sm:$0xff]  }
   0x3   :  { %v1430_v2 = vld [vmem:[%s2197_s1] sm:$0xff]   ;;  %1346 = vmatprep.subr.bf16.mxu1 %v1429_v1  ;;  %v1434_v6 = vld [vmem:[%s2197_s1 + $0x8] sm:$0xff]   ;;  %v1438_v10 = vld [vmem:[%s2197_s1 + $0x10] sm:$0xff]  }
   0x4   :  { %v1431_v3 = vld [vmem:[%s2197_s1 + $0x80] sm:$0xff]   ;;  %1265 = vmatpush3.bf16.msra.mxu0 %v1430_v2  ;;  %v1435_v7 = vld [vmem:[%s2197_s1 + $0x88] sm:$0xff]   ;;  %v1439_v11 = vld [vmem:[%s2197_s1 + $0x90] sm:$0xff]  }
   0x5   :  { %1347 = vmatpush3.bf16.msra.mxu1 %v1431_v3  ;;  %1266 = vmatprep.subr.bf16.mxu0 %v1432_v4  ;;  %v1440_v12 = vld [vmem:[%s2197_s1 + $0x58] sm:$0xff]   ;;  %v1444_v16 = vld [vmem:[%s2197_s1 + $0x60] sm:$0xff]   ;;  %v1448_v20 = vld [vmem:[%s2197_s1 + $0x68] sm:$0xff]  }
   0x6   :  { %1348 = vmatprep.subr.bf16.mxu1 %v1433_v5  ;;  %v1441_v13 = vld [vmem:[%s2197_s1 + $0xd8] sm:$0xff]   ;;  %v1445_v17 = vld [vmem:[%s2197_s1 + $0xe0] sm:$0xff]   ;;  %v1449_v21 = vld [vmem:[%s2197_s1 + $0xe8] sm:$0xff]  }
   0x7   :  { %v1442_v14 = vld [vmem:[%s2197_s1 + $0x18] sm:$0xff]   ;;  %v1446_v18 = vld [vmem:[%s2197_s1 + $0x20] sm:$0xff]   ;;  %v1450_v22 = vld [vmem:[%s2197_s1 + $0x28] sm:$0xff]  }
   0x8   :  { %1267 = vmatpush3.bf16.msra.mxu0 %v1434_v6  ;;  %v1443_v15 = vld [vmem:[%s2197_s1 + $0x98] sm:$0xff]   ;;  %v1447_v19 = vld [vmem:[%s2197_s1 + $0xa0] sm:$0xff]   ;;  %v1451_v23 = vld [vmem:[%s2197_s1 + $0xa8] sm:$0xff]  }
   0x9   :  { %1349 = vmatpush3.bf16.msra.mxu1 %v1435_v7  ;;  %1268 = vmatprep.subr.bf16.mxu0 %v1436_v8  ;;  %v1452_v24 = vld [vmem:[%s2197_s1 + $0x70] sm:$0xff]   ;;  %v1456_v28 = vld [vmem:[%s2197_s1 + $0x78] sm:$0xff]   ;;  %v58_v6 = vld [vmem:[%s2198_s0 + $0x140] sm:$0x11] }
   0xa   :  { %1350 = vmatprep.subr.bf16.mxu1 %v1437_v9  ;;  %v1453_v25 = vld [vmem:[%s2197_s1 + $0xf0] sm:$0xff]   ;;  %v1457_v29 = vld [vmem:[%s2197_s1 + $0xf8] sm:$0xff]   ;;  %v59_v7 = vld [vmem:[%s2198_s0 + $0x148] sm:$0x11] }
   0xb   :  { %v1454_v26 = vld [vmem:[%s2197_s1 + $0x30] sm:$0xff]   ;;  %v1458_v30 = vld [vmem:[%s2197_s1 + $0x38] sm:$0xff]  }
   0xc   :  { %1269 = vmatpush3.bf16.msra.mxu0 %v1438_v10  ;;  %v1455_v27 = vld [vmem:[%s2197_s1 + $0xb0] sm:$0xff]   ;;  %v1459_v31 = vld [vmem:[%s2197_s1 + $0xb8] sm:$0xff]   ;;  %v1186_v10 = vcombine.high %v58_v6, %v58_v6 }
   0xd   :  { %1351 = vmatpush3.bf16.msra.mxu1 %v1439_v11  ;;  %1270 = vmatprep.subr.bf16.mxu0 %v1440_v12  ;;  %v1460_v32 = vld [vmem:[%s2198_s0] ss:$16 sps:$4 sm:$0xff]   ;;  %v1462_v33 = vld [vmem:[%s2198_s0 + $0x4] ss:$16 sps:$4 sm:$0xff]   ;;  %v1463_v34 = vld [vmem:[%s2198_s0 + $0x8] ss:$16 sps:$4 sm:$0xff]   ;;  %v1188_v11 = vcombine.high %v59_v7, %v59_v7  ;;  %v1185_v12 = vcombine.low %v58_v6, %v58_v6 }
   0xe   :  { %1352 = vmatprep.subr.bf16.mxu1 %v1441_v13  ;;  %v1465_v35 = vld [vmem:[%s2198_s0 + $0xc] ss:$16 sps:$4 sm:$0xff]   ;;  %562 = vmatprep.mubr.bf16.mxu0 %v1462_v33  ;;  %v1466_v36 = vld [vmem:[%s2198_s0 + $0x24] ss:$16 sps:$4 sm:$0xff]   ;;  %v1470_v38 = vld [vmem:[%s2198_s0 + $0x20] ss:$16 sps:$4 sm:$0xff]   ;;  %v1187_v13 = vcombine.low %v59_v7, %v59_v7 }
   0xf   :  { %682 = vmatprep.mubr.bf16.mxu1 %v1465_v35  ;;  %v1468_v37 = vld [vmem:[%s2198_s0 + $0x2c] ss:$16 sps:$4 sm:$0xff]   ;;  %v1471_v39 = vld [vmem:[%s2198_s0 + $0x28] ss:$16 sps:$4 sm:$0xff]   ;;  %v1472_v40 = vld [vmem:[%s2198_s0 + $0x44] ss:$16 sps:$4 sm:$0xff]  }
  0x10   :  { %1271 = vmatpush3.bf16.msra.mxu0 %v1442_v14  ;;  %v1474_v41 = vld [vmem:[%s2198_s0 + $0x4c] ss:$16 sps:$4 sm:$0xff]   ;;  %v1476_v42 = vld [vmem:[%s2198_s0 + $0x40] ss:$16 sps:$4 sm:$0xff]   ;;  %v1477_v43 = vld [vmem:[%s2198_s0 + $0x48] ss:$16 sps:$4 sm:$0xff]  }
  0x11   :  { %1353 = vmatpush3.bf16.msra.mxu1 %v1443_v15  ;;  %1272 = vmatprep.subr.bf16.mxu0 %v1444_v16  ;;  %v1478_v44 = vld [vmem:[%s2198_s0 + $0x64] ss:$16 sps:$4 sm:$0xff]   ;;  %v1480_v45 = vld [vmem:[%s2198_s0 + $0x6c] ss:$16 sps:$4 sm:$0xff]   ;;  %v1482_v46 = vld [vmem:[%s2198_s0 + $0x60] ss:$16 sps:$4 sm:$0xff]  }
  0x12   :  { %1354 = vmatprep.subr.bf16.mxu1 %v1445_v17  ;;  %v1483_v47 = vld [vmem:[%s2198_s0 + $0x68] ss:$16 sps:$4 sm:$0xff]   ;;  %v1484_v48 = vld [vmem:[%s2198_s0 + $0x84] ss:$16 sps:$4 sm:$0xff]   ;;  %v1486_v49 = vld [vmem:[%s2198_s0 + $0x8c] ss:$16 sps:$4 sm:$0xff]  }
  0x13   :  { %v1488_v50 = vld [vmem:[%s2198_s0 + $0x80] ss:$16 sps:$4 sm:$0xff]   ;;  %v1489_v51 = vld [vmem:[%s2198_s0 + $0x88] ss:$16 sps:$4 sm:$0xff]   ;;  %v1490_v52 = vld [vmem:[%s2198_s0 + $0xa4] ss:$16 sps:$4 sm:$0xff]  }
  0x14   :  { %1273 = vmatpush3.bf16.msra.mxu0 %v1446_v18  ;;  %v1492_v53 = vld [vmem:[%s2198_s0 + $0xac] ss:$16 sps:$4 sm:$0xff]   ;;  %v1494_v54 = vld [vmem:[%s2198_s0 + $0xa0] ss:$16 sps:$4 sm:$0xff]   ;;  %v1495_v55 = vld [vmem:[%s2198_s0 + $0xa8] ss:$16 sps:$4 sm:$0xff]  }
  0x15   :  { %1355 = vmatpush3.bf16.msra.mxu1 %v1447_v19  ;;  %1274 = vmatprep.subr.bf16.mxu0 %v1448_v20  ;;  %v1496_v56 = vld [vmem:[%s2198_s0 + $0xc4] ss:$16 sps:$4 sm:$0xff]   ;;  %v1498_v57 = vld [vmem:[%s2198_s0 + $0xcc] ss:$16 sps:$4 sm:$0xff]   ;;  %v1500_v58 = vld [vmem:[%s2198_s0 + $0xc0] ss:$16 sps:$4 sm:$0xff]  }
  0x16   :  { %1356 = vmatprep.subr.bf16.mxu1 %v1449_v21  ;;  %v1501_v59 = vld [vmem:[%s2198_s0 + $0xc8] ss:$16 sps:$4 sm:$0xff]   ;;  %v1502_v60 = vld [vmem:[%s2198_s0 + $0xe4] ss:$16 sps:$4 sm:$0xff]   ;;  %v1504_v61 = vld [vmem:[%s2198_s0 + $0xec] ss:$16 sps:$4 sm:$0xff]  }
  0x17   :  { %v1506_v62 = vld [vmem:[%s2198_s0 + $0xe0] ss:$16 sps:$4 sm:$0xff]   ;;  %v1507_v63 = vld [vmem:[%s2198_s0 + $0xe8] ss:$16 sps:$4 sm:$0xff]   ;;  %v1508_v0 = vld [vmem:[%s2198_s0 + $0x104] ss:$16 sps:$4 sm:$0xff]  }
  0x18   :  { %1275 = vmatpush3.bf16.msra.mxu0 %v1450_v22  ;;  %v1510_v1 = vld [vmem:[%s2198_s0 + $0x10c] ss:$16 sps:$4 sm:$0xff]   ;;  %v1512_v2 = vld [vmem:[%s2198_s0 + $0x100] ss:$16 sps:$4 sm:$0xff]   ;;  %v1513_v3 = vld [vmem:[%s2198_s0 + $0x108] ss:$16 sps:$4 sm:$0xff]  }
  0x19   :  { %1357 = vmatpush3.bf16.msra.mxu1 %v1451_v23  ;;  %1276 = vmatprep.subr.bf16.mxu0 %v1452_v24  ;;  %v1514_v4 = vld [vmem:[%s2198_s0 + $0x124] ss:$16 sps:$4 sm:$0xff]   ;;  %v1516_v5 = vld [vmem:[%s2198_s0 + $0x12c] ss:$16 sps:$4 sm:$0xff]   ;;  %v1518_v8 = vld [vmem:[%s2198_s0 + $0x120] ss:$16 sps:$4 sm:$0xff]  }
  0x1a   :  { %1358 = vmatprep.subr.bf16.mxu1 %v1453_v25  ;;  %v1519_v9 = vld [vmem:[%s2198_s0 + $0x128] ss:$16 sps:$4 sm:$0xff]  }
  0x1c   :  { %1277 = vmatpush3.bf16.msra.mxu0 %v1454_v26 }
  0x1d   :  { %1359 = vmatpush3.bf16.msra.mxu1 %v1455_v27  ;;  %1278 = vmatprep.subr.bf16.mxu0 %v1456_v28 }
  0x1e   :  { %1360 = vmatprep.subr.bf16.mxu1 %v1457_v29 }
  0x20   :  { %1279 = vmatpush3.bf16.msra.mxu0 %v1458_v30 }
  0x21   :  { %1361 = vmatpush3.bf16.msra.mxu1 %v1459_v31 }
  0x23   :  { %563 = vmatmul.mubr.bf16.vlgmr.msra.gmra.mrb[0].mxu0 %v1460_v32 }
  0x24   :  { %683 = vmatmul.mubr.bf16.vlgmr.msra.gmra.mrb[0].mxu1 %v1463_v34  ;;  %570 = vmatprep.mubr.bf16.mxu0 %v1466_v36 }
  0x25   :  { %690 = vmatprep.mubr.bf16.mxu1 %v1468_v37 }
  0x2b   :  { %571 = vmatmul.mubr.bf16.gmra.mrb[4].mxu0 %v1470_v38 }
  0x2c   :  { %691 = vmatmul.mubr.bf16.gmra.mrb[4].mxu1 %v1471_v39  ;;  %578 = vmatprep.mubr.bf16.mxu0 %v1472_v40 }
  0x2d   :  { %698 = vmatprep.mubr.bf16.mxu1 %v1474_v41 }
  0x33   :  { %579 = vmatmul.mubr.bf16.gmra.mrb[8].mxu0 %v1476_v42 }
  0x34   :  { %699 = vmatmul.mubr.bf16.gmra.mrb[8].mxu1 %v1477_v43  ;;  %586 = vmatprep.mubr.bf16.mxu0 %v1478_v44 }
  0x35   :  { %706 = vmatprep.mubr.bf16.mxu1 %v1480_v45 }
  0x3b   :  { %587 = vmatmul.mubr.bf16.gmra.mrb[12].mxu0 %v1482_v46 }
  0x3c   :  { %707 = vmatmul.mubr.bf16.gmra.mrb[12].mxu1 %v1483_v47  ;;  %594 = vmatprep.mubr.bf16.mxu0 %v1484_v48 }
  0x3d   :  { %714 = vmatprep.mubr.bf16.mxu1 %v1486_v49 }
  0x43   :  { %595 = vmatmul.mubr.bf16.gmra.mrb[16].mxu0 %v1488_v50 }
  0x44   :  { %715 = vmatmul.mubr.bf16.gmra.mrb[16].mxu1 %v1489_v51  ;;  %602 = vmatprep.mubr.bf16.mxu0 %v1490_v52 }
  0x45   :  { %722 = vmatprep.mubr.bf16.mxu1 %v1492_v53 }
  0x4b   :  { %603 = vmatmul.mubr.bf16.gmra.mrb[20].mxu0 %v1494_v54 }
  0x4c   :  { %723 = vmatmul.mubr.bf16.gmra.mrb[20].mxu1 %v1495_v55  ;;  %610 = vmatprep.mubr.bf16.mxu0 %v1496_v56 }
  0x4d   :  { %730 = vmatprep.mubr.bf16.mxu1 %v1498_v57 }
  0x53   :  { %611 = vmatmul.mubr.bf16.gmra.mrb[24].mxu0 %v1500_v58 }
  0x54   :  { %731 = vmatmul.mubr.bf16.gmra.mrb[24].mxu1 %v1501_v59  ;;  %618 = vmatprep.mubr.bf16.mxu0 %v1502_v60 }
  0x55   :  { %738 = vmatprep.mubr.bf16.mxu1 %v1504_v61 }
  0x5b   :  { %619 = vmatmul.mubr.bf16.gmra.mrb[28].mxu0 %v1506_v62 }
  0x5c   :  { %739 = vmatmul.mubr.bf16.gmra.mrb[28].mxu1 %v1507_v63  ;;  %626 = vmatprep.mubr.bf16.mxu0 %v1508_v0 }
  0x5d   :  { %746 = vmatprep.mubr.bf16.mxu1 %v1510_v1 }
  0x63   :  { %627 = vmatmul.mubr.bf16.gmra.mrb[32].mxu0 %v1512_v2 }
  0x64   :  { %747 = vmatmul.mubr.bf16.gmra.mrb[32].mxu1 %v1513_v3  ;;  %634 = vmatprep.mubr.bf16.mxu0 %v1514_v4 }
  0x65   :  { %754 = vmatprep.mubr.bf16.mxu1 %v1516_v5 }
  0x6b   :  { %635 = vmatmul.mubr.bf16.gmra.mrb[36].mxu0 %v1518_v8 }
  0x6c   :  { %755 = vmatmul.mubr.bf16.gmra.mrb[36].mxu1 %v1519_v9  ;;  %642 = vmatprep.mubr.bf16.mxu0 %v1186_v10 }
  0x6d   :  { %762 = vmatprep.mubr.bf16.mxu1 %v1188_v11 }
  0x73   :  { %643 = vmatmul.mubr.bf16.gmra.mrb[40].mxu0 %v1185_v12 }
  0x74   :  { %763 = vmatmul.mubr.bf16.gmra.mrb[40].mxu1 %v1187_v13 }
  0xf6   :  { %v1280_v14 = vpop.f32.mrb[0].mxu0 }
  0xf7   :  { %v1362_v15 = vpop.f32.mrb[0].mxu1  ;;  %v1281_v16 = vpop.f32.mrb[1].mxu0 }
  0xf8   :  { %v1282_v17 = vadd.f32 %v1281_v16, %v1280_v14  ;;  %v1363_v18 = vpop.f32.mrb[1].mxu1  ;;  %v1283_v19 = vpop.f32.mrb[2].mxu0 }
  0xf9   :  { %v1364_v20 = vadd.f32 %v1363_v18, %v1362_v15  ;;  %v1365_v21 = vpop.f32.mrb[2].mxu1  ;;  %v1284_v22 = vpop.f32.mrb[3].mxu0 }
  0xfa   :  { %v1285_v23 = vadd.f32 %v1284_v22, %v1283_v19  ;;  %v1366_v24 = vpop.f32.mrb[3].mxu1 }
  0xfb   :  { %v1773_v25 = vadd.f32 %v1364_v20, %v1282_v17  ;;  %v1367_v26 = vadd.f32 %v1366_v24, %v1365_v21 }
  0xfd   :  { %v1775_v27 = vadd.f32 %v1367_v26, %v1285_v23  ;;  %v771_v29 = vsel %vm770_vm0, %v1773_v25, 0.0 }
  0xfe   :  { %v1286_v28 = vpop.f32.mrb[4].mxu0 }
  0xff   :  { %v772_v30 = vsel %vm770_vm0, %v1775_v27, 0.0  ;;  %v1368_v31 = vpop.f32.mrb[4].mxu1  ;;  %v1287_v32 = vpop.f32.mrb[5].mxu0 }
 0x100   :  { %v773_v33 = vadd.f32 %v772_v30, %v771_v29  ;;  %v1288_v34 = vadd.f32 %v1287_v32, %v1286_v28  ;;  %v1369_v35 = vpop.f32.mrb[5].mxu1  ;;  %v1289_v36 = vpop.f32.mrb[6].mxu0 }
 0x101   :  { %v1370_v37 = vadd.f32 %v1369_v35, %v1368_v31  ;;  %v1371_v38 = vpop.f32.mrb[6].mxu1  ;;  %v1290_v39 = vpop.f32.mrb[7].mxu0 }
 0x102   :  { %v1291_v40 = vadd.f32 %v1290_v39, %v1289_v36  ;;  %v1372_v41 = vpop.f32.mrb[7].mxu1 }
 0x103   :  { %v1781_v42 = vadd.f32 %v1370_v37, %v1288_v34  ;;  %v1373_v43 = vadd.f32 %v1372_v41, %v1371_v38 }
 0x105   :  { %v774_v44 = vsel %vm770_vm0, %v1781_v42, 0.0  ;;  %v1785_v45 = vadd.f32 %v1373_v43, %v1291_v40 }
 0x106   :  { %v775_v46 = vadd.f32 %v774_v44, %v773_v33  ;;  %v1292_v47 = vpop.f32.mrb[8].mxu0 }
 0x107   :  { %v776_v48 = vsel %vm770_vm0, %v1785_v45, 0.0  ;;  %v1374_v49 = vpop.f32.mrb[8].mxu1  ;;  %v1293_v50 = vpop.f32.mrb[9].mxu0 }
 0x108   :  { %v777_v51 = vadd.f32 %v776_v48, %v775_v46  ;;  %v1294_v52 = vadd.f32 %v1293_v50, %v1292_v47  ;;  %v1375_v53 = vpop.f32.mrb[9].mxu1  ;;  %v1295_v54 = vpop.f32.mrb[10].mxu0 }
 0x109   :  { %v1376_v55 = vadd.f32 %v1375_v53, %v1374_v49  ;;  %v1377_v56 = vpop.f32.mrb[10].mxu1  ;;  %v1296_v57 = vpop.f32.mrb[11].mxu0 }
 0x10a   :  { %v1297_v58 = vadd.f32 %v1296_v57, %v1295_v54  ;;  %v1378_v59 = vpop.f32.mrb[11].mxu1 }
 0x10b   :  { %v1789_v60 = vadd.f32 %v1376_v55, %v1294_v52  ;;  %v1379_v61 = vadd.f32 %v1378_v59, %v1377_v56 }
 0x10d   :  { %v778_v62 = vsel %vm770_vm0, %v1789_v60, 0.0  ;;  %v1793_v63 = vadd.f32 %v1379_v61, %v1297_v58 }
 0x10e   :  { %v779_v0 = vadd.f32 %v778_v62, %v777_v51  ;;  %v1298_v1 = vpop.f32.mrb[12].mxu0 }
 0x10f   :  { %v780_v2 = vsel %vm770_vm0, %v1793_v63, 0.0  ;;  %v1380_v3 = vpop.f32.mrb[12].mxu1  ;;  %v1299_v4 = vpop.f32.mrb[13].mxu0 }
 0x110   :  { %v781_v5 = vadd.f32 %v780_v2, %v779_v0  ;;  %v1300_v6 = vadd.f32 %v1299_v4, %v1298_v1  ;;  %v1381_v7 = vpop.f32.mrb[13].mxu1  ;;  %v1301_v8 = vpop.f32.mrb[14].mxu0 }
 0x111   :  { %v1382_v9 = vadd.f32 %v1381_v7, %v1380_v3  ;;  %v1383_v10 = vpop.f32.mrb[14].mxu1  ;;  %v1302_v11 = vpop.f32.mrb[15].mxu0 }
 0x112   :  { %v1303_v12 = vadd.f32 %v1302_v11, %v1301_v8  ;;  %v1384_v13 = vpop.f32.mrb[15].mxu1 }
 0x113   :  { %v1797_v14 = vadd.f32 %v1382_v9, %v1300_v6  ;;  %v1385_v15 = vadd.f32 %v1384_v13, %v1383_v10 }
 0x115   :  { %v782_v16 = vsel %vm770_vm0, %v1797_v14, 0.0  ;;  %v1801_v17 = vadd.f32 %v1385_v15, %v1303_v12 }
 0x116   :  { %v783_v18 = vadd.f32 %v782_v16, %v781_v5  ;;  %v1304_v19 = vpop.f32.mrb[16].mxu0 }
 0x117   :  { %v784_v20 = vsel %vm770_vm0, %v1801_v17, 0.0  ;;  %v1386_v21 = vpop.f32.mrb[16].mxu1  ;;  %v1305_v22 = vpop.f32.mrb[17].mxu0 }
 0x118   :  { %v785_v23 = vadd.f32 %v784_v20, %v783_v18  ;;  %v1306_v24 = vadd.f32 %v1305_v22, %v1304_v19  ;;  %v1387_v26 = vpop.f32.mrb[17].mxu1  ;;  %v1307_v28 = vpop.f32.mrb[18].mxu0 }
 0x119   :  { %v1388_v29 = vadd.f32 %v1387_v26, %v1386_v21  ;;  %v1389_v30 = vpop.f32.mrb[18].mxu1  ;;  %v1308_v31 = vpop.f32.mrb[19].mxu0 }
 0x11a   :  { %v1309_v32 = vadd.f32 %v1308_v31, %v1307_v28  ;;  %v1390_v33 = vpop.f32.mrb[19].mxu1 }
 0x11b   :  { %v1805_v34 = vadd.f32 %v1388_v29, %v1306_v24  ;;  %v1391_v35 = vadd.f32 %v1390_v33, %v1389_v30 }
 0x11d   :  { %v786_v36 = vsel %vm770_vm0, %v1805_v34, 0.0  ;;  %v1809_v37 = vadd.f32 %v1391_v35, %v1309_v32 }
 0x11e   :  { %v787_v38 = vadd.f32 %v786_v36, %v785_v23  ;;  %v1310_v39 = vpop.f32.mrb[20].mxu0 }
 0x11f   :  { %v788_v40 = vsel %vm770_vm0, %v1809_v37, 0.0  ;;  %v1392_v41 = vpop.f32.mrb[20].mxu1  ;;  %v1311_v43 = vpop.f32.mrb[21].mxu0 }
 0x120   :  { %v789_v44 = vadd.f32 %v788_v40, %v787_v38  ;;  %v1312_v46 = vadd.f32 %v1311_v43, %v1310_v39  ;;  %v1393_v47 = vpop.f32.mrb[21].mxu1  ;;  %v1313_v48 = vpop.f32.mrb[22].mxu0 }
 0x121   :  { %v1394_v49 = vadd.f32 %v1393_v47, %v1392_v41  ;;  %v1395_v50 = vpop.f32.mrb[22].mxu1  ;;  %v1314_v51 = vpop.f32.mrb[23].mxu0 }
 0x122   :  { %v1315_v52 = vadd.f32 %v1314_v51, %v1313_v48  ;;  %v1396_v53 = vpop.f32.mrb[23].mxu1 }
 0x123   :  { %v1813_v54 = vadd.f32 %v1394_v49, %v1312_v46  ;;  %v1397_v55 = vadd.f32 %v1396_v53, %v1395_v50 }
 0x125   :  { %v790_v56 = vsel %vm770_vm0, %v1813_v54, 0.0  ;;  %v1817_v57 = vadd.f32 %v1397_v55, %v1315_v52 }
 0x126   :  { %v791_v58 = vadd.f32 %v790_v56, %v789_v44  ;;  %v1316_v59 = vpop.f32.mrb[24].mxu0 }
 0x127   :  { %v792_v61 = vsel %vm770_vm0, %v1817_v57, 0.0  ;;  %v1398_v62 = vpop.f32.mrb[24].mxu1  ;;  %v1317_v0 = vpop.f32.mrb[25].mxu0 }
 0x128   :  { %v793_v1 = vadd.f32 %v792_v61, %v791_v58  ;;  %v1318_v2 = vadd.f32 %v1317_v0, %v1316_v59  ;;  %v1399_v3 = vpop.f32.mrb[25].mxu1  ;;  %v1319_v4 = vpop.f32.mrb[26].mxu0 }
 0x129   :  { %v1400_v5 = vadd.f32 %v1399_v3, %v1398_v62  ;;  %v1401_v6 = vpop.f32.mrb[26].mxu1  ;;  %v1320_v7 = vpop.f32.mrb[27].mxu0 }
 0x12a   :  { %v1321_v8 = vadd.f32 %v1320_v7, %v1319_v4  ;;  %v1402_v9 = vpop.f32.mrb[27].mxu1 }
 0x12b   :  { %v1821_v10 = vadd.f32 %v1400_v5, %v1318_v2  ;;  %v1403_v11 = vadd.f32 %v1402_v9, %v1401_v6 }
 0x12d   :  { %v794_v12 = vsel %vm770_vm0, %v1821_v10, 0.0  ;;  %v1825_v13 = vadd.f32 %v1403_v11, %v1321_v8 }
 0x12e   :  { %v795_v15 = vadd.f32 %v794_v12, %v793_v1  ;;  %v1322_v16 = vpop.f32.mrb[28].mxu0 }
 0x12f   :  { %v796_v18 = vsel %vm770_vm0, %v1825_v13, 0.0  ;;  %v1404_v19 = vpop.f32.mrb[28].mxu1  ;;  %v1323_v20 = vpop.f32.mrb[29].mxu0 }
 0x130   :  { %v797_v21 = vadd.f32 %v796_v18, %v795_v15  ;;  %v1324_v22 = vadd.f32 %v1323_v20, %v1322_v16  ;;  %v1405_v23 = vpop.f32.mrb[29].mxu1  ;;  %v1325_v24 = vpop.f32.mrb[30].mxu0 }
 0x131   :  { %v1406_v26 = vadd.f32 %v1405_v23, %v1404_v19  ;;  %v1407_v28 = vpop.f32.mrb[30].mxu1  ;;  %v1326_v29 = vpop.f32.mrb[31].mxu0 }
 0x132   :  { %v1327_v30 = vadd.f32 %v1326_v29, %v1325_v24  ;;  %v1408_v31 = vpop.f32.mrb[31].mxu1 }
 0x133   :  { %v1829_v32 = vadd.f32 %v1406_v26, %v1324_v22  ;;  %v1409_v33 = vadd.f32 %v1408_v31, %v1407_v28 }
 0x135   :  { %v798_v35 = vsel %vm770_vm0, %v1829_v32, 0.0  ;;  %v1833_v36 = vadd.f32 %v1409_v33, %v1327_v30 }
 0x136   :  { %v799_v38 = vadd.f32 %v798_v35, %v797_v21  ;;  %v1328_v39 = vpop.f32.mrb[32].mxu0 }
 0x137   :  { %v800_v40 = vsel %vm770_vm0, %v1833_v36, 0.0  ;;  %v1410_v41 = vpop.f32.mrb[32].mxu1  ;;  %v1329_v43 = vpop.f32.mrb[33].mxu0 }
 0x138   :  { %v801_v44 = vadd.f32 %v800_v40, %v799_v38  ;;  %v1330_v46 = vadd.f32 %v1329_v43, %v1328_v39  ;;  %v1411_v47 = vpop.f32.mrb[33].mxu1  ;;  %v1331_v48 = vpop.f32.mrb[34].mxu0 }
 0x139   :  { %v1412_v49 = vadd.f32 %v1411_v47, %v1410_v41  ;;  %v1413_v50 = vpop.f32.mrb[34].mxu1  ;;  %v1332_v51 = vpop.f32.mrb[35].mxu0 }
 0x13a   :  { %v1333_v52 = vadd.f32 %v1332_v51, %v1331_v48  ;;  %v1414_v53 = vpop.f32.mrb[35].mxu1 }
 0x13b   :  { %v749_v55 = vadd.f32 %v1412_v49, %v1330_v46  ;;  %v1415_v56 = vadd.f32 %v1414_v53, %v1413_v50 }
 0x13d   :  { %v802_v58 = vsel %vm770_vm0, %v749_v55, 0.0  ;;  %v752_v59 = vadd.f32 %v1415_v56, %v1333_v52 }
 0x13e   :  { %v803_v61 = vadd.f32 %v802_v58, %v801_v44  ;;  %v1334_v62 = vpop.f32.mrb[36].mxu0 }
 0x13f   :  { %v804_v0 = vsel %vm770_vm0, %v752_v59, 0.0  ;;  %v1416_v1 = vpop.f32.mrb[36].mxu1  ;;  %v1335_v2 = vpop.f32.mrb[37].mxu0 }
 0x140   :  { %v805_v3 = vadd.f32 %v804_v0, %v803_v61  ;;  %v1336_v4 = vadd.f32 %v1335_v2, %v1334_v62  ;;  %v1417_v5 = vpop.f32.mrb[37].mxu1  ;;  %v1337_v6 = vpop.f32.mrb[38].mxu0 }
 0x141   :  { %v1418_v7 = vadd.f32 %v1417_v5, %v1416_v1  ;;  %v1419_v8 = vpop.f32.mrb[38].mxu1  ;;  %v1338_v9 = vpop.f32.mrb[39].mxu0 }
 0x142   :  { %v1339_v11 = vadd.f32 %v1338_v9, %v1337_v6  ;;  %v1420_v12 = vpop.f32.mrb[39].mxu1 }
 0x143   :  { %v757_v15 = vadd.f32 %v1418_v7, %v1336_v4  ;;  %v1421_v16 = vadd.f32 %v1420_v12, %v1419_v8 }
 0x145   :  { %v806_v18 = vsel %vm770_vm0, %v757_v15, 0.0  ;;  %v760_v19 = vadd.f32 %v1421_v16, %v1339_v11 }
 0x146   :  { %v807_v20 = vadd.f32 %v806_v18, %v805_v3  ;;  %v1340_v21 = vpop.f32.mrb[40].mxu0 }
 0x147   :  { %v808_v22 = vsel %vm770_vm0, %v760_v19, 0.0  ;;  %v1422_v23 = vpop.f32.mrb[40].mxu1  ;;  %v1341_v24 = vpop.f32.mrb[41].mxu0 }
 0x148   :  { %v809_v26 = vadd.f32 %v808_v22, %v807_v20  ;;  %v1342_v28 = vadd.f32 %v1341_v24, %v1340_v21  ;;  %v1423_v29 = vpop.f32.mrb[41].mxu1  ;;  %v1343_v30 = vpop.f32.mrb[42].mxu0 }
 0x149   :  { %v1424_v31 = vadd.f32 %v1423_v29, %v1422_v23  ;;  %v1425_v33 = vpop.f32.mrb[42].mxu1  ;;  %v1344_v35 = vpop.f32.mrb[43].mxu0 }
 0x14a   :  { %v1426_v38 = vpop.f32.mrb[43].mxu1 }
 0x14b   :  { %v765_v39 = vadd.f32 %v1424_v31, %v1342_v28 }
 0x14d   :  { %v811_v40 = vsel %vm810_vm1, %v765_v39, 0.0 }
 0x14e   :  { %v812_v41 = vadd.f32 %v811_v40, %v809_v26 }
 0x150   :  { %v813_v43 = vrot.slane %v812_v41, 4 }
 0x152   :  { %v814_v44 = vadd.f32 %v813_v43, %v812_v41 }
 0x154   :  { %v815_v46 = vrot.slane %v814_v44, 2 }
 0x156   :  { %v816_v47 = vadd.f32 %v815_v46, %v814_v44 }
 0x158   :  { %v817_v48 = vrot.slane %v816_v47, 1 }
 0x15a   :  { %v818_v49 = vadd.f32 %v817_v48, %v816_v47 }
 0x15c   :  { %v820_v50 = vmul.f32 0.0061728396, %v818_v49 }
 0x15e   :  { %v1843_v51 = vsub.f32 %v1773_v25, %v820_v50  ;;  %v1846_v52 = vsub.f32 %v1775_v27, %v820_v50  ;;  %v1849_v53 = vsub.f32 %v1781_v42, %v820_v50  ;;  %v1852_v56 = vsub.f32 %v1785_v45, %v820_v50 }
 0x15f   :  { %v1855_v58 = vsub.f32 %v1789_v60, %v820_v50  ;;  %v1858_v61 = vsub.f32 %v1793_v63, %v820_v50  ;;  %v1861_v62 = vsub.f32 %v1797_v14, %v820_v50  ;;  %v1864_v25 = vsub.f32 %v1801_v17, %v820_v50 }
 0x160   :  { %v1867_v27 = vsub.f32 %v1805_v34, %v820_v50  ;;  %v1870_v42 = vsub.f32 %v1809_v37, %v820_v50  ;;  %v1873_v45 = vsub.f32 %v1813_v54, %v820_v50  ;;  %v1876_v60 = vsub.f32 %v1817_v57, %v820_v50 }
 0x161   :  { %v1879_v63 = vsub.f32 %v1821_v10, %v820_v50  ;;  %v1882_v14 = vsub.f32 %v1825_v13, %v820_v50  ;;  %v1885_v17 = vsub.f32 %v1829_v32, %v820_v50  ;;  %v1888_v34 = vsub.f32 %v1833_v36, %v820_v50 }
 0x162   :  { %v1890_v37 = vsub.f32 %v749_v55, %v820_v50  ;;  %v1892_v0 = vsub.f32 %v752_v59, %v820_v50  ;;  %v1894_v54 = vsub.f32 %v757_v15, %v820_v50  ;;  %v1896_v57 = vsub.f32 %v760_v19, %v820_v50 }
 0x163   :  { %v1898_v1 = vsub.f32 %v765_v39, %v820_v50  ;;  %v842_v10 = vmul.f32 %v1843_v51, %v1843_v51  ;;  %v843_v13 = vmul.f32 %v1846_v52, %v1846_v52  ;;  %v844_v32 = vmul.f32 %v1849_v53, %v1849_v53 }
 0x164   :  { %v845_v36 = vmul.f32 %v1852_v56, %v1852_v56  ;;  %v846_v3 = vmul.f32 %v1855_v58, %v1855_v58  ;;  %v847_v6 = vmul.f32 %v1858_v61, %v1858_v61  ;;  %v848_v9 = vmul.f32 %v1861_v62, %v1861_v62 }
 0x165   :  { %v863_v55 = vsel %vm770_vm0, %v842_v10, 0.0  ;;  %v864_v59 = vsel %vm770_vm0, %v843_v13, 0.0  ;;  %v866_v4 = vsel %vm770_vm0, %v844_v32, 0.0  ;;  %v849_v15 = vmul.f32 %v1864_v25, %v1864_v25 }
 0x166   :  { %v865_v2 = vadd.f32 %v864_v59, %v863_v55  ;;  %v868_v7 = vsel %vm770_vm0, %v845_v36, 0.0  ;;  %v870_v11 = vsel %vm770_vm0, %v846_v3, 0.0  ;;  %v872_v16 = vsel %vm770_vm0, %v847_v6, 0.0 }
 0x167   :  { %v850_v19 = vmul.f32 %v1867_v27, %v1867_v27  ;;  %v874_v20 = vsel %vm770_vm0, %v848_v9, 0.0  ;;  %v851_v22 = vmul.f32 %v1870_v42, %v1870_v42  ;;  %v876_v23 = vsel %vm770_vm0, %v849_v15, 0.0 }
 0x168   :  { %v867_v5 = vadd.f32 %v866_v4, %v865_v2  ;;  %v852_v26 = vmul.f32 %v1873_v45, %v1873_v45  ;;  %v853_v30 = vmul.f32 %v1876_v60, %v1876_v60  ;;  %v854_v35 = vmul.f32 %v1879_v63, %v1879_v63 }
 0x169   :  { %v878_v28 = vsel %vm770_vm0, %v850_v19, 0.0  ;;  %v880_v31 = vsel %vm770_vm0, %v851_v22, 0.0  ;;  %v855_v40 = vmul.f32 %v1882_v14, %v1882_v14  ;;  %v856_v44 = vmul.f32 %v1885_v17, %v1885_v17 }
 0x16a   :  { %v869_v8 = vadd.f32 %v868_v7, %v867_v5  ;;  %v882_v38 = vsel %vm770_vm0, %v852_v26, 0.0  ;;  %v884_v41 = vsel %vm770_vm0, %v853_v30, 0.0  ;;  %v886_v46 = vsel %vm770_vm0, %v854_v35, 0.0 }
 0x16b   :  { %v857_v48 = vmul.f32 %v1888_v34, %v1888_v34  ;;  %v888_v49 = vsel %vm770_vm0, %v855_v40, 0.0  ;;  %v858_v10 = vmul.f32 %v1890_v37, %v1890_v37  ;;  %v890_v13 = vsel %vm770_vm0, %v856_v44, 0.0 }
 0x16c   :  { %v871_v12 = vadd.f32 %v870_v11, %v869_v8  ;;  %v859_v36 = vmul.f32 %v1892_v0, %v1892_v0  ;;  %v860_v2 = vmul.f32 %v1894_v54, %v1894_v54  ;;  %v861_v5 = vmul.f32 %v1896_v57, %v1896_v57 }
 0x16d   :  { %v892_v55 = vsel %vm770_vm0, %v857_v48, 0.0  ;;  %v894_v3 = vsel %vm770_vm0, %v858_v10, 0.0  ;;  %v862_v8 = vmul.f32 %v1898_v1, %v1898_v1 }
 0x16e   :  { %v873_v18 = vadd.f32 %v872_v16, %v871_v12  ;;  %v896_v6 = vsel %vm770_vm0, %v859_v36, 0.0  ;;  %v898_v9 = vsel %vm770_vm0, %v860_v2, 0.0  ;;  %v900_v12 = vsel %vm770_vm0, %v861_v5, 0.0 }
 0x16f   :  { %v902_v16 = vsel %vm810_vm1, %v862_v8, 0.0 }
 0x170   :  { %v875_v21 = vadd.f32 %v874_v20, %v873_v18 }
 0x172   :  { %v877_v24 = vadd.f32 %v876_v23, %v875_v21 }
 0x174   :  { %v879_v29 = vadd.f32 %v878_v28, %v877_v24 }
 0x176   :  { %v881_v33 = vadd.f32 %v880_v31, %v879_v29  ;;  %v916_v29 = vlaneseq  ;;  %v911_v31 = vld [vmem:[%s2199_s2] sm:$0x1] }
 0x178   :  { %v883_v39 = vadd.f32 %v882_v38, %v881_v33  ;;  %v917_v30 = vshrl.u32 %v916_v29, 7 }
 0x17a   :  { %v885_v43 = vadd.f32 %v884_v41, %v883_v39  ;;  %v918_v33 = vsub.s32 0, %v917_v30 }
 0x17c   :  { %v887_v47 = vadd.f32 %v886_v46, %v885_v43 }
 0x17e   :  { %v889_v50 = vadd.f32 %v888_v49, %v887_v47 }
 0x180   :  { %v891_v32 = vadd.f32 %v890_v13, %v889_v50 }
 0x182   :  { %v893_v59 = vadd.f32 %v892_v55, %v891_v32 }
 0x184   :  { %v895_v4 = vadd.f32 %v894_v3, %v893_v59 }
 0x186   :  { %v897_v7 = vadd.f32 %v896_v6, %v895_v4 }
 0x188   :  { %v899_v11 = vadd.f32 %v898_v9, %v897_v7 }
 0x18a   :  { %v901_v15 = vadd.f32 %v900_v12, %v899_v11 }
 0x18c   :  { %v903_v18 = vadd.f32 %v902_v16, %v901_v15 }
 0x18e   :  { %v904_v19 = vrot.slane %v903_v18, 4 }
 0x190   :  { %v905_v20 = vadd.f32 %v904_v19, %v903_v18 }
 0x192   :  { %v906_v21 = vrot.slane %v905_v20, 2 }
 0x194   :  { %v907_v22 = vadd.f32 %v906_v21, %v905_v20 }
 0x196   :  { %v908_v23 = vrot.slane %v907_v22, 1 }
 0x198   :  { %v909_v24 = vadd.f32 %v908_v23, %v907_v22 }
 0x19a   :  { %v910_v26 = vmul.f32 0.0061728396, %v909_v24 }
 0x19c   :  { %v912_v28 = vadd.f32 1e-05, %v910_v26 }
 0x19e   :  { %1524 = vrsqrt.f32 %v912_v28 }
 0x1a8   :  { %v1525_v35 = vpop.eup %1524 }
 0x1a9   :  { %v914_v38 = vmul.f32 %v1525_v35, %v911_v31 }
 0x1ab   :  { %v919_v39 = vrot.slane %v914_v38, %v918_v33 }
 0x1ad   :  { %v921_v40 = vmul.f32 %v919_v39, %v1843_v51  ;;  %v922_v41 = vmul.f32 %v919_v39, %v1846_v52  ;;  %v923_v43 = vmul.f32 %v919_v39, %v1849_v53  ;;  %v924_v44 = vmul.f32 %v919_v39, %v1852_v56  ;;  %v1221_v53 = vld [vmem:[%s2200_s3] ss:$0 sm:$0xff] }
 0x1ae   :  { %v925_v46 = vmul.f32 %v919_v39, %v1855_v58  ;;  %v926_v47 = vmul.f32 %v919_v39, %v1858_v61  ;;  %v927_v48 = vmul.f32 %v919_v39, %v1861_v62  ;;  %v928_v49 = vmul.f32 %v919_v39, %v1864_v25 }
 0x1af   :  { %v929_v50 = vmul.f32 %v919_v39, %v1867_v27  ;;  %v930_v10 = vmul.f32 %v919_v39, %v1870_v42  ;;  %v931_v51 = vmul.f32 %v919_v39, %v1873_v45  ;;  %v932_v52 = vmul.f32 %v919_v39, %v1876_v60 }
 0x1b0   :  { %v933_v56 = vmul.f32 %v919_v39, %v1879_v63  ;;  %v934_v58 = vmul.f32 %v919_v39, %v1882_v14  ;;  %v935_v61 = vmul.f32 %v919_v39, %v1885_v17  ;;  %v936_v62 = vmul.f32 %v919_v39, %v1888_v34 }
 0x1b1   :  { %v937_v25 = vmul.f32 %v919_v39, %v1890_v37  ;;  %v938_v27 = vmul.f32 %v919_v39, %v1892_v0  ;;  %v939_v42 = vmul.f32 %v919_v39, %v1894_v54  ;;  %v940_v45 = vmul.f32 %v919_v39, %v1896_v57 }
 0x1b2   :  { %v941_v60 = vmul.f32 %v919_v39, %v1898_v1  ;;  %v949_v13 = vadd.f32 %v1221_v53, %v921_v40  ;;  %v950_v32 = vadd.f32 %v1221_v53, %v922_v41  ;;  %v951_v36 = vadd.f32 %v1221_v53, %v923_v43 }
 0x1b3   :  { %v952_v63 = vadd.f32 %v1221_v53, %v924_v44  ;;  %v1990_v55 = vadd.f32 %v1221_v53, %v925_v46  ;;  %v1992_v14 = vadd.f32 %v1221_v53, %v926_v47  ;;  %v1994_v17 = vadd.f32 %v1221_v53, %v927_v48 }
 0x1b4   :  { %v1996_v34 = vadd.f32 %v1221_v53, %v928_v49  ;;  %v1998_v37 = vadd.f32 %v1221_v53, %v929_v50  ;;  %v2000_v0 = vadd.f32 %v1221_v53, %v930_v10  ;;  %v2002_v54 = vadd.f32 %v1221_v53, %v931_v51 }
 0x1b5   :  { %v2004_v57 = vadd.f32 %v1221_v53, %v932_v52  ;;  %v2006_v1 = vadd.f32 %v1221_v53, %v933_v56  ;;  %v2008_v59 = vadd.f32 %v1221_v53, %v934_v58  ;;  %v2010_v2 = vadd.f32 %v1221_v53, %v935_v61 }
 0x1b6   :  { %v2012_v3 = vadd.f32 %v1221_v53, %v936_v62  ;;  %v2014_v4 = vadd.f32 %v1221_v53, %v937_v25  ;;  %v2016_v5 = vadd.f32 %v1221_v53, %v938_v27  ;;  %v2018_v6 = vadd.f32 %v1221_v53, %v939_v42 }
 0x1b7   :  { %v2020_v7 = vadd.f32 %v1221_v53, %v940_v45  ;;  %v2022_v8 = vadd.f32 %v1221_v53, %v941_v60  ;;  %vm970_vm2 = vcmp.gt.f32.partialorder %v949_v13, 0.0  ;;  %vm971_vm3 = vcmp.gt.f32.partialorder %v950_v32, 0.0 }
 0x1b8   :  { %vm972_vm4 = vcmp.gt.f32.partialorder %v951_v36, 0.0  ;;  %vm973_vm5 = vcmp.gt.f32.partialorder %v952_v63, 0.0  ;;  %vm974_vm6 = vcmp.gt.f32.partialorder %v1990_v55, 0.0  ;;  %vm975_vm7 = vcmp.gt.f32.partialorder %v1992_v14, 0.0 }
 0x1b9   :  { %vm981_vm13 = vcmp.gt.f32.partialorder %v2004_v57, 0.0  ;;  %vm982_vm14 = vcmp.gt.f32.partialorder %v2006_v1, 0.0  ;;  %vm983_vm15 = vcmp.gt.f32.partialorder %v2008_v59, 0.0  ;;  %vm984_vm0 = vcmp.gt.f32.partialorder %v2010_v2, 0.0 }
 0x1ba   :  { %vm985_vm1 = vcmp.gt.f32.partialorder %v2012_v3, 0.0  ;;  %vm987_vm9 = vcmp.gt.f32.partialorder %v2016_v5, 0.0  ;;  %vm988_vm10 = vcmp.gt.f32.partialorder %v2018_v6, 0.0  ;;  %vm989_vm11 = vcmp.gt.f32.partialorder %v2020_v7, 0.0 }
 0x1bb   :  { %vm990_vm12 = vcmp.gt.f32.partialorder %v2022_v8, 0.0  ;;  %v991_v9 = vmul.f32 0.01, %v949_v13  ;;  %v992_v11 = vmul.f32 0.01, %v950_v32 }
 0x1bc   :  { %v993_v12 = vmul.f32 0.01, %v951_v36  ;;  %v994_v15 = vmul.f32 0.01, %v952_v63  ;;  %v995_v16 = vmul.f32 0.01, %v1990_v55 }
 0x1bd   :  { %v996_v18 = vmul.f32 0.01, %v1992_v14  ;;  %v997_v19 = vmul.f32 0.01, %v1994_v17  ;;  %v1012_v20 = vsel %vm970_vm2, %v949_v13, %v991_v9  ;;  %v998_v21 = vmul.f32 0.01, %v1996_v34 }
 0x1be   :  { %v999_v22 = vmul.f32 0.01, %v1998_v37  ;;  %v1000_v23 = vmul.f32 0.01, %v2000_v0  ;;  %v1013_v24 = vsel %vm971_vm3, %v950_v32, %v992_v11  ;;  %v1001_v26 = vmul.f32 0.01, %v2002_v54 }
 0x1bf   :  { %v1002_v28 = vmul.f32 0.01, %v2004_v57  ;;  %v1003_v29 = vmul.f32 0.01, %v2006_v1  ;;  %v1014_v30 = vsel %vm972_vm4, %v951_v36, %v993_v12  ;;  %v1004_v31 = vmul.f32 0.01, %v2008_v59 }
 0x1c0   :  { %v1005_v33 = vmul.f32 0.01, %v2010_v2  ;;  %v1006_v35 = vmul.f32 0.01, %v2012_v3  ;;  %v1015_v38 = vsel %vm973_vm5, %v952_v63, %v994_v15  ;;  %v1007_v39 = vmul.f32 0.01, %v2014_v4 }
 0x1c1   :  { %v1008_v40 = vmul.f32 0.01, %v2016_v5  ;;  %v1009_v41 = vmul.f32 0.01, %v2018_v6  ;;  %v1016_v43 = vsel %vm974_vm6, %v1990_v55, %v995_v16  ;;  %v1010_v44 = vmul.f32 0.01, %v2020_v7 }
 0x1c2   :  { %v1011_v46 = vmul.f32 0.01, %v2022_v8  ;;  %v1017_v47 = vsel %vm975_vm7, %v1992_v14, %v996_v18  ;;  %vm2202_vm2 = vcmp.gt.f32.partialorder %v1994_v17, 0.0  ;;  %vm1139_vm3 = vcmask 516096  }
 0x1c3   :  { %v1018_v48 = vsel %vm2202_vm2, %v1994_v17, %v997_v19  ;;  %vm2203_vm4 = vcmp.gt.f32.partialorder %v1996_v34, 0.0  ;;  %vm2204_vm5 = vcmp.gt.f32.partialorder %v1998_v37, 0.0  ;;  %vm2205_vm6 = vcmp.gt.f32.partialorder %v2000_v0, 0.0 }
 0x1c4   :  { %v1019_v49 = vsel %vm2203_vm4, %v1996_v34, %v998_v21  ;;  %v1020_v50 = vsel %vm2204_vm5, %v1998_v37, %v999_v22  ;;  %v1021_v10 = vsel %vm2205_vm6, %v2000_v0, %v1000_v23  ;;  %vm2206_vm7 = vcmp.gt.f32.partialorder %v2002_v54, 0.0 }
 0x1c5   :  { %v1022_v51 = vsel %vm2206_vm7, %v2002_v54, %v1001_v26  ;;  %v1023_v52 = vsel %vm981_vm13, %v2004_v57, %v1002_v28  ;;  %v1024_v53 = vsel %vm982_vm14, %v2006_v1, %v1003_v29  ;;  %v1025_v56 = vsel %vm983_vm15, %v2008_v59, %v1004_v31 }
 0x1c6   :  { %v1026_v58 = vsel %vm984_vm0, %v2010_v2, %v1005_v33  ;;  %v1027_v61 = vsel %vm985_vm1, %v2012_v3, %v1006_v35  ;;  %vm2207_vm2 = vcmp.gt.f32.partialorder %v2014_v4, 0.0  ;;  %v1029_v25 = vsel %vm987_vm9, %v2016_v5, %v1008_v40 }
 0x1c7   :  { %v1028_v62 = vsel %vm2207_vm2, %v2014_v4, %v1007_v39  ;;  %v1030_v27 = vsel %vm988_vm10, %v2018_v6, %v1009_v41  ;;  %v1031_v42 = vsel %vm989_vm11, %v2020_v7, %v1010_v44  ;;  %v1032_v45 = vsel %vm990_vm12, %v2022_v8, %v1011_v46 }
 0x1c8   :  { %v1243_v60 = vpack.c.bf16 %v1012_v20, %v1012_v20  ;;  %v1244_v13 = vpack.c.bf16 %v1013_v24, %v1013_v24  ;;  %v1245_v32 = vpack.c.bf16 %v1014_v30, %v1014_v30  ;;  %v1246_v36 = vpack.c.bf16 %v1015_v38, %v1015_v38 }
 0x1c9   :  { %v1247_v63 = vpack.c.bf16 %v1016_v43, %v1016_v43  ;;  %v1248_v55 = vpack.c.bf16 %v1017_v47, %v1017_v47  ;;  %v1249_v14 = vpack.c.bf16 %v1018_v48, %v1018_v48  ;;  %v1250_v17 = vpack.c.bf16 %v1019_v49, %v1019_v49 }
 0x1ca   :  { %v1251_v34 = vpack.c.bf16 %v1020_v50, %v1020_v50  ;;  %v1252_v37 = vpack.c.bf16 %v1021_v10, %v1021_v10  ;;  %1119 = vst.msk [vmem:[%s2201_s4] sm:$0xf] %vm1118_vm8, %v1243_v60  ;;  %1120 = vst.msk [vmem:[%s2201_s4 + $0x4] sm:$0xf] %vm1118_vm8, %v1244_v13  ;;  %v1253_v0 = vpack.c.bf16 %v1022_v51, %v1022_v51 }
 0x1cb   :  { %v1254_v54 = vpack.c.bf16 %v1023_v52, %v1023_v52  ;;  %v1255_v57 = vpack.c.bf16 %v1024_v53, %v1024_v53  ;;  %v1256_v1 = vpack.c.bf16 %v1025_v56, %v1025_v56  ;;  %1121 = vst.msk [vmem:[%s2201_s4 + $0x8] sm:$0xf] %vm1118_vm8, %v1245_v32  ;;  %1122 = vst.msk [vmem:[%s2201_s4 + $0xc] sm:$0xf] %vm1118_vm8, %v1246_v36 }
 0x1cc   :  { %1123 = vst.msk [vmem:[%s2201_s4 + $0x10] sm:$0xf] %vm1118_vm8, %v1247_v63  ;;  %1124 = vst.msk [vmem:[%s2201_s4 + $0x14] sm:$0xf] %vm1118_vm8, %v1248_v55  ;;  %v1257_v59 = vpack.c.bf16 %v1026_v58, %v1026_v58  ;;  %v1258_v2 = vpack.c.bf16 %v1027_v61, %v1027_v61  ;;  %v1259_v3 = vpack.c.bf16 %v1028_v62, %v1028_v62 }
 0x1cd   :  { %v1260_v4 = vpack.c.bf16 %v1029_v25, %v1029_v25  ;;  %1125 = vst.msk [vmem:[%s2201_s4 + $0x18] sm:$0xf] %vm1118_vm8, %v1249_v14  ;;  %1126 = vst.msk [vmem:[%s2201_s4 + $0x1c] sm:$0xf] %vm1118_vm8, %v1250_v17  ;;  %v1261_v5 = vpack.c.bf16 %v1030_v27, %v1030_v27  ;;  %v1262_v6 = vpack.c.bf16 %v1031_v42, %v1031_v42 }
 0x1ce   :  { %1127 = vst.msk [vmem:[%s2201_s4 + $0x20] sm:$0xf] %vm1118_vm8, %v1251_v34  ;;  %1128 = vst.msk [vmem:[%s2201_s4 + $0x24] sm:$0xf] %vm1118_vm8, %v1252_v37  ;;  %v1263_v7 = vpack.c.bf16 %v1032_v45, %v1032_v45 }
 0x1cf   :  { %1129 = vst.msk [vmem:[%s2201_s4 + $0x28] sm:$0xf] %vm1118_vm8, %v1253_v0  ;;  %1130 = vst.msk [vmem:[%s2201_s4 + $0x2c] sm:$0xf] %vm1118_vm8, %v1254_v54 }
 0x1d0   :  { %1131 = vst.msk [vmem:[%s2201_s4 + $0x30] sm:$0xf] %vm1118_vm8, %v1255_v57  ;;  %1132 = vst.msk [vmem:[%s2201_s4 + $0x34] sm:$0xf] %vm1118_vm8, %v1256_v1 }
 0x1d1   :  { %1133 = vst.msk [vmem:[%s2201_s4 + $0x38] sm:$0xf] %vm1118_vm8, %v1257_v59  ;;  %1134 = vst.msk [vmem:[%s2201_s4 + $0x3c] sm:$0xf] %vm1118_vm8, %v1258_v2 }
 0x1d2   :  { %1135 = vst.msk [vmem:[%s2201_s4 + $0x40] sm:$0xf] %vm1118_vm8, %v1259_v3  ;;  %1136 = vst.msk [vmem:[%s2201_s4 + $0x44] sm:$0xf] %vm1118_vm8, %v1260_v4 }
 0x1d3   :  { %1137 = vst.msk [vmem:[%s2201_s4 + $0x48] sm:$0xf] %vm1118_vm8, %v1261_v5  ;;  %1138 = vst.msk [vmem:[%s2201_s4 + $0x4c] sm:$0xf] %vm1118_vm8, %v1262_v6 }
 0x1d4   :  { %1140 = vst.msk [vmem:[%s2201_s4 + $0x50] sm:$0x1] %vm1139_vm3, %v1263_v7 }

// kernel: dqnet_forward.6
= control target key start
LH: loop header
LB: loop body
LE: loop exit
PB: predicated region body
PF: predicated region fallthrough
CT: control target
= control target key end

     0   :  { %v1407_v34 = vmov 0.0   ;;  %vm1408_vm0 = vmmov 0   ;;  %vm512_vm1 = vcmask 523264   ;;  %vm821_vm2 = vcmask 517120   ;;  %s1876_s1 = inlined_call_operand.vmem [shape: bf16[576,64], index: 1, kind: input, shape index: {}]   ;;  %s1877_s0 = inlined_call_operand.vmem [shape: bf16[98,576], index: 0, kind: input, shape index: {}]   ;;  %s1878_s2 = inlined_call_operand.vmem [shape: f32[1,64], index: 2, kind: input, shape index: {}]   ;;  %s1879_s3 = inlined_call_operand.vmem [shape: f32[1,64], index: 3, kind: input, shape index: {}]   ;;  %s1880_s4 = inlined_call_operand.vmem [shape: bf16[98,64], index: 4, kind: output, shape index: {}]  }
   0x1   :  { %v1322_v0 = vld [vmem:[%s1876_s1 + $0x40] sm:$0xff]   ;;  %v1326_v4 = vld [vmem:[%s1876_s1 + $0x48] sm:$0xff]   ;;  %v1330_v8 = vld [vmem:[%s1876_s1 + $0x50] sm:$0xff]   ;;  %vm1025_vm9 = vcmask 519168  }
   0x2   :  { %v1323_v1 = vld [vmem:[%s1876_s1 + $0xc0] sm:$0xff]   ;;  %1149 = vmatprep.subr.bf16.mxu0 %v1322_v0  ;;  %v1327_v5 = vld [vmem:[%s1876_s1 + $0xc8] sm:$0xff]   ;;  %v1331_v9 = vld [vmem:[%s1876_s1 + $0xd0] sm:$0xff]  }
   0x3   :  { %v1324_v2 = vld [vmem:[%s1876_s1] sm:$0xff]   ;;  %1207 = vmatprep.subr.bf16.mxu1 %v1323_v1  ;;  %v1328_v6 = vld [vmem:[%s1876_s1 + $0x8] sm:$0xff]   ;;  %v1332_v10 = vld [vmem:[%s1876_s1 + $0x10] sm:$0xff]  }
   0x4   :  { %v1325_v3 = vld [vmem:[%s1876_s1 + $0x80] sm:$0xff]   ;;  %1150 = vmatpush3.bf16.msra.mxu0 %v1324_v2  ;;  %v1329_v7 = vld [vmem:[%s1876_s1 + $0x88] sm:$0xff]   ;;  %v1333_v11 = vld [vmem:[%s1876_s1 + $0x90] sm:$0xff]  }
   0x5   :  { %1208 = vmatpush3.bf16.msra.mxu1 %v1325_v3  ;;  %1151 = vmatprep.subr.bf16.mxu0 %v1326_v4  ;;  %v1334_v12 = vld [vmem:[%s1876_s1 + $0x58] sm:$0xff]   ;;  %v1338_v16 = vld [vmem:[%s1876_s1 + $0x60] sm:$0xff]   ;;  %v1342_v20 = vld [vmem:[%s1876_s1 + $0x68] sm:$0xff]  }
   0x6   :  { %1209 = vmatprep.subr.bf16.mxu1 %v1327_v5  ;;  %v1335_v13 = vld [vmem:[%s1876_s1 + $0xd8] sm:$0xff]   ;;  %v1339_v17 = vld [vmem:[%s1876_s1 + $0xe0] sm:$0xff]   ;;  %v1343_v21 = vld [vmem:[%s1876_s1 + $0xe8] sm:$0xff]  }
   0x7   :  { %v1336_v14 = vld [vmem:[%s1876_s1 + $0x18] sm:$0xff]   ;;  %v1340_v18 = vld [vmem:[%s1876_s1 + $0x20] sm:$0xff]   ;;  %v1344_v22 = vld [vmem:[%s1876_s1 + $0x28] sm:$0xff]  }
   0x8   :  { %1152 = vmatpush3.bf16.msra.mxu0 %v1328_v6  ;;  %v1337_v15 = vld [vmem:[%s1876_s1 + $0x98] sm:$0xff]   ;;  %v1341_v19 = vld [vmem:[%s1876_s1 + $0xa0] sm:$0xff]   ;;  %v1345_v23 = vld [vmem:[%s1876_s1 + $0xa8] sm:$0xff]  }
   0x9   :  { %1210 = vmatpush3.bf16.msra.mxu1 %v1329_v7  ;;  %1153 = vmatprep.subr.bf16.mxu0 %v1330_v8  ;;  %v1346_v24 = vld [vmem:[%s1876_s1 + $0x70] sm:$0xff]   ;;  %v1350_v28 = vld [vmem:[%s1876_s1 + $0x78] sm:$0xff]   ;;  %v1359_v36 = vld [vmem:[%s1877_s0 + $0xc] ss:$20 sps:$4 sm:$0xff]  }
   0xa   :  { %1211 = vmatprep.subr.bf16.mxu1 %v1331_v9  ;;  %v1347_v25 = vld [vmem:[%s1876_s1 + $0xf0] sm:$0xff]   ;;  %v1351_v29 = vld [vmem:[%s1876_s1 + $0xf8] sm:$0xff]   ;;  %v1360_v37 = vld [vmem:[%s1876_s1 + $0x100] sm:$0xff]   ;;  %654 = vmatprep.mubr.bf16.mxu1 %v1359_v36 }
   0xb   :  { %v1348_v26 = vld [vmem:[%s1876_s1 + $0x30] sm:$0xff]   ;;  %v1352_v30 = vld [vmem:[%s1876_s1 + $0x38] sm:$0xff]   ;;  %v1361_v38 = vld [vmem:[%s1877_s0 + $0x2c] ss:$20 sps:$4 sm:$0xff]  }
   0xc   :  { %1154 = vmatpush3.bf16.msra.mxu0 %v1332_v10  ;;  %v1349_v27 = vld [vmem:[%s1876_s1 + $0xb0] sm:$0xff]   ;;  %v1353_v31 = vld [vmem:[%s1876_s1 + $0xb8] sm:$0xff]   ;;  %v1371_v43 = vld [vmem:[%s1876_s1 + $0x108] sm:$0xff]  }
   0xd   :  { %1212 = vmatpush3.bf16.msra.mxu1 %v1333_v11  ;;  %1155 = vmatprep.subr.bf16.mxu0 %v1334_v12  ;;  %v1354_v32 = vld [vmem:[%s1877_s0] ss:$20 sps:$4 sm:$0xff]   ;;  %v1356_v33 = vld [vmem:[%s1877_s0 + $0x4] ss:$20 sps:$4 sm:$0xff]   ;;  %v1357_v35 = vld [vmem:[%s1877_s0 + $0x8] ss:$20 sps:$4 sm:$0xff]  }
   0xe   :  { %1213 = vmatprep.subr.bf16.mxu1 %v1335_v13  ;;  %566 = vmatprep.mubr.bf16.mxu0 %v1356_v33  ;;  %v1363_v39 = vld [vmem:[%s1877_s0 + $0x34] ss:$20 sps:$4 sm:$0xff]   ;;  %v1366_v41 = vld [vmem:[%s1877_s0 + $0x30] ss:$20 sps:$4 sm:$0xff]   ;;  %v1373_v47 = vld [vmem:[%s1877_s0 + $0x58] ss:$20 sps:$4 sm:$0xff]  }
   0xf   :  { %v1365_v40 = vld [vmem:[%s1877_s0 + $0x28] ss:$20 sps:$4 sm:$0xff]   ;;  %v1380_v45 = vld [vmem:[%s1876_s1 + $0x110] sm:$0xff]   ;;  %v1376_v49 = vld [vmem:[%s1877_s0 + $0x84] ss:$20 sps:$4 sm:$0xff]  }
  0x10   :  { %1156 = vmatpush3.bf16.msra.mxu0 %v1336_v14  ;;  %v1367_v42 = vld [vmem:[%s1877_s0 + $0x54] ss:$20 sps:$4 sm:$0xff]   ;;  %v1369_v44 = vld [vmem:[%s1877_s0 + $0x5c] ss:$20 sps:$4 sm:$0xff]   ;;  %v1378_v51 = vld [vmem:[%s1877_s0 + $0x78] ss:$20 sps:$4 sm:$0xff]  }
  0x11   :  { %1214 = vmatpush3.bf16.msra.mxu1 %v1337_v15  ;;  %1157 = vmatprep.subr.bf16.mxu0 %v1338_v16  ;;  %v1372_v46 = vld [vmem:[%s1877_s0 + $0x50] ss:$20 sps:$4 sm:$0xff]   ;;  %v1393_v50 = vld [vmem:[%s1876_s1 + $0x118] sm:$0xff]   ;;  %v1379_v52 = vld [vmem:[%s1877_s0 + $0x80] ss:$20 sps:$4 sm:$0xff]  }
  0x12   :  { %1215 = vmatprep.subr.bf16.mxu1 %v1339_v17  ;;  %v1374_v48 = vld [vmem:[%s1877_s0 + $0x7c] ss:$20 sps:$4 sm:$0xff]   ;;  %v1381_v53 = vld [vmem:[%s1877_s0 + $0xa4] ss:$20 sps:$4 sm:$0xff]   ;;  %v1383_v54 = vld [vmem:[%s1877_s0 + $0xac] ss:$20 sps:$4 sm:$0xff]  }
  0x13   :  { %v1385_v55 = vld [vmem:[%s1877_s0 + $0xa0] ss:$20 sps:$4 sm:$0xff]   ;;  %v1386_v56 = vld [vmem:[%s1877_s0 + $0xa8] ss:$20 sps:$4 sm:$0xff]   ;;  %v1392_v62 = vld [vmem:[%s1877_s0 + $0xd0] ss:$20 sps:$4 sm:$0xff]  }
  0x14   :  { %1158 = vmatpush3.bf16.msra.mxu0 %v1340_v18  ;;  %v1387_v57 = vld [vmem:[%s1877_s0 + $0xcc] ss:$20 sps:$4 sm:$0xff]   ;;  %v1389_v58 = vld [vmem:[%s1877_s0 + $0xd4] ss:$20 sps:$4 sm:$0xff]   ;;  %v55_v60 = vld [vmem:[%s1877_s0 + $0xf8] sm:$0x11] }
  0x15   :  { %1216 = vmatpush3.bf16.msra.mxu1 %v1341_v19  ;;  %1159 = vmatprep.subr.bf16.mxu0 %v1342_v20  ;;  %v54_v59 = vld [vmem:[%s1877_s0 + $0xf0] sm:$0x11]  ;;  %v1391_v61 = vld [vmem:[%s1877_s0 + $0xc8] ss:$20 sps:$4 sm:$0xff]   ;;  %v1077_v0 = vcombine.high %v55_v60, %v55_v60  ;;  %v1076_v2 = vcombine.low %v55_v60, %v55_v60  ;;  %v1400_v5 = vld [vmem:[%s1877_s0 + $0x38] ss:$20 sps:$4 sm:$0xff]  }
  0x16   :  { %1217 = vmatprep.subr.bf16.mxu1 %v1343_v21  ;;  %v1075_v63 = vcombine.high %v54_v59, %v54_v59  ;;  %v1074_v1 = vcombine.low %v54_v59, %v54_v59  ;;  %v1398_v3 = vld [vmem:[%s1877_s0 + $0x10] ss:$20 sps:$4 sm:$0xff]   ;;  %v1401_v6 = vld [vmem:[%s1877_s0 + $0xd8] ss:$20 sps:$4 sm:$0xff]   ;;  %v1402_v7 = vld [vmem:[%s1877_s0 + $0x60] ss:$20 sps:$4 sm:$0xff]  }
  0x17   :  { %v1399_v4 = vld [vmem:[%s1877_s0 + $0xb0] ss:$20 sps:$4 sm:$0xff]   ;;  %v1403_v8 = vld [vmem:[%s1877_s0 + $0x100] ss:$0 sps:$4 sm:$0x11]  }
  0x18   :  { %1160 = vmatpush3.bf16.msra.mxu0 %v1344_v22  ;;  %v1404_v9 = vld [vmem:[%s1877_s0 + $0x88] ss:$20 sps:$4 sm:$0xff]  }
  0x19   :  { %1218 = vmatpush3.bf16.msra.mxu1 %v1345_v23  ;;  %1161 = vmatprep.subr.bf16.mxu0 %v1346_v24 }
  0x1a   :  { %1219 = vmatprep.subr.bf16.mxu1 %v1347_v25 }
  0x1c   :  { %1162 = vmatpush3.bf16.msra.mxu0 %v1348_v26 }
  0x1d   :  { %1220 = vmatpush3.bf16.msra.mxu1 %v1349_v27  ;;  %1163 = vmatprep.subr.bf16.mxu0 %v1350_v28 }
  0x1e   :  { %1221 = vmatprep.subr.bf16.mxu1 %v1351_v29 }
  0x20   :  { %1164 = vmatpush3.bf16.msra.mxu0 %v1352_v30 }
  0x21   :  { %1222 = vmatpush3.bf16.msra.mxu1 %v1353_v31  ;;  %1276 = vmatprep.subr.bf16.mxu0 %v1407_v34 }
  0x22   :  { %1312 = vmatprep.subr.bf16.mxu1 %v1407_v34 }
  0x23   :  { %567 = vmatmul.mubr.bf16.vlgmr.msra.gmra.mrb[0].mxu0 %v1354_v32 }
  0x24   :  { %655 = vmatmul.mubr.bf16.vlgmr.msra.gmra.mrb[0].mxu1 %v1357_v35  ;;  %1277 = vmatpush3.bf16.msra.mxu0 %v1360_v37 }
  0x25   :  { %574 = vmatprep.mubr.bf16.mxu0 %v1361_v38  ;;  %1278 = vmatprep.subr.bf16.mxu0 %v1407_v34 }
  0x26   :  { %662 = vmatprep.mubr.bf16.mxu1 %v1363_v39  ;;  %1316 = vmatpush3.bf16.msra.mxu1 %v1360_v37 }
  0x27   :  { %1313 = vmatprep.subr.bf16.mxu1 %v1407_v34 }
  0x28   :  { %1279 = vmatpush3.bf16.msra.mxu0 %v1371_v43 }
  0x29   :  { %1280 = vmatprep.subr.bf16.mxu0 %v1407_v34 }
  0x2a   :  { %1317 = vmatpush3.bf16.msra.mxu1 %v1371_v43 }
  0x2b   :  { %575 = vmatmul.mubr.bf16.gmra.mrb[4].mxu0 %v1365_v40  ;;  %1314 = vmatprep.subr.bf16.mxu1 %v1407_v34 }
  0x2c   :  { %663 = vmatmul.mubr.bf16.gmra.mrb[4].mxu1 %v1366_v41  ;;  %582 = vmatprep.mubr.bf16.mxu0 %v1367_v42 }
  0x2d   :  { %670 = vmatprep.mubr.bf16.mxu1 %v1369_v44  ;;  %1281 = vmatpush3.bf16.msra.mxu0 %v1380_v45 }
  0x2e   :  { %1318 = vmatpush3.bf16.msra.mxu1 %v1380_v45  ;;  %1282 = vmatprep.subr.bf16.mxu0 %v1407_v34 }
  0x2f   :  { %1315 = vmatprep.subr.bf16.mxu1 %v1407_v34 }
  0x31   :  { %1283 = vmatpush3.bf16.msra.mxu0 %v1393_v50 }
  0x32   :  { %1319 = vmatpush3.bf16.msra.mxu1 %v1393_v50 }
  0x33   :  { %583 = vmatmul.mubr.bf16.gmra.mrb[8].mxu0 %v1372_v46 }
  0x34   :  { %671 = vmatmul.mubr.bf16.gmra.mrb[8].mxu1 %v1373_v47  ;;  %590 = vmatprep.mubr.bf16.mxu0 %v1374_v48 }
  0x35   :  { %678 = vmatprep.mubr.bf16.mxu1 %v1376_v49 }
  0x3b   :  { %591 = vmatmul.mubr.bf16.gmra.mrb[12].mxu0 %v1378_v51 }
  0x3c   :  { %679 = vmatmul.mubr.bf16.gmra.mrb[12].mxu1 %v1379_v52  ;;  %598 = vmatprep.mubr.bf16.mxu0 %v1381_v53 }
  0x3d   :  { %686 = vmatprep.mubr.bf16.mxu1 %v1383_v54 }
  0x43   :  { %599 = vmatmul.mubr.bf16.gmra.mrb[16].mxu0 %v1385_v55 }
  0x44   :  { %687 = vmatmul.mubr.bf16.gmra.mrb[16].mxu1 %v1386_v56  ;;  %606 = vmatprep.mubr.bf16.mxu0 %v1387_v57 }
  0x45   :  { %694 = vmatprep.mubr.bf16.mxu1 %v1389_v58 }
  0x4b   :  { %607 = vmatmul.mubr.bf16.gmra.mrb[20].mxu0 %v1391_v61 }
  0x4c   :  { %695 = vmatmul.mubr.bf16.gmra.mrb[20].mxu1 %v1392_v62  ;;  %614 = vmatprep.mubr.bf16.mxu0 %v1075_v63 }
  0x4d   :  { %702 = vmatprep.mubr.bf16.mxu1 %v1077_v0 }
  0x53   :  { %615 = vmatmul.mubr.bf16.gmra.mrb[24].mxu0 %v1074_v1 }
  0x54   :  { %703 = vmatmul.mubr.bf16.gmra.mrb[24].mxu1 %v1076_v2  ;;  %1284 = vmatprep.mubr.msk.bf16.mxu0 %vm1408_vm0, %v1407_v34 }
  0x55   :  { %1300 = vmatprep.mubr.msk.bf16.mxu1 %vm1408_vm0, %v1407_v34 }
  0x5b   :  { %1285 = vmatmul.mubr.msk.bf16.vlgmr.msra.gmra.mrb[28].mxu0 %vm512_vm1, %v1398_v3 }
  0x5c   :  { %1301 = vmatmul.mubr.msk.bf16.vlgmr.msra.gmra.mrb[28].mxu1 %vm512_vm1, %v1399_v4  ;;  %1288 = vmatprep.mubr.msk.bf16.mxu0 %vm1408_vm0, %v1407_v34 }
  0x5d   :  { %1304 = vmatprep.mubr.msk.bf16.mxu1 %vm1408_vm0, %v1407_v34 }
  0x63   :  { %1289 = vmatmul.mubr.msk.bf16.gmra.mrb[32].mxu0 %vm512_vm1, %v1400_v5 }
  0x64   :  { %1305 = vmatmul.mubr.msk.bf16.gmra.mrb[32].mxu1 %vm512_vm1, %v1401_v6  ;;  %1292 = vmatprep.mubr.msk.bf16.mxu0 %vm1408_vm0, %v1407_v34 }
  0x65   :  { %1308 = vmatprep.mubr.msk.bf16.mxu1 %vm1408_vm0, %v1407_v34 }
  0x6b   :  { %1293 = vmatmul.mubr.msk.bf16.gmra.mrb[36].mxu0 %vm512_vm1, %v1402_v7 }
  0x6c   :  { %1309 = vmatmul.mubr.msk.bf16.gmra.mrb[36].mxu1 %vm512_vm1, %v1403_v8  ;;  %1296 = vmatprep.mubr.msk.bf16.mxu0 %vm1408_vm0, %v1407_v34 }
  0x73   :  { %1297 = vmatmul.mubr.msk.bf16.gmra.mrb[40].mxu0 %vm512_vm1, %v1404_v9 }
  0xf6   :  { %v1165_v10 = vpop.f32.mrb[0].mxu0 }
  0xf7   :  { %v1223_v11 = vpop.f32.mrb[0].mxu1  ;;  %v1166_v12 = vpop.f32.mrb[1].mxu0 }
  0xf8   :  { %v1167_v13 = vadd.f32 %v1166_v12, %v1165_v10  ;;  %v1224_v14 = vpop.f32.mrb[1].mxu1  ;;  %v1168_v15 = vpop.f32.mrb[2].mxu0 }
  0xf9   :  { %v1225_v16 = vadd.f32 %v1224_v14, %v1223_v11  ;;  %v1226_v17 = vpop.f32.mrb[2].mxu1  ;;  %v1169_v18 = vpop.f32.mrb[3].mxu0 }
  0xfa   :  { %v1170_v19 = vadd.f32 %v1169_v18, %v1168_v15  ;;  %v1227_v20 = vpop.f32.mrb[3].mxu1 }
  0xfb   :  { %v1228_v21 = vadd.f32 %v1227_v20, %v1226_v17  ;;  %v1670_v22 = vadd.f32 %v1225_v16, %v1167_v13 }
  0xfd   :  { %v1672_v23 = vadd.f32 %v1228_v21, %v1170_v19 }
  0xfe   :  { %v1171_v24 = vpop.f32.mrb[4].mxu0 }
  0xff   :  { %v1229_v25 = vpop.f32.mrb[4].mxu1  ;;  %v1172_v26 = vpop.f32.mrb[5].mxu0 }
 0x100   :  { %v1173_v27 = vadd.f32 %v1172_v26, %v1171_v24  ;;  %v1230_v28 = vpop.f32.mrb[5].mxu1  ;;  %v1174_v29 = vpop.f32.mrb[6].mxu0 }
 0x101   :  { %v1231_v30 = vadd.f32 %v1230_v28, %v1229_v25  ;;  %v1232_v31 = vpop.f32.mrb[6].mxu1  ;;  %v1175_v32 = vpop.f32.mrb[7].mxu0 }
 0x102   :  { %v1176_v33 = vadd.f32 %v1175_v32, %v1174_v29  ;;  %v1233_v34 = vpop.f32.mrb[7].mxu1 }
 0x103   :  { %v1234_v35 = vadd.f32 %v1233_v34, %v1232_v31  ;;  %v1674_v36 = vadd.f32 %v1231_v30, %v1173_v27 }
 0x105   :  { %v1676_v37 = vadd.f32 %v1234_v35, %v1176_v33 }
 0x106   :  { %v1177_v38 = vpop.f32.mrb[8].mxu0 }
 0x107   :  { %v1235_v39 = vpop.f32.mrb[8].mxu1  ;;  %v1178_v40 = vpop.f32.mrb[9].mxu0 }
 0x108   :  { %v1179_v41 = vadd.f32 %v1178_v40, %v1177_v38  ;;  %v1236_v42 = vpop.f32.mrb[9].mxu1  ;;  %v1180_v43 = vpop.f32.mrb[10].mxu0 }
 0x109   :  { %v1237_v44 = vadd.f32 %v1236_v42, %v1235_v39  ;;  %v1238_v45 = vpop.f32.mrb[10].mxu1  ;;  %v1181_v46 = vpop.f32.mrb[11].mxu0 }
 0x10a   :  { %v1182_v47 = vadd.f32 %v1181_v46, %v1180_v43  ;;  %v1239_v48 = vpop.f32.mrb[11].mxu1 }
 0x10b   :  { %v1240_v49 = vadd.f32 %v1239_v48, %v1238_v45  ;;  %v1678_v50 = vadd.f32 %v1237_v44, %v1179_v41 }
 0x10d   :  { %v1680_v51 = vadd.f32 %v1240_v49, %v1182_v47 }
 0x10e   :  { %v1183_v52 = vpop.f32.mrb[12].mxu0 }
 0x10f   :  { %v1241_v53 = vpop.f32.mrb[12].mxu1  ;;  %v1184_v54 = vpop.f32.mrb[13].mxu0 }
 0x110   :  { %v1185_v55 = vadd.f32 %v1184_v54, %v1183_v52  ;;  %v1242_v56 = vpop.f32.mrb[13].mxu1  ;;  %v1186_v57 = vpop.f32.mrb[14].mxu0 }
 0x111   :  { %v1243_v58 = vadd.f32 %v1242_v56, %v1241_v53  ;;  %v1244_v59 = vpop.f32.mrb[14].mxu1  ;;  %v1187_v60 = vpop.f32.mrb[15].mxu0 }
 0x112   :  { %v1188_v61 = vadd.f32 %v1187_v60, %v1186_v57  ;;  %v1245_v62 = vpop.f32.mrb[15].mxu1 }
 0x113   :  { %v1246_v63 = vadd.f32 %v1245_v62, %v1244_v59  ;;  %v1682_v0 = vadd.f32 %v1243_v58, %v1185_v55 }
 0x115   :  { %v1684_v1 = vadd.f32 %v1246_v63, %v1188_v61 }
 0x116   :  { %v1189_v2 = vpop.f32.mrb[16].mxu0 }
 0x117   :  { %v1247_v3 = vpop.f32.mrb[16].mxu1  ;;  %v1190_v4 = vpop.f32.mrb[17].mxu0 }
 0x118   :  { %v1191_v5 = vadd.f32 %v1190_v4, %v1189_v2  ;;  %v1248_v6 = vpop.f32.mrb[17].mxu1  ;;  %v1192_v7 = vpop.f32.mrb[18].mxu0 }
 0x119   :  { %v1249_v8 = vadd.f32 %v1248_v6, %v1247_v3  ;;  %v1250_v9 = vpop.f32.mrb[18].mxu1  ;;  %v1193_v10 = vpop.f32.mrb[19].mxu0 }
 0x11a   :  { %v1194_v11 = vadd.f32 %v1193_v10, %v1192_v7  ;;  %v1251_v12 = vpop.f32.mrb[19].mxu1 }
 0x11b   :  { %v1252_v13 = vadd.f32 %v1251_v12, %v1250_v9  ;;  %v689_v14 = vadd.f32 %v1249_v8, %v1191_v5 }
 0x11d   :  { %v692_v15 = vadd.f32 %v1252_v13, %v1194_v11 }
 0x11e   :  { %v1195_v16 = vpop.f32.mrb[20].mxu0 }
 0x11f   :  { %v1253_v17 = vpop.f32.mrb[20].mxu1  ;;  %v1196_v18 = vpop.f32.mrb[21].mxu0 }
 0x120   :  { %v1197_v19 = vadd.f32 %v1196_v18, %v1195_v16  ;;  %v1254_v20 = vpop.f32.mrb[21].mxu1  ;;  %v1198_v21 = vpop.f32.mrb[22].mxu0 }
 0x121   :  { %v1255_v24 = vadd.f32 %v1254_v20, %v1253_v17  ;;  %v1256_v25 = vpop.f32.mrb[22].mxu1  ;;  %v1199_v26 = vpop.f32.mrb[23].mxu0 }
 0x122   :  { %v1200_v27 = vadd.f32 %v1199_v26, %v1198_v21  ;;  %v1257_v28 = vpop.f32.mrb[23].mxu1 }
 0x123   :  { %v1258_v29 = vadd.f32 %v1257_v28, %v1256_v25  ;;  %v697_v30 = vadd.f32 %v1255_v24, %v1197_v19 }
 0x125   :  { %v700_v31 = vadd.f32 %v1258_v29, %v1200_v27 }
 0x126   :  { %v1201_v32 = vpop.f32.mrb[24].mxu0 }
 0x127   :  { %v1259_v33 = vpop.f32.mrb[24].mxu1  ;;  %v1202_v34 = vpop.f32.mrb[25].mxu0 }
 0x128   :  { %v1203_v35 = vadd.f32 %v1202_v34, %v1201_v32  ;;  %v1260_v38 = vpop.f32.mrb[25].mxu1  ;;  %v1204_v39 = vpop.f32.mrb[26].mxu0 }
 0x129   :  { %v1261_v40 = vadd.f32 %v1260_v38, %v1259_v33  ;;  %v1205_v41 = vpop.f32.mrb[27].mxu0  ;;  %v1262_v42 = vpop.f32.mrb[26].mxu1 }
 0x12a   :  { %v1263_v43 = vpop.f32.mrb[27].mxu1 }
 0x12b   :  { %v705_v44 = vadd.f32 %v1261_v40, %v1203_v35 }
 0x12e   :  { %v744_v45 = vpop.f32.mrb[28].mxu0 }
 0x12f   :  { %v1687_v46 = vadd.f32 %v744_v45, %v1670_v22  ;;  %v776_v47 = vpop.f32.mrb[28].mxu1  ;;  %v1286_v48 = vpop.f32.mrb[29].mxu0 }
 0x130   :  { %v1689_v49 = vadd.f32 %v776_v47, %v689_v14  ;;  %v1302_v52 = vpop.f32.mrb[29].mxu1  ;;  %v747_v53 = vpop.f32.mrb[30].mxu0 }
 0x131   :  { %v1692_v54 = vadd.f32 %v747_v53, %v1672_v23  ;;  %v779_v55 = vpop.f32.mrb[30].mxu1  ;;  %v1287_v56 = vpop.f32.mrb[31].mxu0  ;;  %v798_v59 = vsel %vm512_vm1, %v1687_v46, 0.0 }
 0x132   :  { %v1694_v57 = vadd.f32 %v779_v55, %v692_v15  ;;  %v1303_v58 = vpop.f32.mrb[31].mxu1  ;;  %v813_v39 = vsel %vm512_vm1, %v1689_v49, 0.0 }
 0x133   :  { %v799_v22 = vsel %vm512_vm1, %v1692_v54, 0.0 }
 0x134   :  { %v800_v60 = vadd.f32 %v799_v22, %v798_v59  ;;  %v815_v41 = vsel %vm512_vm1, %v1694_v57, 0.0 }
 0x136   :  { %v752_v61 = vpop.f32.mrb[32].mxu0 }
 0x137   :  { %v753_v62 = vadd.f32 %v752_v61, %v1674_v36  ;;  %v784_v63 = vpop.f32.mrb[32].mxu1  ;;  %v1290_v2 = vpop.f32.mrb[33].mxu0 }
 0x138   :  { %v1701_v3 = vadd.f32 %v784_v63, %v697_v30  ;;  %v1306_v23 = vpop.f32.mrb[33].mxu1  ;;  %v755_v4 = vpop.f32.mrb[34].mxu0 }
 0x139   :  { %v801_v5 = vsel %vm512_vm1, %v753_v62, 0.0  ;;  %v756_v6 = vadd.f32 %v755_v4, %v1676_v37  ;;  %v787_v7 = vpop.f32.mrb[34].mxu1  ;;  %v1291_v8 = vpop.f32.mrb[35].mxu0 }
 0x13a   :  { %v802_v9 = vadd.f32 %v801_v5, %v800_v60  ;;  %v788_v10 = vadd.f32 %v787_v7, %v700_v31  ;;  %v1307_v11 = vpop.f32.mrb[35].mxu1 }
 0x13b   :  { %v803_v12 = vsel %vm512_vm1, %v756_v6, 0.0 }
 0x13c   :  { %v804_v13 = vadd.f32 %v803_v12, %v802_v9 }
 0x13e   :  { %v760_v14 = vpop.f32.mrb[36].mxu0 }
 0x13f   :  { %v761_v36 = vadd.f32 %v760_v14, %v1678_v50  ;;  %v792_v15 = vpop.f32.mrb[36].mxu1  ;;  %v1294_v16 = vpop.f32.mrb[37].mxu0 }
 0x140   :  { %v793_v17 = vadd.f32 %v792_v15, %v705_v44  ;;  %v763_v18 = vpop.f32.mrb[38].mxu0  ;;  %v1310_v19 = vpop.f32.mrb[37].mxu1 }
 0x141   :  { %v805_v20 = vsel %vm512_vm1, %v761_v36, 0.0  ;;  %v764_v37 = vadd.f32 %v763_v18, %v1680_v51  ;;  %v1295_v21 = vpop.f32.mrb[39].mxu0  ;;  %v795_v24 = vpop.f32.mrb[38].mxu1 }
 0x142   :  { %v806_v25 = vadd.f32 %v805_v20, %v804_v13  ;;  %v1311_v26 = vpop.f32.mrb[39].mxu1  ;;  %v822_v45 = vsel %vm821_vm2, %v793_v17, 0.0 }
 0x143   :  { %v807_v27 = vsel %vm512_vm1, %v764_v37, 0.0 }
 0x144   :  { %v808_v28 = vadd.f32 %v807_v27, %v806_v25 }
 0x146   :  { %v768_v29 = vpop.f32.mrb[40].mxu0 }
 0x147   :  { %v769_v30 = vadd.f32 %v768_v29, %v1682_v0  ;;  %v1298_v50 = vpop.f32.mrb[41].mxu0  ;;  %v817_v0 = vsel %vm512_vm1, %v1701_v3, 0.0 }
 0x148   :  { %v771_v31 = vpop.f32.mrb[42].mxu0 }
 0x149   :  { %v809_v32 = vsel %vm512_vm1, %v769_v30, 0.0  ;;  %v772_v33 = vadd.f32 %v771_v31, %v1684_v1  ;;  %v1299_v34 = vpop.f32.mrb[43].mxu0  ;;  %v819_v1 = vsel %vm512_vm1, %v788_v10, 0.0 }
 0x14a   :  { %v810_v35 = vadd.f32 %v809_v32, %v808_v28 }
 0x14b   :  { %v811_v51 = vsel %vm512_vm1, %v772_v33, 0.0 }
 0x14c   :  { %v812_v38 = vadd.f32 %v811_v51, %v810_v35 }
 0x14e   :  { %v814_v40 = vadd.f32 %v813_v39, %v812_v38 }
 0x150   :  { %v816_v42 = vadd.f32 %v815_v41, %v814_v40 }
 0x152   :  { %v818_v43 = vadd.f32 %v817_v0, %v816_v42 }
 0x154   :  { %v820_v44 = vadd.f32 %v819_v1, %v818_v43 }
 0x156   :  { %v823_v47 = vadd.f32 %v822_v45, %v820_v44 }
 0x158   :  { %v824_v48 = vrot.slane %v823_v47, 4 }
 0x15a   :  { %v825_v52 = vadd.f32 %v824_v48, %v823_v47 }
 0x15c   :  { %v826_v53 = vrot.slane %v825_v52, 2 }
 0x15e   :  { %v827_v55 = vadd.f32 %v826_v53, %v825_v52  ;;  %v895_v53 = vlaneseq }
 0x160   :  { %v828_v56 = vrot.slane %v827_v55, 1 }
 0x162   :  { %v829_v58 = vadd.f32 %v828_v56, %v827_v55  ;;  %v896_v55 = vshrl.u32 %v895_v53, 7  ;;  %v890_v56 = vld [vmem:[%s1878_s2] sm:$0x1] }
 0x164   :  { %v831_v59 = vmul.f32 0.010204081, %v829_v58  ;;  %v897_v58 = vsub.s32 0, %v896_v55 }
 0x166   :  { %v1723_v22 = vsub.f32 %v1687_v46, %v831_v59  ;;  %v1726_v60 = vsub.f32 %v1692_v54, %v831_v59  ;;  %v1728_v61 = vsub.f32 %v753_v62, %v831_v59  ;;  %v1730_v63 = vsub.f32 %v756_v6, %v831_v59 }
 0x167   :  { %v1732_v2 = vsub.f32 %v761_v36, %v831_v59  ;;  %v1734_v23 = vsub.f32 %v764_v37, %v831_v59  ;;  %v1736_v4 = vsub.f32 %v769_v30, %v831_v59  ;;  %v1738_v5 = vsub.f32 %v772_v33, %v831_v59 }
 0x168   :  { %v1741_v7 = vsub.f32 %v1689_v49, %v831_v59  ;;  %v1744_v46 = vsub.f32 %v1694_v57, %v831_v59  ;;  %v1747_v54 = vsub.f32 %v1701_v3, %v831_v59  ;;  %v1749_v62 = vsub.f32 %v788_v10, %v831_v59 }
 0x169   :  { %v1751_v6 = vsub.f32 %v793_v17, %v831_v59  ;;  %v845_v8 = vmul.f32 %v1723_v22, %v1723_v22  ;;  %v846_v9 = vmul.f32 %v1726_v60, %v1726_v60  ;;  %v847_v49 = vmul.f32 %v1728_v61, %v1728_v61 }
 0x16a   :  { %v848_v57 = vmul.f32 %v1730_v63, %v1730_v63  ;;  %v849_v12 = vmul.f32 %v1732_v2, %v1732_v2  ;;  %v850_v36 = vmul.f32 %v1734_v23, %v1734_v23  ;;  %v851_v17 = vmul.f32 %v1736_v4, %v1736_v4 }
 0x16b   :  { %v858_v11 = vsel %vm512_vm1, %v845_v8, 0.0  ;;  %v859_v3 = vsel %vm512_vm1, %v846_v9, 0.0  ;;  %v861_v13 = vsel %vm512_vm1, %v847_v49, 0.0  ;;  %v852_v20 = vmul.f32 %v1738_v5, %v1738_v5 }
 0x16c   :  { %v860_v10 = vadd.f32 %v859_v3, %v858_v11  ;;  %v863_v15 = vsel %vm512_vm1, %v848_v57, 0.0  ;;  %v865_v18 = vsel %vm512_vm1, %v849_v12, 0.0  ;;  %v867_v37 = vsel %vm512_vm1, %v850_v36, 0.0 }
 0x16d   :  { %v853_v24 = vmul.f32 %v1741_v7, %v1741_v7  ;;  %v869_v25 = vsel %vm512_vm1, %v851_v17, 0.0  ;;  %v854_v27 = vmul.f32 %v1744_v46, %v1744_v46  ;;  %v871_v28 = vsel %vm512_vm1, %v852_v20, 0.0 }
 0x16e   :  { %v862_v14 = vadd.f32 %v861_v13, %v860_v10  ;;  %v855_v30 = vmul.f32 %v1747_v54, %v1747_v54  ;;  %v856_v32 = vmul.f32 %v1749_v62, %v1749_v62  ;;  %v857_v35 = vmul.f32 %v1751_v6, %v1751_v6  ;;  %v1122_v10 = vld [vmem:[%s1879_s3] ss:$0 sm:$0xff] }
 0x16f   :  { %v873_v50 = vsel %vm512_vm1, %v853_v24, 0.0  ;;  %v875_v33 = vsel %vm512_vm1, %v854_v27, 0.0 }
 0x170   :  { %v864_v16 = vadd.f32 %v863_v15, %v862_v14  ;;  %v877_v51 = vsel %vm512_vm1, %v855_v30, 0.0  ;;  %v879_v39 = vsel %vm512_vm1, %v856_v32, 0.0  ;;  %v881_v41 = vsel %vm821_vm2, %v857_v35, 0.0 }
 0x171   :  { %vm1038_vm1 = vcmask 516096  }
 0x172   :  { %v866_v19 = vadd.f32 %v865_v18, %v864_v16 }
 0x174   :  { %v868_v21 = vadd.f32 %v867_v37, %v866_v19 }
 0x176   :  { %v870_v26 = vadd.f32 %v869_v25, %v868_v21 }
 0x178   :  { %v872_v29 = vadd.f32 %v871_v28, %v870_v26 }
 0x17a   :  { %v874_v31 = vadd.f32 %v873_v50, %v872_v29 }
 0x17c   :  { %v876_v34 = vadd.f32 %v875_v33, %v874_v31 }
 0x17e   :  { %v878_v38 = vadd.f32 %v877_v51, %v876_v34 }
 0x180   :  { %v880_v40 = vadd.f32 %v879_v39, %v878_v38 }
 0x182   :  { %v882_v42 = vadd.f32 %v881_v41, %v880_v40 }
 0x184   :  { %v883_v0 = vrot.slane %v882_v42, 4 }
 0x186   :  { %v884_v43 = vadd.f32 %v883_v0, %v882_v42 }
 0x188   :  { %v885_v1 = vrot.slane %v884_v43, 2 }
 0x18a   :  { %v886_v44 = vadd.f32 %v885_v1, %v884_v43 }
 0x18c   :  { %v887_v45 = vrot.slane %v886_v44, 1 }
 0x18e   :  { %v888_v47 = vadd.f32 %v887_v45, %v886_v44 }
 0x190   :  { %v889_v48 = vmul.f32 0.010204081, %v888_v47 }
 0x192   :  { %v891_v52 = vadd.f32 1e-05, %v889_v48 }
 0x194   :  { %1405 = vrsqrt.f32 %v891_v52 }
 0x19e   :  { %v1406_v59 = vpop.eup %1405 }
 0x19f   :  { %v893_v8 = vmul.f32 %v1406_v59, %v890_v56 }
 0x1a1   :  { %v898_v9 = vrot.slane %v893_v8, %v897_v58 }
 0x1a3   :  { %v900_v49 = vmul.f32 %v898_v9, %v1723_v22  ;;  %v901_v57 = vmul.f32 %v898_v9, %v1726_v60  ;;  %v902_v11 = vmul.f32 %v898_v9, %v1728_v61  ;;  %v903_v3 = vmul.f32 %v898_v9, %v1730_v63 }
 0x1a4   :  { %v904_v12 = vmul.f32 %v898_v9, %v1732_v2  ;;  %v905_v13 = vmul.f32 %v898_v9, %v1734_v23  ;;  %v906_v14 = vmul.f32 %v898_v9, %v1736_v4  ;;  %v907_v36 = vmul.f32 %v898_v9, %v1738_v5 }
 0x1a5   :  { %v908_v22 = vmul.f32 %v898_v9, %v1741_v7  ;;  %v909_v60 = vmul.f32 %v898_v9, %v1744_v46  ;;  %v910_v61 = vmul.f32 %v898_v9, %v1747_v54  ;;  %v911_v63 = vmul.f32 %v898_v9, %v1749_v62 }
 0x1a6   :  { %v912_v15 = vmul.f32 %v898_v9, %v1751_v6  ;;  %v920_v16 = vadd.f32 %v1122_v10, %v900_v49  ;;  %v921_v17 = vadd.f32 %v1122_v10, %v901_v57  ;;  %v922_v18 = vadd.f32 %v1122_v10, %v902_v11 }
 0x1a7   :  { %v923_v2 = vadd.f32 %v1122_v10, %v903_v3  ;;  %v924_v19 = vadd.f32 %v1122_v10, %v904_v12  ;;  %v925_v23 = vadd.f32 %v1122_v10, %v905_v13  ;;  %v926_v20 = vadd.f32 %v1122_v10, %v906_v14 }
 0x1a8   :  { %v927_v4 = vadd.f32 %v1122_v10, %v907_v36  ;;  %v928_v37 = vadd.f32 %v1122_v10, %v908_v22  ;;  %v929_v5 = vadd.f32 %v1122_v10, %v909_v60  ;;  %v930_v21 = vadd.f32 %v1122_v10, %v910_v61 }
 0x1a9   :  { %v931_v7 = vadd.f32 %v1122_v10, %v911_v63  ;;  %v932_v24 = vadd.f32 %v1122_v10, %v912_v15  ;;  %vm933_vm3 = vcmp.gt.f32.partialorder %v920_v16, 0.0  ;;  %vm934_vm4 = vcmp.gt.f32.partialorder %v921_v17, 0.0 }
 0x1aa   :  { %vm935_vm5 = vcmp.gt.f32.partialorder %v922_v18, 0.0  ;;  %vm936_vm6 = vcmp.gt.f32.partialorder %v923_v2, 0.0  ;;  %vm937_vm7 = vcmp.gt.f32.partialorder %v924_v19, 0.0  ;;  %vm938_vm8 = vcmp.gt.f32.partialorder %v925_v23, 0.0 }
 0x1ab   :  { %vm939_vm10 = vcmp.gt.f32.partialorder %v926_v20, 0.0  ;;  %vm940_vm11 = vcmp.gt.f32.partialorder %v927_v4, 0.0  ;;  %vm941_vm12 = vcmp.gt.f32.partialorder %v928_v37, 0.0  ;;  %vm942_vm13 = vcmp.gt.f32.partialorder %v929_v5, 0.0 }
 0x1ac   :  { %vm943_vm14 = vcmp.gt.f32.partialorder %v930_v21, 0.0  ;;  %vm944_vm15 = vcmp.gt.f32.partialorder %v931_v7, 0.0  ;;  %vm945_vm0 = vcmp.gt.f32.partialorder %v932_v24, 0.0  ;;  %v946_v46 = vmul.f32 0.01, %v920_v16 }
 0x1ad   :  { %v947_v54 = vmul.f32 0.01, %v921_v17  ;;  %v948_v62 = vmul.f32 0.01, %v922_v18  ;;  %v949_v6 = vmul.f32 0.01, %v923_v2 }
 0x1ae   :  { %v950_v25 = vmul.f32 0.01, %v924_v19  ;;  %v951_v26 = vmul.f32 0.01, %v925_v23  ;;  %v952_v27 = vmul.f32 0.01, %v926_v20  ;;  %v959_v28 = vsel %vm933_vm3, %v920_v16, %v946_v46 }
 0x1af   :  { %v953_v29 = vmul.f32 0.01, %v927_v4  ;;  %v954_v30 = vmul.f32 0.01, %v928_v37  ;;  %v955_v50 = vmul.f32 0.01, %v929_v5  ;;  %v960_v31 = vsel %vm934_vm4, %v921_v17, %v947_v54 }
 0x1b0   :  { %v956_v32 = vmul.f32 0.01, %v930_v21  ;;  %v957_v33 = vmul.f32 0.01, %v931_v7  ;;  %v958_v34 = vmul.f32 0.01, %v932_v24  ;;  %v961_v35 = vsel %vm935_vm5, %v922_v18, %v948_v62 }
 0x1b1   :  { %v962_v51 = vsel %vm936_vm6, %v923_v2, %v949_v6  ;;  %v963_v38 = vsel %vm937_vm7, %v924_v19, %v950_v25  ;;  %v964_v39 = vsel %vm938_vm8, %v925_v23, %v951_v26  ;;  %v965_v40 = vsel %vm939_vm10, %v926_v20, %v952_v27 }
 0x1b2   :  { %v966_v41 = vsel %vm940_vm11, %v927_v4, %v953_v29  ;;  %v967_v42 = vsel %vm941_vm12, %v928_v37, %v954_v30  ;;  %v968_v0 = vsel %vm942_vm13, %v929_v5, %v955_v50  ;;  %v969_v43 = vsel %vm943_vm14, %v930_v21, %v956_v32 }
 0x1b3   :  { %v970_v1 = vsel %vm944_vm15, %v931_v7, %v957_v33  ;;  %v971_v44 = vsel %vm945_vm0, %v932_v24, %v958_v34  ;;  %v1136_v45 = vpack.c.bf16 %v959_v28, %v959_v28  ;;  %v1137_v47 = vpack.c.bf16 %v960_v31, %v960_v31 }
 0x1b4   :  { %v1138_v48 = vpack.c.bf16 %v961_v35, %v961_v35  ;;  %v1139_v52 = vpack.c.bf16 %v962_v51, %v962_v51  ;;  %v1140_v53 = vpack.c.bf16 %v963_v38, %v963_v38  ;;  %v1141_v55 = vpack.c.bf16 %v964_v39, %v964_v39 }
 0x1b5   :  { %v1142_v56 = vpack.c.bf16 %v965_v40, %v965_v40  ;;  %v1143_v58 = vpack.c.bf16 %v966_v41, %v966_v41  ;;  %v1144_v59 = vpack.c.bf16 %v967_v42, %v967_v42  ;;  %v1145_v8 = vpack.c.bf16 %v968_v0, %v968_v0  ;;  %1026 = vst.msk [vmem:[%s1880_s4] sm:$0xf] %vm1025_vm9, %v1136_v45 }
 0x1b6   :  { %1027 = vst.msk [vmem:[%s1880_s4 + $0x4] sm:$0xf] %vm1025_vm9, %v1137_v47  ;;  %v1146_v9 = vpack.c.bf16 %v969_v43, %v969_v43  ;;  %v1147_v49 = vpack.c.bf16 %v970_v1, %v970_v1  ;;  %v1148_v57 = vpack.c.bf16 %v971_v44, %v971_v44  ;;  %1028 = vst.msk [vmem:[%s1880_s4 + $0x8] sm:$0xf] %vm1025_vm9, %v1138_v48 }
 0x1b7   :  { %1029 = vst.msk [vmem:[%s1880_s4 + $0xc] sm:$0xf] %vm1025_vm9, %v1139_v52  ;;  %1030 = vst.msk [vmem:[%s1880_s4 + $0x10] sm:$0xf] %vm1025_vm9, %v1140_v53 }
 0x1b8   :  { %1031 = vst.msk [vmem:[%s1880_s4 + $0x14] sm:$0xf] %vm1025_vm9, %v1141_v55  ;;  %1032 = vst.msk [vmem:[%s1880_s4 + $0x18] sm:$0xf] %vm1025_vm9, %v1142_v56 }
 0x1b9   :  { %1033 = vst.msk [vmem:[%s1880_s4 + $0x1c] sm:$0xf] %vm1025_vm9, %v1143_v58  ;;  %1034 = vst.msk [vmem:[%s1880_s4 + $0x20] sm:$0xf] %vm1025_vm9, %v1144_v59 }
 0x1ba   :  { %1035 = vst.msk [vmem:[%s1880_s4 + $0x24] sm:$0xf] %vm1025_vm9, %v1145_v8  ;;  %1036 = vst.msk [vmem:[%s1880_s4 + $0x28] sm:$0xf] %vm1025_vm9, %v1146_v9 }
 0x1bb   :  { %1037 = vst.msk [vmem:[%s1880_s4 + $0x2c] sm:$0xf] %vm1025_vm9, %v1147_v49 }
 0x1bc   :  { %1039 = vst.msk [vmem:[%s1880_s4 + $0x30] sm:$0x1] %vm1038_vm1, %v1148_v57 }

// kernel: dqnet_forward.7
= control target key start
LH: loop header
LB: loop body
LE: loop exit
PB: predicated region body
PF: predicated region fallthrough
CT: control target
= control target key end

     0   :  { %v426_v36 = vlaneseq  ;;  %v4632_v37 = vmov 1966171168   ;;  %s6072_s0 = inlined_call_operand.vmem [shape: bf16[2,3136], index: 0, kind: input, shape index: {}]   ;;  %s6073_s1 = inlined_call_operand.vmem [shape: bf16[3136,256], index: 1, kind: input, shape index: {}]   ;;  %s6074_s2 = inlined_call_operand.vmem [shape: f32[1,256], index: 2, kind: input, shape index: {}]   ;;  %s6075_s3 = inlined_call_operand.vmem [shape: bf16[256,128], index: 3, kind: input, shape index: {}]   ;;  %s6076_s4 = inlined_call_operand.vmem [shape: f32[1,128], index: 4, kind: input, shape index: {}]   ;;  %s6077_s5 = inlined_call_operand.vmem [shape: bf16[128,7], index: 5, kind: input, shape index: {}]   ;;  %s6078_s6 = inlined_call_operand.vmem [shape: f32[1,7], index: 6, kind: input, shape index: {}]   ;;  %s6079_s7 = inlined_call_operand.hbm [shape: f32[2,6], index: 7, kind: output, shape index: {}]  }
   0x1   :  { %v3991_v0 = vld [vmem:[%s6073_s1 + $0x4] ss:$8 sps:$4 sm:$0xff]   ;;  %v3995_v2 = vld [vmem:[%s6073_s1] ss:$8 sps:$4 sm:$0xff]   ;;  %v3997_v4 = vld [vmem:[%s6073_s1 + $0x14] ss:$8 sps:$4 sm:$0xff]   ;;  %v442_v38 = vunpack.c.l.s4 %v4632_v37 }
   0x2   :  { %v3993_v1 = vld [vmem:[%s6073_s1 + $0x604] ss:$8 sps:$4 sm:$0xff]   ;;  %2589 = vmatprep.subr.bf16.mxu1 %v3991_v0  ;;  %v3996_v3 = vld [vmem:[%s6073_s1 + $0x600] ss:$8 sps:$4 sm:$0xff]   ;;  %v3999_v5 = vld [vmem:[%s6073_s1 + $0x614] ss:$8 sps:$4 sm:$0xff]  }
   0x3   :  { %2835 = vmatprep.subr.bf16.mxu0 %v3993_v1  ;;  %2590 = vmatpush1.bf16.msra.mxu1 %v3995_v2  ;;  %v4001_v6 = vld [vmem:[%s6073_s1 + $0x10] ss:$8 sps:$4 sm:$0xff]   ;;  %v4003_v8 = vld [vmem:[%s6073_s1 + $0x24] ss:$8 sps:$4 sm:$0xff]   ;;  %v4007_v10 = vld [vmem:[%s6073_s1 + $0x20] ss:$8 sps:$4 sm:$0xff]   ;;  %v443_v43 = vunpack.c.0.s8 %v442_v38 }
   0x4   :  { %2836 = vmatpush1.bf16.msra.mxu0 %v3996_v3  ;;  %2591 = vmatprep.subr.bf16.mxu1 %v3997_v4  ;;  %v4002_v7 = vld [vmem:[%s6073_s1 + $0x610] ss:$8 sps:$4 sm:$0xff]   ;;  %v4005_v9 = vld [vmem:[%s6073_s1 + $0x624] ss:$8 sps:$4 sm:$0xff]   ;;  %v4008_v11 = vld [vmem:[%s6073_s1 + $0x620] ss:$8 sps:$4 sm:$0xff]  }
   0x5   :  { %2837 = vmatprep.subr.bf16.mxu0 %v3999_v5  ;;  %v4009_v12 = vld [vmem:[%s6073_s1 + $0x34] ss:$8 sps:$4 sm:$0xff]   ;;  %v4013_v14 = vld [vmem:[%s6073_s1 + $0x30] ss:$8 sps:$4 sm:$0xff]   ;;  %v4015_v16 = vld [vmem:[%s6073_s1 + $0x44] ss:$8 sps:$4 sm:$0xff]  }
   0x6   :  { %v4011_v13 = vld [vmem:[%s6073_s1 + $0x634] ss:$8 sps:$4 sm:$0xff]   ;;  %v4014_v15 = vld [vmem:[%s6073_s1 + $0x630] ss:$8 sps:$4 sm:$0xff]   ;;  %v4017_v17 = vld [vmem:[%s6073_s1 + $0x644] ss:$8 sps:$4 sm:$0xff]  }
   0x7   :  { %2592 = vmatpush1.bf16.msra.mxu1 %v4001_v6  ;;  %v4019_v18 = vld [vmem:[%s6073_s1 + $0x40] ss:$8 sps:$4 sm:$0xff]   ;;  %v4021_v20 = vld [vmem:[%s6073_s1 + $0x54] ss:$8 sps:$4 sm:$0xff]   ;;  %v4025_v22 = vld [vmem:[%s6073_s1 + $0x50] ss:$8 sps:$4 sm:$0xff]  }
   0x8   :  { %2838 = vmatpush1.bf16.msra.mxu0 %v4002_v7  ;;  %2593 = vmatprep.subr.bf16.mxu1 %v4003_v8  ;;  %v4020_v19 = vld [vmem:[%s6073_s1 + $0x640] ss:$8 sps:$4 sm:$0xff]   ;;  %v4023_v21 = vld [vmem:[%s6073_s1 + $0x654] ss:$8 sps:$4 sm:$0xff]   ;;  %v4026_v23 = vld [vmem:[%s6073_s1 + $0x650] ss:$8 sps:$4 sm:$0xff]  }
   0x9   :  { %2839 = vmatprep.subr.bf16.mxu0 %v4005_v9  ;;  %v4027_v24 = vld [vmem:[%s6073_s1 + $0x64] ss:$8 sps:$4 sm:$0xff]   ;;  %v4031_v26 = vld [vmem:[%s6073_s1 + $0x60] ss:$8 sps:$4 sm:$0xff]   ;;  %v4033_v28 = vld [vmem:[%s6073_s1 + $0x74] ss:$8 sps:$4 sm:$0xff]  }
   0xa   :  { %v4029_v25 = vld [vmem:[%s6073_s1 + $0x664] ss:$8 sps:$4 sm:$0xff]   ;;  %v4032_v27 = vld [vmem:[%s6073_s1 + $0x660] ss:$8 sps:$4 sm:$0xff]   ;;  %v4035_v29 = vld [vmem:[%s6073_s1 + $0x674] ss:$8 sps:$4 sm:$0xff]  }
   0xb   :  { %2594 = vmatpush1.bf16.msra.mxu1 %v4007_v10  ;;  %v4037_v30 = vld [vmem:[%s6073_s1 + $0x70] ss:$8 sps:$4 sm:$0xff]   ;;  %v4039_v32 = vld [vmem:[%s6073_s1 + $0x84] ss:$8 sps:$4 sm:$0xff]   ;;  %v4043_v34 = vld [vmem:[%s6073_s1 + $0x80] ss:$8 sps:$4 sm:$0xff]  }
   0xc   :  { %2840 = vmatpush1.bf16.msra.mxu0 %v4008_v11  ;;  %2595 = vmatprep.subr.bf16.mxu1 %v4009_v12  ;;  %v4038_v31 = vld [vmem:[%s6073_s1 + $0x670] ss:$8 sps:$4 sm:$0xff]   ;;  %v4041_v33 = vld [vmem:[%s6073_s1 + $0x684] ss:$8 sps:$4 sm:$0xff]   ;;  %v4044_v35 = vld [vmem:[%s6073_s1 + $0x680] ss:$8 sps:$4 sm:$0xff]  }
   0xd   :  { %2841 = vmatprep.subr.bf16.mxu0 %v4011_v13  ;;  %v4045_v39 = vld [vmem:[%s6073_s1 + $0x94] ss:$8 sps:$4 sm:$0xff]   ;;  %v4049_v41 = vld [vmem:[%s6073_s1 + $0x90] ss:$8 sps:$4 sm:$0xff]   ;;  %v4795_v42 = vshrl.u32 %v426_v36, 7  ;;  %v4824_v52 = vld [vmem:[%s6072_s0] sm:$0xff] }
   0xe   :  { %v4047_v40 = vld [vmem:[%s6073_s1 + $0x694] ss:$8 sps:$4 sm:$0xff]   ;;  %v4050_v44 = vld [vmem:[%s6073_s1 + $0x690] ss:$8 sps:$4 sm:$0xff]   ;;  %v4051_v45 = vld [vmem:[%s6073_s1 + $0xa4] ss:$8 sps:$4 sm:$0xff]  }
   0xf   :  { %2596 = vmatpush1.bf16.msra.mxu1 %v4013_v14  ;;  %v4053_v46 = vld [vmem:[%s6073_s1 + $0x6a4] ss:$8 sps:$4 sm:$0xff]   ;;  %v4055_v47 = vld [vmem:[%s6073_s1 + $0xa0] ss:$8 sps:$4 sm:$0xff]   ;;  %v4813_v49 = vsub.s32 %v443_v43, %v4795_v42  ;;  %v4057_v50 = vld [vmem:[%s6073_s1 + $0xb4] ss:$8 sps:$4 sm:$0xff]  }
  0x10   :  { %2842 = vmatpush1.bf16.msra.mxu0 %v4014_v15  ;;  %2597 = vmatprep.subr.bf16.mxu1 %v4015_v16  ;;  %v4056_v48 = vld [vmem:[%s6073_s1 + $0x6a0] ss:$8 sps:$4 sm:$0xff]   ;;  %v4059_v51 = vld [vmem:[%s6073_s1 + $0x6b4] ss:$8 sps:$4 sm:$0xff]   ;;  %v4061_v53 = vld [vmem:[%s6073_s1 + $0xb0] ss:$8 sps:$4 sm:$0xff]  }
  0x11   :  { %2843 = vmatprep.subr.bf16.mxu0 %v4017_v17  ;;  %v447_v54 = vrot.slane %v4824_v52, %v4813_v49  ;;  %v4062_v55 = vld [vmem:[%s6073_s1 + $0x6b0] ss:$8 sps:$4 sm:$0xff]   ;;  %v29_v56 = vld [vmem:[%s6072_s0 + $0x8] sm:$0xff]  ;;  %v4069_v1 = vld [vmem:[%s6073_s1 + $0xd4] ss:$8 sps:$4 sm:$0xff]  }
  0x12   :  { %v4063_v57 = vld [vmem:[%s6073_s1 + $0xc4] ss:$8 sps:$4 sm:$0xff]   ;;  %v489_v60 = vcombine.high %v29_v56, %v29_v56  ;;  %v4067_v63 = vld [vmem:[%s6073_s1 + $0xc0] ss:$8 sps:$4 sm:$0xff]   ;;  %v4071_v2 = vld [vmem:[%s6073_s1 + $0x6d4] ss:$8 sps:$4 sm:$0xff]  }
  0x13   :  { %2598 = vmatpush1.bf16.msra.mxu1 %v4019_v18  ;;  %v4065_v58 = vld [vmem:[%s6073_s1 + $0x6c4] ss:$8 sps:$4 sm:$0xff]   ;;  %v455_v59 = vcombine.high %v447_v54, %v447_v54  ;;  %v4068_v0 = vld [vmem:[%s6073_s1 + $0x6c0] ss:$8 sps:$4 sm:$0xff]   ;;  %v4073_v5 = vld [vmem:[%s6073_s1 + $0xd0] ss:$8 sps:$4 sm:$0xff]   ;;  %v4895_v17 = vrot.slane %v447_v54, %v4813_v49 }
  0x14   :  { %2844 = vmatpush1.bf16.msra.mxu0 %v4020_v19  ;;  %2599 = vmatprep.subr.bf16.mxu1 %v4021_v20  ;;  %v503_v62 = vrot.slane %v489_v60, %v4813_v49  ;;  %v4074_v6 = vld [vmem:[%s6073_s1 + $0x6d0] ss:$8 sps:$4 sm:$0xff]   ;;  %v4075_v7 = vld [vmem:[%s6073_s1 + $0xe4] ss:$8 sps:$4 sm:$0xff]   ;;  %v4079_v9 = vld [vmem:[%s6073_s1 + $0xe0] ss:$8 sps:$4 sm:$0xff]  }
  0x15   :  { %2845 = vmatprep.subr.bf16.mxu0 %v4023_v21  ;;  %v477_v61 = vrot.slane %v455_v59, %v4813_v49  ;;  %v4077_v8 = vld [vmem:[%s6073_s1 + $0x6e4] ss:$8 sps:$4 sm:$0xff]   ;;  %v4080_v10 = vld [vmem:[%s6073_s1 + $0x6e0] ss:$8 sps:$4 sm:$0xff]   ;;  %v4081_v11 = vld [vmem:[%s6073_s1 + $0xf4] ss:$8 sps:$4 sm:$0xff]  }
  0x16   :  { %v505_v3 = vcombine.high %v503_v62, %v503_v62  ;;  %v4083_v12 = vld [vmem:[%s6073_s1 + $0x6f4] ss:$8 sps:$4 sm:$0xff]   ;;  %v4085_v13 = vld [vmem:[%s6073_s1 + $0xf0] ss:$8 sps:$4 sm:$0xff]   ;;  %v4090_v15 = vld [vmem:[%s6073_s1 + $0x104] ss:$8 sps:$4 sm:$0xff]   ;;  %v4898_v18 = vrot.slane %v503_v62, %v4813_v49 }
  0x17   :  { %2600 = vmatpush1.bf16.msra.mxu1 %v4025_v22  ;;  %2621 = vmatprep.mubr.bf16.mxu1 %v477_v61  ;;  %v4086_v14 = vld [vmem:[%s6073_s1 + $0x6f0] ss:$8 sps:$4 sm:$0xff]   ;;  %v4094_v16 = vld [vmem:[%s6073_s1 + $0x704] ss:$8 sps:$4 sm:$0xff]   ;;  %v4088_v19 = vld [vmem:[%s6073_s1 + $0x100] ss:$8 sps:$4 sm:$0xff]  }
  0x18   :  { %2846 = vmatpush1.bf16.msra.mxu0 %v4026_v23  ;;  %2601 = vmatprep.subr.bf16.mxu1 %v4027_v24  ;;  %v533_v4 = vrot.slane %v505_v3, %v4813_v49  ;;  %v4092_v20 = vld [vmem:[%s6073_s1 + $0x700] ss:$8 sps:$4 sm:$0xff]   ;;  %v4097_v21 = vld [vmem:[%s6073_s1 + $0x114] ss:$8 sps:$4 sm:$0xff]   ;;  %v487_v23 = vcombine.high %v477_v61, %v477_v61  ;;  %v4118_v36 = vld [vmem:[%s6073_s1 + $0x744] ss:$8 sps:$4 sm:$0xff]  }
  0x19   :  { %2847 = vmatprep.subr.bf16.mxu0 %v4029_v25  ;;  %v4100_v22 = vld [vmem:[%s6073_s1 + $0x714] ss:$8 sps:$4 sm:$0xff]   ;;  %v4095_v25 = vld [vmem:[%s6073_s1 + $0x110] ss:$8 sps:$4 sm:$0xff]   ;;  %v4113_v37 = vld [vmem:[%s6073_s1 + $0x140] ss:$8 sps:$4 sm:$0xff]  }
  0x1a   :  { %2867 = vmatprep.mubr.bf16.mxu0 %v533_v4  ;;  %v537_v24 = vcombine.high %v533_v4, %v533_v4  ;;  %v4116_v38 = vld [vmem:[%s6073_s1 + $0x740] ss:$8 sps:$4 sm:$0xff]   ;;  %v4122_v43 = vld [vmem:[%s6073_s1 + $0x750] ss:$8 sps:$4 sm:$0xff]   ;;  %v4139_v54 = vld [vmem:[%s6073_s1 + $0x184] ss:$8 sps:$4 sm:$0xff]  }
  0x1b   :  { %2602 = vmatpush1.bf16.msra.mxu1 %v4031_v26  ;;  %v4098_v26 = vld [vmem:[%s6073_s1 + $0x710] ss:$8 sps:$4 sm:$0xff]   ;;  %v4137_v56 = vld [vmem:[%s6073_s1 + $0x180] ss:$8 sps:$4 sm:$0xff]   ;;  %v4148_v59 = vld [vmem:[%s6073_s1 + $0x794] ss:$8 sps:$4 sm:$0xff]  }
  0x1c   :  { %2848 = vmatpush1.bf16.msra.mxu0 %v4032_v27  ;;  %2603 = vmatprep.subr.bf16.mxu1 %v4033_v28  ;;  %v4103_v27 = vld [vmem:[%s6073_s1 + $0x124] ss:$8 sps:$4 sm:$0xff]   ;;  %v4143_v60 = vld [vmem:[%s6073_s1 + $0x190] ss:$8 sps:$4 sm:$0xff]   ;;  %v4160_v3 = vld [vmem:[%s6073_s1 + $0x7b4] ss:$8 sps:$4 sm:$0xff]  }
  0x1d   :  { %2849 = vmatprep.subr.bf16.mxu0 %v4035_v29  ;;  %v4106_v28 = vld [vmem:[%s6073_s1 + $0x724] ss:$8 sps:$4 sm:$0xff]   ;;  %v4101_v29 = vld [vmem:[%s6073_s1 + $0x120] ss:$8 sps:$4 sm:$0xff]   ;;  %v4146_v61 = vld [vmem:[%s6073_s1 + $0x790] ss:$8 sps:$4 sm:$0xff]  }
  0x1e   :  { %v4151_v62 = vld [vmem:[%s6073_s1 + $0x1a4] ss:$8 sps:$4 sm:$0xff]   ;;  %v4155_v4 = vld [vmem:[%s6073_s1 + $0x1b0] ss:$8 sps:$4 sm:$0xff]  }
  0x1f   :  { %2604 = vmatpush1.bf16.msra.mxu1 %v4037_v30  ;;  %v4104_v30 = vld [vmem:[%s6073_s1 + $0x720] ss:$8 sps:$4 sm:$0xff]  }
  0x20   :  { %2850 = vmatpush1.bf16.msra.mxu0 %v4038_v31  ;;  %2605 = vmatprep.subr.bf16.mxu1 %v4039_v32  ;;  %v4109_v31 = vld [vmem:[%s6073_s1 + $0x134] ss:$8 sps:$4 sm:$0xff]  }
  0x21   :  { %2851 = vmatprep.subr.bf16.mxu0 %v4041_v33  ;;  %v4112_v32 = vld [vmem:[%s6073_s1 + $0x734] ss:$8 sps:$4 sm:$0xff]   ;;  %v4107_v33 = vld [vmem:[%s6073_s1 + $0x130] ss:$8 sps:$4 sm:$0xff]  }
  0x23   :  { %2606 = vmatpush1.bf16.msra.mxu1 %v4043_v34  ;;  %v4110_v34 = vld [vmem:[%s6073_s1 + $0x730] ss:$8 sps:$4 sm:$0xff]  }
  0x24   :  { %2852 = vmatpush1.bf16.msra.mxu0 %v4044_v35  ;;  %2607 = vmatprep.subr.bf16.mxu1 %v4045_v39  ;;  %v4115_v35 = vld [vmem:[%s6073_s1 + $0x144] ss:$8 sps:$4 sm:$0xff]   ;;  %v4121_v39 = vld [vmem:[%s6073_s1 + $0x154] ss:$8 sps:$4 sm:$0xff]  }
  0x25   :  { %2853 = vmatprep.subr.bf16.mxu0 %v4047_v40  ;;  %v4124_v40 = vld [vmem:[%s6073_s1 + $0x754] ss:$8 sps:$4 sm:$0xff]  }
  0x27   :  { %2608 = vmatpush1.bf16.msra.mxu1 %v4049_v41  ;;  %v4119_v41 = vld [vmem:[%s6073_s1 + $0x150] ss:$8 sps:$4 sm:$0xff]  }
  0x28   :  { %2854 = vmatpush1.bf16.msra.mxu0 %v4050_v44  ;;  %2609 = vmatprep.subr.bf16.mxu1 %v4051_v45  ;;  %v4127_v44 = vld [vmem:[%s6073_s1 + $0x164] ss:$8 sps:$4 sm:$0xff]  }
  0x29   :  { %2855 = vmatprep.subr.bf16.mxu0 %v4053_v46  ;;  %v4130_v45 = vld [vmem:[%s6073_s1 + $0x764] ss:$8 sps:$4 sm:$0xff]   ;;  %v4125_v46 = vld [vmem:[%s6073_s1 + $0x160] ss:$8 sps:$4 sm:$0xff]  }
  0x2b   :  { %2610 = vmatpush1.bf16.msra.mxu1 %v4055_v47  ;;  %v4128_v47 = vld [vmem:[%s6073_s1 + $0x760] ss:$8 sps:$4 sm:$0xff]  }
  0x2c   :  { %2856 = vmatpush1.bf16.msra.mxu0 %v4056_v48  ;;  %2611 = vmatprep.subr.bf16.mxu1 %v4057_v50  ;;  %v4133_v48 = vld [vmem:[%s6073_s1 + $0x174] ss:$8 sps:$4 sm:$0xff]  }
  0x2d   :  { %2857 = vmatprep.subr.bf16.mxu0 %v4059_v51  ;;  %v4136_v50 = vld [vmem:[%s6073_s1 + $0x774] ss:$8 sps:$4 sm:$0xff]   ;;  %v4131_v51 = vld [vmem:[%s6073_s1 + $0x170] ss:$8 sps:$4 sm:$0xff]  }
  0x2f   :  { %2612 = vmatpush1.bf16.msra.mxu1 %v4061_v53  ;;  %v4134_v53 = vld [vmem:[%s6073_s1 + $0x770] ss:$8 sps:$4 sm:$0xff]  }
  0x30   :  { %2858 = vmatpush1.bf16.msra.mxu0 %v4062_v55  ;;  %2613 = vmatprep.subr.bf16.mxu1 %v4063_v57  ;;  %v4142_v55 = vld [vmem:[%s6073_s1 + $0x784] ss:$8 sps:$4 sm:$0xff]   ;;  %v4140_v57 = vld [vmem:[%s6073_s1 + $0x780] ss:$8 sps:$4 sm:$0xff]  }
  0x31   :  { %2859 = vmatprep.subr.bf16.mxu0 %v4065_v58  ;;  %v4145_v58 = vld [vmem:[%s6073_s1 + $0x194] ss:$8 sps:$4 sm:$0xff]  }
  0x33   :  { %2614 = vmatpush1.bf16.msra.mxu1 %v4067_v63  ;;  %v4154_v63 = vld [vmem:[%s6073_s1 + $0x7a4] ss:$8 sps:$4 sm:$0xff]  }
  0x34   :  { %2860 = vmatpush1.bf16.msra.mxu0 %v4068_v0  ;;  %2615 = vmatprep.subr.bf16.mxu1 %v4069_v1  ;;  %v4149_v0 = vld [vmem:[%s6073_s1 + $0x1a0] ss:$8 sps:$4 sm:$0xff]  }
  0x35   :  { %2861 = vmatprep.subr.bf16.mxu0 %v4071_v2  ;;  %v4152_v1 = vld [vmem:[%s6073_s1 + $0x7a0] ss:$8 sps:$4 sm:$0xff]   ;;  %v4157_v2 = vld [vmem:[%s6073_s1 + $0x1b4] ss:$8 sps:$4 sm:$0xff]  }
  0x37   :  { %2616 = vmatpush1.bf16.msra.mxu1 %v4073_v5  ;;  %v4158_v5 = vld [vmem:[%s6073_s1 + $0x7b0] ss:$8 sps:$4 sm:$0xff]  }
  0x38   :  { %2862 = vmatpush1.bf16.msra.mxu0 %v4074_v6  ;;  %2617 = vmatprep.subr.bf16.mxu1 %v4075_v7  ;;  %v4163_v6 = vld [vmem:[%s6073_s1 + $0x1c4] ss:$8 sps:$4 sm:$0xff]  }
  0x39   :  { %2863 = vmatprep.subr.bf16.mxu0 %v4077_v8  ;;  %v4166_v7 = vld [vmem:[%s6073_s1 + $0x7c4] ss:$8 sps:$4 sm:$0xff]   ;;  %v4161_v8 = vld [vmem:[%s6073_s1 + $0x1c0] ss:$8 sps:$4 sm:$0xff]  }
  0x3b   :  { %2618 = vmatpush1.bf16.msra.mxu1 %v4079_v9  ;;  %v4164_v9 = vld [vmem:[%s6073_s1 + $0x7c0] ss:$8 sps:$4 sm:$0xff]  }
  0x3c   :  { %2864 = vmatpush1.bf16.msra.mxu0 %v4080_v10  ;;  %2619 = vmatprep.subr.bf16.mxu1 %v4081_v11  ;;  %v4169_v10 = vld [vmem:[%s6073_s1 + $0x1d4] ss:$8 sps:$4 sm:$0xff]  }
  0x3d   :  { %2865 = vmatprep.subr.bf16.mxu0 %v4083_v12  ;;  %v4172_v11 = vld [vmem:[%s6073_s1 + $0x7d4] ss:$8 sps:$4 sm:$0xff]   ;;  %v4167_v12 = vld [vmem:[%s6073_s1 + $0x1d0] ss:$8 sps:$4 sm:$0xff]  }
  0x3f   :  { %2620 = vmatpush1.bf16.msra.mxu1 %v4085_v13  ;;  %v4170_v13 = vld [vmem:[%s6073_s1 + $0x7d0] ss:$8 sps:$4 sm:$0xff]  }
  0x40   :  { %2866 = vmatpush1.bf16.msra.mxu0 %v4086_v14  ;;  %2630 = vmatprep.subr.bf16.mxu1 %v4090_v15  ;;  %v4175_v14 = vld [vmem:[%s6073_s1 + $0x1e4] ss:$8 sps:$4 sm:$0xff]  }
  0x41   :  { %2876 = vmatprep.subr.bf16.mxu0 %v4094_v16  ;;  %v4178_v15 = vld [vmem:[%s6073_s1 + $0x7e4] ss:$8 sps:$4 sm:$0xff]   ;;  %v440_v16 = vcombine.high %v4824_v52, %v4824_v52  ;;  %v4184_v52 = vld [vmem:[%s6073_s1 + $0x7f4] ss:$8 sps:$4 sm:$0xff]  }
  0x42   :  { %2622 = vmatmul.mubr.bf16.vlgmr.msra.gmra.mrb[0].mxu1 %v4895_v17 }
  0x43   :  { %2868 = vmatmul.mubr.bf16.vlgmr.msra.gmra.mrb[0].mxu0 %v4898_v18  ;;  %2631 = vmatpush1.bf16.msra.mxu1 %v4088_v19  ;;  %v4173_v19 = vld [vmem:[%s6073_s1 + $0x1e0] ss:$8 sps:$4 sm:$0xff]  }
  0x44   :  { %2877 = vmatpush1.bf16.msra.mxu0 %v4092_v20  ;;  %2632 = vmatprep.subr.bf16.mxu1 %v4097_v21  ;;  %v4176_v20 = vld [vmem:[%s6073_s1 + $0x7e0] ss:$8 sps:$4 sm:$0xff]   ;;  %v4181_v21 = vld [vmem:[%s6073_s1 + $0x1f4] ss:$8 sps:$4 sm:$0xff]  }
  0x45   :  { %2878 = vmatprep.subr.bf16.mxu0 %v4100_v22  ;;  %2662 = vmatprep.mubr.bf16.mxu1 %v487_v23  ;;  %v5085_v22 = vrot.slane %v440_v16, %v4813_v49  ;;  %v4179_v23 = vld [vmem:[%s6073_s1 + $0x1f0] ss:$8 sps:$4 sm:$0xff]  }
  0x46   :  { %2908 = vmatprep.mubr.bf16.mxu0 %v537_v24  ;;  %v4182_v24 = vld [vmem:[%s6073_s1 + $0x7f0] ss:$8 sps:$4 sm:$0xff]  }
  0x47   :  { %2633 = vmatpush1.bf16.msra.mxu1 %v4095_v25  ;;  %v4187_v25 = vld [vmem:[%s6073_s1 + $0x204] ss:$8 sps:$4 sm:$0xff]   ;;  %v4251_v16 = vld [vmem:[%s6073_s1 + $0x2b0] ss:$8 sps:$4 sm:$0xff]  }
  0x48   :  { %2879 = vmatpush1.bf16.msra.mxu0 %v4098_v26  ;;  %2634 = vmatprep.subr.bf16.mxu1 %v4103_v27  ;;  %v4190_v26 = vld [vmem:[%s6073_s1 + $0x804] ss:$8 sps:$4 sm:$0xff]   ;;  %v456_v27 = vcombine.high %v5085_v22, %v5085_v22 }
  0x49   :  { %2880 = vmatprep.subr.bf16.mxu0 %v4106_v28  ;;  %v485_v28 = vcombine.high %v4895_v17, %v4895_v17  ;;  %v4196_v17 = vld [vmem:[%s6073_s1 + $0x814] ss:$8 sps:$4 sm:$0xff]  }
  0x4b   :  { %2635 = vmatpush1.bf16.msra.mxu1 %v4101_v29  ;;  %v535_v29 = vcombine.high %v4898_v18, %v4898_v18  ;;  %v5118_v18 = vrot.slane %v456_v27, %v4813_v49  ;;  %v4266_v27 = vld [vmem:[%s6073_s1 + $0x8d0] ss:$8 sps:$4 sm:$0xff]  }
  0x4c   :  { %2881 = vmatpush1.bf16.msra.mxu0 %v4104_v30  ;;  %2636 = vmatprep.subr.bf16.mxu1 %v4109_v31  ;;  %v4185_v30 = vld [vmem:[%s6073_s1 + $0x200] ss:$8 sps:$4 sm:$0xff]  }
  0x4d   :  { %2882 = vmatprep.subr.bf16.mxu0 %v4112_v32  ;;  %v4188_v31 = vld [vmem:[%s6073_s1 + $0x800] ss:$8 sps:$4 sm:$0xff]   ;;  %v4193_v32 = vld [vmem:[%s6073_s1 + $0x214] ss:$8 sps:$4 sm:$0xff]  }
  0x4f   :  { %2637 = vmatpush1.bf16.msra.mxu1 %v4107_v33  ;;  %v5123_v33 = vld [vmem:[%s6072_s0 + $0x10] sm:$0xff] }
  0x50   :  { %2883 = vmatpush1.bf16.msra.mxu0 %v4110_v34  ;;  %2638 = vmatprep.subr.bf16.mxu1 %v4115_v35  ;;  %v4191_v34 = vld [vmem:[%s6073_s1 + $0x210] ss:$8 sps:$4 sm:$0xff]   ;;  %v5130_v35 = vrot.slane %v5123_v33, %v4813_v49 }
  0x51   :  { %2884 = vmatprep.subr.bf16.mxu0 %v4118_v36  ;;  %v4194_v36 = vld [vmem:[%s6073_s1 + $0x810] ss:$8 sps:$4 sm:$0xff]  }
  0x53   :  { %2639 = vmatpush1.bf16.msra.mxu1 %v4113_v37  ;;  %v4199_v37 = vld [vmem:[%s6073_s1 + $0x224] ss:$8 sps:$4 sm:$0xff]  }
  0x54   :  { %2885 = vmatpush1.bf16.msra.mxu0 %v4116_v38  ;;  %2640 = vmatprep.subr.bf16.mxu1 %v4121_v39  ;;  %v4202_v38 = vld [vmem:[%s6073_s1 + $0x824] ss:$8 sps:$4 sm:$0xff]   ;;  %v553_v39 = vcombine.high %v5130_v35, %v5130_v35 }
  0x55   :  { %2886 = vmatprep.subr.bf16.mxu0 %v4124_v40  ;;  %v4197_v40 = vld [vmem:[%s6073_s1 + $0x220] ss:$8 sps:$4 sm:$0xff]  }
  0x57   :  { %2641 = vmatpush1.bf16.msra.mxu1 %v4119_v41  ;;  %v5148_v41 = vrot.slane %v553_v39, %v4813_v49  ;;  %v4281_v39 = vld [vmem:[%s6073_s1 + $0x300] ss:$8 sps:$4 sm:$0xff]  }
  0x58   :  { %2887 = vmatpush1.bf16.msra.mxu0 %v4122_v43  ;;  %2642 = vmatprep.subr.bf16.mxu1 %v4127_v44  ;;  %v4200_v43 = vld [vmem:[%s6073_s1 + $0x820] ss:$8 sps:$4 sm:$0xff]   ;;  %v4205_v44 = vld [vmem:[%s6073_s1 + $0x234] ss:$8 sps:$4 sm:$0xff]  }
  0x59   :  { %2888 = vmatprep.subr.bf16.mxu0 %v4130_v45  ;;  %v4208_v45 = vld [vmem:[%s6073_s1 + $0x834] ss:$8 sps:$4 sm:$0xff]  }
  0x5b   :  { %2643 = vmatpush1.bf16.msra.mxu1 %v4125_v46  ;;  %v4203_v46 = vld [vmem:[%s6073_s1 + $0x230] ss:$8 sps:$4 sm:$0xff]  }
  0x5c   :  { %2889 = vmatpush1.bf16.msra.mxu0 %v4128_v47  ;;  %2644 = vmatprep.subr.bf16.mxu1 %v4133_v48  ;;  %v4206_v47 = vld [vmem:[%s6073_s1 + $0x830] ss:$8 sps:$4 sm:$0xff]   ;;  %v4211_v48 = vld [vmem:[%s6073_s1 + $0x244] ss:$8 sps:$4 sm:$0xff]  }
  0x5d   :  { %2890 = vmatprep.subr.bf16.mxu0 %v4136_v50  ;;  %v4214_v50 = vld [vmem:[%s6073_s1 + $0x844] ss:$8 sps:$4 sm:$0xff]  }
  0x5f   :  { %2645 = vmatpush1.bf16.msra.mxu1 %v4131_v51  ;;  %v4209_v51 = vld [vmem:[%s6073_s1 + $0x240] ss:$8 sps:$4 sm:$0xff]  }
  0x60   :  { %2891 = vmatpush1.bf16.msra.mxu0 %v4134_v53  ;;  %2646 = vmatprep.subr.bf16.mxu1 %v4139_v54  ;;  %v4212_v53 = vld [vmem:[%s6073_s1 + $0x840] ss:$8 sps:$4 sm:$0xff]   ;;  %v4217_v54 = vld [vmem:[%s6073_s1 + $0x254] ss:$8 sps:$4 sm:$0xff]  }
  0x61   :  { %2892 = vmatprep.subr.bf16.mxu0 %v4142_v55  ;;  %v4220_v55 = vld [vmem:[%s6073_s1 + $0x854] ss:$8 sps:$4 sm:$0xff]  }
  0x63   :  { %2647 = vmatpush1.bf16.msra.mxu1 %v4137_v56  ;;  %v4215_v56 = vld [vmem:[%s6073_s1 + $0x250] ss:$8 sps:$4 sm:$0xff]  }
  0x64   :  { %2893 = vmatpush1.bf16.msra.mxu0 %v4140_v57  ;;  %2648 = vmatprep.subr.bf16.mxu1 %v4145_v58  ;;  %v4218_v57 = vld [vmem:[%s6073_s1 + $0x850] ss:$8 sps:$4 sm:$0xff]   ;;  %v4223_v58 = vld [vmem:[%s6073_s1 + $0x264] ss:$8 sps:$4 sm:$0xff]  }
  0x65   :  { %2894 = vmatprep.subr.bf16.mxu0 %v4148_v59  ;;  %v4226_v59 = vld [vmem:[%s6073_s1 + $0x864] ss:$8 sps:$4 sm:$0xff]  }
  0x67   :  { %2649 = vmatpush1.bf16.msra.mxu1 %v4143_v60  ;;  %v4221_v60 = vld [vmem:[%s6073_s1 + $0x260] ss:$8 sps:$4 sm:$0xff]  }
  0x68   :  { %2895 = vmatpush1.bf16.msra.mxu0 %v4146_v61  ;;  %2650 = vmatprep.subr.bf16.mxu1 %v4151_v62  ;;  %v4224_v61 = vld [vmem:[%s6073_s1 + $0x860] ss:$8 sps:$4 sm:$0xff]   ;;  %v4229_v62 = vld [vmem:[%s6073_s1 + $0x274] ss:$8 sps:$4 sm:$0xff]  }
  0x69   :  { %2896 = vmatprep.subr.bf16.mxu0 %v4154_v63  ;;  %v4232_v63 = vld [vmem:[%s6073_s1 + $0x874] ss:$8 sps:$4 sm:$0xff]  }
  0x6b   :  { %2651 = vmatpush1.bf16.msra.mxu1 %v4149_v0  ;;  %v4227_v0 = vld [vmem:[%s6073_s1 + $0x270] ss:$8 sps:$4 sm:$0xff]  }
  0x6c   :  { %2897 = vmatpush1.bf16.msra.mxu0 %v4152_v1  ;;  %2652 = vmatprep.subr.bf16.mxu1 %v4157_v2  ;;  %v4230_v1 = vld [vmem:[%s6073_s1 + $0x870] ss:$8 sps:$4 sm:$0xff]   ;;  %v4235_v2 = vld [vmem:[%s6073_s1 + $0x284] ss:$8 sps:$4 sm:$0xff]  }
  0x6d   :  { %2898 = vmatprep.subr.bf16.mxu0 %v4160_v3  ;;  %v4238_v3 = vld [vmem:[%s6073_s1 + $0x884] ss:$8 sps:$4 sm:$0xff]  }
  0x6f   :  { %2653 = vmatpush1.bf16.msra.mxu1 %v4155_v4  ;;  %v4233_v4 = vld [vmem:[%s6073_s1 + $0x280] ss:$8 sps:$4 sm:$0xff]  }
  0x70   :  { %2899 = vmatpush1.bf16.msra.mxu0 %v4158_v5  ;;  %2654 = vmatprep.subr.bf16.mxu1 %v4163_v6  ;;  %v4236_v5 = vld [vmem:[%s6073_s1 + $0x880] ss:$8 sps:$4 sm:$0xff]   ;;  %v4241_v6 = vld [vmem:[%s6073_s1 + $0x294] ss:$8 sps:$4 sm:$0xff]  }
  0x71   :  { %2900 = vmatprep.subr.bf16.mxu0 %v4166_v7  ;;  %v4244_v7 = vld [vmem:[%s6073_s1 + $0x894] ss:$8 sps:$4 sm:$0xff]  }
  0x73   :  { %2655 = vmatpush1.bf16.msra.mxu1 %v4161_v8  ;;  %v4239_v8 = vld [vmem:[%s6073_s1 + $0x290] ss:$8 sps:$4 sm:$0xff]  }
  0x74   :  { %2901 = vmatpush1.bf16.msra.mxu0 %v4164_v9  ;;  %2656 = vmatprep.subr.bf16.mxu1 %v4169_v10  ;;  %v4242_v9 = vld [vmem:[%s6073_s1 + $0x890] ss:$8 sps:$4 sm:$0xff]   ;;  %v4247_v10 = vld [vmem:[%s6073_s1 + $0x2a4] ss:$8 sps:$4 sm:$0xff]  }
  0x75   :  { %2902 = vmatprep.subr.bf16.mxu0 %v4172_v11  ;;  %v4250_v11 = vld [vmem:[%s6073_s1 + $0x8a4] ss:$8 sps:$4 sm:$0xff]  }
  0x77   :  { %2657 = vmatpush1.bf16.msra.mxu1 %v4167_v12  ;;  %v4245_v12 = vld [vmem:[%s6073_s1 + $0x2a0] ss:$8 sps:$4 sm:$0xff]  }
  0x78   :  { %2903 = vmatpush1.bf16.msra.mxu0 %v4170_v13  ;;  %2658 = vmatprep.subr.bf16.mxu1 %v4175_v14  ;;  %v4248_v13 = vld [vmem:[%s6073_s1 + $0x8a0] ss:$8 sps:$4 sm:$0xff]   ;;  %v4253_v14 = vld [vmem:[%s6073_s1 + $0x2b4] ss:$8 sps:$4 sm:$0xff]  }
  0x79   :  { %2904 = vmatprep.subr.bf16.mxu0 %v4178_v15  ;;  %v4256_v15 = vld [vmem:[%s6073_s1 + $0x8b4] ss:$8 sps:$4 sm:$0xff]  }
  0x7b   :  { %2659 = vmatpush1.bf16.msra.mxu1 %v4173_v19  ;;  %v4254_v19 = vld [vmem:[%s6073_s1 + $0x8b0] ss:$8 sps:$4 sm:$0xff]  }
  0x7c   :  { %2905 = vmatpush1.bf16.msra.mxu0 %v4176_v20  ;;  %2660 = vmatprep.subr.bf16.mxu1 %v4181_v21  ;;  %v4259_v20 = vld [vmem:[%s6073_s1 + $0x2c4] ss:$8 sps:$4 sm:$0xff]  }
  0x7d   :  { %2906 = vmatprep.subr.bf16.mxu0 %v4184_v52  ;;  %v4262_v21 = vld [vmem:[%s6073_s1 + $0x8c4] ss:$8 sps:$4 sm:$0xff]   ;;  %v4257_v52 = vld [vmem:[%s6073_s1 + $0x2c0] ss:$8 sps:$4 sm:$0xff]  }
  0x7f   :  { %2661 = vmatpush1.bf16.msra.mxu1 %v4179_v23  ;;  %v4260_v23 = vld [vmem:[%s6073_s1 + $0x8c0] ss:$8 sps:$4 sm:$0xff]  }
  0x80   :  { %2907 = vmatpush1.bf16.msra.mxu0 %v4182_v24  ;;  %2671 = vmatprep.subr.bf16.mxu1 %v4187_v25  ;;  %v4265_v24 = vld [vmem:[%s6073_s1 + $0x2d4] ss:$8 sps:$4 sm:$0xff]  }
  0x81   :  { %2917 = vmatprep.subr.bf16.mxu0 %v4190_v26  ;;  %v4268_v25 = vld [vmem:[%s6073_s1 + $0x8d4] ss:$8 sps:$4 sm:$0xff]   ;;  %v4263_v26 = vld [vmem:[%s6073_s1 + $0x2d0] ss:$8 sps:$4 sm:$0xff]  }
  0x82   :  { %2663 = vmatmul.mubr.bf16.vlgmr.msra.gmra.mrb[0].mxu1 %v485_v28  ;;  %v4271_v28 = vld [vmem:[%s6073_s1 + $0x2e4] ss:$8 sps:$4 sm:$0xff]  }
  0x83   :  { %2909 = vmatmul.mubr.bf16.vlgmr.msra.gmra.mrb[0].mxu0 %v535_v29  ;;  %2672 = vmatpush1.bf16.msra.mxu1 %v4185_v30  ;;  %v4274_v29 = vld [vmem:[%s6073_s1 + $0x8e4] ss:$8 sps:$4 sm:$0xff]   ;;  %v4269_v30 = vld [vmem:[%s6073_s1 + $0x2e0] ss:$8 sps:$4 sm:$0xff]  }
  0x84   :  { %2918 = vmatpush1.bf16.msra.mxu0 %v4188_v31  ;;  %2673 = vmatprep.subr.bf16.mxu1 %v4193_v32  ;;  %v4272_v31 = vld [vmem:[%s6073_s1 + $0x8e0] ss:$8 sps:$4 sm:$0xff]   ;;  %v4277_v32 = vld [vmem:[%s6073_s1 + $0x2f4] ss:$8 sps:$4 sm:$0xff]  }
  0x85   :  { %2919 = vmatprep.subr.bf16.mxu0 %v4196_v17  ;;  %2703 = vmatprep.mubr.bf16.mxu1 %v5118_v18  ;;  %v4280_v17 = vld [vmem:[%s6073_s1 + $0x8f4] ss:$8 sps:$4 sm:$0xff]  }
  0x86   :  { %2949 = vmatprep.mubr.bf16.mxu0 %v5148_v41 }
  0x87   :  { %2674 = vmatpush1.bf16.msra.mxu1 %v4191_v34  ;;  %v4275_v34 = vld [vmem:[%s6073_s1 + $0x2f0] ss:$8 sps:$4 sm:$0xff]  }
  0x88   :  { %2920 = vmatpush1.bf16.msra.mxu0 %v4194_v36  ;;  %2675 = vmatprep.subr.bf16.mxu1 %v4199_v37  ;;  %v4278_v36 = vld [vmem:[%s6073_s1 + $0x8f0] ss:$8 sps:$4 sm:$0xff]   ;;  %v4283_v37 = vld [vmem:[%s6073_s1 + $0x304] ss:$8 sps:$4 sm:$0xff]  }
  0x89   :  { %2921 = vmatprep.subr.bf16.mxu0 %v4202_v38  ;;  %v4286_v38 = vld [vmem:[%s6073_s1 + $0x904] ss:$8 sps:$4 sm:$0xff]  }
  0x8b   :  { %2676 = vmatpush1.bf16.msra.mxu1 %v4197_v40  ;;  %v5321_v40 = vrot.slane %v5085_v22, %v4813_v49  ;;  %v4292_v22 = vld [vmem:[%s6073_s1 + $0x914] ss:$8 sps:$4 sm:$0xff]  }
  0x8c   :  { %2922 = vmatpush1.bf16.msra.mxu0 %v4200_v43  ;;  %2677 = vmatprep.subr.bf16.mxu1 %v4205_v44  ;;  %v5325_v43 = vrot.slane %v5130_v35, %v4813_v49  ;;  %v4284_v44 = vld [vmem:[%s6073_s1 + $0x900] ss:$8 sps:$4 sm:$0xff]   ;;  %v488_v35 = vcombine.high %v5118_v18, %v5118_v18  ;;  %v4295_v18 = vld [vmem:[%s6073_s1 + $0x324] ss:$8 sps:$4 sm:$0xff]  }
  0x8d   :  { %2923 = vmatprep.subr.bf16.mxu0 %v4208_v45  ;;  %v4289_v45 = vld [vmem:[%s6073_s1 + $0x314] ss:$8 sps:$4 sm:$0xff]  }
  0x8f   :  { %2678 = vmatpush1.bf16.msra.mxu1 %v4203_v46  ;;  %v585_v46 = vcombine.high %v5148_v41, %v5148_v41  ;;  %v4298_v41 = vld [vmem:[%s6073_s1 + $0x924] ss:$8 sps:$4 sm:$0xff]  }
  0x90   :  { %2924 = vmatpush1.bf16.msra.mxu0 %v4206_v47  ;;  %2679 = vmatprep.subr.bf16.mxu1 %v4211_v48  ;;  %v4287_v47 = vld [vmem:[%s6073_s1 + $0x310] ss:$8 sps:$4 sm:$0xff]  }
  0x91   :  { %2925 = vmatprep.subr.bf16.mxu0 %v4214_v50  ;;  %v4290_v48 = vld [vmem:[%s6073_s1 + $0x910] ss:$8 sps:$4 sm:$0xff]   ;;  %v4293_v50 = vld [vmem:[%s6073_s1 + $0x320] ss:$8 sps:$4 sm:$0xff]  }
  0x93   :  { %2680 = vmatpush1.bf16.msra.mxu1 %v4209_v51  ;;  %v4296_v51 = vld [vmem:[%s6073_s1 + $0x920] ss:$8 sps:$4 sm:$0xff]  }
  0x94   :  { %2926 = vmatpush1.bf16.msra.mxu0 %v4212_v53  ;;  %2681 = vmatprep.subr.bf16.mxu1 %v4217_v54  ;;  %v4301_v53 = vld [vmem:[%s6073_s1 + $0x334] ss:$8 sps:$4 sm:$0xff]  }
  0x95   :  { %2927 = vmatprep.subr.bf16.mxu0 %v4220_v55  ;;  %v4304_v54 = vld [vmem:[%s6073_s1 + $0x934] ss:$8 sps:$4 sm:$0xff]   ;;  %v4299_v55 = vld [vmem:[%s6073_s1 + $0x330] ss:$8 sps:$4 sm:$0xff]  }
  0x97   :  { %2682 = vmatpush1.bf16.msra.mxu1 %v4215_v56  ;;  %v4302_v56 = vld [vmem:[%s6073_s1 + $0x930] ss:$8 sps:$4 sm:$0xff]  }
  0x98   :  { %2928 = vmatpush1.bf16.msra.mxu0 %v4218_v57  ;;  %2683 = vmatprep.subr.bf16.mxu1 %v4223_v58  ;;  %v4307_v57 = vld [vmem:[%s6073_s1 + $0x344] ss:$8 sps:$4 sm:$0xff]  }
  0x99   :  { %2929 = vmatprep.subr.bf16.mxu0 %v4226_v59  ;;  %v4310_v58 = vld [vmem:[%s6073_s1 + $0x944] ss:$8 sps:$4 sm:$0xff]   ;;  %v4305_v59 = vld [vmem:[%s6073_s1 + $0x340] ss:$8 sps:$4 sm:$0xff]  }
  0x9b   :  { %2684 = vmatpush1.bf16.msra.mxu1 %v4221_v60  ;;  %v4308_v60 = vld [vmem:[%s6073_s1 + $0x940] ss:$8 sps:$4 sm:$0xff]  }
  0x9c   :  { %2930 = vmatpush1.bf16.msra.mxu0 %v4224_v61  ;;  %2685 = vmatprep.subr.bf16.mxu1 %v4229_v62  ;;  %v4313_v61 = vld [vmem:[%s6073_s1 + $0x354] ss:$8 sps:$4 sm:$0xff]  }
  0x9d   :  { %2931 = vmatprep.subr.bf16.mxu0 %v4232_v63  ;;  %v4316_v62 = vld [vmem:[%s6073_s1 + $0x954] ss:$8 sps:$4 sm:$0xff]   ;;  %v4311_v63 = vld [vmem:[%s6073_s1 + $0x350] ss:$8 sps:$4 sm:$0xff]  }
  0x9f   :  { %2686 = vmatpush1.bf16.msra.mxu1 %v4227_v0  ;;  %v4314_v0 = vld [vmem:[%s6073_s1 + $0x950] ss:$8 sps:$4 sm:$0xff]  }
  0xa0   :  { %2932 = vmatpush1.bf16.msra.mxu0 %v4230_v1  ;;  %2687 = vmatprep.subr.bf16.mxu1 %v4235_v2  ;;  %v4319_v1 = vld [vmem:[%s6073_s1 + $0x364] ss:$8 sps:$4 sm:$0xff]  }
  0xa1   :  { %2933 = vmatprep.subr.bf16.mxu0 %v4238_v3  ;;  %v4322_v2 = vld [vmem:[%s6073_s1 + $0x964] ss:$8 sps:$4 sm:$0xff]   ;;  %v4317_v3 = vld [vmem:[%s6073_s1 + $0x360] ss:$8 sps:$4 sm:$0xff]  }
  0xa3   :  { %2688 = vmatpush1.bf16.msra.mxu1 %v4233_v4  ;;  %v4320_v4 = vld [vmem:[%s6073_s1 + $0x960] ss:$8 sps:$4 sm:$0xff]  }
  0xa4   :  { %2934 = vmatpush1.bf16.msra.mxu0 %v4236_v5  ;;  %2689 = vmatprep.subr.bf16.mxu1 %v4241_v6  ;;  %v4325_v5 = vld [vmem:[%s6073_s1 + $0x374] ss:$8 sps:$4 sm:$0xff]  }
  0xa5   :  { %2935 = vmatprep.subr.bf16.mxu0 %v4244_v7  ;;  %v4328_v6 = vld [vmem:[%s6073_s1 + $0x974] ss:$8 sps:$4 sm:$0xff]   ;;  %v4323_v7 = vld [vmem:[%s6073_s1 + $0x370] ss:$8 sps:$4 sm:$0xff]  }
  0xa7   :  { %2690 = vmatpush1.bf16.msra.mxu1 %v4239_v8  ;;  %v4326_v8 = vld [vmem:[%s6073_s1 + $0x970] ss:$8 sps:$4 sm:$0xff]  }
  0xa8   :  { %2936 = vmatpush1.bf16.msra.mxu0 %v4242_v9  ;;  %2691 = vmatprep.subr.bf16.mxu1 %v4247_v10  ;;  %v4331_v9 = vld [vmem:[%s6073_s1 + $0x384] ss:$8 sps:$4 sm:$0xff]  }
  0xa9   :  { %2937 = vmatprep.subr.bf16.mxu0 %v4250_v11  ;;  %v4334_v10 = vld [vmem:[%s6073_s1 + $0x984] ss:$8 sps:$4 sm:$0xff]   ;;  %v4329_v11 = vld [vmem:[%s6073_s1 + $0x380] ss:$8 sps:$4 sm:$0xff]  }
  0xab   :  { %2692 = vmatpush1.bf16.msra.mxu1 %v4245_v12  ;;  %v4332_v12 = vld [vmem:[%s6073_s1 + $0x980] ss:$8 sps:$4 sm:$0xff]  }
  0xac   :  { %2938 = vmatpush1.bf16.msra.mxu0 %v4248_v13  ;;  %2693 = vmatprep.subr.bf16.mxu1 %v4253_v14  ;;  %v4337_v13 = vld [vmem:[%s6073_s1 + $0x394] ss:$8 sps:$4 sm:$0xff]  }
  0xad   :  { %2939 = vmatprep.subr.bf16.mxu0 %v4256_v15  ;;  %v4340_v14 = vld [vmem:[%s6073_s1 + $0x994] ss:$8 sps:$4 sm:$0xff]   ;;  %v4335_v15 = vld [vmem:[%s6073_s1 + $0x390] ss:$8 sps:$4 sm:$0xff]  }
  0xaf   :  { %2694 = vmatpush1.bf16.msra.mxu1 %v4251_v16  ;;  %v4338_v16 = vld [vmem:[%s6073_s1 + $0x990] ss:$8 sps:$4 sm:$0xff]  }
  0xb0   :  { %2940 = vmatpush1.bf16.msra.mxu0 %v4254_v19  ;;  %2695 = vmatprep.subr.bf16.mxu1 %v4259_v20  ;;  %v4343_v19 = vld [vmem:[%s6073_s1 + $0x3a4] ss:$8 sps:$4 sm:$0xff]  }
  0xb1   :  { %2941 = vmatprep.subr.bf16.mxu0 %v4262_v21  ;;  %v4346_v20 = vld [vmem:[%s6073_s1 + $0x9a4] ss:$8 sps:$4 sm:$0xff]   ;;  %v4341_v21 = vld [vmem:[%s6073_s1 + $0x3a0] ss:$8 sps:$4 sm:$0xff]  }
  0xb3   :  { %2696 = vmatpush1.bf16.msra.mxu1 %v4257_v52  ;;  %v4344_v52 = vld [vmem:[%s6073_s1 + $0x9a0] ss:$8 sps:$4 sm:$0xff]  }
  0xb4   :  { %2942 = vmatpush1.bf16.msra.mxu0 %v4260_v23  ;;  %2697 = vmatprep.subr.bf16.mxu1 %v4265_v24  ;;  %v4349_v23 = vld [vmem:[%s6073_s1 + $0x3b4] ss:$8 sps:$4 sm:$0xff]  }
  0xb5   :  { %2943 = vmatprep.subr.bf16.mxu0 %v4268_v25  ;;  %v4352_v24 = vld [vmem:[%s6073_s1 + $0x9b4] ss:$8 sps:$4 sm:$0xff]   ;;  %v4347_v25 = vld [vmem:[%s6073_s1 + $0x3b0] ss:$8 sps:$4 sm:$0xff]  }
  0xb7   :  { %2698 = vmatpush1.bf16.msra.mxu1 %v4263_v26  ;;  %v4350_v26 = vld [vmem:[%s6073_s1 + $0x9b0] ss:$8 sps:$4 sm:$0xff]  }
  0xb8   :  { %2944 = vmatpush1.bf16.msra.mxu0 %v4266_v27  ;;  %2699 = vmatprep.subr.bf16.mxu1 %v4271_v28  ;;  %v4355_v27 = vld [vmem:[%s6073_s1 + $0x3c4] ss:$8 sps:$4 sm:$0xff]  }
  0xb9   :  { %2945 = vmatprep.subr.bf16.mxu0 %v4274_v29  ;;  %v4358_v28 = vld [vmem:[%s6073_s1 + $0x9c4] ss:$8 sps:$4 sm:$0xff]   ;;  %v4353_v29 = vld [vmem:[%s6073_s1 + $0x3c0] ss:$8 sps:$4 sm:$0xff]  }
  0xbb   :  { %2700 = vmatpush1.bf16.msra.mxu1 %v4269_v30  ;;  %v4356_v30 = vld [vmem:[%s6073_s1 + $0x9c0] ss:$8 sps:$4 sm:$0xff]  }
  0xbc   :  { %2946 = vmatpush1.bf16.msra.mxu0 %v4272_v31  ;;  %2701 = vmatprep.subr.bf16.mxu1 %v4277_v32  ;;  %v4361_v31 = vld [vmem:[%s6073_s1 + $0x3d4] ss:$8 sps:$4 sm:$0xff]  }
  0xbd   :  { %2947 = vmatprep.subr.bf16.mxu0 %v4280_v17  ;;  %v4364_v32 = vld [vmem:[%s6073_s1 + $0x9d4] ss:$8 sps:$4 sm:$0xff]   ;;  %v4359_v17 = vld [vmem:[%s6073_s1 + $0x3d0] ss:$8 sps:$4 sm:$0xff]  }
  0xbf   :  { %2702 = vmatpush1.bf16.msra.mxu1 %v4275_v34  ;;  %v4362_v34 = vld [vmem:[%s6073_s1 + $0x9d0] ss:$8 sps:$4 sm:$0xff]  }
  0xc0   :  { %2948 = vmatpush1.bf16.msra.mxu0 %v4278_v36  ;;  %2712 = vmatprep.subr.bf16.mxu1 %v4283_v37  ;;  %v4367_v36 = vld [vmem:[%s6073_s1 + $0x3e4] ss:$8 sps:$4 sm:$0xff]  }
  0xc1   :  { %2958 = vmatprep.subr.bf16.mxu0 %v4286_v38  ;;  %v4370_v37 = vld [vmem:[%s6073_s1 + $0x9e4] ss:$8 sps:$4 sm:$0xff]   ;;  %v538_v38 = vcombine.high %v5123_v33, %v5123_v33  ;;  %v4376_v33 = vld [vmem:[%s6073_s1 + $0x9f4] ss:$8 sps:$4 sm:$0xff]  }
  0xc2   :  { %2704 = vmatmul.mubr.bf16.vlgmr.msra.gmra.mrb[0].mxu1 %v5321_v40 }
  0xc3   :  { %2950 = vmatmul.mubr.bf16.vlgmr.msra.gmra.mrb[0].mxu0 %v5325_v43  ;;  %2713 = vmatpush1.bf16.msra.mxu1 %v4281_v39  ;;  %v4365_v39 = vld [vmem:[%s6073_s1 + $0x3e0] ss:$8 sps:$4 sm:$0xff]  }
  0xc4   :  { %2959 = vmatpush1.bf16.msra.mxu0 %v4284_v44  ;;  %2714 = vmatprep.subr.bf16.mxu1 %v4289_v45  ;;  %v4368_v44 = vld [vmem:[%s6073_s1 + $0x9e0] ss:$8 sps:$4 sm:$0xff]   ;;  %v4373_v45 = vld [vmem:[%s6073_s1 + $0x3f4] ss:$8 sps:$4 sm:$0xff]  }
  0xc5   :  { %2960 = vmatprep.subr.bf16.mxu0 %v4292_v22  ;;  %2744 = vmatprep.mubr.bf16.mxu1 %v488_v35  ;;  %v5515_v22 = vld.sshfl [vmem:[%s6072_s0 + $0x8] sm:$0xff pattern:$0x75316420]  ;;  %v5518_v35 = vrot.slane %v538_v38, %v4813_v49 }
  0xc6   :  { %2990 = vmatprep.mubr.bf16.mxu0 %v585_v46  ;;  %v4371_v46 = vld [vmem:[%s6073_s1 + $0x3f0] ss:$8 sps:$4 sm:$0xff]  }
  0xc7   :  { %2715 = vmatpush1.bf16.msra.mxu1 %v4287_v47  ;;  %v4374_v47 = vld [vmem:[%s6073_s1 + $0x9f0] ss:$8 sps:$4 sm:$0xff]  }
  0xc8   :  { %2961 = vmatpush1.bf16.msra.mxu0 %v4290_v48  ;;  %2716 = vmatprep.subr.bf16.mxu1 %v4295_v18  ;;  %v4379_v48 = vld [vmem:[%s6073_s1 + $0x404] ss:$8 sps:$4 sm:$0xff]  }
  0xc9   :  { %2962 = vmatprep.subr.bf16.mxu0 %v4298_v41  ;;  %v4382_v18 = vld [vmem:[%s6073_s1 + $0xa04] ss:$8 sps:$4 sm:$0xff]   ;;  %v504_v41 = vcombine.high %v5515_v22, %v5515_v22 }
  0xcb   :  { %2717 = vmatpush1.bf16.msra.mxu1 %v4293_v50  ;;  %v554_v50 = vcombine.high %v5518_v35, %v5518_v35 }
  0xcc   :  { %2963 = vmatpush1.bf16.msra.mxu0 %v4296_v51  ;;  %2718 = vmatprep.subr.bf16.mxu1 %v4301_v53  ;;  %v4377_v51 = vld [vmem:[%s6073_s1 + $0x400] ss:$8 sps:$4 sm:$0xff]   ;;  %v486_v53 = vcombine.high %v5321_v40, %v5321_v40  ;;  %v4383_v40 = vld [vmem:[%s6073_s1 + $0x410] ss:$8 sps:$4 sm:$0xff]  }
  0xcd   :  { %2964 = vmatprep.subr.bf16.mxu0 %v4304_v54  ;;  %v583_v54 = vcombine.high %v5325_v43, %v5325_v43  ;;  %v4386_v43 = vld [vmem:[%s6073_s1 + $0xa10] ss:$8 sps:$4 sm:$0xff]  }
  0xcf   :  { %2719 = vmatpush1.bf16.msra.mxu1 %v4299_v55  ;;  %v4380_v55 = vld [vmem:[%s6073_s1 + $0xa00] ss:$8 sps:$4 sm:$0xff]  }
  0xd0   :  { %2965 = vmatpush1.bf16.msra.mxu0 %v4302_v56  ;;  %2720 = vmatprep.subr.bf16.mxu1 %v4307_v57  ;;  %v4385_v56 = vld [vmem:[%s6073_s1 + $0x414] ss:$8 sps:$4 sm:$0xff]  }
  0xd1   :  { %2966 = vmatprep.subr.bf16.mxu0 %v4310_v58  ;;  %v4388_v57 = vld [vmem:[%s6073_s1 + $0xa14] ss:$8 sps:$4 sm:$0xff]   ;;  %v5559_v58 = vrot.slane %v504_v41, %v4813_v49 }
  0xd3   :  { %2721 = vmatpush1.bf16.msra.mxu1 %v4305_v59  ;;  %v5562_v59 = vrot.slane %v554_v50, %v4813_v49 }
  0xd4   :  { %2967 = vmatpush1.bf16.msra.mxu0 %v4308_v60  ;;  %2722 = vmatprep.subr.bf16.mxu1 %v4313_v61  ;;  %v4391_v60 = vld [vmem:[%s6073_s1 + $0x424] ss:$8 sps:$4 sm:$0xff]  }
  0xd5   :  { %2968 = vmatprep.subr.bf16.mxu0 %v4316_v62  ;;  %v4394_v61 = vld [vmem:[%s6073_s1 + $0xa24] ss:$8 sps:$4 sm:$0xff]   ;;  %v4389_v62 = vld [vmem:[%s6073_s1 + $0x420] ss:$8 sps:$4 sm:$0xff]  }
  0xd7   :  { %2723 = vmatpush1.bf16.msra.mxu1 %v4311_v63  ;;  %v4392_v63 = vld [vmem:[%s6073_s1 + $0xa20] ss:$8 sps:$4 sm:$0xff]  }
  0xd8   :  { %2969 = vmatpush1.bf16.msra.mxu0 %v4314_v0  ;;  %2724 = vmatprep.subr.bf16.mxu1 %v4319_v1  ;;  %v4397_v0 = vld [vmem:[%s6073_s1 + $0x434] ss:$8 sps:$4 sm:$0xff]  }
  0xd9   :  { %2970 = vmatprep.subr.bf16.mxu0 %v4322_v2  ;;  %v4400_v1 = vld [vmem:[%s6073_s1 + $0xa34] ss:$8 sps:$4 sm:$0xff]   ;;  %v4395_v2 = vld [vmem:[%s6073_s1 + $0x430] ss:$8 sps:$4 sm:$0xff]  }
  0xdb   :  { %2725 = vmatpush1.bf16.msra.mxu1 %v4317_v3  ;;  %v4398_v3 = vld [vmem:[%s6073_s1 + $0xa30] ss:$8 sps:$4 sm:$0xff]  }
  0xdc   :  { %2971 = vmatpush1.bf16.msra.mxu0 %v4320_v4  ;;  %2726 = vmatprep.subr.bf16.mxu1 %v4325_v5  ;;  %v4403_v4 = vld [vmem:[%s6073_s1 + $0x444] ss:$8 sps:$4 sm:$0xff]  }
  0xdd   :  { %2972 = vmatprep.subr.bf16.mxu0 %v4328_v6  ;;  %v4406_v5 = vld [vmem:[%s6073_s1 + $0xa44] ss:$8 sps:$4 sm:$0xff]   ;;  %v4401_v6 = vld [vmem:[%s6073_s1 + $0x440] ss:$8 sps:$4 sm:$0xff]  }
  0xdf   :  { %2727 = vmatpush1.bf16.msra.mxu1 %v4323_v7  ;;  %v4404_v7 = vld [vmem:[%s6073_s1 + $0xa40] ss:$8 sps:$4 sm:$0xff]  }
  0xe0   :  { %2973 = vmatpush1.bf16.msra.mxu0 %v4326_v8  ;;  %2728 = vmatprep.subr.bf16.mxu1 %v4331_v9  ;;  %v4409_v8 = vld [vmem:[%s6073_s1 + $0x454] ss:$8 sps:$4 sm:$0xff]  }
  0xe1   :  { %2974 = vmatprep.subr.bf16.mxu0 %v4334_v10  ;;  %v4412_v9 = vld [vmem:[%s6073_s1 + $0xa54] ss:$8 sps:$4 sm:$0xff]   ;;  %v4633_v10 = vmov 0  }
  0xe2   :  { %3989 = vset.pattern.permute.xlu1 %v4633_v10  ;;  %3990 = vset.pattern.permute.xlu0 %v4633_v10 }
  0xe3   :  { %2729 = vmatpush1.bf16.msra.mxu1 %v4329_v11  ;;  %v4407_v11 = vld [vmem:[%s6073_s1 + $0x450] ss:$8 sps:$4 sm:$0xff]  }
  0xe4   :  { %2975 = vmatpush1.bf16.msra.mxu0 %v4332_v12  ;;  %2730 = vmatprep.subr.bf16.mxu1 %v4337_v13  ;;  %v4410_v12 = vld [vmem:[%s6073_s1 + $0xa50] ss:$8 sps:$4 sm:$0xff]   ;;  %v4415_v13 = vld [vmem:[%s6073_s1 + $0x464] ss:$8 sps:$4 sm:$0xff]  }
  0xe5   :  { %2976 = vmatprep.subr.bf16.mxu0 %v4340_v14  ;;  %v4418_v14 = vld [vmem:[%s6073_s1 + $0xa64] ss:$8 sps:$4 sm:$0xff]  }
  0xe7   :  { %2731 = vmatpush1.bf16.msra.mxu1 %v4335_v15  ;;  %v4413_v15 = vld [vmem:[%s6073_s1 + $0x460] ss:$8 sps:$4 sm:$0xff]  }
  0xe8   :  { %2977 = vmatpush1.bf16.msra.mxu0 %v4338_v16  ;;  %2732 = vmatprep.subr.bf16.mxu1 %v4343_v19  ;;  %v4416_v16 = vld [vmem:[%s6073_s1 + $0xa60] ss:$8 sps:$4 sm:$0xff]   ;;  %v4421_v19 = vld [vmem:[%s6073_s1 + $0x474] ss:$8 sps:$4 sm:$0xff]  }
  0xe9   :  { %2978 = vmatprep.subr.bf16.mxu0 %v4346_v20  ;;  %v4424_v20 = vld [vmem:[%s6073_s1 + $0xa74] ss:$8 sps:$4 sm:$0xff]  }
  0xeb   :  { %2733 = vmatpush1.bf16.msra.mxu1 %v4341_v21 }
  0xec   :  { %2979 = vmatpush1.bf16.msra.mxu0 %v4344_v52  ;;  %2734 = vmatprep.subr.bf16.mxu1 %v4349_v23 }
  0xed   :  { %2980 = vmatprep.subr.bf16.mxu0 %v4352_v24 }
  0xef   :  { %2735 = vmatpush1.bf16.msra.mxu1 %v4347_v25 }
  0xf0   :  { %2981 = vmatpush1.bf16.msra.mxu0 %v4350_v26  ;;  %2736 = vmatprep.subr.bf16.mxu1 %v4355_v27 }
  0xf1   :  { %2982 = vmatprep.subr.bf16.mxu0 %v4358_v28 }
  0xf3   :  { %2737 = vmatpush1.bf16.msra.mxu1 %v4353_v29 }
  0xf4   :  { %2983 = vmatpush1.bf16.msra.mxu0 %v4356_v30  ;;  %2738 = vmatprep.subr.bf16.mxu1 %v4361_v31 }
  0xf5   :  { %2984 = vmatprep.subr.bf16.mxu0 %v4364_v32 }
  0xf7   :  { %2739 = vmatpush1.bf16.msra.mxu1 %v4359_v17 }
  0xf8   :  { %2985 = vmatpush1.bf16.msra.mxu0 %v4362_v34  ;;  %2740 = vmatprep.subr.bf16.mxu1 %v4367_v36 }
  0xf9   :  { %2986 = vmatprep.subr.bf16.mxu0 %v4370_v37 }
  0xfb   :  { %2741 = vmatpush1.bf16.msra.mxu1 %v4365_v39 }
  0xfc   :  { %2987 = vmatpush1.bf16.msra.mxu0 %v4368_v44  ;;  %2742 = vmatprep.subr.bf16.mxu1 %v4373_v45 }
  0xfd   :  { %2988 = vmatprep.subr.bf16.mxu0 %v4376_v33 }
  0xff   :  { %2743 = vmatpush1.bf16.msra.mxu1 %v4371_v46 }
 0x100   :  { %2989 = vmatpush1.bf16.msra.mxu0 %v4374_v47  ;;  %2753 = vmatprep.subr.bf16.mxu1 %v4379_v48 }
 0x101   :  { %2999 = vmatprep.subr.bf16.mxu0 %v4382_v18 }
 0x102   :  { %2745 = vmatmul.mubr.bf16.vlgmr.msra.gmra.mrb[0].mxu1 %v486_v53 }
 0x103   :  { %2991 = vmatmul.mubr.bf16.vlgmr.msra.gmra.mrb[0].mxu0 %v583_v54  ;;  %2754 = vmatpush1.bf16.msra.mxu1 %v4377_v51 }
 0x104   :  { %3000 = vmatpush1.bf16.msra.mxu0 %v4380_v55  ;;  %2755 = vmatprep.subr.bf16.mxu1 %v4385_v56 }
 0x105   :  { %3001 = vmatprep.subr.bf16.mxu0 %v4388_v57  ;;  %2785 = vmatprep.mubr.bf16.mxu1 %v5559_v58 }
 0x106   :  { %3031 = vmatprep.mubr.bf16.mxu0 %v5562_v59 }
 0x107   :  { %2756 = vmatpush1.bf16.msra.mxu1 %v4383_v40 }
 0x108   :  { %3002 = vmatpush1.bf16.msra.mxu0 %v4386_v43  ;;  %2757 = vmatprep.subr.bf16.mxu1 %v4391_v60 }
 0x109   :  { %3003 = vmatprep.subr.bf16.mxu0 %v4394_v61 }
 0x10b   :  { %2758 = vmatpush1.bf16.msra.mxu1 %v4389_v62 }
 0x10c   :  { %3004 = vmatpush1.bf16.msra.mxu0 %v4392_v63  ;;  %2759 = vmatprep.subr.bf16.mxu1 %v4397_v0 }
 0x10d   :  { %3005 = vmatprep.subr.bf16.mxu0 %v4400_v1 }
 0x10f   :  { %2760 = vmatpush1.bf16.msra.mxu1 %v4395_v2 }
 0x110   :  { %3006 = vmatpush1.bf16.msra.mxu0 %v4398_v3  ;;  %2761 = vmatprep.subr.bf16.mxu1 %v4403_v4 }
 0x111   :  { %3007 = vmatprep.subr.bf16.mxu0 %v4406_v5 }
 0x113   :  { %2762 = vmatpush1.bf16.msra.mxu1 %v4401_v6 }
 0x114   :  { %3008 = vmatpush1.bf16.msra.mxu0 %v4404_v7  ;;  %2763 = vmatprep.subr.bf16.mxu1 %v4409_v8 }
 0x115   :  { %3009 = vmatprep.subr.bf16.mxu0 %v4412_v9 }
 0x117   :  { %2764 = vmatpush1.bf16.msra.mxu1 %v4407_v11 }
 0x118   :  { %3010 = vmatpush1.bf16.msra.mxu0 %v4410_v12  ;;  %2765 = vmatprep.subr.bf16.mxu1 %v4415_v13 }
 0x119   :  { %3011 = vmatprep.subr.bf16.mxu0 %v4418_v14 }
 0x11a   :  { %12 = vsyncpa [#allocation3], 0  ;;  %v4419_v21 = vld [vmem:[%s6073_s1 + $0x470] ss:$8 sps:$4 sm:$0xff]   ;;  %v4427_v23 = vld [vmem:[%s6073_s1 + $0x484] ss:$8 sps:$4 sm:$0xff]   ;;  %v5744_v61 = vrot.slane %v5515_v22, %v4813_v49  ;;  %v5748_v62 = vrot.slane %v5518_v35, %v4813_v49  ;;  %v536_v1 = vcombine.high %v5559_v58, %v5559_v58  ;;  %v586_v2 = vcombine.high %v5562_v59, %v5562_v59 }
 0x11b   :  { %2766 = vmatpush1.bf16.msra.mxu1 %v4413_v15  ;;  %v4422_v52 = vld [vmem:[%s6073_s1 + $0xa70] ss:$8 sps:$4 sm:$0xff]   ;;  %v4430_v24 = vld [vmem:[%s6073_s1 + $0xa84] ss:$8 sps:$4 sm:$0xff]   ;;  %v4425_v25 = vld [vmem:[%s6073_s1 + $0x480] ss:$8 sps:$4 sm:$0xff]  }
 0x11c   :  { %3012 = vmatpush1.bf16.msra.mxu0 %v4416_v16  ;;  %2767 = vmatprep.subr.bf16.mxu1 %v4421_v19  ;;  %v4428_v26 = vld [vmem:[%s6073_s1 + $0xa80] ss:$8 sps:$4 sm:$0xff]   ;;  %v4433_v27 = vld [vmem:[%s6073_s1 + $0x494] ss:$8 sps:$4 sm:$0xff]   ;;  %v4431_v29 = vld [vmem:[%s6073_s1 + $0x490] ss:$8 sps:$4 sm:$0xff]  }
 0x11d   :  { %3013 = vmatprep.subr.bf16.mxu0 %v4424_v20  ;;  %v4436_v28 = vld [vmem:[%s6073_s1 + $0xa94] ss:$8 sps:$4 sm:$0xff]   ;;  %v4434_v30 = vld [vmem:[%s6073_s1 + $0xa90] ss:$8 sps:$4 sm:$0xff]   ;;  %v4439_v31 = vld [vmem:[%s6073_s1 + $0x4a4] ss:$8 sps:$4 sm:$0xff]  }
 0x11e   :  { %v4442_v32 = vld [vmem:[%s6073_s1 + $0xaa4] ss:$8 sps:$4 sm:$0xff]   ;;  %v4437_v17 = vld [vmem:[%s6073_s1 + $0x4a0] ss:$8 sps:$4 sm:$0xff]   ;;  %v4445_v36 = vld [vmem:[%s6073_s1 + $0x4b4] ss:$8 sps:$4 sm:$0xff]  }
 0x11f   :  { %2768 = vmatpush1.bf16.msra.mxu1 %v4419_v21  ;;  %v4440_v34 = vld [vmem:[%s6073_s1 + $0xaa0] ss:$8 sps:$4 sm:$0xff]   ;;  %v4448_v37 = vld [vmem:[%s6073_s1 + $0xab4] ss:$8 sps:$4 sm:$0xff]   ;;  %v4443_v38 = vld [vmem:[%s6073_s1 + $0x4b0] ss:$8 sps:$4 sm:$0xff]  }
 0x120   :  { %3014 = vmatpush1.bf16.msra.mxu0 %v4422_v52  ;;  %2769 = vmatprep.subr.bf16.mxu1 %v4427_v23  ;;  %v4446_v39 = vld [vmem:[%s6073_s1 + $0xab0] ss:$8 sps:$4 sm:$0xff]   ;;  %v4451_v44 = vld [vmem:[%s6073_s1 + $0x4c4] ss:$8 sps:$4 sm:$0xff]   ;;  %v4449_v33 = vld [vmem:[%s6073_s1 + $0x4c0] ss:$8 sps:$4 sm:$0xff]  }
 0x121   :  { %3015 = vmatprep.subr.bf16.mxu0 %v4430_v24  ;;  %v4454_v45 = vld [vmem:[%s6073_s1 + $0xac4] ss:$8 sps:$4 sm:$0xff]   ;;  %v4452_v46 = vld [vmem:[%s6073_s1 + $0xac0] ss:$8 sps:$4 sm:$0xff]   ;;  %v4457_v47 = vld [vmem:[%s6073_s1 + $0x4d4] ss:$8 sps:$4 sm:$0xff]  }
 0x122   :  { %v4460_v48 = vld [vmem:[%s6073_s1 + $0xad4] ss:$8 sps:$4 sm:$0xff]   ;;  %v4455_v18 = vld [vmem:[%s6073_s1 + $0x4d0] ss:$8 sps:$4 sm:$0xff]   ;;  %v4463_v50 = vld [vmem:[%s6073_s1 + $0x4e4] ss:$8 sps:$4 sm:$0xff]  }
 0x123   :  { %2770 = vmatpush1.bf16.msra.mxu1 %v4425_v25  ;;  %v4458_v41 = vld [vmem:[%s6073_s1 + $0xad0] ss:$8 sps:$4 sm:$0xff]   ;;  %v4466_v51 = vld [vmem:[%s6073_s1 + $0xae4] ss:$8 sps:$4 sm:$0xff]   ;;  %v4461_v53 = vld [vmem:[%s6073_s1 + $0x4e0] ss:$8 sps:$4 sm:$0xff]  }
 0x124   :  { %3016 = vmatpush1.bf16.msra.mxu0 %v4428_v26  ;;  %2771 = vmatprep.subr.bf16.mxu1 %v4433_v27  ;;  %v4464_v54 = vld [vmem:[%s6073_s1 + $0xae0] ss:$8 sps:$4 sm:$0xff]   ;;  %v4469_v55 = vld [vmem:[%s6073_s1 + $0x4f4] ss:$8 sps:$4 sm:$0xff]   ;;  %v4467_v57 = vld [vmem:[%s6073_s1 + $0x4f0] ss:$8 sps:$4 sm:$0xff]  }
 0x125   :  { %3017 = vmatprep.subr.bf16.mxu0 %v4436_v28  ;;  %v4472_v56 = vld [vmem:[%s6073_s1 + $0xaf4] ss:$8 sps:$4 sm:$0xff]   ;;  %v4470_v40 = vld [vmem:[%s6073_s1 + $0xaf0] ss:$8 sps:$4 sm:$0xff]   ;;  %v4475_v43 = vld [vmem:[%s6073_s1 + $0x504] ss:$8 sps:$4 sm:$0xff]  }
 0x126   :  { %v4479_v60 = vld [vmem:[%s6073_s1 + $0xb04] ss:$8 sps:$4 sm:$0xff]   ;;  %v4473_v63 = vld [vmem:[%s6073_s1 + $0x500] ss:$8 sps:$4 sm:$0xff]   ;;  %v4482_v22 = vld [vmem:[%s6073_s1 + $0x514] ss:$8 sps:$4 sm:$0xff]  }
 0x127   :  { %2772 = vmatpush1.bf16.msra.mxu1 %v4431_v29  ;;  %v4477_v0 = vld [vmem:[%s6073_s1 + $0xb00] ss:$8 sps:$4 sm:$0xff]   ;;  %v4485_v35 = vld [vmem:[%s6073_s1 + $0xb14] ss:$8 sps:$4 sm:$0xff]   ;;  %v4480_v3 = vld [vmem:[%s6073_s1 + $0x510] ss:$8 sps:$4 sm:$0xff]  }
 0x128   :  { %3018 = vmatpush1.bf16.msra.mxu0 %v4434_v30  ;;  %2773 = vmatprep.subr.bf16.mxu1 %v4439_v31  ;;  %v4483_v4 = vld [vmem:[%s6073_s1 + $0xb10] ss:$8 sps:$4 sm:$0xff]   ;;  %v4488_v58 = vld [vmem:[%s6073_s1 + $0x524] ss:$8 sps:$4 sm:$0xff]   ;;  %v4486_v5 = vld [vmem:[%s6073_s1 + $0x520] ss:$8 sps:$4 sm:$0xff]  }
 0x129   :  { %3019 = vmatprep.subr.bf16.mxu0 %v4442_v32  ;;  %v4491_v59 = vld [vmem:[%s6073_s1 + $0xb24] ss:$8 sps:$4 sm:$0xff]   ;;  %v4489_v6 = vld [vmem:[%s6073_s1 + $0xb20] ss:$8 sps:$4 sm:$0xff]   ;;  %v4494_v7 = vld [vmem:[%s6073_s1 + $0x534] ss:$8 sps:$4 sm:$0xff]  }
 0x12a   :  { %v4497_v8 = vld [vmem:[%s6073_s1 + $0xb34] ss:$8 sps:$4 sm:$0xff]   ;;  %v4492_v9 = vld [vmem:[%s6073_s1 + $0x530] ss:$8 sps:$4 sm:$0xff]   ;;  %v4500_v12 = vld [vmem:[%s6073_s1 + $0x544] ss:$8 sps:$4 sm:$0xff]  }
 0x12b   :  { %2774 = vmatpush1.bf16.msra.mxu1 %v4437_v17  ;;  %v4495_v11 = vld [vmem:[%s6073_s1 + $0xb30] ss:$8 sps:$4 sm:$0xff]   ;;  %v4503_v13 = vld [vmem:[%s6073_s1 + $0xb44] ss:$8 sps:$4 sm:$0xff]   ;;  %v4498_v14 = vld [vmem:[%s6073_s1 + $0x540] ss:$8 sps:$4 sm:$0xff]  }
 0x12c   :  { %3020 = vmatpush1.bf16.msra.mxu0 %v4440_v34  ;;  %2775 = vmatprep.subr.bf16.mxu1 %v4445_v36  ;;  %v4501_v15 = vld [vmem:[%s6073_s1 + $0xb40] ss:$8 sps:$4 sm:$0xff]   ;;  %v4506_v16 = vld [vmem:[%s6073_s1 + $0x554] ss:$8 sps:$4 sm:$0xff]   ;;  %v4504_v20 = vld [vmem:[%s6073_s1 + $0x550] ss:$8 sps:$4 sm:$0xff]  }
 0x12d   :  { %3021 = vmatprep.subr.bf16.mxu0 %v4448_v37  ;;  %v4509_v19 = vld [vmem:[%s6073_s1 + $0xb54] ss:$8 sps:$4 sm:$0xff]   ;;  %v4507_v21 = vld [vmem:[%s6073_s1 + $0xb50] ss:$8 sps:$4 sm:$0xff]   ;;  %v4512_v52 = vld [vmem:[%s6073_s1 + $0x564] ss:$8 sps:$4 sm:$0xff]  }
 0x12e   :  { %v4515_v23 = vld [vmem:[%s6073_s1 + $0xb64] ss:$8 sps:$4 sm:$0xff]   ;;  %v4510_v24 = vld [vmem:[%s6073_s1 + $0x560] ss:$8 sps:$4 sm:$0xff]   ;;  %v4518_v26 = vld [vmem:[%s6073_s1 + $0x574] ss:$8 sps:$4 sm:$0xff]  }
 0x12f   :  { %2776 = vmatpush1.bf16.msra.mxu1 %v4443_v38  ;;  %v4513_v25 = vld [vmem:[%s6073_s1 + $0xb60] ss:$8 sps:$4 sm:$0xff]   ;;  %v4521_v27 = vld [vmem:[%s6073_s1 + $0xb74] ss:$8 sps:$4 sm:$0xff]   ;;  %v4516_v28 = vld [vmem:[%s6073_s1 + $0x570] ss:$8 sps:$4 sm:$0xff]  }
 0x130   :  { %3022 = vmatpush1.bf16.msra.mxu0 %v4446_v39  ;;  %2777 = vmatprep.subr.bf16.mxu1 %v4451_v44  ;;  %v4519_v29 = vld [vmem:[%s6073_s1 + $0xb70] ss:$8 sps:$4 sm:$0xff]   ;;  %v4524_v30 = vld [vmem:[%s6073_s1 + $0x584] ss:$8 sps:$4 sm:$0xff]   ;;  %v4522_v32 = vld [vmem:[%s6073_s1 + $0x580] ss:$8 sps:$4 sm:$0xff]  }
 0x131   :  { %3023 = vmatprep.subr.bf16.mxu0 %v4454_v45  ;;  %v4527_v31 = vld [vmem:[%s6073_s1 + $0xb84] ss:$8 sps:$4 sm:$0xff]   ;;  %v4525_v17 = vld [vmem:[%s6073_s1 + $0xb80] ss:$8 sps:$4 sm:$0xff]   ;;  %v4530_v34 = vld [vmem:[%s6073_s1 + $0x594] ss:$8 sps:$4 sm:$0xff]  }
 0x132   :  { %v4533_v36 = vld [vmem:[%s6073_s1 + $0xb94] ss:$8 sps:$4 sm:$0xff]   ;;  %v4528_v37 = vld [vmem:[%s6073_s1 + $0x590] ss:$8 sps:$4 sm:$0xff]   ;;  %v4536_v39 = vld [vmem:[%s6073_s1 + $0x5a4] ss:$8 sps:$4 sm:$0xff]  }
 0x133   :  { %2778 = vmatpush1.bf16.msra.mxu1 %v4449_v33  ;;  %v4531_v38 = vld [vmem:[%s6073_s1 + $0xb90] ss:$8 sps:$4 sm:$0xff]   ;;  %v4539_v44 = vld [vmem:[%s6073_s1 + $0xba4] ss:$8 sps:$4 sm:$0xff]   ;;  %v4534_v45 = vld [vmem:[%s6073_s1 + $0x5a0] ss:$8 sps:$4 sm:$0xff]  }
 0x134   :  { %3024 = vmatpush1.bf16.msra.mxu0 %v4452_v46  ;;  %2779 = vmatprep.subr.bf16.mxu1 %v4457_v47  ;;  %v4537_v33 = vld [vmem:[%s6073_s1 + $0xba0] ss:$8 sps:$4 sm:$0xff]   ;;  %v4542_v46 = vld [vmem:[%s6073_s1 + $0x5b4] ss:$8 sps:$4 sm:$0xff]   ;;  %vm2585_vm0 = vcmask 523264   ;;  %vm4635_vm3 = vmmov 0  }
 0x135   :  { %3025 = vmatprep.subr.bf16.mxu0 %v4460_v48  ;;  %v4545_v47 = vld [vmem:[%s6073_s1 + $0xbb4] ss:$8 sps:$4 sm:$0xff]   ;;  %v4540_v48 = vld [vmem:[%s6073_s1 + $0x5b0] ss:$8 sps:$4 sm:$0xff]   ;;  %vm3422_vm4 = vcmask 41984   ;;  %s4637_s15 = smov [#allocation2]  }
 0x136   :  { %s3454_s16 = sshll.u32 %s4637_s15, 4  ;;  %s3455_s16 = int_to_ptr.vmem [resolvable:$true] %s3454_s16 }
 0x137   :  { %2780 = vmatpush1.bf16.msra.mxu1 %v4455_v18  ;;  %v4543_v18 = vld [vmem:[%s6073_s1 + $0xbb0] ss:$8 sps:$4 sm:$0xff]   ;;  %s4608_s17 = scalar_lea.vmem %s3455_s16, 32  ;;  %p4613_p1 = scmp.lt.s32.totalorder %s3455_s16, %s3455_s16 }
 0x138   :  { %3026 = vmatpush1.bf16.msra.mxu0 %v4458_v41  ;;  %2781 = vmatprep.subr.bf16.mxu1 %v4463_v50  ;;  %v4548_v41 = vld [vmem:[%s6073_s1 + $0x5c4] ss:$8 sps:$4 sm:$0xff]   ;;  %p4609_p0 = scmp.ne.s32.totalorder %s3455_s16, %s4608_s17  ;;  %p4614_p2 = scmp.lt.s32.totalorder %s4608_s17, %s4608_s17 }
 0x139   :  { %3027 = vmatprep.subr.bf16.mxu0 %v4466_v51  ;;  %v4551_v50 = vld [vmem:[%s6073_s1 + $0xbc4] ss:$8 sps:$4 sm:$0xff]   ;;  %v4546_v51 = vld [vmem:[%s6073_s1 + $0x5c0] ss:$8 sps:$4 sm:$0xff]  }
 0x13a   :  { %p4615_p3 = por %p4614_p2, %p4613_p1 }
 0x13b   :  { %2782 = vmatpush1.bf16.msra.mxu1 %v4461_v53  ;;  %v4549_v53 = vld [vmem:[%s6073_s1 + $0xbc0] ss:$8 sps:$4 sm:$0xff]  }
 0x13c   :  { %3028 = vmatpush1.bf16.msra.mxu0 %v4464_v54  ;;  %2783 = vmatprep.subr.bf16.mxu1 %v4469_v55  ;;  %v4554_v54 = vld [vmem:[%s6073_s1 + $0x5d4] ss:$8 sps:$4 sm:$0xff]   ;;  %p4616_p4 = pnand %p4615_p3, %p4609_p0 }
 0x13d   :  { %3029 = vmatprep.subr.bf16.mxu0 %v4472_v56  ;;  %v4557_v55 = vld [vmem:[%s6073_s1 + $0xbd4] ss:$8 sps:$4 sm:$0xff]   ;;  %v4552_v56 = vld [vmem:[%s6073_s1 + $0x5d0] ss:$8 sps:$4 sm:$0xff]  }
 0x13f   :  { %2784 = vmatpush1.bf16.msra.mxu1 %v4467_v57  ;;  %v4555_v57 = vld [vmem:[%s6073_s1 + $0xbd0] ss:$8 sps:$4 sm:$0xff]  }
 0x140   :  { %3030 = vmatpush1.bf16.msra.mxu0 %v4470_v40  ;;  %2794 = vmatprep.subr.bf16.mxu1 %v4475_v43  ;;  %v4560_v40 = vld [vmem:[%s6073_s1 + $0x5e4] ss:$8 sps:$4 sm:$0xff]  }
 0x141   :  { %3040 = vmatprep.subr.bf16.mxu0 %v4479_v60  ;;  %v4563_v43 = vld [vmem:[%s6073_s1 + $0xbe4] ss:$8 sps:$4 sm:$0xff]   ;;  %v4558_v60 = vld [vmem:[%s6073_s1 + $0x5e0] ss:$8 sps:$4 sm:$0xff]  }
 0x142   :  { %2786 = vmatmul.mubr.bf16.vlgmr.msra.gmra.mrb[0].mxu1 %v5744_v61 }
 0x143   :  { %3032 = vmatmul.mubr.bf16.vlgmr.msra.gmra.mrb[0].mxu0 %v5748_v62  ;;  %2795 = vmatpush1.bf16.msra.mxu1 %v4473_v63  ;;  %v4561_v63 = vld [vmem:[%s6073_s1 + $0xbe0] ss:$8 sps:$4 sm:$0xff]  }
 0x144   :  { %3041 = vmatpush1.bf16.msra.mxu0 %v4477_v0  ;;  %2796 = vmatprep.subr.bf16.mxu1 %v4482_v22  ;;  %v4566_v0 = vld [vmem:[%s6073_s1 + $0x5f4] ss:$8 sps:$4 sm:$0xff]  }
 0x145   :  { %3042 = vmatprep.subr.bf16.mxu0 %v4485_v35  ;;  %2826 = vmatprep.mubr.bf16.mxu1 %v536_v1  ;;  %v4569_v22 = vld [vmem:[%s6073_s1 + $0xbf4] ss:$8 sps:$4 sm:$0xff]   ;;  %v4564_v35 = vld [vmem:[%s6073_s1 + $0x5f0] ss:$8 sps:$4 sm:$0xff]  }
 0x146   :  { %3072 = vmatprep.mubr.bf16.mxu0 %v586_v2  ;;  %v4567_v1 = vld [vmem:[%s6073_s1 + $0xbf0] ss:$8 sps:$4 sm:$0xff]   ;;  %v4572_v2 = vld [vmem:[%s6073_s1 + $0xc04] ss:$8 sps:$4 sm:$0xff]  }
 0x147   :  { %2797 = vmatpush1.bf16.msra.mxu1 %v4480_v3  ;;  %v534_v3 = vcombine.high %v5744_v61, %v5744_v61  ;;  %v4573_v61 = vld [vmem:[%s6073_s1 + $0xc10] ss:$8 sps:$4 sm:$0xff]  }
 0x148   :  { %3043 = vmatpush1.bf16.msra.mxu0 %v4483_v4  ;;  %2798 = vmatprep.subr.bf16.mxu1 %v4488_v58  ;;  %v584_v4 = vcombine.high %v5748_v62, %v5748_v62  ;;  %v4570_v58 = vld [vmem:[%s6073_s1 + $0xc00] ss:$8 sps:$4 sm:$0xff]   ;;  %v4578_v62 = vld [vmem:[%s6073_s1 + $0xc24] ss:$8 sps:$4 sm:$0xff]  }
 0x149   :  { %3044 = vmatprep.subr.bf16.mxu0 %v4491_v59  ;;  %v4575_v59 = vld [vmem:[%s6073_s1 + $0xc14] ss:$8 sps:$4 sm:$0xff]  }
 0x14b   :  { %2799 = vmatpush1.bf16.msra.mxu1 %v4486_v5  ;;  %v4576_v5 = vld [vmem:[%s6073_s1 + $0xc20] ss:$8 sps:$4 sm:$0xff]  }
 0x14c   :  { %3045 = vmatpush1.bf16.msra.mxu0 %v4489_v6  ;;  %2800 = vmatprep.subr.bf16.mxu1 %v4494_v7  ;;  %v4581_v6 = vld [vmem:[%s6073_s1 + $0xc34] ss:$8 sps:$4 sm:$0xff]   ;;  %v3462_v7 = vld.sshfl [vmem:[%s6072_s0 + $0x18] sm:$0x1 pattern:$0x75316420] }
 0x14d   :  { %3046 = vmatprep.subr.bf16.mxu0 %v4497_v8  ;;  %v4582_v8 = vld [vmem:[%s6075_s3 + $0x40] sm:$0xff]  }
 0x14f   :  { %2801 = vmatpush1.bf16.msra.mxu1 %v4492_v9  ;;  %v600_v9 = vrot.slane %v3462_v7, %v4813_v49  ;;  %v4586_v49 = vld [vmem:[%s6075_s3 + $0x50] sm:$0xff]  }
 0x150   :  { %3047 = vmatpush1.bf16.msra.mxu0 %v4495_v11  ;;  %2802 = vmatprep.subr.bf16.mxu1 %v4500_v12  ;;  %v4583_v11 = vld [vmem:[%s6075_s3] sm:$0xff]   ;;  %v4584_v12 = vld [vmem:[%s6075_s3 + $0x48] sm:$0xff]  }
 0x151   :  { %3048 = vmatprep.subr.bf16.mxu0 %v4503_v13  ;;  %v4585_v13 = vld [vmem:[%s6075_s3 + $0x8] sm:$0xff]  }
 0x153   :  { %2803 = vmatpush1.bf16.msra.mxu1 %v4498_v14  ;;  %v4587_v14 = vld [vmem:[%s6075_s3 + $0x10] sm:$0xff]  }
 0x154   :  { %3049 = vmatpush1.bf16.msra.mxu0 %v4501_v15  ;;  %2804 = vmatprep.subr.bf16.mxu1 %v4506_v16  ;;  %v4588_v15 = vld [vmem:[%s6075_s3 + $0x58] sm:$0xff]  }
 0x155   :  { %3050 = vmatprep.subr.bf16.mxu0 %v4509_v19  ;;  %v4589_v16 = vld [vmem:[%s6075_s3 + $0x18] sm:$0xff]   ;;  %v4590_v19 = vld [vmem:[%s6075_s3 + $0x60] sm:$0xff]  }
 0x157   :  { %2805 = vmatpush1.bf16.msra.mxu1 %v4504_v20  ;;  %v4591_v20 = vld [vmem:[%s6075_s3 + $0x20] sm:$0xff]  }
 0x158   :  { %3051 = vmatpush1.bf16.msra.mxu0 %v4507_v21  ;;  %2806 = vmatprep.subr.bf16.mxu1 %v4512_v52  ;;  %v4592_v21 = vld [vmem:[%s6075_s3 + $0x68] sm:$0xff]  }
 0x159   :  { %3052 = vmatprep.subr.bf16.mxu0 %v4515_v23  ;;  %v4593_v52 = vld [vmem:[%s6075_s3 + $0x28] sm:$0xff]   ;;  %v4594_v23 = vld [vmem:[%s6075_s3 + $0x70] sm:$0xff]  }
 0x15b   :  { %2807 = vmatpush1.bf16.msra.mxu1 %v4510_v24  ;;  %v4595_v24 = vld [vmem:[%s6075_s3 + $0x30] sm:$0xff]  }
 0x15c   :  { %3053 = vmatpush1.bf16.msra.mxu0 %v4513_v25  ;;  %2808 = vmatprep.subr.bf16.mxu1 %v4518_v26  ;;  %v4596_v25 = vld [vmem:[%s6075_s3 + $0x78] sm:$0xff]  }
 0x15d   :  { %3054 = vmatprep.subr.bf16.mxu0 %v4521_v27  ;;  %v4597_v26 = vld [vmem:[%s6075_s3 + $0x38] sm:$0xff]   ;;  %v4598_v27 = vld [vmem:[%s6077_s5] sm:$0xff]  }
 0x15f   :  { %2809 = vmatpush1.bf16.msra.mxu1 %v4516_v28  ;;  %v4634_v28 = vmov 0.0  }
 0x160   :  { %3055 = vmatpush1.bf16.msra.mxu0 %v4519_v29  ;;  %2810 = vmatprep.subr.bf16.mxu1 %v4524_v30  ;;  %v4599_v29 = vld [vmem:[%s6077_s5 + $0x8] sm:$0xff]   ;;  %v4600_v30 = vld [vmem:[%s6077_s5 + $0x10] sm:$0xff]  }
 0x161   :  { %3056 = vmatprep.subr.bf16.mxu0 %v4527_v31  ;;  %v4601_v31 = vld [vmem:[%s6077_s5 + $0x18] sm:$0xff]  }
 0x163   :  { %2811 = vmatpush1.bf16.msra.mxu1 %v4522_v32  ;;  %v4602_v32 = vld [vmem:[%s6077_s5 + $0x20] sm:$0xff]  }
 0x164   :  { %3057 = vmatpush1.bf16.msra.mxu0 %v4525_v17  ;;  %2812 = vmatprep.subr.bf16.mxu1 %v4530_v34  ;;  %v4603_v17 = vld [vmem:[%s6077_s5 + $0x28] sm:$0xff]  }
 0x165   :  { %3058 = vmatprep.subr.bf16.mxu0 %v4533_v36 }
 0x167   :  { %2813 = vmatpush1.bf16.msra.mxu1 %v4528_v37 }
 0x168   :  { %3059 = vmatpush1.bf16.msra.mxu0 %v4531_v38  ;;  %2814 = vmatprep.subr.bf16.mxu1 %v4536_v39  ;;  %v428_v39 = vsub.s32 0, %v4795_v42 }
 0x169   :  { %3060 = vmatprep.subr.bf16.mxu0 %v4539_v44  ;;  %v424_v44 = vld [vmem:[%s6074_s2] sm:$0x3] }
 0x16b   :  { %2815 = vmatpush1.bf16.msra.mxu1 %v4534_v45  ;;  %v432_v45 = vsub.s32 1, %v4795_v42  ;;  %v4604_v42 = vld [vmem:[%s6077_s5 + $0x30] sm:$0xff]  }
 0x16c   :  { %3061 = vmatpush1.bf16.msra.mxu0 %v4537_v33  ;;  %2816 = vmatprep.subr.bf16.mxu1 %v4542_v46  ;;  %v429_v33 = vrot.slane %v424_v44, %v428_v39 }
 0x16d   :  { %3062 = vmatprep.subr.bf16.mxu0 %v4545_v47  ;;  %v433_v46 = vrot.slane %v424_v44, %v432_v45 }
 0x16f   :  { %2817 = vmatpush1.bf16.msra.mxu1 %v4540_v48 }
 0x170   :  { %3063 = vmatpush1.bf16.msra.mxu0 %v4543_v18  ;;  %2818 = vmatprep.subr.bf16.mxu1 %v4548_v41 }
 0x171   :  { %3064 = vmatprep.subr.bf16.mxu0 %v4551_v50 }
 0x173   :  { %2819 = vmatpush1.bf16.msra.mxu1 %v4546_v51 }
 0x174   :  { %3065 = vmatpush1.bf16.msra.mxu0 %v4549_v53  ;;  %2820 = vmatprep.subr.bf16.mxu1 %v4554_v54 }
 0x175   :  { %3066 = vmatprep.subr.bf16.mxu0 %v4557_v55 }
 0x177   :  { %2821 = vmatpush1.bf16.msra.mxu1 %v4552_v56 }
 0x178   :  { %3067 = vmatpush1.bf16.msra.mxu0 %v4555_v57  ;;  %2822 = vmatprep.subr.bf16.mxu1 %v4560_v40 }
 0x179   :  { %3068 = vmatprep.subr.bf16.mxu0 %v4563_v43 }
 0x17b   :  { %2823 = vmatpush1.bf16.msra.mxu1 %v4558_v60 }
 0x17c   :  { %3069 = vmatpush1.bf16.msra.mxu0 %v4561_v63  ;;  %2824 = vmatprep.subr.bf16.mxu1 %v4566_v0  ;;  %v4605_v63 = vld [vmem:[%s6077_s5 + $0x38] sm:$0xff]   ;;  %s4636_s5 = smov 127  }
 0x17d   :  { %3070 = vmatprep.subr.bf16.mxu0 %v4569_v22  ;;  %v3856_v22 = vld [vmem:[%s6076_s4] ss:$0 sm:$0xff] }
 0x17f   :  { %2825 = vmatpush1.bf16.msra.mxu1 %v4564_v35 }
 0x180   :  { %3071 = vmatpush1.bf16.msra.mxu0 %v4567_v1  ;;  %3913 = vmatprep.subr.bf16.mxu1 %v4634_v28 }
 0x181   :  { %3081 = vmatprep.subr.bf16.mxu0 %v4572_v2 }
 0x182   :  { %2827 = vmatmul.mubr.bf16.vlgmr.msra.gmra.mrb[0].mxu1 %v534_v3 }
 0x183   :  { %3073 = vmatmul.mubr.bf16.vlgmr.msra.gmra.mrb[0].mxu0 %v584_v4  ;;  %3914 = vmatpush3.bf16.msra.mxu1 %v4598_v27 }
 0x184   :  { %3082 = vmatpush1.bf16.msra.mxu0 %v4570_v58  ;;  %3113 = vmatprep.mubr.bf16.mxu0 %v4633_v10  ;;  %v4579_v10 = vld [vmem:[%s6073_s1 + $0xc30] ss:$8 sps:$4 sm:$0xff]  }
 0x185   :  { %3083 = vmatprep.subr.bf16.mxu0 %v4575_v59  ;;  %3915 = vmatprep.subr.bf16.mxu1 %v4634_v28 }
 0x186   :  { %3929 = vmatprep.mubr.msk.bf16.mxu1 %vm4635_vm3, %v4634_v28 }
 0x187   :  { %3916 = vmatpush3.bf16.msra.mxu1 %v4599_v29 }
 0x188   :  { %3084 = vmatpush1.bf16.msra.mxu0 %v4573_v61  ;;  %3917 = vmatprep.subr.bf16.mxu1 %v4634_v28  ;;  %v3873_v61 = vld [vmem:[%s6078_s6] ss:$0 sm:$0xff] }
 0x189   :  { %3085 = vmatprep.subr.bf16.mxu0 %v4578_v62 }
 0x18b   :  { %3918 = vmatpush3.bf16.msra.mxu1 %v4600_v30 }
 0x18c   :  { %3086 = vmatpush1.bf16.msra.mxu0 %v4576_v5  ;;  %3919 = vmatprep.subr.bf16.mxu1 %v4634_v28 }
 0x18d   :  { %3087 = vmatprep.subr.bf16.mxu0 %v4581_v6 }
 0x18f   :  { %3920 = vmatpush3.bf16.msra.mxu1 %v4601_v31 }
 0x190   :  { %3088 = vmatpush1.bf16.msra.mxu0 %v4579_v10  ;;  %3921 = vmatprep.subr.bf16.mxu1 %v4634_v28 }
 0x191   :  { %3882 = vmatprep.subr.bf16.mxu0 %v4582_v8 }
 0x193   :  { %3855 = vmatmul.mubr.msk.bf16.vlgmr.msra.gmra.mrb[0].mxu0 %vm2585_vm0, %v600_v9  ;;  %3922 = vmatpush3.bf16.msra.mxu1 %v4602_v32 }
 0x194   :  { %3883 = vmatpush3.bf16.msra.mxu0 %v4583_v11  ;;  %3923 = vmatprep.subr.bf16.mxu1 %v4634_v28 }
 0x195   :  { %3884 = vmatprep.subr.bf16.mxu0 %v4584_v12 }
 0x197   :  { %3924 = vmatpush3.bf16.msra.mxu1 %v4603_v17 }
 0x198   :  { %3885 = vmatpush3.bf16.msra.mxu0 %v4585_v13  ;;  %3925 = vmatprep.subr.bf16.mxu1 %v4634_v28 }
 0x199   :  { %3886 = vmatprep.subr.bf16.mxu0 %v4586_v49 }
 0x19b   :  { %3926 = vmatpush3.bf16.msra.mxu1 %v4604_v42 }
 0x19c   :  { %3887 = vmatpush3.bf16.msra.mxu0 %v4587_v14  ;;  %3927 = vmatprep.subr.bf16.mxu1 %v4634_v28 }
 0x19d   :  { %3888 = vmatprep.subr.bf16.mxu0 %v4588_v15 }
 0x19f   :  { %3928 = vmatpush3.bf16.msra.mxu1 %v4605_v63 }
 0x1a0   :  { %3889 = vmatpush3.bf16.msra.mxu0 %v4589_v16 }
 0x1a1   :  { %3890 = vmatprep.subr.bf16.mxu0 %v4590_v19 }
 0x1a4   :  { %3891 = vmatpush3.bf16.msra.mxu0 %v4591_v20 }
 0x1a5   :  { %3892 = vmatprep.subr.bf16.mxu0 %v4592_v21 }
 0x1a8   :  { %3893 = vmatpush3.bf16.msra.mxu0 %v4593_v52 }
 0x1a9   :  { %3894 = vmatprep.subr.bf16.mxu0 %v4594_v23 }
 0x1ac   :  { %3895 = vmatpush3.bf16.msra.mxu0 %v4595_v24 }
 0x1ad   :  { %3896 = vmatprep.subr.bf16.mxu0 %v4596_v25 }
 0x1b0   :  { %3897 = vmatpush3.bf16.msra.mxu0 %v4597_v26 }
 0x255   :  { %v2828_v34 = vpop.f32.mrb[0].mxu1 }
 0x256   :  { %v2830_v36 = vpop.f32.mrb[1].mxu1  ;;  %v3933_v47 = vadd.f32 %v2828_v34, %v429_v33 }
 0x257   :  { %v2832_v37 = vpop.f32.mrb[2].mxu1  ;;  %v3935_v48 = vadd.f32 %v2830_v36, %v433_v46 }
 0x258   :  { %v2833_v38 = vpop.f32.mrb[3].mxu1 }
 0x266   :  { %v3115_v18 = vpop.f32.mrb[0].mxu0 }
 0x267   :  { %v3934_v41 = vadd.f32 %v3933_v47, %v3115_v18  ;;  %v3117_v50 = vpop.f32.mrb[1].mxu0 }
 0x268   :  { %v3936_v51 = vadd.f32 %v3935_v48, %v3117_v50  ;;  %v3119_v53 = vpop.f32.mrb[2].mxu0 }
 0x269   :  { %vm3122_vm1 = vcmp.gt.f32.partialorder %v3934_v41, 0.0  ;;  %v3124_v54 = vmul.f32 0.01, %v3934_v41  ;;  %v3120_v55 = vpop.f32.mrb[3].mxu0 }
 0x26a   :  { %vm3123_vm2 = vcmp.gt.f32.partialorder %v3936_v51, 0.0  ;;  %v3125_v56 = vmul.f32 0.01, %v3936_v51 }
 0x26b   :  { %v3126_v57 = vsel %vm3122_vm1, %v3934_v41, %v3124_v54 }
 0x26c   :  { %v3127_v40 = vsel %vm3123_vm2, %v3936_v51, %v3125_v56  ;;  %v3128_v60 = vpack.c.bf16 %v3126_v57, %v3126_v57 }
 0x26d   :  { %v3129_v43 = vpack.c.bf16 %v3127_v40, %v3127_v40 }
 0x26f   :  { %3297 = vmatprep.mubr.bf16.mxu0 %v3129_v43 }
 0x270   :  { %3298 = vmatmul.mubr.bf16.vlgmr.msra.gmra.mrb[4].mxu0 %v3128_v60 }
 0x343   :  { %v3898_v0 = vpop.f32.mrb[4].mxu0 }
 0x344   :  { %v3899_v35 = vpop.f32.mrb[5].mxu0 }
 0x345   :  { %v3900_v1 = vadd.f32 %v3899_v35, %v3898_v0  ;;  %v3901_v2 = vpop.f32.mrb[6].mxu0 }
 0x346   :  { %v3902_v3 = vpop.f32.mrb[7].mxu0 }
 0x347   :  { %v3300_v4 = vadd.f32 %v3900_v1, %v3856_v22 }
 0x349   :  { %v3305_v58 = vmax.f32 %v3300_v4, 0.0 }
 0x34b   :  { %v3306_v59 = vpack.c.bf16 %v3305_v58, %v3305_v58 }
 0x34d   :  { %3930 = vmatmul.mubr.bf16.vlgmr.msra.gmra.mrb[4].mxu1 %v3306_v59 }
 0x420   :  { %v3412_v62 = vpop.f32.mrb[4].mxu1 }
 0x421   :  { %v3413_v5 = vadd.f32 %v3873_v61, %v3412_v62  ;;  %v3931_v6 = vpop.f32.mrb[5].mxu1 }
 0x422   :  { %v3415_v10 = vpop.f32.mrb[6].mxu1 }
 0x423   :  { %3439 = vperm.xlu1 %3989, %v3413_v5   ;;  %3419 = vrot.lane.b32.xlu0 %v3413_v5, %s4636_s5  ;;  %v3932_v7 = vpop.f32.mrb[7].mxu1 }
 0x495   :  { %v3420_v8 = vpop.permute.xlu0 %3419 }
 0x496   :  { %v3423_v9 = vsel %vm3422_vm4, %v3420_v8, 0.0 }
 0x497   :  { %3424 = vadd.xlane.f32.xlu0 %v3423_v9 }
 0x4a2   :  { %v3440_v21 = vpop.permute.xlu1 %3439 }
 0x524   :  { %v3425_v11 = vpop.xlane.xlu0 %3424 }
 0x525   :  { %v3426_v12 = vrot.slane %v3425_v11, 4 }
 0x527   :  { %v3427_v13 = vadd.f32 %v3426_v12, %v3425_v11 }
 0x529   :  { %v3428_v49 = vrot.slane %v3427_v13, 2 }
 0x52b   :  { %v3429_v14 = vadd.f32 %v3428_v49, %v3427_v13 }
 0x52d   :  { %v3430_v15 = vrot.slane %v3429_v14, 1 }
 0x52f   :  { %v3431_v16 = vadd.f32 %v3430_v15, %v3429_v14 }
 0x531   :  { %3981 = vpush %v3431_v16 }
 0x562   :  { %s3982_s4 = spop %3981 }
 0x563   :  { %s3435_s6 = smul.f32 0.083333336, %s3982_s4 }
 0x565   :  { %v3436_v19 = vstv %s3435_s6 }
 0x566   :  { %v3437_v20 = vsub.f32 %v3413_v5, %v3436_v19 }
 0x568   :  { %v3442_v52 = vadd.f32 %v3440_v21, %v3437_v20 }
 0x56a   :  { %3444 = vrot.lane.b32.xlu1 %v3442_v52, %s4636_s5 }
 0x5dc   :  { %v3445_v23 = vpop.permute.xlu1 %3444 }
 0x5dd   :  { %3447 = vst.msk [vmem:[#allocation2] sm:$0x3] %vm3422_vm4, %v3445_v23 }
 0x5de   :  { %4619 = shalt.err (!%p4616_p4)
}
 0x5df   :  { %s4620_s18 = scalar_lea.hbm %s6079_s7, 32 }
 0x5e0   :  { %p4621_p5 = scmp.ne.s32.totalorder %s6079_s7, %s4620_s18  ;;  %p4624_p6 = scmp.lt.u32.totalorder %s4620_s18, %s6079_s7 }
 0x5e2   :  { %p4626_p7 = pnand %p4624_p6, %p4621_p5 }
 0x5e4   :  { %4629 = shalt.err (!%p4626_p7)
}
 0x5e5   :  { %3457 = dma.vmem_to_hbm [thread:$0]  %s3455_s16, 32, %s6079_s7, [#allocation3]  }
 0x5e6   :  { %4630 = dma.done.wait [#allocation3], 32  }
 0x5e7   :  { %4631 = vsyncadd [#allocation3], 4294967264 }
 0x5e8   :  { %3461 = vsyncpa [#allocation3], 1 }

</bundles_post_ra>
